<compile_context>
chip_gen: v6e
topology: v6e:2x2x1
jax: 0.10.0
libtpu: 0.0.40
codegen_flags: <defaults>
</compile_context>

<pallas_src>
import functools

import jax
import jax.numpy as jnp
from jax.experimental import pallas as pl
from jax.experimental.pallas import tpu as pltpu

N_HEAD = 8
_NEG = -1e30  # additive mask for key positions beyond the in-batch max length


def _round_up(x, m):
    return (x + m - 1) // m * m


# ----------------------------------------------------------------------------
# Fused kernel: one grid step == one block of B_BLK batch elements, all in VMEM.
# ----------------------------------------------------------------------------
def _aen_kernel(ctx_ref, tgt_ref, neg_ref, poolc_ref, poolt_ref,
                wctx_ref, wtgt_ref, whc_ref, wht_ref, wffn_ref,
                dw_ref, bsc_ref, bval_ref, bffn_ref, bd_ref,
                out_ref, *, n_head, hdim, b_blk, lcp, ltp, mm_dtype):
    f32 = jnp.float32
    hv = n_head * hdim

    def mm(a, b):
        return jnp.dot(a.astype(mm_dtype), b.astype(mm_dtype),
                       preferred_element_type=f32)

    # Flatten the batch block: (B_BLK, L, D) -> (B_BLK*L, D) is a free
    # re-labelling because L was padded to a multiple of 8 on the host.
    ctx = ctx_ref[...].reshape(b_blk * lcp, -1)
    tgt = tgt_ref[...].reshape(b_blk * ltp, -1)
    neg = neg_ref[...].reshape(1, 1, 1, lcp)      # -1e30 past batch-max keys

    def attention(kdot, qdot, v, b_score, b_val, lk, lq):
        """Multi-head 'mlp'-score attention, head-batched.

        kdot/qdot: (B*lk, nh) / (B*lq, nh)  separable score terms
        v:         (B*lk, nh*H)             per-head value slabs (proj folded in)
        """
        kd = jnp.swapaxes((kdot + b_score).reshape(b_blk, lk, n_head), -1, -2)
        qd = jnp.swapaxes(qdot.reshape(b_blk, lq, n_head), -1, -2)
        # No row-max subtraction: tanh bounds scores to [-1, 1]; masked keys are
        # -1e30 so exp underflows to exactly 0.  Reinstate the max if the score
        # function ever changes.
        s = jnp.tanh(qd[:, :, :, None] + kd[:, :, None, :]) + neg   # (B,nh,lq,lk)
        e = jnp.exp(s)
        p = e * pl.reciprocal(jnp.sum(e, axis=-1, keepdims=True), approx=True)
        v3 = v.reshape(b_blk, lk, hv)
        acc = jnp.zeros((b_blk, lq, hdim), f32)
        for h in range(n_head):                   # unrolled; N=hdim lanes each
            acc = acc + jnp.einsum(
                'bqk,bkm->bqm',
                p[:, h].astype(mm_dtype),
                v3[:, :, h * hdim:(h + 1) * hdim].astype(mm_dtype),
                preferred_element_type=f32)
        return acc + b_val.reshape(1, 1, hdim)

    def ffn(x_flat, w1, w2, b1, b2):
        y = jnp.maximum(mm(x_flat, w1) + b1, 0.0)
        return mm(y, w2) + b2

    # One wide matmul covers all five ctx-side projections (attn_k & attn_q).
    ctx_proj = mm(ctx, wctx_ref[...])             # (B*Lc, 2*nh*H + 3*nh)
    v_k = ctx_proj[:, 0:hv]
    v_q = ctx_proj[:, hv:2 * hv]
    kdot_k = ctx_proj[:, 2 * hv:2 * hv + n_head]
    qdot_k = ctx_proj[:, 2 * hv + n_head:2 * hv + 2 * n_head]
    kdot_q = ctx_proj[:, 2 * hv + 2 * n_head:2 * hv + 3 * n_head]
    qdot_q = mm(tgt, wtgt_ref[...])               # (B*Lt, nh)

    bsc_k, bsc_q, bsc_s = bsc_ref[0:1, :], bsc_ref[1:2, :], bsc_ref[2:3, :]
    bv_k, bv_q, bv_s = bval_ref[0:1, :], bval_ref[1:2, :], bval_ref[2:3, :]
    bc1, bc2 = bffn_ref[0:1, :], bffn_ref[1:2, :]
    bt1, bt2 = bffn_ref[2:3, :], bffn_ref[3:4, :]

    hc = attention(kdot_k, qdot_k, v_k, bsc_k, bv_k, lcp, lcp)        # (B,Lc,H)
    hc = ffn(hc.reshape(b_blk * lcp, hdim), wffn_ref[0], wffn_ref[1], bc1, bc2)
    ht = attention(kdot_q, qdot_q, v_q, bsc_q, bv_q, lcp, ltp)        # (B,Lt,H)
    ht = ffn(ht.reshape(b_blk * ltp, hdim), wffn_ref[2], wffn_ref[3], bt1, bt2)

    # attn_s1: keys = hc, queries = ht
    hc_proj = mm(hc, whc_ref[...])                # (B*Lc, nh*H + nh)
    v_s = hc_proj[:, 0:hv]
    kdot_s = hc_proj[:, hv:hv + n_head]
    qdot_s = mm(ht, wht_ref[...])                 # (B*Lt, nh)
    s1 = attention(kdot_s, qdot_s, v_s, bsc_s, bv_s, lcp, ltp)        # (B,Lt,H)

    # Masked, length-normalised pooling (weights are 0 past the batch-max and
    # 1/len[b] otherwise -> identical to the reference truncate-then-mean).
    hc3 = hc.reshape(b_blk, lcp, hdim)
    ht3 = ht.reshape(b_blk, ltp, hdim)
    pool_c = poolc_ref[...]                       # (B, Lc, 1)
    pool_t = poolt_ref[...]                       # (B, Lt, 2)
    hc_mean = jnp.sum(hc3 * pool_c, axis=1)       # (B, H)
    ht_mean = jnp.sum(ht3 * pool_t[:, :, 0:1], axis=1)
    s1_mean = jnp.sum(s1 * pool_t[:, :, 1:2], axis=1)

    dw = dw_ref[...]                              # (3H, pol), rows: hc | s1 | ht
    logits = (mm(hc_mean, dw[0:hdim, :])
              + mm(s1_mean, dw[hdim:2 * hdim, :])
              + mm(ht_mean, dw[2 * hdim:3 * hdim, :])
              + bd_ref[...])
    out_ref[...] = logits.reshape(b_blk, 1, logits.shape[-1])


# ----------------------------------------------------------------------------
# Host-side weight packing & wrapper
# ----------------------------------------------------------------------------
def _pack_attention(p, n_head):
    """Fold the per-head MLP-score reductions into K/Q projections and the
    output projection into per-head value slabs."""
    d_in, nh_hd = p["w_k"].shape
    hd = nh_hd // n_head
    out_dim = p["proj_w"].shape[1]
    wk_sc, wq_sc = p["score_w"][:hd], p["score_w"][hd:]
    wk3 = p["w_k"].reshape(d_in, n_head, hd)
    wq3 = p["w_q"].reshape(d_in, n_head, hd)
    bk2 = p["b_k"].reshape(n_head, hd)
    bq2 = p["b_q"].reshape(n_head, hd)
    pw3 = p["proj_w"].reshape(n_head, hd, out_dim)
    wks = jnp.einsum('dnh,h->dn', wk3, wk_sc)                  # (d_in, nh)
    wqs = jnp.einsum('dnh,h->dn', wq3, wq_sc)                  # (d_in, nh)
    b_score = bk2 @ wk_sc + bq2 @ wq_sc                        # (nh,)
    wv = jnp.einsum('dnh,nho->dno', wk3, pw3).reshape(d_in, n_head * out_dim)
    # Softmax rows sum to 1, so the key-side bias contribution collapses to a
    # constant that folds into the projection bias.
    b_val = p["proj_b"] + jnp.einsum('nh,nho->o', bk2, pw3)    # (out_dim,)
    return wks, wqs, wv, b_score, b_val


def aen_bert_forward(params, context_ids, target_ids, *, n_head=N_HEAD,
                     b_blk=4, mm_dtype=jnp.float32):
    """context_ids/target_ids: (B, L) int32, id 0 == [PAD]."""
    bsz, lc = context_ids.shape
    lt = target_ids.shape[1]
    lcp, ltp = _round_up(lc, 8), _round_up(lt, 8)   # free in-kernel reshapes
    bp = _round_up(bsz, b_blk)

    ctx_ids = jnp.pad(context_ids, ((0, bp - bsz), (0, lcp - lc)))
    tgt_ids = jnp.pad(target_ids, ((0, bp - bsz), (0, ltp - lt)))

    clen_raw = jnp.sum(ctx_ids != 0, axis=-1)
    tlen_raw = jnp.sum(tgt_ids != 0, axis=-1)
    clen = jnp.maximum(clen_raw, 1).astype(jnp.float32)   # guard all-PAD rows
    tlen = jnp.maximum(tlen_raw, 1).astype(jnp.float32)
    cmax = jnp.max(clen_raw)
    tmax = jnp.max(tlen_raw)

    # SqueezeEmbedding without a host sync: static padded shapes + masks.
    cmask = (jnp.arange(lcp) < cmax).astype(jnp.float32)
    tmask = (jnp.arange(ltp) < tmax).astype(jnp.float32)
    neg_c = ((1.0 - cmask) * _NEG).reshape(1, lcp)
    pool_c = (cmask[None, :] / clen[:, None]).reshape(bp, lcp, 1)
    pool_t = jnp.stack([tmask[None, :] / tlen[:, None],
                        tmask[None, :] / clen[:, None]], axis=-1)   # (Bp,Lt,2)

    # TODO(synk): external pretrained BERT encoder not reproduced; stand-in is a
    # deterministic embedding lookup yielding (B, L, bert_dim) like bert(...)[0].
    ctx = params["bert_emb"][ctx_ids]
    tgt = params["bert_emb"][tgt_ids]
    dbert = ctx.shape[-1]
    hdim = params["dense_w"].shape[0] // 3
    pol = params["dense_w"].shape[1]

    wks_k, wqs_k, wv_k, bs_k, bv_k = _pack_attention(params["attn_k"], n_head)
    wks_q, wqs_q, wv_q, bs_q, bv_q = _pack_attention(params["attn_q"], n_head)
    wks_s, wqs_s, wv_s, bs_s, bv_s = _pack_attention(params["attn_s1"], n_head)

    # 15 lane-dense input slabs (was ~40 tiny arrays).
    w_ctx = jnp.concatenate([wv_k, wv_q, wks_k, wqs_k, wks_q], axis=1)
    w_tgt = wqs_q
    w_hc = jnp.concatenate([wv_s, wks_s], axis=1)
    w_ht = wqs_s
    w_ffn = jnp.stack([params["ffn_c"]["w1"], params["ffn_c"]["w2"],
                       params["ffn_t"]["w1"], params["ffn_t"]["w2"]], axis=0)
    b_score = jnp.stack([bs_k, bs_q, bs_s], axis=0)              # (3, nh)
    b_val = jnp.stack([bv_k, bv_q, bv_s], axis=0)                # (3, H)
    b_ffn = jnp.stack([params["ffn_c"]["b1"], params["ffn_c"]["b2"],
                       params["ffn_t"]["b1"], params["ffn_t"]["b2"]], axis=0)
    dense_w = params["dense_w"]
    dense_b = params["dense_b"].reshape(1, -1)

    def blocked(shape):
        return pl.BlockSpec(shape, lambda b: (b, 0, 0))

    def shared2(arr):
        return pl.BlockSpec(arr.shape, lambda b: (0, 0))

    def shared3(arr):
        return pl.BlockSpec(arr.shape, lambda b: (0, 0, 0))

    in_specs = [
        blocked((b_blk, lcp, dbert)),                 # ctx
        blocked((b_blk, ltp, dbert)),                 # tgt
        pl.BlockSpec((1, lcp), lambda b: (0, 0)),     # neg_c (shared)
        blocked((b_blk, lcp, 1)),                     # pool_c
        blocked((b_blk, ltp, 2)),                     # pool_t
        shared2(w_ctx), shared2(w_tgt), shared2(w_hc), shared2(w_ht),
        shared3(w_ffn),
        shared2(dense_w), shared2(b_score), shared2(b_val), shared2(b_ffn),
        shared2(dense_b),
    ]

    kernel = functools.partial(_aen_kernel, n_head=n_head, hdim=hdim,
                               b_blk=b_blk, lcp=lcp, ltp=ltp, mm_dtype=mm_dtype)
    out = pl.pallas_call(
        kernel,
        out_shape=jax.ShapeDtypeStruct((bp, 1, pol), jnp.float32),
        grid=(bp // b_blk,),
        in_specs=in_specs,
        out_specs=pl.BlockSpec((b_blk, 1, pol), lambda b: (b, 0, 0)),
        compiler_params=pltpu.CompilerParams(
            dimension_semantics=("parallel",)),
    )(ctx, tgt, neg_c, pool_c, pool_t,
      w_ctx, w_tgt, w_hc, w_ht, w_ffn,
      dense_w, b_score, b_val, b_ffn, dense_b)
    return out.reshape(bp, pol)[:bsz]


# ----------------------------------------------------------------------------
# Pure-JAX reference (eager; faithful port of the PyTorch module) for checking
# ----------------------------------------------------------------------------
def _attention_ref(p, k, q, n_head):
    bsz, klen, _ = k.shape
    qlen = q.shape[1]
    hd = p["w_k"].shape[1] // n_head
    kx = k @ p["w_k"] + p["b_k"]
    qx = q @ p["w_q"] + p["b_q"]
    kx = kx.reshape(bsz, klen, n_head, hd).transpose(2, 0, 1, 3).reshape(
        n_head * bsz, klen, hd)
    qx = qx.reshape(bsz, qlen, n_head, hd).transpose(2, 0, 1, 3).reshape(
        n_head * bsz, qlen, hd)
    kxx = jnp.broadcast_to(kx[:, None, :, :], (n_head * bsz, qlen, klen, hd))
    qxx = jnp.broadcast_to(qx[:, :, None, :], (n_head * bsz, qlen, klen, hd))
    kq = jnp.concatenate([kxx, qxx], axis=-1)
    score = jax.nn.softmax(jnp.tanh(jnp.einsum('...d,d->...', kq, p["score_w"])),
                           axis=-1)
    output = score @ kx
    output = jnp.concatenate(jnp.split(output, n_head, axis=0), axis=-1)
    return output @ p["proj_w"] + p["proj_b"]


def _ffn_ref(p, x):
    return jnp.maximum(x @ p["w1"] + p["b1"], 0.0) @ p["w2"] + p["b2"]


def aen_bert_reference(params, context_ids, target_ids, n_head=N_HEAD):
    clen = jnp.sum(context_ids != 0, axis=-1).astype(jnp.float32)
    tlen = jnp.sum(target_ids != 0, axis=-1).astype(jnp.float32)
    cmax, tmax = int(jnp.max(clen)), int(jnp.max(tlen))
    ctx = params["bert_emb"][context_ids[:, :cmax]]
    tgt = params["bert_emb"][target_ids[:, :tmax]]
    hc = _ffn_ref(params["ffn_c"], _attention_ref(params["attn_k"], ctx, ctx, n_head))
    ht = _ffn_ref(params["ffn_t"], _attention_ref(params["attn_q"], ctx, tgt, n_head))
    s1 = _attention_ref(params["attn_s1"], hc, ht, n_head)
    hc_mean = jnp.sum(hc, axis=1) / clen[:, None]
    ht_mean = jnp.sum(ht, axis=1) / tlen[:, None]
    s1_mean = jnp.sum(s1, axis=1) / clen[:, None]
    x = jnp.concatenate([hc_mean, s1_mean, ht_mean], axis=-1)
    return x @ params["dense_w"] + params["dense_b"]


# ----------------------------------------------------------------------------
# Deterministic parameter initialization (same structure as the PyTorch module)
# ----------------------------------------------------------------------------
def init_params(key, vocab=50, bert_dim=32, hidden_dim=32, n_head=N_HEAD,
                polarities=3):
    keys = iter(jax.random.split(key, 64))

    def nrm(shape, scale=0.1):
        return scale * jax.random.normal(next(keys), shape, dtype=jnp.float32)

    def attn_params(embed_dim, out_dim):
        hd = embed_dim // n_head
        return {
            "w_k": nrm((embed_dim, n_head * hd)), "b_k": nrm((n_head * hd,)),
            "w_q": nrm((embed_dim, n_head * hd)), "b_q": nrm((n_head * hd,)),
            "proj_w": nrm((n_head * hd, out_dim)), "proj_b": nrm((out_dim,)),
            "score_w": nrm((2 * hd,)),
        }

    def ffn_params(h):
        return {"w1": nrm((h, h)), "b1": nrm((h,)),
                "w2": nrm((h, h)), "b2": nrm((h,))}

    return {
        "bert_emb": nrm((vocab, bert_dim), scale=1.0),
        "attn_k": attn_params(bert_dim, hidden_dim),
        "attn_q": attn_params(bert_dim, hidden_dim),
        "ffn_c": ffn_params(hidden_dim),
        "ffn_t": ffn_params(hidden_dim),
        "attn_s1": attn_params(hidden_dim, hidden_dim),
        "dense_w": nrm((hidden_dim * 3, polarities)),
        "dense_b": nrm((polarities,)),
    }


if __name__ == "__main__":
    key = jax.random.PRNGKey(0)
    kp, kc, kt = jax.random.split(key, 3)
    params = init_params(kp, vocab=50, bert_dim=32, hidden_dim=32,
                         n_head=N_HEAD, polarities=3)

    B, Lc, Lt = 6, 12, 8
    ctx_ids = jax.random.randint(kc, (B, Lc), 1, 50, dtype=jnp.int32)
    tgt_ids = jax.random.randint(kt, (B, Lt), 1, 50, dtype=jnp.int32)
    clens = [10, 7, 12, 5, 9, 11]
    tlens = [6, 4, 8, 3, 5, 7]
    for b in range(B):          # right-pad with zeros (id 0 == [PAD])
        ctx_ids = ctx_ids.at[b, clens[b]:].set(0)
        tgt_ids = tgt_ids.at[b, tlens[b]:].set(0)

    fwd = jax.jit(aen_bert_forward)        # fully jittable: no host sync
    out = jax.block_until_ready(fwd(params, ctx_ids, tgt_ids))
    assert out.shape == (B, 3) and out.dtype == jnp.float32
    assert bool(jnp.all(jnp.isfinite(out)))

    ref = aen_bert_reference(params, ctx_ids, tgt_ids)
    assert bool(jnp.allclose(out, ref, rtol=2e-2, atol=2e-2)), (out, ref)
    print("KERNEL_OK")
</pallas_src>

<mosaic_0001>
module attributes {stable_mosaic.version = 11 : i64} {
  func.func @_aen_kernel(%arg0: i32, %arg1: memref<4x16x32xf32, #tpu.memory_space<vmem>>, %arg2: memref<4x8x32xf32, #tpu.memory_space<vmem>>, %arg3: memref<1x16xf32, #tpu.memory_space<vmem>>, %arg4: memref<4x16x1xf32, #tpu.memory_space<vmem>>, %arg5: memref<4x8x2xf32, #tpu.memory_space<vmem>>, %arg6: memref<32x536xf32, #tpu.memory_space<vmem>>, %arg7: memref<32x8xf32, #tpu.memory_space<vmem>>, %arg8: memref<32x264xf32, #tpu.memory_space<vmem>>, %arg9: memref<32x8xf32, #tpu.memory_space<vmem>>, %arg10: memref<4x32x32xf32, #tpu.memory_space<vmem>>, %arg11: memref<96x3xf32, #tpu.memory_space<vmem>>, %arg12: memref<3x8xf32, #tpu.memory_space<vmem>>, %arg13: memref<3x32xf32, #tpu.memory_space<vmem>>, %arg14: memref<4x32xf32, #tpu.memory_space<vmem>>, %arg15: memref<1x3xf32, #tpu.memory_space<vmem>>, %arg16: memref<4x1x3xf32, #tpu.memory_space<vmem>>) attributes {dimension_semantics = [#tpu.dimension_semantics<parallel>], iteration_bounds = array<i64: 2>, scalar_prefetch = 0 : i64, scratch_operands = 0 : i64, tpu.core_type = #tpu.core_type<tc>, window_params = [{transform_indices = @transform_0, window_bounds = array<i64: 4, 16, 32>}, {transform_indices = @transform_1, window_bounds = array<i64: 4, 8, 32>}, {pipeline_mode = #tpu.pipeline_mode<synchronous>, transform_indices = @transform_2, window_bounds = array<i64: 1, 16>}, {transform_indices = @transform_3, window_bounds = array<i64: 4, 16, 1>}, {transform_indices = @transform_4, window_bounds = array<i64: 4, 8, 2>}, {pipeline_mode = #tpu.pipeline_mode<synchronous>, transform_indices = @transform_5, window_bounds = array<i64: 32, 536>}, {pipeline_mode = #tpu.pipeline_mode<synchronous>, transform_indices = @transform_6, window_bounds = array<i64: 32, 8>}, {pipeline_mode = #tpu.pipeline_mode<synchronous>, transform_indices = @transform_7, window_bounds = array<i64: 32, 264>}, {pipeline_mode = #tpu.pipeline_mode<synchronous>, transform_indices = @transform_8, window_bounds = array<i64: 32, 8>}, {pipeline_mode = #tpu.pipeline_mode<synchronous>, transform_indices = @transform_9, window_bounds = array<i64: 4, 32, 32>}, {pipeline_mode = #tpu.pipeline_mode<synchronous>, transform_indices = @transform_10, window_bounds = array<i64: 96, 3>}, {pipeline_mode = #tpu.pipeline_mode<synchronous>, transform_indices = @transform_11, window_bounds = array<i64: 3, 8>}, {pipeline_mode = #tpu.pipeline_mode<synchronous>, transform_indices = @transform_12, window_bounds = array<i64: 3, 32>}, {pipeline_mode = #tpu.pipeline_mode<synchronous>, transform_indices = @transform_13, window_bounds = array<i64: 4, 32>}, {pipeline_mode = #tpu.pipeline_mode<synchronous>, transform_indices = @transform_14, window_bounds = array<i64: 1, 3>}, {transform_indices = @transform_15, window_bounds = array<i64: 4, 1, 3>}]} {
    %c0 = arith.constant 0 : index
    %c0_0 = arith.constant 0 : index
    %c0_1 = arith.constant 0 : index
    %0 = vector.load %arg1[%c0, %c0_0, %c0_1] : memref<4x16x32xf32, #tpu.memory_space<vmem>>, vector<4x16x32xf32>
    %1 = vector.shape_cast %0 : vector<4x16x32xf32> to vector<64x32xf32>
    %c0_2 = arith.constant 0 : index
    %c0_3 = arith.constant 0 : index
    %c0_4 = arith.constant 0 : index
    %2 = vector.load %arg2[%c0_2, %c0_3, %c0_4] : memref<4x8x32xf32, #tpu.memory_space<vmem>>, vector<4x8x32xf32>
    %3 = vector.shape_cast %2 : vector<4x8x32xf32> to vector<32x32xf32>
    %c0_5 = arith.constant 0 : index
    %c0_6 = arith.constant 0 : index
    %4 = vector.load %arg3[%c0_5, %c0_6] : memref<1x16xf32, #tpu.memory_space<vmem>>, vector<1x16xf32>
    %5 = vector.shape_cast %4 : vector<1x16xf32> to vector<1x1x1x16xf32>
    %c0_7 = arith.constant 0 : index
    %c0_8 = arith.constant 0 : index
    %6 = vector.load %arg6[%c0_7, %c0_8] : memref<32x536xf32, #tpu.memory_space<vmem>>, vector<32x536xf32>
    %cst = arith.constant dense<0.000000e+00> : vector<64x536xf32>
    %7 = tpu.matmul %1, %6, %cst {dimension_numbers = #tpu.dot_dimension_numbers<[1], [0], [0], [1], [0, 0, 1, 1], [], []>} : vector<64x32xf32>, vector<32x536xf32>, vector<64x536xf32> -> vector<64x536xf32>
    %8 = vector.extract_strided_slice %7 {offsets = [0, 0], sizes = [64, 256], strides = [1, 1]} : vector<64x536xf32> to vector<64x256xf32>
    %9 = vector.extract_strided_slice %7 {offsets = [0, 256], sizes = [64, 256], strides = [1, 1]} : vector<64x536xf32> to vector<64x256xf32>
    %10 = vector.extract_strided_slice %7 {offsets = [0, 512], sizes = [64, 8], strides = [1, 1]} : vector<64x536xf32> to vector<64x8xf32>
    %11 = vector.extract_strided_slice %7 {offsets = [0, 520], sizes = [64, 8], strides = [1, 1]} : vector<64x536xf32> to vector<64x8xf32>
    %12 = vector.extract_strided_slice %7 {offsets = [0, 528], sizes = [64, 8], strides = [1, 1]} : vector<64x536xf32> to vector<64x8xf32>
    %c0_9 = arith.constant 0 : index
    %c0_10 = arith.constant 0 : index
    %13 = vector.load %arg7[%c0_9, %c0_10] : memref<32x8xf32, #tpu.memory_space<vmem>>, vector<32x8xf32>
    %cst_11 = arith.constant dense<0.000000e+00> : vector<32x8xf32>
    %14 = tpu.matmul %3, %13, %cst_11 {dimension_numbers = #tpu.dot_dimension_numbers<[1], [0], [0], [1], [0, 0, 1, 1], [], []>} : vector<32x32xf32>, vector<32x8xf32>, vector<32x8xf32> -> vector<32x8xf32>
    %c0_12 = arith.constant 0 : index
    %c0_13 = arith.constant 0 : index
    %15 = vector.load %arg12[%c0_12, %c0_13] : memref<3x8xf32, #tpu.memory_space<vmem>>, vector<1x8xf32>
    %c1 = arith.constant 1 : index
    %c0_14 = arith.constant 0 : index
    %16 = vector.load %arg12[%c1, %c0_14] : memref<3x8xf32, #tpu.memory_space<vmem>>, vector<1x8xf32>
    %c2 = arith.constant 2 : index
    %c0_15 = arith.constant 0 : index
    %17 = vector.load %arg12[%c2, %c0_15] : memref<3x8xf32, #tpu.memory_space<vmem>>, vector<1x8xf32>
    %c0_16 = arith.constant 0 : index
    %c0_17 = arith.constant 0 : index
    %18 = vector.load %arg13[%c0_16, %c0_17] : memref<3x32xf32, #tpu.memory_space<vmem>>, vector<1x32xf32>
    %c1_18 = arith.constant 1 : index
    %c0_19 = arith.constant 0 : index
    %19 = vector.load %arg13[%c1_18, %c0_19] : memref<3x32xf32, #tpu.memory_space<vmem>>, vector<1x32xf32>
    %c2_20 = arith.constant 2 : index
    %c0_21 = arith.constant 0 : index
    %20 = vector.load %arg13[%c2_20, %c0_21] : memref<3x32xf32, #tpu.memory_space<vmem>>, vector<1x32xf32>
    %c0_22 = arith.constant 0 : index
    %c0_23 = arith.constant 0 : index
    %21 = vector.load %arg14[%c0_22, %c0_23] : memref<4x32xf32, #tpu.memory_space<vmem>>, vector<1x32xf32>
    %c1_24 = arith.constant 1 : index
    %c0_25 = arith.constant 0 : index
    %22 = vector.load %arg14[%c1_24, %c0_25] : memref<4x32xf32, #tpu.memory_space<vmem>>, vector<1x32xf32>
    %c2_26 = arith.constant 2 : index
    %c0_27 = arith.constant 0 : index
    %23 = vector.load %arg14[%c2_26, %c0_27] : memref<4x32xf32, #tpu.memory_space<vmem>>, vector<1x32xf32>
    %c3 = arith.constant 3 : index
    %c0_28 = arith.constant 0 : index
    %24 = vector.load %arg14[%c3, %c0_28] : memref<4x32xf32, #tpu.memory_space<vmem>>, vector<1x32xf32>
    %25 = vector.broadcast %15 : vector<1x8xf32> to vector<64x8xf32>
    %26 = arith.addf %10, %25 : vector<64x8xf32>
    %27 = vector.shape_cast %26 : vector<64x8xf32> to vector<4x16x8xf32>
    %28 = tpu.transpose %27, [0, 2, 1] : vector<4x16x8xf32> -> vector<4x8x16xf32>
    %29 = vector.shape_cast %11 : vector<64x8xf32> to vector<4x16x8xf32>
    %30 = tpu.transpose %29, [0, 2, 1] : vector<4x16x8xf32> -> vector<4x8x16xf32>
    %31 = vector.shape_cast %30 : vector<4x8x16xf32> to vector<4x8x16x1xf32>
    %32 = vector.shape_cast %28 : vector<4x8x16xf32> to vector<4x8x1x16xf32>
    %33 = vector.broadcast %31 : vector<4x8x16x1xf32> to vector<4x8x16x16xf32>
    %34 = vector.broadcast %32 : vector<4x8x1x16xf32> to vector<4x8x16x16xf32>
    %35 = arith.addf %33, %34 : vector<4x8x16x16xf32>
    %36 = math.tanh %35 : vector<4x8x16x16xf32>
    %37 = vector.broadcast %5 : vector<1x1x1x16xf32> to vector<4x8x16x16xf32>
    %38 = arith.addf %36, %37 : vector<4x8x16x16xf32>
    %39 = math.exp %38 : vector<4x8x16x16xf32>
    %cst_29 = arith.constant dense<0.000000e+00> : vector<4x8x16xf32>
    %40 = vector.multi_reduction <add>, %39, %cst_29 [3] : vector<4x8x16x16xf32> to vector<4x8x16xf32>
    %41 = vector.shape_cast %40 : vector<4x8x16xf32> to vector<4x8x16x1xf32>
    %42 = tpu.reciprocal %41 {approx = true} : vector<4x8x16x1xf32> -> vector<4x8x16x1xf32>
    %43 = vector.broadcast %42 : vector<4x8x16x1xf32> to vector<4x8x16x16xf32>
    %44 = arith.mulf %39, %43 : vector<4x8x16x16xf32>
    %45 = vector.shape_cast %8 : vector<64x256xf32> to vector<4x16x256xf32>
    %cst_30 = arith.constant 0.000000e+00 : f32
    %46 = vector.broadcast %cst_30 : f32 to vector<4x16x32xf32>
    %47 = vector.extract_strided_slice %44 {offsets = [0, 0, 0, 0], sizes = [4, 1, 16, 16], strides = [1, 1, 1, 1]} : vector<4x8x16x16xf32> to vector<4x1x16x16xf32>
    %48 = vector.shape_cast %47 : vector<4x1x16x16xf32> to vector<4x16x16xf32>
    %49 = vector.extract_strided_slice %45 {offsets = [0, 0, 0], sizes = [4, 16, 32], strides = [1, 1, 1]} : vector<4x16x256xf32> to vector<4x16x32xf32>
    "tpu.trace_start"() <{level = 10 : i32, message = "bqk,bkm->bqm"}> : () -> ()
    %cst_31 = arith.constant dense<0.000000e+00> : vector<4x16x32xf32>
    %50 = tpu.matmul %48, %49, %cst_31 {dimension_numbers = #tpu.dot_dimension_numbers<[2], [1], [1], [2], [0, 0, 0, 1, 1, 2], [0], [0]>} : vector<4x16x16xf32>, vector<4x16x32xf32>, vector<4x16x32xf32> -> vector<4x16x32xf32>
    "tpu.trace_stop"() : () -> ()
    %51 = arith.addf %46, %50 : vector<4x16x32xf32>
    %52 = vector.extract_strided_slice %44 {offsets = [0, 1, 0, 0], sizes = [4, 1, 16, 16], strides = [1, 1, 1, 1]} : vector<4x8x16x16xf32> to vector<4x1x16x16xf32>
    %53 = vector.shape_cast %52 : vector<4x1x16x16xf32> to vector<4x16x16xf32>
    %54 = vector.extract_strided_slice %45 {offsets = [0, 0, 32], sizes = [4, 16, 32], strides = [1, 1, 1]} : vector<4x16x256xf32> to vector<4x16x32xf32>
    "tpu.trace_start"() <{level = 10 : i32, message = "bqk,bkm->bqm"}> : () -> ()
    %cst_32 = arith.constant dense<0.000000e+00> : vector<4x16x32xf32>
    %55 = tpu.matmul %53, %54, %cst_32 {dimension_numbers = #tpu.dot_dimension_numbers<[2], [1], [1], [2], [0, 0, 0, 1, 1, 2], [0], [0]>} : vector<4x16x16xf32>, vector<4x16x32xf32>, vector<4x16x32xf32> -> vector<4x16x32xf32>
    "tpu.trace_stop"() : () -> ()
    %56 = arith.addf %51, %55 : vector<4x16x32xf32>
    %57 = vector.extract_strided_slice %44 {offsets = [0, 2, 0, 0], sizes = [4, 1, 16, 16], strides = [1, 1, 1, 1]} : vector<4x8x16x16xf32> to vector<4x1x16x16xf32>
    %58 = vector.shape_cast %57 : vector<4x1x16x16xf32> to vector<4x16x16xf32>
    %59 = vector.extract_strided_slice %45 {offsets = [0, 0, 64], sizes = [4, 16, 32], strides = [1, 1, 1]} : vector<4x16x256xf32> to vector<4x16x32xf32>
    "tpu.trace_start"() <{level = 10 : i32, message = "bqk,bkm->bqm"}> : () -> ()
    %cst_33 = arith.constant dense<0.000000e+00> : vector<4x16x32xf32>
    %60 = tpu.matmul %58, %59, %cst_33 {dimension_numbers = #tpu.dot_dimension_numbers<[2], [1], [1], [2], [0, 0, 0, 1, 1, 2], [0], [0]>} : vector<4x16x16xf32>, vector<4x16x32xf32>, vector<4x16x32xf32> -> vector<4x16x32xf32>
    "tpu.trace_stop"() : () -> ()
    %61 = arith.addf %56, %60 : vector<4x16x32xf32>
    %62 = vector.extract_strided_slice %44 {offsets = [0, 3, 0, 0], sizes = [4, 1, 16, 16], strides = [1, 1, 1, 1]} : vector<4x8x16x16xf32> to vector<4x1x16x16xf32>
    %63 = vector.shape_cast %62 : vector<4x1x16x16xf32> to vector<4x16x16xf32>
    %64 = vector.extract_strided_slice %45 {offsets = [0, 0, 96], sizes = [4, 16, 32], strides = [1, 1, 1]} : vector<4x16x256xf32> to vector<4x16x32xf32>
    "tpu.trace_start"() <{level = 10 : i32, message = "bqk,bkm->bqm"}> : () -> ()
    %cst_34 = arith.constant dense<0.000000e+00> : vector<4x16x32xf32>
    %65 = tpu.matmul %63, %64, %cst_34 {dimension_numbers = #tpu.dot_dimension_numbers<[2], [1], [1], [2], [0, 0, 0, 1, 1, 2], [0], [0]>} : vector<4x16x16xf32>, vector<4x16x32xf32>, vector<4x16x32xf32> -> vector<4x16x32xf32>
    "tpu.trace_stop"() : () -> ()
    %66 = arith.addf %61, %65 : vector<4x16x32xf32>
    %67 = vector.extract_strided_slice %44 {offsets = [0, 4, 0, 0], sizes = [4, 1, 16, 16], strides = [1, 1, 1, 1]} : vector<4x8x16x16xf32> to vector<4x1x16x16xf32>
    %68 = vector.shape_cast %67 : vector<4x1x16x16xf32> to vector<4x16x16xf32>
    %69 = vector.extract_strided_slice %45 {offsets = [0, 0, 128], sizes = [4, 16, 32], strides = [1, 1, 1]} : vector<4x16x256xf32> to vector<4x16x32xf32>
    "tpu.trace_start"() <{level = 10 : i32, message = "bqk,bkm->bqm"}> : () -> ()
    %cst_35 = arith.constant dense<0.000000e+00> : vector<4x16x32xf32>
    %70 = tpu.matmul %68, %69, %cst_35 {dimension_numbers = #tpu.dot_dimension_numbers<[2], [1], [1], [2], [0, 0, 0, 1, 1, 2], [0], [0]>} : vector<4x16x16xf32>, vector<4x16x32xf32>, vector<4x16x32xf32> -> vector<4x16x32xf32>
    "tpu.trace_stop"() : () -> ()
    %71 = arith.addf %66, %70 : vector<4x16x32xf32>
    %72 = vector.extract_strided_slice %44 {offsets = [0, 5, 0, 0], sizes = [4, 1, 16, 16], strides = [1, 1, 1, 1]} : vector<4x8x16x16xf32> to vector<4x1x16x16xf32>
    %73 = vector.shape_cast %72 : vector<4x1x16x16xf32> to vector<4x16x16xf32>
    %74 = vector.extract_strided_slice %45 {offsets = [0, 0, 160], sizes = [4, 16, 32], strides = [1, 1, 1]} : vector<4x16x256xf32> to vector<4x16x32xf32>
    "tpu.trace_start"() <{level = 10 : i32, message = "bqk,bkm->bqm"}> : () -> ()
    %cst_36 = arith.constant dense<0.000000e+00> : vector<4x16x32xf32>
    %75 = tpu.matmul %73, %74, %cst_36 {dimension_numbers = #tpu.dot_dimension_numbers<[2], [1], [1], [2], [0, 0, 0, 1, 1, 2], [0], [0]>} : vector<4x16x16xf32>, vector<4x16x32xf32>, vector<4x16x32xf32> -> vector<4x16x32xf32>
    "tpu.trace_stop"() : () -> ()
    %76 = arith.addf %71, %75 : vector<4x16x32xf32>
    %77 = vector.extract_strided_slice %44 {offsets = [0, 6, 0, 0], sizes = [4, 1, 16, 16], strides = [1, 1, 1, 1]} : vector<4x8x16x16xf32> to vector<4x1x16x16xf32>
    %78 = vector.shape_cast %77 : vector<4x1x16x16xf32> to vector<4x16x16xf32>
    %79 = vector.extract_strided_slice %45 {offsets = [0, 0, 192], sizes = [4, 16, 32], strides = [1, 1, 1]} : vector<4x16x256xf32> to vector<4x16x32xf32>
    "tpu.trace_start"() <{level = 10 : i32, message = "bqk,bkm->bqm"}> : () -> ()
    %cst_37 = arith.constant dense<0.000000e+00> : vector<4x16x32xf32>
    %80 = tpu.matmul %78, %79, %cst_37 {dimension_numbers = #tpu.dot_dimension_numbers<[2], [1], [1], [2], [0, 0, 0, 1, 1, 2], [0], [0]>} : vector<4x16x16xf32>, vector<4x16x32xf32>, vector<4x16x32xf32> -> vector<4x16x32xf32>
    "tpu.trace_stop"() : () -> ()
    %81 = arith.addf %76, %80 : vector<4x16x32xf32>
    %82 = vector.extract_strided_slice %44 {offsets = [0, 7, 0, 0], sizes = [4, 1, 16, 16], strides = [1, 1, 1, 1]} : vector<4x8x16x16xf32> to vector<4x1x16x16xf32>
    %83 = vector.shape_cast %82 : vector<4x1x16x16xf32> to vector<4x16x16xf32>
    %84 = vector.extract_strided_slice %45 {offsets = [0, 0, 224], sizes = [4, 16, 32], strides = [1, 1, 1]} : vector<4x16x256xf32> to vector<4x16x32xf32>
    "tpu.trace_start"() <{level = 10 : i32, message = "bqk,bkm->bqm"}> : () -> ()
    %cst_38 = arith.constant dense<0.000000e+00> : vector<4x16x32xf32>
    %85 = tpu.matmul %83, %84, %cst_38 {dimension_numbers = #tpu.dot_dimension_numbers<[2], [1], [1], [2], [0, 0, 0, 1, 1, 2], [0], [0]>} : vector<4x16x16xf32>, vector<4x16x32xf32>, vector<4x16x32xf32> -> vector<4x16x32xf32>
    "tpu.trace_stop"() : () -> ()
    %86 = arith.addf %81, %85 : vector<4x16x32xf32>
    %87 = vector.shape_cast %18 : vector<1x32xf32> to vector<1x1x32xf32>
    %88 = vector.broadcast %87 : vector<1x1x32xf32> to vector<4x16x32xf32>
    %89 = arith.addf %86, %88 : vector<4x16x32xf32>
    %90 = vector.shape_cast %89 : vector<4x16x32xf32> to vector<64x32xf32>
    %c0_39 = arith.constant 0 : index
    %c0_40 = arith.constant 0 : index
    %c0_41 = arith.constant 0 : index
    %91 = vector.load %arg10[%c0_39, %c0_40, %c0_41] : memref<4x32x32xf32, #tpu.memory_space<vmem>>, vector<1x32x32xf32>
    %92 = vector.shape_cast %91 : vector<1x32x32xf32> to vector<32x32xf32>
    %c1_42 = arith.constant 1 : index
    %c0_43 = arith.constant 0 : index
    %c0_44 = arith.constant 0 : index
    %93 = vector.load %arg10[%c1_42, %c0_43, %c0_44] : memref<4x32x32xf32, #tpu.memory_space<vmem>>, vector<1x32x32xf32>
    %94 = vector.shape_cast %93 : vector<1x32x32xf32> to vector<32x32xf32>
    %cst_45 = arith.constant dense<0.000000e+00> : vector<64x32xf32>
    %95 = tpu.matmul %90, %92, %cst_45 {dimension_numbers = #tpu.dot_dimension_numbers<[1], [0], [0], [1], [0, 0, 1, 1], [], []>} : vector<64x32xf32>, vector<32x32xf32>, vector<64x32xf32> -> vector<64x32xf32>
    %96 = vector.broadcast %21 : vector<1x32xf32> to vector<64x32xf32>
    %97 = arith.addf %95, %96 : vector<64x32xf32>
    %cst_46 = arith.constant 0.000000e+00 : f32
    %98 = vector.broadcast %cst_46 : f32 to vector<64x32xf32>
    %99 = arith.maximumf %97, %98 : vector<64x32xf32>
    %cst_47 = arith.constant dense<0.000000e+00> : vector<64x32xf32>
    %100 = tpu.matmul %99, %94, %cst_47 {dimension_numbers = #tpu.dot_dimension_numbers<[1], [0], [0], [1], [0, 0, 1, 1], [], []>} : vector<64x32xf32>, vector<32x32xf32>, vector<64x32xf32> -> vector<64x32xf32>
    %101 = vector.broadcast %22 : vector<1x32xf32> to vector<64x32xf32>
    %102 = arith.addf %100, %101 : vector<64x32xf32>
    %103 = vector.broadcast %16 : vector<1x8xf32> to vector<64x8xf32>
    %104 = arith.addf %12, %103 : vector<64x8xf32>
    %105 = vector.shape_cast %104 : vector<64x8xf32> to vector<4x16x8xf32>
    %106 = tpu.transpose %105, [0, 2, 1] : vector<4x16x8xf32> -> vector<4x8x16xf32>
    %107 = vector.shape_cast %14 : vector<32x8xf32> to vector<4x8x8xf32>
    %108 = tpu.transpose %107, [0, 2, 1] : vector<4x8x8xf32> -> vector<4x8x8xf32>
    %109 = vector.shape_cast %108 : vector<4x8x8xf32> to vector<4x8x8x1xf32>
    %110 = vector.shape_cast %106 : vector<4x8x16xf32> to vector<4x8x1x16xf32>
    %111 = vector.broadcast %109 : vector<4x8x8x1xf32> to vector<4x8x8x16xf32>
    %112 = vector.broadcast %110 : vector<4x8x1x16xf32> to vector<4x8x8x16xf32>
    %113 = arith.addf %111, %112 : vector<4x8x8x16xf32>
    %114 = math.tanh %113 : vector<4x8x8x16xf32>
    %115 = vector.broadcast %5 : vector<1x1x1x16xf32> to vector<4x8x8x16xf32>
    %116 = arith.addf %114, %115 : vector<4x8x8x16xf32>
    %117 = math.exp %116 : vector<4x8x8x16xf32>
    %cst_48 = arith.constant dense<0.000000e+00> : vector<4x8x8xf32>
    %118 = vector.multi_reduction <add>, %117, %cst_48 [3] : vector<4x8x8x16xf32> to vector<4x8x8xf32>
    %119 = vector.shape_cast %118 : vector<4x8x8xf32> to vector<4x8x8x1xf32>
    %120 = tpu.reciprocal %119 {approx = true} : vector<4x8x8x1xf32> -> vector<4x8x8x1xf32>
    %121 = vector.broadcast %120 : vector<4x8x8x1xf32> to vector<4x8x8x16xf32>
    %122 = arith.mulf %117, %121 : vector<4x8x8x16xf32>
    %123 = vector.shape_cast %9 : vector<64x256xf32> to vector<4x16x256xf32>
    %cst_49 = arith.constant 0.000000e+00 : f32
    %124 = vector.broadcast %cst_49 : f32 to vector<4x8x32xf32>
    %125 = vector.extract_strided_slice %122 {offsets = [0, 0, 0, 0], sizes = [4, 1, 8, 16], strides = [1, 1, 1, 1]} : vector<4x8x8x16xf32> to vector<4x1x8x16xf32>
    %126 = vector.shape_cast %125 : vector<4x1x8x16xf32> to vector<4x8x16xf32>
    %127 = vector.extract_strided_slice %123 {offsets = [0, 0, 0], sizes = [4, 16, 32], strides = [1, 1, 1]} : vector<4x16x256xf32> to vector<4x16x32xf32>
    "tpu.trace_start"() <{level = 10 : i32, message = "bqk,bkm->bqm"}> : () -> ()
    %cst_50 = arith.constant dense<0.000000e+00> : vector<4x8x32xf32>
    %128 = tpu.matmul %126, %127, %cst_50 {dimension_numbers = #tpu.dot_dimension_numbers<[2], [1], [1], [2], [0, 0, 0, 1, 1, 2], [0], [0]>} : vector<4x8x16xf32>, vector<4x16x32xf32>, vector<4x8x32xf32> -> vector<4x8x32xf32>
    "tpu.trace_stop"() : () -> ()
    %129 = arith.addf %124, %128 : vector<4x8x32xf32>
    %130 = vector.extract_strided_slice %122 {offsets = [0, 1, 0, 0], sizes = [4, 1, 8, 16], strides = [1, 1, 1, 1]} : vector<4x8x8x16xf32> to vector<4x1x8x16xf32>
    %131 = vector.shape_cast %130 : vector<4x1x8x16xf32> to vector<4x8x16xf32>
    %132 = vector.extract_strided_slice %123 {offsets = [0, 0, 32], sizes = [4, 16, 32], strides = [1, 1, 1]} : vector<4x16x256xf32> to vector<4x16x32xf32>
    "tpu.trace_start"() <{level = 10 : i32, message = "bqk,bkm->bqm"}> : () -> ()
    %cst_51 = arith.constant dense<0.000000e+00> : vector<4x8x32xf32>
    %133 = tpu.matmul %131, %132, %cst_51 {dimension_numbers = #tpu.dot_dimension_numbers<[2], [1], [1], [2], [0, 0, 0, 1, 1, 2], [0], [0]>} : vector<4x8x16xf32>, vector<4x16x32xf32>, vector<4x8x32xf32> -> vector<4x8x32xf32>
    "tpu.trace_stop"() : () -> ()
    %134 = arith.addf %129, %133 : vector<4x8x32xf32>
    %135 = vector.extract_strided_slice %122 {offsets = [0, 2, 0, 0], sizes = [4, 1, 8, 16], strides = [1, 1, 1, 1]} : vector<4x8x8x16xf32> to vector<4x1x8x16xf32>
    %136 = vector.shape_cast %135 : vector<4x1x8x16xf32> to vector<4x8x16xf32>
    %137 = vector.extract_strided_slice %123 {offsets = [0, 0, 64], sizes = [4, 16, 32], strides = [1, 1, 1]} : vector<4x16x256xf32> to vector<4x16x32xf32>
    "tpu.trace_start"() <{level = 10 : i32, message = "bqk,bkm->bqm"}> : () -> ()
    %cst_52 = arith.constant dense<0.000000e+00> : vector<4x8x32xf32>
    %138 = tpu.matmul %136, %137, %cst_52 {dimension_numbers = #tpu.dot_dimension_numbers<[2], [1], [1], [2], [0, 0, 0, 1, 1, 2], [0], [0]>} : vector<4x8x16xf32>, vector<4x16x32xf32>, vector<4x8x32xf32> -> vector<4x8x32xf32>
    "tpu.trace_stop"() : () -> ()
    %139 = arith.addf %134, %138 : vector<4x8x32xf32>
    %140 = vector.extract_strided_slice %122 {offsets = [0, 3, 0, 0], sizes = [4, 1, 8, 16], strides = [1, 1, 1, 1]} : vector<4x8x8x16xf32> to vector<4x1x8x16xf32>
    %141 = vector.shape_cast %140 : vector<4x1x8x16xf32> to vector<4x8x16xf32>
    %142 = vector.extract_strided_slice %123 {offsets = [0, 0, 96], sizes = [4, 16, 32], strides = [1, 1, 1]} : vector<4x16x256xf32> to vector<4x16x32xf32>
    "tpu.trace_start"() <{level = 10 : i32, message = "bqk,bkm->bqm"}> : () -> ()
    %cst_53 = arith.constant dense<0.000000e+00> : vector<4x8x32xf32>
    %143 = tpu.matmul %141, %142, %cst_53 {dimension_numbers = #tpu.dot_dimension_numbers<[2], [1], [1], [2], [0, 0, 0, 1, 1, 2], [0], [0]>} : vector<4x8x16xf32>, vector<4x16x32xf32>, vector<4x8x32xf32> -> vector<4x8x32xf32>
    "tpu.trace_stop"() : () -> ()
    %144 = arith.addf %139, %143 : vector<4x8x32xf32>
    %145 = vector.extract_strided_slice %122 {offsets = [0, 4, 0, 0], sizes = [4, 1, 8, 16], strides = [1, 1, 1, 1]} : vector<4x8x8x16xf32> to vector<4x1x8x16xf32>
    %146 = vector.shape_cast %145 : vector<4x1x8x16xf32> to vector<4x8x16xf32>
    %147 = vector.extract_strided_slice %123 {offsets = [0, 0, 128], sizes = [4, 16, 32], strides = [1, 1, 1]} : vector<4x16x256xf32> to vector<4x16x32xf32>
    "tpu.trace_start"() <{level = 10 : i32, message = "bqk,bkm->bqm"}> : () -> ()
    %cst_54 = arith.constant dense<0.000000e+00> : vector<4x8x32xf32>
    %148 = tpu.matmul %146, %147, %cst_54 {dimension_numbers = #tpu.dot_dimension_numbers<[2], [1], [1], [2], [0, 0, 0, 1, 1, 2], [0], [0]>} : vector<4x8x16xf32>, vector<4x16x32xf32>, vector<4x8x32xf32> -> vector<4x8x32xf32>
    "tpu.trace_stop"() : () -> ()
    %149 = arith.addf %144, %148 : vector<4x8x32xf32>
    %150 = vector.extract_strided_slice %122 {offsets = [0, 5, 0, 0], sizes = [4, 1, 8, 16], strides = [1, 1, 1, 1]} : vector<4x8x8x16xf32> to vector<4x1x8x16xf32>
    %151 = vector.shape_cast %150 : vector<4x1x8x16xf32> to vector<4x8x16xf32>
    %152 = vector.extract_strided_slice %123 {offsets = [0, 0, 160], sizes = [4, 16, 32], strides = [1, 1, 1]} : vector<4x16x256xf32> to vector<4x16x32xf32>
    "tpu.trace_start"() <{level = 10 : i32, message = "bqk,bkm->bqm"}> : () -> ()
    %cst_55 = arith.constant dense<0.000000e+00> : vector<4x8x32xf32>
    %153 = tpu.matmul %151, %152, %cst_55 {dimension_numbers = #tpu.dot_dimension_numbers<[2], [1], [1], [2], [0, 0, 0, 1, 1, 2], [0], [0]>} : vector<4x8x16xf32>, vector<4x16x32xf32>, vector<4x8x32xf32> -> vector<4x8x32xf32>
    "tpu.trace_stop"() : () -> ()
    %154 = arith.addf %149, %153 : vector<4x8x32xf32>
    %155 = vector.extract_strided_slice %122 {offsets = [0, 6, 0, 0], sizes = [4, 1, 8, 16], strides = [1, 1, 1, 1]} : vector<4x8x8x16xf32> to vector<4x1x8x16xf32>
    %156 = vector.shape_cast %155 : vector<4x1x8x16xf32> to vector<4x8x16xf32>
    %157 = vector.extract_strided_slice %123 {offsets = [0, 0, 192], sizes = [4, 16, 32], strides = [1, 1, 1]} : vector<4x16x256xf32> to vector<4x16x32xf32>
    "tpu.trace_start"() <{level = 10 : i32, message = "bqk,bkm->bqm"}> : () -> ()
    %cst_56 = arith.constant dense<0.000000e+00> : vector<4x8x32xf32>
    %158 = tpu.matmul %156, %157, %cst_56 {dimension_numbers = #tpu.dot_dimension_numbers<[2], [1], [1], [2], [0, 0, 0, 1, 1, 2], [0], [0]>} : vector<4x8x16xf32>, vector<4x16x32xf32>, vector<4x8x32xf32> -> vector<4x8x32xf32>
    "tpu.trace_stop"() : () -> ()
    %159 = arith.addf %154, %158 : vector<4x8x32xf32>
    %160 = vector.extract_strided_slice %122 {offsets = [0, 7, 0, 0], sizes = [4, 1, 8, 16], strides = [1, 1, 1, 1]} : vector<4x8x8x16xf32> to vector<4x1x8x16xf32>
    %161 = vector.shape_cast %160 : vector<4x1x8x16xf32> to vector<4x8x16xf32>
    %162 = vector.extract_strided_slice %123 {offsets = [0, 0, 224], sizes = [4, 16, 32], strides = [1, 1, 1]} : vector<4x16x256xf32> to vector<4x16x32xf32>
    "tpu.trace_start"() <{level = 10 : i32, message = "bqk,bkm->bqm"}> : () -> ()
    %cst_57 = arith.constant dense<0.000000e+00> : vector<4x8x32xf32>
    %163 = tpu.matmul %161, %162, %cst_57 {dimension_numbers = #tpu.dot_dimension_numbers<[2], [1], [1], [2], [0, 0, 0, 1, 1, 2], [0], [0]>} : vector<4x8x16xf32>, vector<4x16x32xf32>, vector<4x8x32xf32> -> vector<4x8x32xf32>
    "tpu.trace_stop"() : () -> ()
    %164 = arith.addf %159, %163 : vector<4x8x32xf32>
    %165 = vector.shape_cast %19 : vector<1x32xf32> to vector<1x1x32xf32>
    %166 = vector.broadcast %165 : vector<1x1x32xf32> to vector<4x8x32xf32>
    %167 = arith.addf %164, %166 : vector<4x8x32xf32>
    %168 = vector.shape_cast %167 : vector<4x8x32xf32> to vector<32x32xf32>
    %c2_58 = arith.constant 2 : index
    %c0_59 = arith.constant 0 : index
    %c0_60 = arith.constant 0 : index
    %169 = vector.load %arg10[%c2_58, %c0_59, %c0_60] : memref<4x32x32xf32, #tpu.memory_space<vmem>>, vector<1x32x32xf32>
    %170 = vector.shape_cast %169 : vector<1x32x32xf32> to vector<32x32xf32>
    %c3_61 = arith.constant 3 : index
    %c0_62 = arith.constant 0 : index
    %c0_63 = arith.constant 0 : index
    %171 = vector.load %arg10[%c3_61, %c0_62, %c0_63] : memref<4x32x32xf32, #tpu.memory_space<vmem>>, vector<1x32x32xf32>
    %172 = vector.shape_cast %171 : vector<1x32x32xf32> to vector<32x32xf32>
    %cst_64 = arith.constant dense<0.000000e+00> : vector<32x32xf32>
    %173 = tpu.matmul %168, %170, %cst_64 {dimension_numbers = #tpu.dot_dimension_numbers<[1], [0], [0], [1], [0, 0, 1, 1], [], []>} : vector<32x32xf32>, vector<32x32xf32>, vector<32x32xf32> -> vector<32x32xf32>
    %174 = vector.broadcast %23 : vector<1x32xf32> to vector<32x32xf32>
    %175 = arith.addf %173, %174 : vector<32x32xf32>
    %cst_65 = arith.constant 0.000000e+00 : f32
    %176 = vector.broadcast %cst_65 : f32 to vector<32x32xf32>
    %177 = arith.maximumf %175, %176 : vector<32x32xf32>
    %cst_66 = arith.constant dense<0.000000e+00> : vector<32x32xf32>
    %178 = tpu.matmul %177, %172, %cst_66 {dimension_numbers = #tpu.dot_dimension_numbers<[1], [0], [0], [1], [0, 0, 1, 1], [], []>} : vector<32x32xf32>, vector<32x32xf32>, vector<32x32xf32> -> vector<32x32xf32>
    %179 = vector.broadcast %24 : vector<1x32xf32> to vector<32x32xf32>
    %180 = arith.addf %178, %179 : vector<32x32xf32>
    %c0_67 = arith.constant 0 : index
    %c0_68 = arith.constant 0 : index
    %181 = vector.load %arg8[%c0_67, %c0_68] : memref<32x264xf32, #tpu.memory_space<vmem>>, vector<32x264xf32>
    %cst_69 = arith.constant dense<0.000000e+00> : vector<64x264xf32>
    %182 = tpu.matmul %102, %181, %cst_69 {dimension_numbers = #tpu.dot_dimension_numbers<[1], [0], [0], [1], [0, 0, 1, 1], [], []>} : vector<64x32xf32>, vector<32x264xf32>, vector<64x264xf32> -> vector<64x264xf32>
    %183 = vector.extract_strided_slice %182 {offsets = [0, 0], sizes = [64, 256], strides = [1, 1]} : vector<64x264xf32> to vector<64x256xf32>
    %184 = vector.extract_strided_slice %182 {offsets = [0, 256], sizes = [64, 8], strides = [1, 1]} : vector<64x264xf32> to vector<64x8xf32>
    %c0_70 = arith.constant 0 : index
    %c0_71 = arith.constant 0 : index
    %185 = vector.load %arg9[%c0_70, %c0_71] : memref<32x8xf32, #tpu.memory_space<vmem>>, vector<32x8xf32>
    %cst_72 = arith.constant dense<0.000000e+00> : vector<32x8xf32>
    %186 = tpu.matmul %180, %185, %cst_72 {dimension_numbers = #tpu.dot_dimension_numbers<[1], [0], [0], [1], [0, 0, 1, 1], [], []>} : vector<32x32xf32>, vector<32x8xf32>, vector<32x8xf32> -> vector<32x8xf32>
    %187 = vector.broadcast %17 : vector<1x8xf32> to vector<64x8xf32>
    %188 = arith.addf %184, %187 : vector<64x8xf32>
    %189 = vector.shape_cast %188 : vector<64x8xf32> to vector<4x16x8xf32>
    %190 = tpu.transpose %189, [0, 2, 1] : vector<4x16x8xf32> -> vector<4x8x16xf32>
    %191 = vector.shape_cast %186 : vector<32x8xf32> to vector<4x8x8xf32>
    %192 = tpu.transpose %191, [0, 2, 1] : vector<4x8x8xf32> -> vector<4x8x8xf32>
    %193 = vector.shape_cast %192 : vector<4x8x8xf32> to vector<4x8x8x1xf32>
    %194 = vector.shape_cast %190 : vector<4x8x16xf32> to vector<4x8x1x16xf32>
    %195 = vector.broadcast %193 : vector<4x8x8x1xf32> to vector<4x8x8x16xf32>
    %196 = vector.broadcast %194 : vector<4x8x1x16xf32> to vector<4x8x8x16xf32>
    %197 = arith.addf %195, %196 : vector<4x8x8x16xf32>
    %198 = math.tanh %197 : vector<4x8x8x16xf32>
    %199 = vector.broadcast %5 : vector<1x1x1x16xf32> to vector<4x8x8x16xf32>
    %200 = arith.addf %198, %199 : vector<4x8x8x16xf32>
    %201 = math.exp %200 : vector<4x8x8x16xf32>
    %cst_73 = arith.constant dense<0.000000e+00> : vector<4x8x8xf32>
    %202 = vector.multi_reduction <add>, %201, %cst_73 [3] : vector<4x8x8x16xf32> to vector<4x8x8xf32>
    %203 = vector.shape_cast %202 : vector<4x8x8xf32> to vector<4x8x8x1xf32>
    %204 = tpu.reciprocal %203 {approx = true} : vector<4x8x8x1xf32> -> vector<4x8x8x1xf32>
    %205 = vector.broadcast %204 : vector<4x8x8x1xf32> to vector<4x8x8x16xf32>
    %206 = arith.mulf %201, %205 : vector<4x8x8x16xf32>
    %207 = vector.shape_cast %183 : vector<64x256xf32> to vector<4x16x256xf32>
    %cst_74 = arith.constant 0.000000e+00 : f32
    %208 = vector.broadcast %cst_74 : f32 to vector<4x8x32xf32>
    %209 = vector.extract_strided_slice %206 {offsets = [0, 0, 0, 0], sizes = [4, 1, 8, 16], strides = [1, 1, 1, 1]} : vector<4x8x8x16xf32> to vector<4x1x8x16xf32>
    %210 = vector.shape_cast %209 : vector<4x1x8x16xf32> to vector<4x8x16xf32>
    %211 = vector.extract_strided_slice %207 {offsets = [0, 0, 0], sizes = [4, 16, 32], strides = [1, 1, 1]} : vector<4x16x256xf32> to vector<4x16x32xf32>
    "tpu.trace_start"() <{level = 10 : i32, message = "bqk,bkm->bqm"}> : () -> ()
    %cst_75 = arith.constant dense<0.000000e+00> : vector<4x8x32xf32>
    %212 = tpu.matmul %210, %211, %cst_75 {dimension_numbers = #tpu.dot_dimension_numbers<[2], [1], [1], [2], [0, 0, 0, 1, 1, 2], [0], [0]>} : vector<4x8x16xf32>, vector<4x16x32xf32>, vector<4x8x32xf32> -> vector<4x8x32xf32>
    "tpu.trace_stop"() : () -> ()
    %213 = arith.addf %208, %212 : vector<4x8x32xf32>
    %214 = vector.extract_strided_slice %206 {offsets = [0, 1, 0, 0], sizes = [4, 1, 8, 16], strides = [1, 1, 1, 1]} : vector<4x8x8x16xf32> to vector<4x1x8x16xf32>
    %215 = vector.shape_cast %214 : vector<4x1x8x16xf32> to vector<4x8x16xf32>
    %216 = vector.extract_strided_slice %207 {offsets = [0, 0, 32], sizes = [4, 16, 32], strides = [1, 1, 1]} : vector<4x16x256xf32> to vector<4x16x32xf32>
    "tpu.trace_start"() <{level = 10 : i32, message = "bqk,bkm->bqm"}> : () -> ()
    %cst_76 = arith.constant dense<0.000000e+00> : vector<4x8x32xf32>
    %217 = tpu.matmul %215, %216, %cst_76 {dimension_numbers = #tpu.dot_dimension_numbers<[2], [1], [1], [2], [0, 0, 0, 1, 1, 2], [0], [0]>} : vector<4x8x16xf32>, vector<4x16x32xf32>, vector<4x8x32xf32> -> vector<4x8x32xf32>
    "tpu.trace_stop"() : () -> ()
    %218 = arith.addf %213, %217 : vector<4x8x32xf32>
    %219 = vector.extract_strided_slice %206 {offsets = [0, 2, 0, 0], sizes = [4, 1, 8, 16], strides = [1, 1, 1, 1]} : vector<4x8x8x16xf32> to vector<4x1x8x16xf32>
    %220 = vector.shape_cast %219 : vector<4x1x8x16xf32> to vector<4x8x16xf32>
    %221 = vector.extract_strided_slice %207 {offsets = [0, 0, 64], sizes = [4, 16, 32], strides = [1, 1, 1]} : vector<4x16x256xf32> to vector<4x16x32xf32>
    "tpu.trace_start"() <{level = 10 : i32, message = "bqk,bkm->bqm"}> : () -> ()
    %cst_77 = arith.constant dense<0.000000e+00> : vector<4x8x32xf32>
    %222 = tpu.matmul %220, %221, %cst_77 {dimension_numbers = #tpu.dot_dimension_numbers<[2], [1], [1], [2], [0, 0, 0, 1, 1, 2], [0], [0]>} : vector<4x8x16xf32>, vector<4x16x32xf32>, vector<4x8x32xf32> -> vector<4x8x32xf32>
    "tpu.trace_stop"() : () -> ()
    %223 = arith.addf %218, %222 : vector<4x8x32xf32>
    %224 = vector.extract_strided_slice %206 {offsets = [0, 3, 0, 0], sizes = [4, 1, 8, 16], strides = [1, 1, 1, 1]} : vector<4x8x8x16xf32> to vector<4x1x8x16xf32>
    %225 = vector.shape_cast %224 : vector<4x1x8x16xf32> to vector<4x8x16xf32>
    %226 = vector.extract_strided_slice %207 {offsets = [0, 0, 96], sizes = [4, 16, 32], strides = [1, 1, 1]} : vector<4x16x256xf32> to vector<4x16x32xf32>
    "tpu.trace_start"() <{level = 10 : i32, message = "bqk,bkm->bqm"}> : () -> ()
    %cst_78 = arith.constant dense<0.000000e+00> : vector<4x8x32xf32>
    %227 = tpu.matmul %225, %226, %cst_78 {dimension_numbers = #tpu.dot_dimension_numbers<[2], [1], [1], [2], [0, 0, 0, 1, 1, 2], [0], [0]>} : vector<4x8x16xf32>, vector<4x16x32xf32>, vector<4x8x32xf32> -> vector<4x8x32xf32>
    "tpu.trace_stop"() : () -> ()
    %228 = arith.addf %223, %227 : vector<4x8x32xf32>
    %229 = vector.extract_strided_slice %206 {offsets = [0, 4, 0, 0], sizes = [4, 1, 8, 16], strides = [1, 1, 1, 1]} : vector<4x8x8x16xf32> to vector<4x1x8x16xf32>
    %230 = vector.shape_cast %229 : vector<4x1x8x16xf32> to vector<4x8x16xf32>
    %231 = vector.extract_strided_slice %207 {offsets = [0, 0, 128], sizes = [4, 16, 32], strides = [1, 1, 1]} : vector<4x16x256xf32> to vector<4x16x32xf32>
    "tpu.trace_start"() <{level = 10 : i32, message = "bqk,bkm->bqm"}> : () -> ()
    %cst_79 = arith.constant dense<0.000000e+00> : vector<4x8x32xf32>
    %232 = tpu.matmul %230, %231, %cst_79 {dimension_numbers = #tpu.dot_dimension_numbers<[2], [1], [1], [2], [0, 0, 0, 1, 1, 2], [0], [0]>} : vector<4x8x16xf32>, vector<4x16x32xf32>, vector<4x8x32xf32> -> vector<4x8x32xf32>
    "tpu.trace_stop"() : () -> ()
    %233 = arith.addf %228, %232 : vector<4x8x32xf32>
    %234 = vector.extract_strided_slice %206 {offsets = [0, 5, 0, 0], sizes = [4, 1, 8, 16], strides = [1, 1, 1, 1]} : vector<4x8x8x16xf32> to vector<4x1x8x16xf32>
    %235 = vector.shape_cast %234 : vector<4x1x8x16xf32> to vector<4x8x16xf32>
    %236 = vector.extract_strided_slice %207 {offsets = [0, 0, 160], sizes = [4, 16, 32], strides = [1, 1, 1]} : vector<4x16x256xf32> to vector<4x16x32xf32>
    "tpu.trace_start"() <{level = 10 : i32, message = "bqk,bkm->bqm"}> : () -> ()
    %cst_80 = arith.constant dense<0.000000e+00> : vector<4x8x32xf32>
    %237 = tpu.matmul %235, %236, %cst_80 {dimension_numbers = #tpu.dot_dimension_numbers<[2], [1], [1], [2], [0, 0, 0, 1, 1, 2], [0], [0]>} : vector<4x8x16xf32>, vector<4x16x32xf32>, vector<4x8x32xf32> -> vector<4x8x32xf32>
    "tpu.trace_stop"() : () -> ()
    %238 = arith.addf %233, %237 : vector<4x8x32xf32>
    %239 = vector.extract_strided_slice %206 {offsets = [0, 6, 0, 0], sizes = [4, 1, 8, 16], strides = [1, 1, 1, 1]} : vector<4x8x8x16xf32> to vector<4x1x8x16xf32>
    %240 = vector.shape_cast %239 : vector<4x1x8x16xf32> to vector<4x8x16xf32>
    %241 = vector.extract_strided_slice %207 {offsets = [0, 0, 192], sizes = [4, 16, 32], strides = [1, 1, 1]} : vector<4x16x256xf32> to vector<4x16x32xf32>
    "tpu.trace_start"() <{level = 10 : i32, message = "bqk,bkm->bqm"}> : () -> ()
    %cst_81 = arith.constant dense<0.000000e+00> : vector<4x8x32xf32>
    %242 = tpu.matmul %240, %241, %cst_81 {dimension_numbers = #tpu.dot_dimension_numbers<[2], [1], [1], [2], [0, 0, 0, 1, 1, 2], [0], [0]>} : vector<4x8x16xf32>, vector<4x16x32xf32>, vector<4x8x32xf32> -> vector<4x8x32xf32>
    "tpu.trace_stop"() : () -> ()
    %243 = arith.addf %238, %242 : vector<4x8x32xf32>
    %244 = vector.extract_strided_slice %206 {offsets = [0, 7, 0, 0], sizes = [4, 1, 8, 16], strides = [1, 1, 1, 1]} : vector<4x8x8x16xf32> to vector<4x1x8x16xf32>
    %245 = vector.shape_cast %244 : vector<4x1x8x16xf32> to vector<4x8x16xf32>
    %246 = vector.extract_strided_slice %207 {offsets = [0, 0, 224], sizes = [4, 16, 32], strides = [1, 1, 1]} : vector<4x16x256xf32> to vector<4x16x32xf32>
    "tpu.trace_start"() <{level = 10 : i32, message = "bqk,bkm->bqm"}> : () -> ()
    %cst_82 = arith.constant dense<0.000000e+00> : vector<4x8x32xf32>
    %247 = tpu.matmul %245, %246, %cst_82 {dimension_numbers = #tpu.dot_dimension_numbers<[2], [1], [1], [2], [0, 0, 0, 1, 1, 2], [0], [0]>} : vector<4x8x16xf32>, vector<4x16x32xf32>, vector<4x8x32xf32> -> vector<4x8x32xf32>
    "tpu.trace_stop"() : () -> ()
    %248 = arith.addf %243, %247 : vector<4x8x32xf32>
    %249 = vector.shape_cast %20 : vector<1x32xf32> to vector<1x1x32xf32>
    %250 = vector.broadcast %249 : vector<1x1x32xf32> to vector<4x8x32xf32>
    %251 = arith.addf %248, %250 : vector<4x8x32xf32>
    %252 = vector.shape_cast %102 : vector<64x32xf32> to vector<4x16x32xf32>
    %253 = vector.shape_cast %180 : vector<32x32xf32> to vector<4x8x32xf32>
    %c0_83 = arith.constant 0 : index
    %c0_84 = arith.constant 0 : index
    %c0_85 = arith.constant 0 : index
    %254 = vector.load %arg4[%c0_83, %c0_84, %c0_85] : memref<4x16x1xf32, #tpu.memory_space<vmem>>, vector<4x16x1xf32>
    %c0_86 = arith.constant 0 : index
    %c0_87 = arith.constant 0 : index
    %c0_88 = arith.constant 0 : index
    %255 = vector.load %arg5[%c0_86, %c0_87, %c0_88] : memref<4x8x2xf32, #tpu.memory_space<vmem>>, vector<4x8x2xf32>
    %256 = vector.broadcast %254 : vector<4x16x1xf32> to vector<4x16x32xf32>
    %257 = arith.mulf %252, %256 : vector<4x16x32xf32>
    %cst_89 = arith.constant dense<0.000000e+00> : vector<4x32xf32>
    %258 = vector.multi_reduction <add>, %257, %cst_89 [1] : vector<4x16x32xf32> to vector<4x32xf32>
    %259 = vector.extract_strided_slice %255 {offsets = [0, 0, 0], sizes = [4, 8, 1], strides = [1, 1, 1]} : vector<4x8x2xf32> to vector<4x8x1xf32>
    %260 = vector.broadcast %259 : vector<4x8x1xf32> to vector<4x8x32xf32>
    %261 = arith.mulf %253, %260 : vector<4x8x32xf32>
    %cst_90 = arith.constant dense<0.000000e+00> : vector<4x32xf32>
    %262 = vector.multi_reduction <add>, %261, %cst_90 [1] : vector<4x8x32xf32> to vector<4x32xf32>
    %263 = vector.extract_strided_slice %255 {offsets = [0, 0, 1], sizes = [4, 8, 1], strides = [1, 1, 1]} : vector<4x8x2xf32> to vector<4x8x1xf32>
    %264 = vector.broadcast %263 : vector<4x8x1xf32> to vector<4x8x32xf32>
    %265 = arith.mulf %251, %264 : vector<4x8x32xf32>
    %cst_91 = arith.constant dense<0.000000e+00> : vector<4x32xf32>
    %266 = vector.multi_reduction <add>, %265, %cst_91 [1] : vector<4x8x32xf32> to vector<4x32xf32>
    %c0_92 = arith.constant 0 : index
    %c0_93 = arith.constant 0 : index
    %267 = vector.load %arg11[%c0_92, %c0_93] : memref<96x3xf32, #tpu.memory_space<vmem>>, vector<96x3xf32>
    %268 = vector.extract_strided_slice %267 {offsets = [0, 0], sizes = [32, 3], strides = [1, 1]} : vector<96x3xf32> to vector<32x3xf32>
    %cst_94 = arith.constant dense<0.000000e+00> : vector<4x3xf32>
    %269 = tpu.matmul %258, %268, %cst_94 {dimension_numbers = #tpu.dot_dimension_numbers<[1], [0], [0], [1], [0, 0, 1, 1], [], []>} : vector<4x32xf32>, vector<32x3xf32>, vector<4x3xf32> -> vector<4x3xf32>
    %270 = vector.extract_strided_slice %267 {offsets = [32, 0], sizes = [32, 3], strides = [1, 1]} : vector<96x3xf32> to vector<32x3xf32>
    %cst_95 = arith.constant dense<0.000000e+00> : vector<4x3xf32>
    %271 = tpu.matmul %266, %270, %cst_95 {dimension_numbers = #tpu.dot_dimension_numbers<[1], [0], [0], [1], [0, 0, 1, 1], [], []>} : vector<4x32xf32>, vector<32x3xf32>, vector<4x3xf32> -> vector<4x3xf32>
    %272 = arith.addf %269, %271 : vector<4x3xf32>
    %273 = vector.extract_strided_slice %267 {offsets = [64, 0], sizes = [32, 3], strides = [1, 1]} : vector<96x3xf32> to vector<32x3xf32>
    %cst_96 = arith.constant dense<0.000000e+00> : vector<4x3xf32>
    %274 = tpu.matmul %262, %273, %cst_96 {dimension_numbers = #tpu.dot_dimension_numbers<[1], [0], [0], [1], [0, 0, 1, 1], [], []>} : vector<4x32xf32>, vector<32x3xf32>, vector<4x3xf32> -> vector<4x3xf32>
    %275 = arith.addf %272, %274 : vector<4x3xf32>
    %c0_97 = arith.constant 0 : index
    %c0_98 = arith.constant 0 : index
    %276 = vector.load %arg15[%c0_97, %c0_98] : memref<1x3xf32, #tpu.memory_space<vmem>>, vector<1x3xf32>
    %277 = vector.broadcast %276 : vector<1x3xf32> to vector<4x3xf32>
    %278 = arith.addf %275, %277 : vector<4x3xf32>
    %279 = vector.shape_cast %278 : vector<4x3xf32> to vector<4x1x3xf32>
    %c0_99 = arith.constant 0 : index
    %c0_100 = arith.constant 0 : index
    %c0_101 = arith.constant 0 : index
    %280 = vector.load %arg16[%c0_99, %c0_100, %c0_101] : memref<4x1x3xf32, #tpu.memory_space<vmem>>, vector<4x1x3xf32>
    tpu.vector_store %arg16[%c0_99, %c0_100, %c0_101], %279 {strides = array<i32>} : memref<4x1x3xf32, #tpu.memory_space<vmem>>, vector<4x1x3xf32>,
    return
  }
  func.func @transform_0(%arg0: i32) -> (i32, i32, i32) {
    %c0_i32 = arith.constant 0 : i32
    %c0_i32_0 = arith.constant 0 : i32
    %c0_i32_1 = arith.constant 0 : i32
    return %arg0, %c0_i32, %c0_i32_0 : i32, i32, i32
  }
  func.func @transform_1(%arg0: i32) -> (i32, i32, i32) {
    %c0_i32 = arith.constant 0 : i32
    %c0_i32_0 = arith.constant 0 : i32
    %c0_i32_1 = arith.constant 0 : i32
    return %arg0, %c0_i32, %c0_i32_0 : i32, i32, i32
  }
  func.func @transform_2(%arg0: i32) -> (i32, i32) {
    %c0_i32 = arith.constant 0 : i32
    %c0_i32_0 = arith.constant 0 : i32
    %c0_i32_1 = arith.constant 0 : i32
    return %c0_i32, %c0_i32_0 : i32, i32
  }
  func.func @transform_3(%arg0: i32) -> (i32, i32, i32) {
    %c0_i32 = arith.constant 0 : i32
    %c0_i32_0 = arith.constant 0 : i32
    %c0_i32_1 = arith.constant 0 : i32
    return %arg0, %c0_i32, %c0_i32_0 : i32, i32, i32
  }
  func.func @transform_4(%arg0: i32) -> (i32, i32, i32) {
    %c0_i32 = arith.constant 0 : i32
    %c0_i32_0 = arith.constant 0 : i32
    %c0_i32_1 = arith.constant 0 : i32
    return %arg0, %c0_i32, %c0_i32_0 : i32, i32, i32
  }
  func.func @transform_5(%arg0: i32) -> (i32, i32) {
    %c0_i32 = arith.constant 0 : i32
    %c0_i32_0 = arith.constant 0 : i32
    %c0_i32_1 = arith.constant 0 : i32
    return %c0_i32, %c0_i32_0 : i32, i32
  }
  func.func @transform_6(%arg0: i32) -> (i32, i32) {
    %c0_i32 = arith.constant 0 : i32
    %c0_i32_0 = arith.constant 0 : i32
    %c0_i32_1 = arith.constant 0 : i32
    return %c0_i32, %c0_i32_0 : i32, i32
  }
  func.func @transform_7(%arg0: i32) -> (i32, i32) {
    %c0_i32 = arith.constant 0 : i32
    %c0_i32_0 = arith.constant 0 : i32
    %c0_i32_1 = arith.constant 0 : i32
    return %c0_i32, %c0_i32_0 : i32, i32
  }
  func.func @transform_8(%arg0: i32) -> (i32, i32) {
    %c0_i32 = arith.constant 0 : i32
    %c0_i32_0 = arith.constant 0 : i32
    %c0_i32_1 = arith.constant 0 : i32
    return %c0_i32, %c0_i32_0 : i32, i32
  }
  func.func @transform_9(%arg0: i32) -> (i32, i32, i32) {
    %c0_i32 = arith.constant 0 : i32
    %c0_i32_0 = arith.constant 0 : i32
    %c0_i32_1 = arith.constant 0 : i32
    %c0_i32_2 = arith.constant 0 : i32
    return %c0_i32, %c0_i32_0, %c0_i32_1 : i32, i32, i32
  }
  func.func @transform_10(%arg0: i32) -> (i32, i32) {
    %c0_i32 = arith.constant 0 : i32
    %c0_i32_0 = arith.constant 0 : i32
    %c0_i32_1 = arith.constant 0 : i32
    return %c0_i32, %c0_i32_0 : i32, i32
  }
  func.func @transform_11(%arg0: i32) -> (i32, i32) {
    %c0_i32 = arith.constant 0 : i32
    %c0_i32_0 = arith.constant 0 : i32
    %c0_i32_1 = arith.constant 0 : i32
    return %c0_i32, %c0_i32_0 : i32, i32
  }
  func.func @transform_12(%arg0: i32) -> (i32, i32) {
    %c0_i32 = arith.constant 0 : i32
    %c0_i32_0 = arith.constant 0 : i32
    %c0_i32_1 = arith.constant 0 : i32
    return %c0_i32, %c0_i32_0 : i32, i32
  }
  func.func @transform_13(%arg0: i32) -> (i32, i32) {
    %c0_i32 = arith.constant 0 : i32
    %c0_i32_0 = arith.constant 0 : i32
    %c0_i32_1 = arith.constant 0 : i32
    return %c0_i32, %c0_i32_0 : i32, i32
  }
  func.func @transform_14(%arg0: i32) -> (i32, i32) {
    %c0_i32 = arith.constant 0 : i32
    %c0_i32_0 = arith.constant 0 : i32
    %c0_i32_1 = arith.constant 0 : i32
    return %c0_i32, %c0_i32_0 : i32, i32
  }
  func.func @transform_15(%arg0: i32) -> (i32, i32, i32) {
    %c0_i32 = arith.constant 0 : i32
    %c0_i32_0 = arith.constant 0 : i32
    %c0_i32_1 = arith.constant 0 : i32
    return %arg0, %c0_i32, %c0_i32_0 : i32, i32, i32
  }
}

</mosaic_0001>

<bundles_post_ra>
// kernel: aen_bert_forward.1
= control target key start
LH: loop header
LB: loop body
LE: loop exit
PB: predicated region body
PF: predicated region fallthrough
CT: control target
= control target key end

     0   :  { %s16804_s18 = smov 0   ;;  %s20335_s0 = inlined_call_operand.vmem [shape: f32[8,16,32], index: 0, kind: input, shape index: {}]   ;;  %s20336_s1 = inlined_call_operand.vmem [shape: f32[8,8,32], index: 1, kind: input, shape index: {}]   ;;  %s20337_s2 = inlined_call_operand.vmem [shape: f32[1,16], index: 2, kind: input, shape index: {}]   ;;  %s20338_s3 = inlined_call_operand.vmem [shape: f32[8,16,1], index: 3, kind: input, shape index: {}]   ;;  %s20339_s4 = inlined_call_operand.vmem [shape: f32[8,8,2], index: 4, kind: input, shape index: {}]   ;;  %s20340_s5 = inlined_call_operand.vmem [shape: f32[32,536], index: 5, kind: input, shape index: {}]   ;;  %s20341_s6 = inlined_call_operand.vmem [shape: f32[32,8], index: 6, kind: input, shape index: {}]   ;;  %s20342_s7 = inlined_call_operand.vmem [shape: f32[32,264], index: 7, kind: input, shape index: {}]   ;;  %s20343_s8 = inlined_call_operand.vmem [shape: f32[32,8], index: 8, kind: input, shape index: {}]   ;;  %s20344_s9 = inlined_call_operand.vmem [shape: f32[4,32,32], index: 9, kind: input, shape index: {}]   ;;  %s20345_s10 = inlined_call_operand.vmem [shape: f32[96,3], index: 10, kind: input, shape index: {}]   ;;  %s20346_s11 = inlined_call_operand.vmem [shape: f32[3,8], index: 11, kind: input, shape index: {}]   ;;  %s20347_s12 = inlined_call_operand.vmem [shape: f32[3,32], index: 12, kind: input, shape index: {}]   ;;  %s20348_s13 = inlined_call_operand.vmem [shape: f32[4,32], index: 13, kind: input, shape index: {}]   ;;  %s20349_s14 = inlined_call_operand.vmem [shape: f32[1,3], index: 14, kind: input, shape index: {}]   ;;  %s20350_s15 = inlined_call_operand.vmem [shape: f32[8,1,3], index: 15, kind: output, shape index: {}]  }
   0x1 LB: > { %s14406_s19 = sadd.s32 4294967295, %s16711_s18   ;;  %p14410_p0 = scmp.ge.s32.totalorder %s16711_s18, 1  ;;  %s16711_s18 = sphi %s16804_s18, %s25_s18  }
   0x2   : > { %p473_p1 = scmp.lt.s32.totalorder %s16711_s18, 3 }
   0x4   : > { %p474_p2 = pnand %p14410_p0, %p473_p1 }
   0x6   : > { %477 = sbr.rel (%p474_p2) target bundleno = 4276 (0x10b4), region = 80 }
   0xb   : > { %v597_v0 = vld [vmem:[%s20340_s5 + $0x80] sm:$0xff]  ;;  %v596_v1 = vld [vmem:[%s20340_s5 + $0x78] sm:$0xff]  ;;  %s14411_s26 = sshll.u32 %s14406_s19, 2  ;;  %v591_v3 = vld [vmem:[%s20340_s5 + $0x50] sm:$0xff]  ;;  %v20351_v4 = vmov 0.0   ;;  %vm601_vm0 = vcmask 261120  }
   0xc   : > { %v592_v2 = vld [vmem:[%s20340_s5 + $0x58] sm:$0xff]  ;;  %650 = vmatprep.subr.mxu0 %v597_v0  ;;  %690 = vmatprep.mubr.f32.mxu0 %v20351_v4  ;;  %p538_p3 = scmp.lt.s32.totalorder %s14411_s26, 7  ;;  %v587_v5 = vld [vmem:[%s20340_s5 + $0x30] sm:$0xff]  ;;  %v586_v6 = vld [vmem:[%s20340_s5 + $0x28] sm:$0xff]  ;;  %s16714_s28 = smov 96   ;;  %vm2406_vm1 = vcmask 130048  }
   0xd   : > { %651 = vmatpush1.msra.mxu0 %v596_v1  ;;  %803 = vmatprep.mubr.f32.mxu1 %v20351_v4  ;;  %v582_v7 = vld [vmem:[%s20340_s5 + $0x8] sm:$0xff]  ;;  %v581_v8 = vld [vmem:[%s20340_s5] sm:$0xff]  ;;  %v600_v9 = vld [vmem:[%s20340_s5 + $0x98] sm:$0xff]  ;;  %s16715_s29 = smov 120   ;;  %s16717_s20 = smov 64   ;;  %vm16721_vm2 = vmmov 0  }
   0xe   : > { %652 = vmatprep.subr.mxu0 %v592_v2  ;;  %s20673_s26 = smov (!%p538_p3, %s14411_s26), 7  ;;  %v595_v11 = vld [vmem:[%s20340_s5 + $0x70] sm:$0xff]  ;;  %v590_v13 = vld [vmem:[%s20340_s5 + $0x48] sm:$0xff]  ;;  %v585_v14 = vld [vmem:[%s20340_s5 + $0x20] sm:$0xff]  ;;  %s16718_s25 = smov 32   ;;  %vm14041_vm3 = vcmask 1041409  }
   0xf   : > { %653 = vmatpush1.msra.mxu0 %v591_v3  ;;  %s14651_s23 = sshll.u32 %s20673_s26, 4  ;;  %v599_v21 = vld [vmem:[%s20340_s5 + $0x90] sm:$0xff]  ;;  %v598_v22 = vld [vmem:[%s20340_s5 + $0x88] sm:$0xff]  ;;  %v593_v24 = vld [vmem:[%s20340_s5 + $0x60] sm:$0xff]  ;;  %s14415_s22 = sshll.u32 %s20673_s26, 3  ;;  %vm14043_vm4 = vcmask 1042434  }
  0x10   : > { %654 = vmatprep.subr.mxu0 %v587_v5  ;;  %s16846_s27 = scalar_lea.vmem %s20335_s0, %s14651_s23  ;;  %v594_v23 = vld [vmem:[%s20340_s5 + $0x68] sm:$0xff]  ;;  %763 = vmatprep.subr.mxu1 %v599_v21  ;;  %v589_v25 = vld [vmem:[%s20340_s5 + $0x40] sm:$0xff]  ;;  %v588_v26 = vld [vmem:[%s20340_s5 + $0x38] sm:$0xff]  ;;  %s16719_s30 = smov 16   ;;  %vm14045_vm5 = vcmask 1043459   ;;  %vm14315_vm6 = vcmask 16384  }
  0x11   : > { %655 = vmatpush1.msra.mxu0 %v586_v6  ;;  %v568_v10 = vld [vmem:[%s16846_s27] sm:$0xff]  ;;  %v569_v12 = vld [vmem:[%s16846_s27 + $0x8] sm:$0xff]  ;;  %v570_v15 = vld [vmem:[%s16846_s27 + $0x10] sm:$0xff]  ;;  %764 = vmatpush1.msra.mxu1 %v598_v22  ;;  %s16720_s16 = smov 112   ;;  %s20023_s17 = scalar_lea.vmem %s20338_s3, %s14651_s23 }
  0x12   : > { %656 = vmatprep.subr.mxu0 %v582_v7  ;;  %v571_v16 = vld [vmem:[%s16846_s27 + $0x18] sm:$0xff]  ;;  %v572_v17 = vld [vmem:[%s16846_s27 + $0x20] sm:$0xff]  ;;  %v573_v18 = vld [vmem:[%s16846_s27 + $0x28] sm:$0xff]  ;;  %765 = vmatprep.subr.mxu1 %v594_v23  ;;  %s566_s19 = scalar_lea.vmem %s20350_s15, %s20673_s26 }
  0x13   : > { %657 = vmatpush1.msra.mxu0 %v581_v8  ;;  %v574_v19 = vld [vmem:[%s16846_s27 + $0x30] sm:$0xff]  ;;  %v575_v20 = vld [vmem:[%s16846_s27 + $0x38] sm:$0xff]  ;;  %766 = vmatpush1.msra.mxu1 %v593_v24  ;;  %v958_v31 = vld [vmem:[%s20341_s6 + $0x8] sm:$0xff]  ;;  %s16948_s27 = scalar_lea.vmem %s20336_s1, %s14415_s22 }
  0x14   : > { %14422 = vmatmul.mubr.msk.f32.vlgmr.msra.gmra.mxu0 %vm601_vm0, %v568_v10  ;;  %15068 = vmatprep.subr.mxu0 %v600_v9  ;;  %v584_v27 = vld [vmem:[%s20340_s5 + $0x18] sm:$0xff]  ;;  %v583_v28 = vld [vmem:[%s20340_s5 + $0x10] sm:$0xff]  ;;  %v957_v32 = vld [vmem:[%s20341_s6] sm:$0xff] }
  0x15   : > { %15069 = vmatpush3.msra.mxu0 %v600_v9  ;;  %696 = vmatprep.mubr.f32.mxu0 %v20351_v4  ;;  %v960_v29 = vld [vmem:[%s20341_s6 + $0x18] sm:$0xff]  ;;  %v959_v30 = vld [vmem:[%s20341_s6 + $0x10] sm:$0xff]  ;;  %v576_v33 = vld [vmem:[%s16948_s27] sm:$0xff] }
  0x16   : > { %15070 = vmatprep.subr.mxu0 %v595_v11  ;;  %767 = vmatprep.subr.mxu1 %v589_v25  ;;  %v577_v34 = vld [vmem:[%s16948_s27 + $0x8] sm:$0xff]  ;;  %v14450_v58 = vld [vmem:[%s20346_s11] ss:$0 sm:$0xff] }
  0x17   : > { %15071 = vmatpush3.msra.mxu0 %v595_v11  ;;  %768 = vmatpush1.msra.mxu1 %v588_v26 }
  0x18   : > { %14423 = vmatmul.mubr.msk.f32.gmra.mxu0 %vm601_vm0, %v569_v12  ;;  %15072 = vmatprep.subr.mxu0 %v590_v13 }
  0x19   : > { %702 = vmatprep.mubr.f32.mxu0 %v20351_v4  ;;  %15073 = vmatpush3.msra.mxu0 %v590_v13 }
  0x1a   : > { %15074 = vmatprep.subr.mxu0 %v585_v14  ;;  %769 = vmatprep.subr.mxu1 %v584_v27 }
  0x1b   : > { %15075 = vmatpush3.msra.mxu0 %v585_v14  ;;  %770 = vmatpush1.msra.mxu1 %v583_v28 }
  0x1c   : > { %14424 = vmatmul.mubr.msk.f32.gmra.mxu0 %vm601_vm0, %v570_v15  ;;  %14430 = vmatmul.mubr.msk.f32.vlgmr.msra.gmra.mxu1 %vm601_vm0, %v568_v10 }
  0x1d   : > { %708 = vmatprep.mubr.f32.mxu0 %v20351_v4  ;;  %809 = vmatprep.mubr.f32.mxu1 %v20351_v4 }
  0x1e   : > { %15088 = vmatprep.subr.mxu1 %v960_v29 }
  0x1f   : > { %15089 = vmatpush3.msra.mxu1 %v960_v29 }
  0x20   : > { %14425 = vmatmul.mubr.msk.f32.gmra.mxu0 %vm601_vm0, %v571_v16  ;;  %14431 = vmatmul.mubr.msk.f32.gmra.mxu1 %vm601_vm0, %v569_v12 }
  0x21   : > { %714 = vmatprep.mubr.f32.mxu0 %v20351_v4  ;;  %815 = vmatprep.mubr.f32.mxu1 %v20351_v4 }
  0x22   : > { %15090 = vmatprep.subr.mxu1 %v959_v30 }
  0x23   : > { %15091 = vmatpush3.msra.mxu1 %v959_v30 }
  0x24   : > { %14426 = vmatmul.mubr.msk.f32.gmra.mxu0 %vm601_vm0, %v572_v17  ;;  %14432 = vmatmul.mubr.msk.f32.gmra.mxu1 %vm601_vm0, %v570_v15 }
  0x25   : > { %720 = vmatprep.mubr.f32.mxu0 %v20351_v4  ;;  %821 = vmatprep.mubr.f32.mxu1 %v20351_v4 }
  0x26   : > { %15092 = vmatprep.subr.mxu1 %v958_v31 }
  0x27   : > { %15093 = vmatpush3.msra.mxu1 %v958_v31 }
  0x28   : > { %14427 = vmatmul.mubr.msk.f32.gmra.mxu0 %vm601_vm0, %v573_v18  ;;  %14433 = vmatmul.mubr.msk.f32.gmra.mxu1 %vm601_vm0, %v571_v16 }
  0x29   : > { %726 = vmatprep.mubr.f32.mxu0 %v20351_v4  ;;  %827 = vmatprep.mubr.f32.mxu1 %v20351_v4 }
  0x2a   : > { %15094 = vmatprep.subr.mxu1 %v957_v32 }
  0x2b   : > { %15095 = vmatpush3.msra.mxu1 %v957_v32 }
  0x2c   : > { %14428 = vmatmul.mubr.msk.f32.gmra.mxu0 %vm601_vm0, %v574_v19  ;;  %14434 = vmatmul.mubr.msk.f32.gmra.mxu1 %vm601_vm0, %v572_v17 }
  0x2d   : > { %732 = vmatprep.mubr.f32.mxu0 %v20351_v4  ;;  %833 = vmatprep.mubr.f32.mxu1 %v20351_v4 }
  0x30   : > { %14429 = vmatmul.mubr.msk.f32.gmra.mxu0 %vm601_vm0, %v575_v20  ;;  %14435 = vmatmul.mubr.msk.f32.gmra.mxu1 %vm601_vm0, %v573_v18 }
  0x31   : > { %15076 = vmatprep.mubr.msk.f32.mxu0 %vm601_vm0, %v568_v10  ;;  %839 = vmatprep.mubr.f32.mxu1 %v20351_v4 }
  0x34   : > { %15077 = vmatmul.mubr.msk.f32.vlgmr.msra.gmra.mxu0 %vm601_vm0, %v569_v12  ;;  %14436 = vmatmul.mubr.msk.f32.gmra.mxu1 %vm601_vm0, %v574_v19 }
  0x35   : > { %15079 = vmatprep.mubr.msk.f32.mxu0 %vm601_vm0, %v570_v15  ;;  %845 = vmatprep.mubr.f32.mxu1 %v20351_v4 }
  0x38   : > { %15080 = vmatmul.mubr.msk.f32.gmra.mxu0 %vm601_vm0, %v571_v16  ;;  %14437 = vmatmul.mubr.msk.f32.gmra.mxu1 %vm601_vm0, %v575_v20 }
  0x39   : > { %15082 = vmatprep.mubr.msk.f32.mxu0 %vm601_vm0, %v572_v17  ;;  %15096 = vmatprep.mubr.msk.f32.mxu1 %vm601_vm0, %v576_v33 }
  0x3c   : > { %15083 = vmatmul.mubr.msk.f32.gmra.mxu0 %vm601_vm0, %v573_v18  ;;  %15097 = vmatmul.mubr.msk.f32.vlgmr.msra.gmra.mxu1 %vm601_vm0, %v577_v34 }
  0x3d   : > { %15085 = vmatprep.mubr.msk.f32.mxu0 %vm601_vm0, %v574_v19 }
  0x40   : > { %15086 = vmatmul.mubr.msk.f32.gmra.mxu0 %vm601_vm0, %v575_v20  ;;  %v1368_v20 = vlaneseq }
  0x42   : > { %v17051_v22 = vshrl.u32 %v1368_v20, 7 }
  0x44   : > { %v17056_v24 = vsub.s32 1, %v17051_v22  ;;  %v17059_v25 = vsub.s32 2, %v17051_v22  ;;  %v17062_v27 = vsub.s32 0, %v17051_v22  ;;  %v17070_v32 = vsub.s32 3, %v17051_v22 }
  0x46   : > { %20475 = vst [vmem:[#allocation18_spill] sm:$0xff] %v17056_v24  ;;  %20476 = vst [vmem:[#allocation19_spill] sm:$0xff] %v17059_v25 }
  0x47   : > { %20477 = vst [vmem:[#allocation20_spill] sm:$0xff] %v17070_v32 }
  0xd4   : > { %v16954_v35 = vpop.f32.mrf.mxu0 }
  0xd5   : > { %2729 = vrot.lane.b32.xlu0 %v16954_v35, %s16714_s28 }
  0xd6   : > { %v16958_v36 = vpop.f32.mrf.mxu0 }
  0xd7   : > { %20459 = vst [vmem:[#allocation2_spill] sm:$0xff] %v16958_v36 }
  0xd8   : > { %v16960_v37 = vpop.f32.mrf.mxu0 }
  0xd9   : > { %2731 = vrot.lane.b32.xlu1 %v16960_v37, %s16714_s28  ;;  %15130 = vmatprep.subr.mxu0 %v16960_v37 }
  0xda   : > { %v16965_v38 = vpop.f32.mrf.mxu0  ;;  %15131 = vmatpush3.msra.mxu0 %v16960_v37 }
  0xdb   : > { %20460 = vst [vmem:[#allocation3_spill] sm:$0xff] %v16965_v38  ;;  %15132 = vmatprep.subr.mxu0 %v16954_v35 }
  0xdc   : > { %v16969_v39 = vpop.f32.mrf.mxu0  ;;  %15133 = vmatpush3.msra.mxu0 %v16954_v35 }
  0xdd   : > { %2818 = vrot.lane.b32.xlu0 %v16969_v39, %s16714_s28 }
  0xde   : > { %v16974_v40 = vpop.f32.mrf.mxu0 }
  0xdf   : > { %20461 = vst [vmem:[#allocation4_spill] sm:$0xff] %v16974_v40 }
  0xe0   : > { %v16976_v41 = vpop.f32.mrf.mxu0 }
  0xe1   : > { %2820 = vrot.lane.b32.xlu1 %v16976_v41, %s16714_s28 }
  0xe2   : > { %v16980_v42 = vpop.f32.mrf.mxu0 }
  0xe3   : > { %20462 = vst [vmem:[#allocation5_spill] sm:$0xff] %v16980_v42 }
  0xe4   : > { %v16982_v43 = vpop.f32.mrf.mxu0 }
  0xe5   : > { %2907 = vrot.lane.b32.xlu0 %v16982_v43, %s16714_s28 }
  0xe6   : > { %v16986_v44 = vpop.f32.mrf.mxu0 }
  0xe7   : > { %20463 = vst [vmem:[#allocation6_spill] sm:$0xff] %v16986_v44 }
  0xe8   : > { %v16988_v45 = vpop.f32.mrf.mxu0 }
  0xe9   : > { %2909 = vrot.lane.b32.xlu1 %v16988_v45, %s16714_s28  ;;  %15144 = vmatprep.subr.mxu0 %v16988_v45 }
  0xea   : > { %v16993_v46 = vpop.f32.mrf.mxu0 }
  0xeb   : > { %20464 = vst [vmem:[#allocation7_spill] sm:$0xff] %v16993_v46 }
  0xec   : > { %v16995_v47 = vpop.f32.mrf.mxu0 }
  0xee   : > { %v16997_v48 = vpop.f32.mrf.mxu0 }
  0xef   : > { %20465 = vst [vmem:[#allocation8_spill] sm:$0xff] %v16997_v48 }
  0xf0   : > { %v16999_v49 = vpop.f32.mrf.mxu0 }
  0xf2   : > { %v17001_v50 = vpop.f32.mrf.mxu0 }
  0xf3   : > { %20466 = vst [vmem:[#allocation9_spill] sm:$0xff] %v17001_v50 }
  0xf4   : > { %v17003_v51 = vpop.f32.mrf.mxu0 }
  0xf5   : > { %20467 = vst [vmem:[#allocation10_spill] sm:$0xff] %v17003_v51  ;;  %1218 = vrot.lane.b32.xlu0 %v17003_v51, %s16715_s29  ;;  %v1073_v60 = vadd.f32 %v17003_v51, %v14450_v58 }
  0xf6   : > { %v17006_v52 = vpop.f32.mrf.mxu0 }
  0xf7   : > { %20468 = vst [vmem:[#allocation11_spill] sm:$0xff] %v17006_v52  ;;  %v1072_v59 = vadd.f32 %v14450_v58, %v17006_v52 }
  0xf8   : > { %v17008_v53 = vpop.f32.mrf.mxu0 }
  0xf9   : > { %20469 = vst [vmem:[#allocation12_spill] sm:$0xff] %v17008_v53  ;;  %1216 = vrot.lane.b32.xlu0 %v17006_v52, %s16715_s29  ;;  %1222 = vrot.lane.b32.xlu1 %v17008_v53, %s16715_s29  ;;  %v1075_v62 = vadd.f32 %v17008_v53, %v14450_v58  ;;  %v578_v53 = vld [vmem:[%s16948_s27 + $0x10] sm:$0xff] }
  0xfa   : > { %v17012_v54 = vpop.f32.mrf.mxu0  ;;  %15099 = vmatprep.mubr.msk.f32.mxu1 %vm601_vm0, %v578_v53 }
  0xfb   : > { %20470 = vst [vmem:[#allocation13_spill] sm:$0xff] %v17012_v54  ;;  %v1074_v61 = vadd.f32 %v14450_v58, %v17012_v54 }
  0xfc   : > { %v17014_v55 = vpop.f32.mrf.mxu0 }
  0xfd   : > { %20471 = vst [vmem:[#allocation14_spill] sm:$0xff] %v17014_v55  ;;  %1220 = vrot.lane.b32.xlu1 %v17012_v54, %s16715_s29  ;;  %v1077_v11 = vadd.f32 %v17014_v55, %v14450_v58 }
  0xfe   : > { %v17017_v56 = vpop.f32.mrf.mxu0 }
  0xff   : > { %20472 = vst [vmem:[#allocation15_spill] sm:$0xff] %v17017_v56  ;;  %v1076_v8 = vadd.f32 %v14450_v58, %v17017_v56 }
 0x100   : > { %v17020_v57 = vpop.f32.mrf.mxu0 }
 0x101   : > { %1226 = vrot.lane.b32.xlu1 %v17014_v55, %s16715_s29  ;;  %20473 = vst [vmem:[#allocation16_spill] sm:$0xff] %v17020_v57  ;;  %v1079_v1 = vadd.f32 %v17020_v57, %v14450_v58 }
 0x102   : > { %v17030_v63 = vpop.f32.mrf.mxu0 }
 0x103   : > { %20474 = vst [vmem:[#allocation17_spill] sm:$0xff] %v17030_v63  ;;  %v1078_v0 = vadd.f32 %v14450_v58, %v17030_v63 }
 0x105   : > { %1230 = vrot.lane.b32.xlu1 %v17020_v57, %s16715_s29 }
 0x117   : > { %1080 = vxpose.xlu0.b32.start [1/2] (short) (narrow) %v1072_v59, 8  ;;  %v17075_v59 = vsub.s32 4, %v17051_v22 }
 0x119   : > { %20478 = vst [vmem:[#allocation21_spill] sm:$0xff] %v17075_v59 }
 0x11b   : > { %1081 = vxpose.xlu0.b32.end [2/2] (short) (narrow) %v1073_v60, 8 }
 0x12e   : > { %1112 = vxpose.xlu1.b32.start [1/2] (short) (narrow) %v1074_v61, 8 }
 0x132   : > { %1113 = vxpose.xlu1.b32.end [2/2] (short) (narrow) %v1075_v62, 8 }
 0x136   : > { %1176 = vxpose.xlu1.b32.start [1/2] (short) (narrow) %v1078_v0, 8  ;;  %v17081_v0 = vsub.s32 5, %v17051_v22 }
 0x138   : > { %20479 = vst [vmem:[#allocation22_spill] sm:$0xff] %v17081_v0 }
 0x13a   : > { %1177 = vxpose.xlu1.b32.end [2/2] (short) (narrow) %v1079_v1, 8  ;;  %v17084_v1 = vsub.s32 7, %v17051_v22 }
 0x13c   : > { %20480 = vst [vmem:[#allocation23_spill] sm:$0xff] %v17084_v1 }
 0x144   : > { %1224 = vrot.lane.b32.xlu0 %v17017_v56, %s16715_s29 }
 0x147   : > { %v2730_v3 = vpop.permute.xlu0 %2729 }
 0x148   : > { %1228 = vrot.lane.b32.xlu0 %v17030_v63, %s16715_s29 }
 0x14b   : > { %v2732_v2 = vpop.permute.xlu1 %2731 }
 0x14c   : > { %15102 = vmatprep.subr.mxu1 %v2732_v2 }
 0x14d   : > { %15103 = vmatpush3.msra.mxu1 %v2732_v2 }
 0x14e   : > { %15104 = vmatprep.subr.mxu1 %v2730_v3 }
 0x14f   : > { %15105 = vmatpush3.msra.mxu1 %v2730_v3  ;;  %v17039_v6 = vpop.permute.xlu0 %2818 }
 0x153   : > { %v17036_v5 = vpop.permute.xlu1 %2820 }
 0x154   : > { %15109 = vmatprep.subr.mxu1 %v17036_v5 }
 0x157   : > { %v17041_v7 = vpop.permute.xlu0 %2907 }
 0x15b   : > { %v17044_v9 = vpop.permute.xlu1 %2909 }
 0x166   : > { %1144 = vxpose.xlu0.b32.start [1/2] (short) (narrow) %v1076_v8, 8  ;;  %v17089_v8 = vsub.s32 6, %v17051_v22 }
 0x167   : > { %v1219_v10 = vpop.permute.xlu0 %1218 }
 0x168   : > { %20481 = vst [vmem:[#allocation24_spill] sm:$0xff] %v17089_v8 }
 0x16a   : > { %1145 = vxpose.xlu0.b32.end [2/2] (short) (narrow) %v1077_v11, 8 }
 0x16b   : > { %v1223_v12 = vpop.permute.xlu1 %1222  ;;  %v1217_v13 = vpop.permute.xlu0 %1216 }
 0x16e   : > { %1240 = vxpose.xlu0.b32.start [1/2] (short) (narrow) %v1217_v13, 8 }
 0x16f   : > { %v1221_v14 = vpop.permute.xlu1 %1220 }
 0x170   : > { %1272 = vxpose.xlu1.b32.start [1/2] (short) (narrow) %v1221_v14, 8 }
 0x172   : > { %1241 = vxpose.xlu0.b32.end [2/2] (short) (narrow) %v1219_v10, 8 }
 0x173   : > { %v1227_v17 = vpop.permute.xlu1 %1226 }
 0x174   : > { %1273 = vxpose.xlu1.b32.end [2/2] (short) (narrow) %v1223_v12, 8 }
 0x177   : > { %v1231_v19 = vpop.permute.xlu1 %1230 }
 0x193   : > { %v17047_v15 = vpop.trf.xlu0 }
 0x1aa   : > { %v17053_v23 = vpop.trf.xlu1 }
 0x1b2   : > { %v17065_v29 = vpop.trf.xlu1 }
 0x1b6   : > { %v1225_v16 = vpop.permute.xlu0 %1224 }
 0x1b7   : > { %1304 = vxpose.xlu0.b32.start [1/2] (short) (narrow) %v1225_v16, 8 }
 0x1ba   : > { %v1229_v18 = vpop.permute.xlu0 %1228 }
 0x1bb   : > { %1305 = vxpose.xlu0.b32.end [2/2] (short) (narrow) %v1227_v17, 8 }
 0x1bf   : > { %1336 = vxpose.xlu0.b32.start [1/2] (short) (narrow) %v1229_v18, 8 }
 0x1c3   : > { %1337 = vxpose.xlu0.b32.end [2/2] (short) (narrow) %v1231_v19, 8 }
 0x1e2   : > { %v17049_v21 = vpop.trf.xlu0 }
 0x1ea   : > { %v1256_v26 = vpop.trf.xlu0 }
 0x1eb   : > { %v1382_v28 = vrot.slane %v1256_v26, %v17056_v24  ;;  %v1371_v30 = vrot.slane %v1256_v26, %v17062_v27  ;;  %v1393_v31 = vrot.slane %v1256_v26, %v17059_v25  ;;  %v1404_v33 = vrot.slane %v1256_v26, %v17070_v32 }
 0x1ec   : > { %v1288_v34 = vpop.trf.xlu1  ;;  %v1415_v61 = vrot.slane %v1256_v26, %v17075_v59  ;;  %v1426_v3 = vrot.slane %v1256_v26, %v17081_v0  ;;  %v1437_v10 = vrot.slane %v1256_v26, %v17089_v8  ;;  %v1448_v11 = vrot.slane %v1256_v26, %v17084_v1 }
 0x1ed   : > { %1388 = vbcast.lane.b32.xlu0 %v1382_v28, 264  ;;  %1384 = vbcast.lane.b32.xlu1 %v1382_v28, 256  ;;  %v1470_v58 = vrot.slane %v1288_v34, %v17056_v24  ;;  %v1459_v60 = vrot.slane %v1288_v34, %v17062_v27  ;;  %v1481_v62 = vrot.slane %v1288_v34, %v17059_v25  ;;  %v16716_v26 = vmov 1966171168  }
 0x1ee   : > { %v1536_v2 = vrot.slane %v1288_v34, %v17084_v1  ;;  %v1492_v12 = vrot.slane %v1288_v34, %v17070_v32  ;;  %v1503_v13 = vrot.slane %v1288_v34, %v17075_v59  ;;  %v1514_v17 = vrot.slane %v1288_v34, %v17081_v0 }
 0x1ef   : > { %v1525_v19 = vrot.slane %v1288_v34, %v17089_v8  ;;  %v1726_v28 = vunpack.c.l.s4 %v16716_v26 }
 0x1f1   : > { %1373 = vbcast.lane.b32.xlu0 %v1371_v30, 256  ;;  %1395 = vbcast.lane.b32.xlu1 %v1393_v31, 256 }
 0x1f5   : > { %1377 = vbcast.lane.b32.xlu0 %v1371_v30, 264  ;;  %1406 = vbcast.lane.b32.xlu1 %v1404_v33, 256 }
 0x1f9   : > { %1399 = vbcast.lane.b32.xlu0 %v1393_v31, 264  ;;  %1472 = vbcast.lane.b32.xlu1 %v1470_v58, 256  ;;  %v1727_v31 = vunpack.c.0.s8 %v1726_v28 }
 0x1fd   : > { %1410 = vbcast.lane.b32.xlu0 %v1404_v33, 264  ;;  %1476 = vbcast.lane.b32.xlu1 %v1470_v58, 264  ;;  %v17102_v33 = vsub.s32 %v1727_v31, %v17051_v22 }
 0x1ff   : > { %20482 = vst [vmem:[#allocation25_spill] sm:$0xff] %v17102_v33 }
 0x201   : > { %1417 = vbcast.lane.b32.xlu0 %v1415_v61, 256  ;;  %1465 = vbcast.lane.b32.xlu1 %v1459_v60, 264 }
 0x205   : > { %1421 = vbcast.lane.b32.xlu0 %v1415_v61, 264  ;;  %1487 = vbcast.lane.b32.xlu1 %v1481_v62, 264 }
 0x209   : > { %1428 = vbcast.lane.b32.xlu0 %v1426_v3, 256  ;;  %1542 = vbcast.lane.b32.xlu1 %v1536_v2, 264 }
 0x20d   : > { %1432 = vbcast.lane.b32.xlu0 %v1426_v3, 264 }
 0x211   : > { %1439 = vbcast.lane.b32.xlu0 %v1437_v10, 256 }
 0x215   : > { %1443 = vbcast.lane.b32.xlu0 %v1437_v10, 264 }
 0x219   : > { %1450 = vbcast.lane.b32.xlu0 %v1448_v11, 256 }
 0x21d   : > { %1454 = vbcast.lane.b32.xlu0 %v1448_v11, 264 }
 0x221   : > { %1461 = vbcast.lane.b32.xlu0 %v1459_v60, 256  ;;  %v17108_v60 = vrot.slane %v17047_v15, %v17102_v33 }
 0x223   : > { %v1739_v61 = vcombine.high %v17108_v60, %v17108_v60 }
 0x225   : > { %1483 = vbcast.lane.b32.xlu0 %v1481_v62, 256  ;;  %v17119_v10 = vrot.slane %v1739_v61, %v17102_v33 }
 0x229   : > { %1494 = vbcast.lane.b32.xlu0 %v1492_v12, 256 }
 0x22d   : > { %1498 = vbcast.lane.b32.xlu0 %v1492_v12, 264  ;;  %v17127_v12 = vrot.slane %v17053_v23, %v17102_v33 }
 0x231   : > { %1505 = vbcast.lane.b32.xlu0 %v1503_v13, 256 }
 0x233   : > { %v1320_v14 = vpop.trf.xlu0 }
 0x234   : > { %v1558_v16 = vrot.slane %v1320_v14, %v17056_v24  ;;  %v1547_v18 = vrot.slane %v1320_v14, %v17062_v27  ;;  %v1569_v20 = vrot.slane %v1320_v14, %v17059_v25  ;;  %v1591_v30 = vrot.slane %v1320_v14, %v17075_v59 }
 0x235   : > { %1509 = vbcast.lane.b32.xlu0 %v1503_v13, 264  ;;  %v1580_v34 = vrot.slane %v1320_v14, %v17070_v32  ;;  %v1602_v58 = vrot.slane %v1320_v14, %v17081_v0  ;;  %v1624_v22 = vrot.slane %v1320_v14, %v17084_v1  ;;  %v17131_v13 = vrot.slane %v17119_v10, %v17062_v27 }
 0x236   : > { %1560 = vbcast.lane.b32.xlu1 %v1558_v16, 256 }
 0x239   : > { %1516 = vbcast.lane.b32.xlu0 %v1514_v17, 256 }
 0x23a   : > { %1564 = vbcast.lane.b32.xlu1 %v1558_v16, 264 }
 0x23b   : > { %v17112_v62 = vpop.trf.xlu0 }
 0x23c   : > { %v1668_v3 = vrot.slane %v17112_v62, %v17070_v32  ;;  %v17123_v11 = vrot.slane %v17112_v62, %v17084_v1 }
 0x23d   : > { %1520 = vbcast.lane.b32.xlu0 %v1514_v17, 264 }
 0x23e   : > { %1549 = vbcast.lane.b32.xlu1 %v1547_v18, 256 }
 0x241   : > { %1527 = vbcast.lane.b32.xlu0 %v1525_v19, 256 }
 0x242   : > { %1553 = vbcast.lane.b32.xlu1 %v1547_v18, 264  ;;  %v1788_v18 = vcombine.high %v17127_v12, %v17127_v12 }
 0x244   : > { %v17146_v28 = vrot.slane %v1788_v18, %v17102_v33 }
 0x245   : > { %1531 = vbcast.lane.b32.xlu0 %v1525_v19, 264  ;;  %v1646_v19 = vrot.slane %v17112_v62, %v17056_v24  ;;  %v1657_v24 = vrot.slane %v17112_v62, %v17059_v25  ;;  %v1747_v25 = vrot.slane %v17108_v60, %v17102_v33 }
 0x246   : > { %1575 = vbcast.lane.b32.xlu1 %v1569_v20, 264 }
 0x247   : > { %v1769_v63 = vcombine.high %v1747_v25, %v1747_v25 }
 0x249   : > { %1538 = vbcast.lane.b32.xlu0 %v1536_v2, 256  ;;  %v1613_v2 = vrot.slane %v1320_v14, %v17089_v8 }
 0x24a   : > { %1593 = vbcast.lane.b32.xlu1 %v1591_v30, 256 }
 0x24d   : > { %1571 = vbcast.lane.b32.xlu0 %v1569_v20, 256 }
 0x24e   : > { %1597 = vbcast.lane.b32.xlu1 %v1591_v30, 264 }
 0x251   : > { %1582 = vbcast.lane.b32.xlu0 %v1580_v34, 256 }
 0x252   : > { %1604 = vbcast.lane.b32.xlu1 %v1602_v58, 256 }
 0x255   : > { %1586 = vbcast.lane.b32.xlu0 %v1580_v34, 264  ;;  %v1959_v34 = vrot.slane %v17146_v28, %v17062_v27 }
 0x256   : > { %1608 = vbcast.lane.b32.xlu1 %v1602_v58, 264 }
 0x259   : > { %1626 = vbcast.lane.b32.xlu0 %v1624_v22, 256 }
 0x25a   : > { %1615 = vbcast.lane.b32.xlu1 %v1613_v2, 256 }
 0x25d   : > { %1670 = vbcast.lane.b32.xlu0 %v1668_v3, 256 }
 0x25e   : > { %1619 = vbcast.lane.b32.xlu1 %v1613_v2, 264  ;;  %v1635_v2 = vrot.slane %v17112_v62, %v17062_v27 }
 0x25f   : > { %v17133_v14 = vpop.permute.xlu0 %1388  ;;  %v1385_v16 = vpop.permute.xlu1 %1384 }
 0x260   : > { %v2082_v17 = vadd.f32 %v17131_v13, %v1385_v16  ;;  %v17161_v16 = vld [vmem:[%s20337_s2] ss:$0 sm:$0xff] }
 0x261   : > { %1714 = vbcast.lane.b32.xlu0 %v17123_v11, 256 }
 0x262   : > { %1630 = vbcast.lane.b32.xlu1 %v1624_v22, 264  ;;  %15933 = vtanh.f32 %v2082_v17 }
 0x263   : > { %v17141_v20 = vpop.permute.xlu0 %1373  ;;  %v17143_v26 = vpop.permute.xlu1 %1395 }
 0x266   : > { %1648 = vbcast.lane.b32.xlu1 %v1646_v19, 256 }
 0x267   : > { %v17148_v30 = vpop.permute.xlu0 %1377  ;;  %v17150_v31 = vpop.permute.xlu1 %1406 }
 0x26a   : > { %1652 = vbcast.lane.b32.xlu1 %v1646_v19, 264 }
 0x26b   : > { %v17154_v58 = vpop.permute.xlu0 %1399  ;;  %v1473_v61 = vpop.permute.xlu1 %1472 }
 0x26c   : > { %v2098_v22 = vadd.f32 %v1959_v34, %v1473_v61 }
 0x26e   : > { %1637 = vbcast.lane.b32.xlu1 %v1635_v2, 256  ;;  %15935 = vtanh.f32 %v2098_v22 }
 0x26f   : > { %v17163_v17 = vpop.permute.xlu0 %1410  ;;  %v1477_v18 = vpop.permute.xlu1 %1476 }
 0x270   : > { %v15934_v19 = vpop.eup %15933  ;;  %v2099_v4 = vadd.f32 %v1959_v34, %v1477_v18 }
 0x271   : > { %v2216_v32 = vadd.f32 %v15934_v19, %v17161_v16 }
 0x272   : > { %1641 = vbcast.lane.b32.xlu1 %v1635_v2, 264  ;;  %15937 = vtanh.f32 %v2099_v4 }
 0x273   : > { %v17166_v61 = vpop.permute.xlu0 %1417  ;;  %v2282_v1 = vmul.f32 1.442695, %v2216_v32  ;;  %v1679_v32 = vrot.slane %v17112_v62, %v17075_v59  ;;  %v1690_v59 = vrot.slane %v17112_v62, %v17081_v0 }
 0x275   : > { %15939 = vpow2.f32 %v2282_v1 }
 0x276   : > { %1659 = vbcast.lane.b32.xlu1 %v1657_v24, 256 }
 0x277   : > { %v17170_v55 = vpop.permute.xlu0 %1421 }
 0x27a   : > { %1663 = vbcast.lane.b32.xlu1 %v1657_v24, 264 }
 0x27b   : > { %v17172_v22 = vpop.permute.xlu0 %1428  ;;  %v15936_v57 = vpop.eup %15935 }
 0x27c   : > { %v2232_v34 = vadd.f32 %v15936_v57, %v17161_v16 }
 0x27e   : > { %1674 = vbcast.lane.b32.xlu1 %v1668_v3, 264  ;;  %v2314_v4 = vmul.f32 1.442695, %v2232_v34 }
 0x27f   : > { %v17175_v18 = vpop.permute.xlu0 %1432  ;;  %v15938_v2 = vpop.eup %15937 }
 0x280   : > { %15941 = vpow2.f32 %v2314_v4  ;;  %v2233_v1 = vadd.f32 %v15938_v2, %v17161_v16 }
 0x282   : > { %v17180_v19 = vpop.eup %15939  ;;  %1681 = vbcast.lane.b32.xlu1 %v1679_v32, 256  ;;  %v2316_v3 = vmul.f32 1.442695, %v2233_v1 }
 0x283   : > { %v17182_v24 = vpop.permute.xlu0 %1439  ;;  %v2413_v57 = vsel %vm2406_vm1, %v17180_v19, 0.0 }
 0x284   : > { %2414 = vadd.xlane.f32.xlu0 %v2413_v57  ;;  %15943 = vpow2.f32 %v2316_v3  ;;  %v2083_v57 = vadd.f32 %v17131_v13, %v17133_v14  ;;  %v1466_v13 = vpop.permute.xlu1 %1465 }
 0x286   : > { %1685 = vbcast.lane.b32.xlu1 %v1679_v32, 264  ;;  %v1701_v32 = vrot.slane %v17112_v62, %v17089_v8  ;;  %15945 = vtanh.f32 %v2083_v57  ;;  %v1931_v8 = vrot.slane %v1769_v63, %v17062_v27  ;;  %v1829_v63 = vrot.slane %v17049_v21, %v17102_v33 }
 0x287   : > { %v17186_v34 = vpop.permute.xlu0 %1443 }
 0x288   : > { %v1837_v57 = vcombine.high %v1829_v63, %v1829_v63 }
 0x28a   : > { %1692 = vbcast.lane.b32.xlu1 %v1690_v59, 256 }
 0x28b   : > { %v17190_v4 = vpop.permute.xlu0 %1450 }
 0x28c   : > { %20483 = vst [vmem:[#allocation26_spill] sm:$0xff] %v17190_v4 }
 0x28d   : > { %v17192_v2 = vpop.eup %15941 }
 0x28e   : > { %1696 = vbcast.lane.b32.xlu1 %v1690_v59, 264  ;;  %v2461_v1 = vsel %vm2406_vm1, %v17192_v2, 0.0  ;;  %v1923_v59 = vrot.slane %v1747_v25, %v17062_v27  ;;  %v1771_v25 = vcombine.high %v17119_v10, %v17119_v10  ;;  %v1796_v10 = vrot.slane %v17127_v12, %v17102_v33 }
 0x28f   : > { %v17196_v56 = vpop.permute.xlu0 %1454  ;;  %2462 = vadd.xlane.f32.xlu0 %v2461_v1 }
 0x290   : > { %20484 = vst [vmem:[#allocation27_spill] sm:$0xff] %v17196_v56  ;;  %v2080_v1 = vadd.f32 %v1923_v59, %v17141_v20  ;;  %v2081_v14 = vadd.f32 %v1923_v59, %v17148_v30  ;;  %v579_v20 = vld [vmem:[%s16948_s27 + $0x18] sm:$0xff]  ;;  %v1935_v30 = vrot.slane %v1771_v25, %v17062_v27 }
 0x291   : > { %v17204_v3 = vpop.eup %15943  ;;  %15100 = vmatmul.mubr.msk.f32.gmra.mxu1 %vm601_vm0, %v579_v20 }
 0x292   : > { %1703 = vbcast.lane.b32.xlu1 %v1701_v32, 256  ;;  %v2464_v60 = vsel %vm2406_vm1, %v17204_v3, 0.0  ;;  %15947 = vtanh.f32 %v2080_v1  ;;  %v2086_v59 = vadd.f32 %v1935_v30, %v17150_v31  ;;  %v1955_v31 = vrot.slane %v1796_v10, %v17062_v27 }
 0x293   : > { %v1462_v0 = vpop.permute.xlu0 %1461  ;;  %2465 = vadd.xlane.f32.xlu0 %v2464_v60  ;;  %v2084_v60 = vadd.f32 %v1931_v8, %v17143_v26  ;;  %15949 = vtanh.f32 %v2081_v14  ;;  %v2085_v26 = vadd.f32 %v1931_v8, %v17154_v58  ;;  %v15946_v53 = vpop.eup %15945  ;;  %v17244_v8 = vrot.slane %v1837_v57, %v17102_v33 }
 0x294   : > { %v2217_v20 = vadd.f32 %v15946_v53, %v17161_v16  ;;  %v1845_v53 = vrot.slane %v1829_v63, %v17102_v33 }
 0x295   : > { %15951 = vtanh.f32 %v2084_v60  ;;  %v2087_v60 = vadd.f32 %v1935_v30, %v17163_v17  ;;  %v17253_v17 = vrot.slane %v17244_v8, %v17062_v27 }
 0x296   : > { %1707 = vbcast.lane.b32.xlu1 %v1701_v32, 264  ;;  %v17224_v32 = vpop.permute.xlu1 %1487  ;;  %15953 = vtanh.f32 %v2085_v26  ;;  %v2284_v54 = vmul.f32 1.442695, %v2217_v20  ;;  %v2096_v26 = vadd.f32 %v1955_v31, %v1462_v0  ;;  %v1987_v63 = vrot.slane %v1845_v53, %v17062_v27 }
 0x297   : > { %v17210_v62 = vpop.permute.xlu0 %1483  ;;  %15955 = vtanh.f32 %v2086_v59 }
 0x298   : > { %15957 = vtanh.f32 %v2087_v60  ;;  %v2097_v60 = vadd.f32 %v1955_v31, %v1466_v13 }
 0x299   : > { %15959 = vpow2.f32 %v2284_v54 }
 0x29a   : > { %1718 = vbcast.lane.b32.xlu1 %v17123_v11, 264  ;;  %v17237_v14 = vpop.permute.xlu1 %1542  ;;  %15961 = vtanh.f32 %v2096_v26 }
 0x29b   : > { %v17215_v51 = vpop.permute.xlu0 %1494  ;;  %20485 = vst [vmem:[#allocation28_spill] sm:$0xff] %v17237_v14 }
 0x29f   : > { %v17228_v11 = vpop.permute.xlu0 %1498  ;;  %v15948_v52 = vpop.eup %15947 }
 0x2a0   : > { %v2214_v12 = vadd.f32 %v15948_v52, %v17161_v16  ;;  %v15950_v48 = vpop.eup %15949  ;;  %v1818_v52 = vcombine.high %v1796_v10, %v1796_v10  ;;  %v1867_v10 = vcombine.high %v1845_v53, %v1845_v53 }
 0x2a1   : > { %v2215_v20 = vadd.f32 %v15950_v48, %v17161_v16 }
 0x2a2   : > { %v15952_v59 = vpop.eup %15951  ;;  %v2278_v40 = vmul.f32 1.442695, %v2214_v12  ;;  %v1963_v54 = vrot.slane %v1818_v52, %v17062_v27  ;;  %v1995_v53 = vrot.slane %v1867_v10, %v17062_v27 }
 0x2a3   : > { %v17233_v1 = vpop.permute.xlu0 %1505  ;;  %v2218_v44 = vadd.f32 %v15952_v59, %v17161_v16  ;;  %v2280_v36 = vmul.f32 1.442695, %v2215_v20  ;;  %v15954_v38 = vpop.eup %15953 }
 0x2a4   : > { %v15956_v48 = vpop.eup %15955  ;;  %v2219_v31 = vadd.f32 %v15954_v38, %v17161_v16  ;;  %v2101_v20 = vadd.f32 %v1963_v54, %v17224_v32  ;;  %v1724_v38 = vcombine.high %v17047_v15, %v17047_v15 }
 0x2a5   : > { %v2286_v26 = vmul.f32 1.442695, %v2218_v44  ;;  %v15958_v59 = vpop.eup %15957 }
 0x2a7   : > { %v17241_v25 = vpop.permute.xlu0 %1509 }
 0x2a8   : > { %v17247_v58 = vpop.permute.xlu1 %1560 }
 0x2ab   : > { %v17255_v30 = vpop.permute.xlu0 %1516 }
 0x2ac   : > { %v1565_v57 = vpop.permute.xlu1 %1564 }
 0x2ad   : > { %v2115_v50 = vadd.f32 %v17253_v17, %v1565_v57  ;;  %v2100_v57 = vadd.f32 %v1963_v54, %v17210_v62  ;;  %v2288_v62 = vmul.f32 1.442695, %v2219_v31  ;;  %v1869_v31 = vcombine.high %v17244_v8, %v17244_v8 }
 0x2af   : > { %15963 = vtanh.f32 %v2115_v50  ;;  %v17259_v0 = vpop.permute.xlu0 %1520 }
 0x2b0   : > { %v1550_v42 = vpop.permute.xlu1 %1549  ;;  %15965 = vpow2.f32 %v2278_v40  ;;  %v1820_v40 = vcombine.high %v17146_v28, %v17146_v28 }
 0x2b1   : > { %v2112_v46 = vadd.f32 %v1987_v63, %v1550_v42  ;;  %v2220_v42 = vadd.f32 %v15956_v48, %v17161_v16 }
 0x2b2   : > { %v1967_v28 = vrot.slane %v1820_v40, %v17062_v27 }
 0x2b3   : > { %15967 = vtanh.f32 %v2112_v46  ;;  %v17264_v12 = vpop.permute.xlu0 %1527  ;;  %v2290_v32 = vmul.f32 1.442695, %v2220_v42 }
 0x2b4   : > { %20486 = vst [vmem:[#allocation29_spill] sm:$0xff] %v17264_v12  ;;  %15969 = vtanh.f32 %v2097_v60  ;;  %v1554_v50 = vpop.permute.xlu1 %1553  ;;  %v2221_v60 = vadd.f32 %v15958_v59, %v17161_v16 }
 0x2b5   : > { %v2113_v13 = vadd.f32 %v1987_v63, %v1554_v50  ;;  %15971 = vpow2.f32 %v2280_v36  ;;  %v17275_v36 = vpop.eup %15959  ;;  %v2102_v50 = vadd.f32 %v1967_v28, %v17215_v51 }
 0x2b6   : > { %v15962_v63 = vpop.eup %15961  ;;  %v2292_v59 = vmul.f32 1.442695, %v2221_v60 }
 0x2b7   : > { %15973 = vtanh.f32 %v2113_v13  ;;  %v17271_v46 = vpop.permute.xlu0 %1531  ;;  %v17292_v13 = vrot.slane %v1724_v38, %v17102_v33  ;;  %v2230_v51 = vadd.f32 %v15962_v63, %v17161_v16 }
 0x2b8   : > { %20487 = vst [vmem:[#allocation30_spill] sm:$0xff] %v17271_v46  ;;  %v1576_v44 = vpop.permute.xlu1 %1575  ;;  %15975 = vpow2.f32 %v2286_v26  ;;  %v2416_v26 = vsel %vm2406_vm1, %v17275_v36, 0.0 }
 0x2b9   : > { %15977 = vtanh.f32 %v2100_v57  ;;  %v2117_v52 = vadd.f32 %v1995_v53, %v1576_v44  ;;  %v2103_v44 = vadd.f32 %v1967_v28, %v17228_v11  ;;  %v17307_v63 = vrot.slane %v17292_v13, %v17102_v33 }
 0x2ba   : > { %15979 = vtanh.f32 %v2101_v20  ;;  %v1999_v11 = vrot.slane %v1869_v31, %v17062_v27  ;;  %v2310_v60 = vmul.f32 1.442695, %v2230_v51 }
 0x2bb   : > { %v17281_v48 = vpop.permute.xlu0 %1538  ;;  %15981 = vpow2.f32 %v2288_v62  ;;  %v1939_v51 = vrot.slane %v17307_v63, %v17062_v27 }
 0x2bc   : > { %20488 = vst [vmem:[#allocation31_spill] sm:$0xff] %v17281_v48  ;;  %v15964_v54 = vpop.eup %15963  ;;  %v17284_v10 = vpop.permute.xlu1 %1593  ;;  %15983 = vtanh.f32 %v2117_v52 }
 0x2bd   : > { %v2249_v15 = vadd.f32 %v15964_v54, %v17161_v16  ;;  %v17289_v57 = vpop.eup %15965  ;;  %15985 = vpow2.f32 %v2290_v32 }
 0x2be   : > { %2417 = vadd.xlane.f32.xlu1 %v2416_v26  ;;  %15987 = vtanh.f32 %v2102_v50  ;;  %v2407_v52 = vsel %vm2406_vm1, %v17289_v57, 0.0  ;;  %v2114_v50 = vadd.f32 %v17253_v17, %v17247_v58 }
 0x2bf   : > { %v1572_v40 = vpop.permute.xlu0 %1571  ;;  %v2348_v42 = vmul.f32 1.442695, %v2249_v15 }
 0x2c0   : > { %v15968_v20 = vpop.eup %15967  ;;  %v2116_v62 = vadd.f32 %v1995_v53, %v1572_v40  ;;  %v17298_v54 = vpop.permute.xlu1 %1597 }
 0x2c1   : > { %v15970_v38 = vpop.eup %15969  ;;  %15989 = vpow2.f32 %v2348_v42  ;;  %v2246_v8 = vadd.f32 %v15968_v20, %v17161_v16 }
 0x2c2   : > { %v17303_v26 = vpop.eup %15971  ;;  %15991 = vtanh.f32 %v2116_v62  ;;  %2408 = vadd.xlane.f32.xlu1 %v2407_v52  ;;  %v2231_v20 = vadd.f32 %v15970_v38, %v17161_v16 }
 0x2c3   : > { %v1583_v53 = vpop.permute.xlu0 %1582  ;;  %v2342_v28 = vmul.f32 1.442695, %v2246_v8  ;;  %15993 = vpow2.f32 %v2292_v59  ;;  %v2410_v62 = vsel %vm2406_vm1, %v17303_v26, 0.0 }
 0x2c4   : > { %v15974_v32 = vpop.eup %15973  ;;  %15995 = vtanh.f32 %v2103_v44  ;;  %v2118_v15 = vadd.f32 %v1999_v11, %v1583_v53  ;;  %v17312_v40 = vpop.permute.xlu1 %1604  ;;  %v2088_v44 = vadd.f32 %v1939_v51, %v17166_v61  ;;  %v17332_v61 = vrot.slane %v17065_v29, %v17102_v33 }
 0x2c5   : > { %v17314_v42 = vpop.eup %15975  ;;  %15997 = vpow2.f32 %v2342_v28  ;;  %v2247_v31 = vadd.f32 %v15974_v32, %v17161_v16  ;;  %v2312_v32 = vmul.f32 1.442695, %v2231_v20 }
 0x2c6   : > { %v15978_v59 = vpop.eup %15977  ;;  %15999 = vtanh.f32 %v2118_v15  ;;  %2411 = vadd.xlane.f32.xlu1 %v2410_v62  ;;  %v2419_v28 = vsel %vm2406_vm1, %v17314_v42, 0.0  ;;  %v1894_v46 = vrot.slane %v17332_v61, %v17102_v33 }
 0x2c7   : > { %v1587_v58 = vpop.permute.xlu0 %1586  ;;  %v2344_v17 = vmul.f32 1.442695, %v2247_v31  ;;  %16001 = vpow2.f32 %v2310_v60  ;;  %v15980_v8 = vpop.eup %15979  ;;  %v2234_v53 = vadd.f32 %v15978_v59, %v17161_v16  ;;  %v2089_v60 = vadd.f32 %v1939_v51, %v17170_v55 }
 0x2c8   : > { %16003 = vtanh.f32 %v2114_v50  ;;  %v2119_v52 = vadd.f32 %v1999_v11, %v1587_v58  ;;  %v17323_v38 = vpop.permute.xlu1 %1608  ;;  %v17328_v14 = vpop.eup %15981  ;;  %v2235_v31 = vadd.f32 %v15980_v8, %v17161_v16 }
 0x2c9   : > { %16005 = vpow2.f32 %v2344_v17  ;;  %20489 = vst [vmem:[#allocation32_spill] sm:$0xff] %v17328_v14  ;;  %v15984_v15 = vpop.eup %15983  ;;  %v2422_v20 = vsel %vm2406_vm1, %v17328_v14, 0.0  ;;  %v2318_v59 = vmul.f32 1.442695, %v2234_v53 }
 0x2ca   : > { %16007 = vtanh.f32 %v2119_v52  ;;  %2420 = vadd.xlane.f32.xlu1 %v2419_v28  ;;  %v17334_v11 = vpop.eup %15985  ;;  %v2251_v17 = vadd.f32 %v15984_v15, %v17161_v16 }
 0x2cb   : > { %20490 = vst [vmem:[#allocation33_spill] sm:$0xff] %v17334_v11  ;;  %16009 = vtanh.f32 %v2088_v44  ;;  %v15988_v62 = vpop.eup %15987  ;;  %v1886_v44 = vcombine.high %v17332_v61, %v17332_v61  ;;  %v2425_v15 = vsel %vm2406_vm1, %v17334_v11, 0.0  ;;  %v17387_v12 = vpop.permute.xlu0 %1626  ;;  %v2019_v61 = vrot.slane %v1894_v46, %v17062_v27 }
 0x2cc   : > { %v17337_v50 = vpop.permute.xlu1 %1615  ;;  %16011 = vpow2.f32 %v2312_v32  ;;  %v2236_v8 = vadd.f32 %v15988_v62, %v17161_v16  ;;  %v2352_v4 = vmul.f32 1.442695, %v2251_v17  ;;  %20495 = vst [vmem:[#allocation38_spill] sm:$0xff] %v17387_v12 }
 0x2cd   : > { %20491 = vst [vmem:[#allocation34_spill] sm:$0xff] %v17337_v50  ;;  %16013 = vtanh.f32 %v2089_v60  ;;  %v17360_v60 = vrot.slane %v1886_v44, %v17102_v33 }
 0x2ce   : > { %v17342_v58 = vpop.eup %15989  ;;  %2423 = vadd.xlane.f32.xlu1 %v2422_v20  ;;  %16015 = vpow2.f32 %v2318_v59  ;;  %v2320_v20 = vmul.f32 1.442695, %v2235_v31  ;;  %v2322_v31 = vmul.f32 1.442695, %v2236_v8 }
 0x2cf   : > { %v15992_v52 = vpop.eup %15991  ;;  %v2512_v55 = vsel %vm2406_vm1, %v17342_v58, 0.0 }
 0x2d0   : > { %v17349_v51 = vpop.eup %15993  ;;  %2513 = vadd.xlane.f32.xlu0 %v2512_v55  ;;  %v17352_v28 = vpop.permute.xlu1 %1619  ;;  %v2250_v53 = vadd.f32 %v15992_v52, %v17161_v16 }
 0x2d1   : > { %20492 = vst [vmem:[#allocation35_spill] sm:$0xff] %v17349_v51  ;;  %20493 = vst [vmem:[#allocation36_spill] sm:$0xff] %v17352_v28  ;;  %v15996_v32 = vpop.eup %15995  ;;  %v2428_v17 = vsel %vm2406_vm1, %v17349_v51, 0.0 }
 0x2d2   : > { %v17357_v48 = vpop.eup %15997  ;;  %2426 = vadd.xlane.f32.xlu1 %v2425_v15  ;;  %v2350_v56 = vmul.f32 1.442695, %v2250_v53  ;;  %v2237_v53 = vadd.f32 %v15996_v32, %v17161_v16 }
 0x2d3   : > { %v16000_v14 = vpop.eup %15999  ;;  %v2503_v62 = vsel %vm2406_vm1, %v17357_v48, 0.0 }
 0x2d4   : > { %v17364_v55 = vpop.eup %16001  ;;  %v2252_v52 = vadd.f32 %v16000_v14, %v17161_v16  ;;  %2504 = vadd.xlane.f32.xlu0 %v2503_v62  ;;  %v17367_v11 = vpop.permute.xlu1 %1630  ;;  %16017 = vpow2.f32 %v2350_v56  ;;  %v2023_v56 = vrot.slane %v17360_v60, %v17062_v27 }
 0x2d5   : > { %20494 = vst [vmem:[#allocation37_spill] sm:$0xff] %v17367_v11  ;;  %v16004_v59 = vpop.eup %16003  ;;  %16019 = vpow2.f32 %v2320_v20 }
 0x2d6   : > { %v17372_v44 = vpop.eup %16005  ;;  %2429 = vadd.xlane.f32.xlu1 %v2428_v17  ;;  %16021 = vpow2.f32 %v2352_v4  ;;  %v2354_v15 = vmul.f32 1.442695, %v2252_v52  ;;  %v2248_v20 = vadd.f32 %v16004_v59, %v17161_v16  ;;  %v2455_v4 = vsel %vm2406_vm1, %v17364_v55, 0.0 }
 0x2d7   : > { %v16008_v28 = vpop.eup %16007  ;;  %v2506_v14 = vsel %vm2406_vm1, %v17372_v44, 0.0  ;;  %16023 = vpow2.f32 %v2322_v31  ;;  %v2324_v52 = vmul.f32 1.442695, %v2237_v53 }
 0x2d8   : > { %v2253_v8 = vadd.f32 %v16008_v28, %v17161_v16  ;;  %2507 = vadd.xlane.f32.xlu0 %v2506_v14  ;;  %v1649_v32 = vpop.permute.xlu1 %1648  ;;  %v16010_v62 = vpop.eup %16009  ;;  %16025 = vpow2.f32 %v2354_v15  ;;  %v2346_v53 = vmul.f32 1.442695, %v2248_v20 }
 0x2d9   : > { %v2130_v51 = vadd.f32 %v2023_v56, %v1649_v32  ;;  %v17382_v17 = vpop.eup %16011  ;;  %v2222_v28 = vadd.f32 %v16010_v62, %v17161_v16 }
 0x2da   : > { %2456 = vadd.xlane.f32.xlu1 %v2455_v4  ;;  %v2356_v11 = vmul.f32 1.442695, %v2253_v8  ;;  %v16014_v14 = vpop.eup %16013  ;;  %v2458_v32 = vsel %vm2406_vm1, %v17382_v17, 0.0 }
 0x2db   : > { %16027 = vtanh.f32 %v2130_v51  ;;  %v17391_v50 = vpop.eup %16015  ;;  %v1918_v51 = vcombine.high %v17360_v60, %v17360_v60  ;;  %v2294_v8 = vmul.f32 1.442695, %v2222_v28  ;;  %v1671_v60 = vpop.permute.xlu0 %1670  ;;  %v1916_v28 = vcombine.high %v1894_v46, %v1894_v46 }
 0x2dc   : > { %v1653_v31 = vpop.permute.xlu1 %1652  ;;  %16029 = vpow2.f32 %v2324_v52  ;;  %20496 = vst [vmem:[#allocation39_spill] sm:$0xff] %v17391_v50  ;;  %v2467_v20 = vsel %vm2406_vm1, %v17391_v50, 0.0 }
 0x2dd   : > { %v2131_v59 = vadd.f32 %v2023_v56, %v1653_v31  ;;  %16031 = vpow2.f32 %v2356_v11  ;;  %v2223_v56 = vadd.f32 %v16014_v14, %v17161_v16  ;;  %v2027_v46 = vrot.slane %v1916_v28, %v17062_v27 }
 0x2de   : > { %2459 = vadd.xlane.f32.xlu1 %v2458_v32 }
 0x2df   : > { %16033 = vtanh.f32 %v2131_v59  ;;  %v2031_v59 = vrot.slane %v1918_v51, %v17062_v27 }
 0x2e0   : > { %v1638_v15 = vpop.permute.xlu1 %1637  ;;  %16035 = vpow2.f32 %v2346_v53 }
 0x2e1   : > { %v17396_v62 = vpop.eup %16017  ;;  %v2128_v4 = vadd.f32 %v2019_v61, %v1638_v15  ;;  %v2134_v12 = vadd.f32 %v2031_v59, %v1671_v60 }
 0x2e2   : > { %20497 = vst [vmem:[#allocation40_spill] sm:$0xff] %v17396_v62  ;;  %v17401_v52 = vpop.eup %16019  ;;  %2468 = vadd.xlane.f32.xlu1 %v2467_v20  ;;  %v2515_v11 = vsel %vm2406_vm1, %v17396_v62, 0.0  ;;  %v2296_v20 = vmul.f32 1.442695, %v2223_v56 }
 0x2e3   : > { %v17405_v31 = vpop.eup %16021  ;;  %16037 = vtanh.f32 %v2128_v4  ;;  %2516 = vadd.xlane.f32.xlu0 %v2515_v11  ;;  %v2470_v53 = vsel %vm2406_vm1, %v17401_v52, 0.0 }
 0x2e4   : > { %20498 = vst [vmem:[#allocation41_spill] sm:$0xff] %v17405_v31  ;;  %v1642_v14 = vpop.permute.xlu1 %1641  ;;  %v17408_v32 = vpop.eup %16023  ;;  %16039 = vpow2.f32 %v2294_v8  ;;  %v2518_v62 = vsel %vm2406_vm1, %v17405_v31, 0.0 }
 0x2e5   : > { %20499 = vst [vmem:[#allocation42_spill] sm:$0xff] %v17408_v32  ;;  %v2129_v15 = vadd.f32 %v2019_v61, %v1642_v14  ;;  %v17414_v50 = vpop.eup %16025  ;;  %v2473_v8 = vsel %vm2406_vm1, %v17408_v32, 0.0 }
 0x2e6   : > { %2471 = vadd.xlane.f32.xlu1 %v2470_v53  ;;  %20500 = vst [vmem:[#allocation43_spill] sm:$0xff] %v17414_v50  ;;  %v2521_v60 = vsel %vm2406_vm1, %v17414_v50, 0.0 }
 0x2e7   : > { %16041 = vtanh.f32 %v2129_v15  ;;  %2519 = vadd.xlane.f32.xlu0 %v2518_v62 }
 0x2e8   : > { %v16028_v51 = vpop.eup %16027  ;;  %v1660_v4 = vpop.permute.xlu1 %1659  ;;  %16043 = vpow2.f32 %v2296_v20 }
 0x2e9   : > { %v2264_v61 = vadd.f32 %v16028_v51, %v17161_v16  ;;  %v2132_v11 = vadd.f32 %v2027_v46, %v1660_v4  ;;  %v17420_v56 = vpop.eup %16029  ;;  %16045 = vtanh.f32 %v2134_v12 }
 0x2ea   : > { %20501 = vst [vmem:[#allocation44_spill] sm:$0xff] %v17420_v56  ;;  %2474 = vadd.xlane.f32.xlu1 %v2473_v8  ;;  %v17424_v14 = vpop.eup %16031  ;;  %v2476_v20 = vsel %vm2406_vm1, %v17420_v56, 0.0 }
 0x2eb   : > { %20502 = vst [vmem:[#allocation45_spill] sm:$0xff] %v17424_v14  ;;  %16047 = vtanh.f32 %v2132_v11  ;;  %2522 = vadd.xlane.f32.xlu0 %v2521_v60  ;;  %v2378_v62 = vmul.f32 1.442695, %v2264_v61  ;;  %v2524_v12 = vsel %vm2406_vm1, %v17424_v14, 0.0 }
 0x2ec   : > { %v16034_v28 = vpop.eup %16033  ;;  %v1664_v15 = vpop.permute.xlu1 %1663 }
 0x2ed   : > { %v2265_v53 = vadd.f32 %v16034_v28, %v17161_v16  ;;  %v2133_v51 = vadd.f32 %v2027_v46, %v1664_v15  ;;  %16049 = vpow2.f32 %v2378_v62  ;;  %v17429_v4 = vpop.eup %16035 }
 0x2ee   : > { %2477 = vadd.xlane.f32.xlu1 %v2476_v20  ;;  %v2509_v46 = vsel %vm2406_vm1, %v17429_v4, 0.0 }
 0x2ef   : > { %16051 = vtanh.f32 %v2133_v51  ;;  %2525 = vadd.xlane.f32.xlu0 %v2524_v12  ;;  %v2380_v11 = vmul.f32 1.442695, %v2265_v53  ;;  %v1773_v51 = vcombine.high %v17053_v23, %v17053_v23 }
 0x2f0   : > { %v16038_v8 = vpop.eup %16037  ;;  %v1675_v61 = vpop.permute.xlu1 %1674 }
 0x2f1   : > { %v2262_v60 = vadd.f32 %v16038_v8, %v17161_v16  ;;  %v2135_v50 = vadd.f32 %v2031_v59, %v1675_v61  ;;  %16053 = vpow2.f32 %v2380_v11  ;;  %v17436_v28 = vpop.eup %16039  ;;  %v17446_v61 = vrot.slane %v1773_v51, %v17102_v33 }
 0x2f2   : > { %20503 = vst [vmem:[#allocation46_spill] sm:$0xff] %v17436_v28  ;;  %2510 = vadd.xlane.f32.xlu1 %v2509_v46  ;;  %v2431_v20 = vsel %vm2406_vm1, %v17436_v28, 0.0 }
 0x2f3   : > { %16055 = vtanh.f32 %v2135_v50  ;;  %v2374_v62 = vmul.f32 1.442695, %v2262_v60  ;;  %v17458_v51 = vrot.slane %v17446_v61, %v17102_v33 }
 0x2f4   : > { %v16042_v15 = vpop.eup %16041 }
 0x2f5   : > { %v2263_v53 = vadd.f32 %v16042_v15, %v17161_v16  ;;  %16057 = vpow2.f32 %v2374_v62  ;;  %v17443_v59 = vpop.eup %16043  ;;  %v1971_v28 = vrot.slane %v17458_v51, %v17062_v27 }
 0x2f6   : > { %20504 = vst [vmem:[#allocation47_spill] sm:$0xff] %v17443_v59  ;;  %2432 = vadd.xlane.f32.xlu1 %v2431_v20  ;;  %v16046_v12 = vpop.eup %16045  ;;  %v2434_v23 = vsel %vm2406_vm1, %v17443_v59, 0.0 }
 0x2f7   : > { %v2376_v11 = vmul.f32 1.442695, %v2263_v53  ;;  %v2268_v46 = vadd.f32 %v16046_v12, %v17161_v16 }
 0x2f8   : > { %v16048_v8 = vpop.eup %16047 }
 0x2f9   : > { %v2266_v50 = vadd.f32 %v16048_v8, %v17161_v16  ;;  %16059 = vpow2.f32 %v2376_v11  ;;  %v1740_v11 = vcombine.high %v17292_v13, %v17292_v13  ;;  %v2386_v59 = vmul.f32 1.442695, %v2268_v46 }
 0x2fa   : > { %v17451_v60 = vpop.eup %16049  ;;  %2435 = vadd.xlane.f32.xlu1 %v2434_v23 }
 0x2fb   : > { %v2557_v62 = vsel %vm2406_vm1, %v17451_v60, 0.0  ;;  %v2382_v15 = vmul.f32 1.442695, %v2266_v50  ;;  %v17474_v14 = vrot.slane %v1740_v11, %v17102_v33 }
 0x2fc   : > { %v16052_v53 = vpop.eup %16051  ;;  %2558 = vadd.xlane.f32.xlu0 %v2557_v62 }
 0x2fd   : > { %v2267_v20 = vadd.f32 %v16052_v53, %v17161_v16  ;;  %16061 = vpow2.f32 %v2382_v15  ;;  %v2104_v15 = vadd.f32 %v1971_v28, %v17233_v1  ;;  %20505 = vst [vmem:[#allocation48_spill] sm:$0xff] %v17474_v14 }
 0x2fe   : > { %v17461_v8 = vpop.eup %16053 }
 0x2ff   : > { %v2560_v12 = vsel %vm2406_vm1, %v17461_v8, 0.0  ;;  %v2384_v23 = vmul.f32 1.442695, %v2267_v20 }
 0x300   : > { %v16056_v50 = vpop.eup %16055  ;;  %2561 = vadd.xlane.f32.xlu0 %v2560_v12  ;;  %v2105_v12 = vadd.f32 %v1971_v28, %v17241_v25 }
 0x301   : > { %v2269_v62 = vadd.f32 %v16056_v50, %v17161_v16  ;;  %16063 = vpow2.f32 %v2384_v23  ;;  %v1943_v23 = vrot.slane %v17474_v14, %v17062_v27  ;;  %v17486_v50 = vpop.permute.xlu0 %1714 }
 0x302   : > { %v17470_v53 = vpop.eup %16057  ;;  %16065 = vpow2.f32 %v2386_v59  ;;  %20506 = vst [vmem:[#allocation49_spill] sm:$0xff] %v17486_v50  ;;  %v1682_v50 = vpop.permute.xlu1 %1681 }
 0x303   : > { %v2551_v13 = vsel %vm2406_vm1, %v17470_v53, 0.0  ;;  %v2388_v46 = vmul.f32 1.442695, %v2269_v62  ;;  %16067 = vtanh.f32 %v2104_v15  ;;  %v2090_v11 = vadd.f32 %v1943_v23, %v17172_v22 }
 0x304   : > { %2552 = vadd.xlane.f32.xlu0 %v2551_v13  ;;  %v2091_v15 = vadd.f32 %v1943_v23, %v17175_v18 }
 0x305   : > { %16069 = vpow2.f32 %v2388_v46  ;;  %v1822_v46 = vcombine.high %v17049_v21, %v17049_v21  ;;  %v1871_v21 = vcombine.high %v17065_v29, %v17065_v29 }
 0x306   : > { %v17478_v20 = vpop.eup %16059  ;;  %16071 = vtanh.f32 %v2105_v12 }
 0x307   : > { %v2554_v1 = vsel %vm2406_vm1, %v17478_v20, 0.0  ;;  %16073 = vtanh.f32 %v2090_v11  ;;  %v17508_v18 = vrot.slane %v1822_v46, %v17102_v33 }
 0x308   : > { %2555 = vadd.xlane.f32.xlu0 %v2554_v1 }
 0x30a   : > { %v17488_v59 = vpop.eup %16061 }
 0x30b   : > { %2998 = vrot.lane.b32.xlu1 %v16999_v49, %s16714_s28  ;;  %v2563_v25 = vsel %vm2406_vm1, %v17488_v59, 0.0 }
 0x30c   : > { %2564 = vadd.xlane.f32.xlu0 %v2563_v25 }
 0x30d   : > { %v2415_v28 = vpop.xlane.xlu0 %2414 }
 0x30e   : > { %v17494_v62 = vpop.eup %16063  ;;  %16075 = vrcp.f32 %v2415_v28 }
 0x30f   : > { %20507 = vst [vmem:[#allocation50_spill] sm:$0xff] %v17494_v62  ;;  %v2566_v22 = vsel %vm2406_vm1, %v17494_v62, 0.0  ;;  %v17499_v13 = vpop.eup %16065  ;;  %16077 = vtanh.f32 %v2091_v15 }
 0x310   : > { %20508 = vst [vmem:[#allocation51_spill] sm:$0xff] %v17499_v13  ;;  %2567 = vadd.xlane.f32.xlu0 %v2566_v22  ;;  %v16068_v12 = vpop.eup %16067  ;;  %v2569_v1 = vsel %vm2406_vm1, %v17499_v13, 0.0  ;;  %v17518_v13 = vrot.slane %v17508_v18, %v17102_v33 }
 0x311   : > { %v2238_v23 = vadd.f32 %v16068_v12, %v17161_v16  ;;  %v17522_v12 = vrot.slane %v1871_v21, %v17102_v33 }
 0x312   : > { %v17505_v11 = vpop.eup %16069 }
 0x313   : > { %20509 = vst [vmem:[#allocation52_spill] sm:$0xff] %v17505_v11  ;;  %v16072_v25 = vpop.eup %16071  ;;  %v2572_v28 = vsel %vm2406_vm1, %v17505_v11, 0.0 }
 0x314   : > { %2570 = vadd.xlane.f32.xlu0 %v2569_v1  ;;  %v16074_v15 = vpop.eup %16073  ;;  %v2239_v22 = vadd.f32 %v16072_v25, %v17161_v16  ;;  %v2326_v1 = vmul.f32 1.442695, %v2238_v23 }
 0x315   : > { %v2224_v11 = vadd.f32 %v16074_v15, %v17161_v16 }
 0x316   : > { %16079 = vpow2.f32 %v2326_v1  ;;  %v2328_v29 = vmul.f32 1.442695, %v2239_v22 }
 0x317   : > { %v2298_v21 = vmul.f32 1.442695, %v2224_v11 }
 0x318   : > { %2573 = vadd.xlane.f32.xlu0 %v2572_v28  ;;  %v2003_v28 = vrot.slane %v17518_v13, %v17062_v27  ;;  %16081 = vpow2.f32 %v2328_v29  ;;  %v2463_v31 = vpop.xlane.xlu0 %2462 }
 0x31a   : > { %v2120_v32 = vadd.f32 %v2003_v28, %v17284_v10  ;;  %v2121_v15 = vadd.f32 %v2003_v28, %v17298_v54 }
 0x31b   : > { %v16076_v46 = vpop.eup %16075 }
 0x31c   : > { %v2665_v56 = vmul.f32 %v16076_v46, %v17180_v19  ;;  %v16078_v25 = vpop.eup %16077  ;;  %v17532_v19 = vrot.slane %v17522_v12, %v17102_v33  ;;  %16083 = vtanh.f32 %v2120_v32  ;;  %v1686_v46 = vpop.permute.xlu1 %1685 }
 0x31d   : > { %v2225_v23 = vadd.f32 %v16078_v25, %v17161_v16  ;;  %16085 = vpow2.f32 %v2298_v21 }
 0x31e   : > { %15106 = vmatprep.mubr.msk.f32.mxu1 %vm2406_vm1, %v2665_v56  ;;  %v2035_v56 = vrot.slane %v17532_v19, %v17062_v27  ;;  %16087 = vtanh.f32 %v2121_v15 }
 0x31f   : > { %v2300_v22 = vmul.f32 1.442695, %v2225_v23 }
 0x320   : > { %v2136_v1 = vadd.f32 %v2035_v56, %v1682_v50  ;;  %v2137_v10 = vadd.f32 %v2035_v56, %v1686_v46  ;;  %v17539_v62 = vpop.permute.xlu1 %1692  ;;  %v1789_v56 = vcombine.high %v17446_v61, %v17446_v61 }
 0x321   : > { %16089 = vpow2.f32 %v2300_v22 }
 0x322   : > { %16091 = vtanh.f32 %v2136_v1 }
 0x323   : > { %v17537_v25 = vpop.eup %16079  ;;  %16093 = vtanh.f32 %v2137_v10 }
 0x324   : > { %20510 = vst [vmem:[#allocation53_spill] sm:$0xff] %v17537_v25  ;;  %v2479_v54 = vsel %vm2406_vm1, %v17537_v25, 0.0  ;;  %v17547_v28 = vpop.permute.xlu1 %1696 }
 0x325   : > { %v17545_v32 = vpop.eup %16081 }
 0x326   : > { %20511 = vst [vmem:[#allocation54_spill] sm:$0xff] %v17545_v32  ;;  %v2482_v50 = vsel %vm2406_vm1, %v17545_v32, 0.0  ;;  %v17566_v32 = vrot.slane %v1789_v56, %v17102_v33 }
 0x328   : > { %v17560_v22 = vpop.permute.xlu1 %1703 }
 0x329   : > { %v16084_v11 = vpop.eup %16083 }
 0x32a   : > { %v17551_v29 = vpop.eup %16085  ;;  %v2254_v23 = vadd.f32 %v16084_v11, %v17161_v16 }
 0x32b   : > { %20512 = vst [vmem:[#allocation55_spill] sm:$0xff] %v17551_v29  ;;  %v16088_v21 = vpop.eup %16087  ;;  %v2437_v15 = vsel %vm2406_vm1, %v17551_v29, 0.0 }
 0x32c   : > { %v2255_v1 = vadd.f32 %v16088_v21, %v17161_v16  ;;  %v2358_v10 = vmul.f32 1.442695, %v2254_v23  ;;  %v17569_v61 = vpop.permute.xlu1 %1707  ;;  %v1975_v23 = vrot.slane %v17566_v32, %v17062_v27 }
 0x32e   : > { %2996 = vrot.lane.b32.xlu0 %v16995_v47, %s16714_s28  ;;  %v17556_v46 = vpop.eup %16089  ;;  %16095 = vpow2.f32 %v2358_v10  ;;  %v2360_v29 = vmul.f32 1.442695, %v2255_v1  ;;  %v2107_v1 = vadd.f32 %v1975_v23, %v17259_v0  ;;  %v2466_v10 = vpop.xlane.xlu0 %2465 }
 0x32f   : > { %2480 = vadd.xlane.f32.xlu1 %v2479_v54  ;;  %20513 = vst [vmem:[#allocation56_spill] sm:$0xff] %v17556_v46  ;;  %v16092_v54 = vpop.eup %16091 }
 0x330   : > { %v16094_v11 = vpop.eup %16093  ;;  %v2270_v25 = vadd.f32 %v16092_v54, %v17161_v16  ;;  %16097 = vpow2.f32 %v2360_v29  ;;  %v17575_v56 = vpop.permute.xlu1 %1718 }
 0x332   : > { %v2390_v21 = vmul.f32 1.442695, %v2270_v25 }
 0x333   : > { %2483 = vadd.xlane.f32.xlu1 %v2482_v50  ;;  %v2440_v50 = vsel %vm2406_vm1, %v17556_v46, 0.0  ;;  %v2106_v46 = vadd.f32 %v1975_v23, %v17255_v30 }
 0x334   : > { %16099 = vpow2.f32 %v2390_v21 }
 0x335   : > { %16101 = vtanh.f32 %v2106_v46 }
 0x337   : > { %2438 = vadd.xlane.f32.xlu1 %v2437_v15  ;;  %v2271_v15 = vadd.f32 %v16094_v11, %v17161_v16 }
 0x339   : > { %v2392_v14 = vmul.f32 1.442695, %v2271_v15 }
 0x33b   : > { %2441 = vadd.xlane.f32.xlu1 %v2440_v50  ;;  %16103 = vpow2.f32 %v2392_v14  ;;  %v17578_v16 = vpop.eup %16095 }
 0x33c   : > { %16105 = vrcp.f32 %v2463_v31  ;;  %v2527_v30 = vsel %vm2406_vm1, %v17578_v16, 0.0 }
 0x33d   : > { %v17584_v14 = vpop.eup %16097 }
 0x33e   : > { %v2530_v31 = vsel %vm2406_vm1, %v17584_v14, 0.0 }
 0x341   : > { %v17588_v29 = vpop.eup %16099 }
 0x342   : > { %20514 = vst [vmem:[#allocation57_spill] sm:$0xff] %v17588_v29  ;;  %v16102_v46 = vpop.eup %16101  ;;  %v2575_v23 = vsel %vm2406_vm1, %v17588_v29, 0.0 }
 0x347   : > { %v2418_v54 = vpop.xlane.xlu1 %2417 }
 0x348   : > { %16107 = vrcp.f32 %v2418_v54  ;;  %v17590_v50 = vpop.eup %16103  ;;  %v1838_v54 = vcombine.high %v17508_v18, %v17508_v18 }
 0x349   : > { %16109 = vrcp.f32 %v2466_v10  ;;  %20515 = vst [vmem:[#allocation58_spill] sm:$0xff] %v17590_v50  ;;  %v16106_v15 = vpop.eup %16105 }
 0x34a   : > { %16111 = vtanh.f32 %v2107_v1 }
 0x34b   : > { %v2409_v25 = vpop.xlane.xlu1 %2408 }
 0x34c   : > { %16113 = vrcp.f32 %v2409_v25  ;;  %3409 = vrot.lane.b32.xlu1 %v16960_v37, %s16717_s20  ;;  %v17600_v25 = vld [vmem:[%s20337_s2] ss:$0 sm:$0xff] }
 0x34d   : > { %2528 = vadd.xlane.f32.xlu0 %v2527_v30  ;;  %v2240_v30 = vadd.f32 %v17600_v25, %v16102_v46 }
 0x34f   : > { %v2412_v0 = vpop.xlane.xlu1 %2411 }
 0x350   : > { %16115 = vrcp.f32 %v2412_v0 }
 0x351   : > { %2531 = vadd.xlane.f32.xlu0 %v2530_v31 }
 0x353   : > { %v2421_v11 = vpop.xlane.xlu1 %2420 }
 0x355   : > { %v16108_v21 = vpop.eup %16107  ;;  %2576 = vadd.xlane.f32.xlu0 %v2575_v23  ;;  %v2578_v23 = vsel %vm2406_vm1, %v17590_v50, 0.0  ;;  %v17618_v50 = vrot.slane %v1838_v54, %v17102_v33 }
 0x356   : > { %v2666_v1 = vmul.f32 %v16108_v21, %v17275_v36  ;;  %v16110_v10 = vpop.eup %16109  ;;  %v2681_v36 = vmul.f32 %v16106_v15, %v17192_v2 }
 0x357   : > { %v17603_v0 = vpop.xlane.xlu1 %2423  ;;  %v16112_v31 = vpop.eup %16111  ;;  %v2682_v46 = vmul.f32 %v16110_v10, %v17204_v3 }
 0x358   : > { %15107 = vmatmul.mubr.msk.f32.vlgmr.msra.gmra.mxu1 %vm2406_vm1, %v2666_v1  ;;  %v2241_v1 = vadd.f32 %v17600_v25, %v16112_v31 }
 0x359   : > { %v16114_v21 = vpop.eup %16113  ;;  %15110 = vmatpush3.msra.mxu1 %v17036_v5  ;;  %v17610_v18 = vpop.xlane.xlu0 %2513  ;;  %2579 = vadd.xlane.f32.xlu0 %v2578_v23  ;;  %v2330_v5 = vmul.f32 1.442695, %v2240_v30 }
 0x35a   : > { %15111 = vmatprep.subr.mxu1 %v17039_v6  ;;  %15113 = vmatprep.mubr.msk.f32.mxu1 %vm2406_vm1, %v2681_v36  ;;  %v2663_v29 = vmul.f32 %v16114_v21, %v17289_v57  ;;  %v2332_v54 = vmul.f32 1.442695, %v2241_v1 }
 0x35b   : > { %15112 = vmatpush3.msra.mxu1 %v17039_v6  ;;  %v17621_v2 = vpop.xlane.xlu1 %2426  ;;  %v2007_v6 = vrot.slane %v17618_v50, %v17062_v27 }
 0x35c   : > { %15116 = vmatprep.subr.mxu1 %v17044_v9  ;;  %15114 = vmatmul.mubr.msk.f32.vlgmr.msra.gmra.mxu1 %vm2406_vm1, %v2682_v46 }
 0x35d   : > { %v16116_v15 = vpop.eup %16115  ;;  %15117 = vmatpush3.msra.mxu1 %v17044_v9  ;;  %15134 = vmatprep.mubr.msk.f32.mxu0 %vm2406_vm1, %v2663_v29  ;;  %v2505_v3 = vpop.xlane.xlu0 %2504  ;;  %v2122_v9 = vadd.f32 %v2007_v6, %v17312_v40 }
 0x35e   : > { %v2664_v57 = vmul.f32 %v16116_v15, %v17303_v26  ;;  %16117 = vrcp.f32 %v2505_v3  ;;  %15118 = vmatprep.subr.mxu1 %v17041_v7 }
 0x35f   : > { %15119 = vmatpush3.msra.mxu1 %v17041_v7  ;;  %v17632_v10 = vpop.xlane.xlu1 %2429  ;;  %16119 = vpow2.f32 %v2330_v5  ;;  %v2123_v7 = vadd.f32 %v2007_v6, %v17323_v38 }
 0x360   : > { %15135 = vmatmul.mubr.msk.f32.vlgmr.msra.gmra.mxu0 %vm2406_vm1, %v2664_v57  ;;  %16121 = vrcp.f32 %v2421_v11 }
 0x361   : > { %15145 = vmatpush3.msra.mxu0 %v16988_v45  ;;  %v2508_v26 = vpop.xlane.xlu0 %2507 }
 0x362   : > { %16123 = vrcp.f32 %v2508_v26  ;;  %15146 = vmatprep.subr.mxu0 %v16982_v43 }
 0x363   : > { %15147 = vmatpush3.msra.mxu0 %v16982_v43  ;;  %v17639_v29 = vpop.xlane.xlu1 %2456  ;;  %16125 = vpow2.f32 %v2332_v54 }
 0x364   : > { %16127 = vtanh.f32 %v2122_v9 }
 0x365   : > { %16129 = vtanh.f32 %v2123_v7 }
 0x366   : > { %16131 = vrcp.f32 %v17610_v18 }
 0x367   : > { %v17642_v30 = vpop.xlane.xlu1 %2459 }
 0x36b   : > { %v16118_v31 = vpop.eup %16117  ;;  %v17644_v40 = vpop.xlane.xlu1 %2468 }
 0x36c   : > { %v17646_v11 = vpop.eup %16119  ;;  %v2695_v23 = vmul.f32 %v16118_v31, %v17357_v48  ;;  %v17650_v46 = vpop.xlane.xlu0 %2516 }
 0x36d   : > { %v16122_v36 = vpop.eup %16121  ;;  %v2485_v1 = vsel %vm2406_vm1, %v17646_v11, 0.0 }
 0x36e   : > { %15148 = vmatprep.mubr.msk.f32.mxu0 %vm2406_vm1, %v2695_v23  ;;  %v2667_v48 = vmul.f32 %v16122_v36, %v17314_v42 }
 0x36f   : > { %v16124_v21 = vpop.eup %16123  ;;  %3407 = vrot.lane.b32.xlu0 %v16954_v35, %s16717_s20  ;;  %v17654_v38 = vpop.xlane.xlu1 %2471 }
 0x370   : > { %v17658_v5 = vpop.eup %16125  ;;  %2486 = vadd.xlane.f32.xlu1 %v2485_v1  ;;  %v2696_v15 = vmul.f32 %v16124_v21, %v17372_v44  ;;  %v17669_v9 = vpop.xlane.xlu0 %2519  ;;  %v1887_v44 = vcombine.high %v17522_v12, %v17522_v12 }
 0x371   : > { %20516 = vst [vmem:[#allocation59_spill] sm:$0xff] %v17658_v5  ;;  %v16128_v3 = vpop.eup %16127  ;;  %v2488_v6 = vsel %vm2406_vm1, %v17658_v5, 0.0 }
 0x372   : > { %15149 = vmatmul.mubr.msk.f32.vlgmr.msra.gmra.mxu0 %vm2406_vm1, %v2696_v15  ;;  %v2256_v54 = vadd.f32 %v17600_v25, %v16128_v3  ;;  %v16130_v26 = vpop.eup %16129  ;;  %v17677_v23 = vrot.slane %v1887_v44, %v17102_v33 }
 0x373   : > { %15162 = vmatprep.mubr.msk.f32.mxu0 %vm2406_vm1, %v2667_v48  ;;  %v17664_v57 = vpop.xlane.xlu1 %2474  ;;  %v2257_v7 = vadd.f32 %v17600_v25, %v16130_v26  ;;  %v16132_v26 = vpop.eup %16131 }
 0x374   : > { %2489 = vadd.xlane.f32.xlu1 %v2488_v6  ;;  %v2362_v31 = vmul.f32 1.442695, %v2256_v54  ;;  %v17680_v36 = vpop.xlane.xlu0 %2522  ;;  %v2039_v15 = vrot.slane %v17677_v23, %v17062_v27 }
 0x375   : > { %v2364_v1 = vmul.f32 1.442695, %v2257_v7 }
 0x376   : > { %v2138_v48 = vadd.f32 %v2039_v15, %v17539_v62 }
 0x377   : > { %v17673_v42 = vpop.xlane.xlu1 %2477 }
 0x378   : > { %v17687_v3 = vpop.xlane.xlu0 %2525 }
 0x37b   : > { %v2511_v21 = vpop.xlane.xlu1 %2510 }
 0x37c   : > { %16133 = vrcp.f32 %v2511_v21  ;;  %v2698_v21 = vmul.f32 %v16132_v26, %v17342_v58 }
 0x37d   : > { %16135 = vpow2.f32 %v2362_v31 }
 0x37e   : > { %16137 = vpow2.f32 %v2364_v1 }
 0x37f   : > { %v17684_v12 = vpop.xlane.xlu1 %2432  ;;  %16139 = vtanh.f32 %v2138_v48 }
 0x383   : > { %v17689_v6 = vpop.xlane.xlu1 %2435 }
 0x385   : > { %3496 = vrot.lane.b32.xlu1 %v16976_v41, %s16717_s20  ;;  %v2559_v18 = vpop.xlane.xlu0 %2558 }
 0x386   : > { %16141 = vrcp.f32 %v2559_v18 }
 0x387   : > { %v2999_v54 = vpop.permute.xlu1 %2998 }
 0x388   : > { %15123 = vmatprep.subr.mxu1 %v2999_v54 }
 0x389   : > { %v16134_v44 = vpop.eup %16133  ;;  %3494 = vrot.lane.b32.xlu1 %v16969_v39, %s16717_s20  ;;  %v2562_v7 = vpop.xlane.xlu0 %2561 }
 0x38a   : > { %v17695_v62 = vpop.eup %16135  ;;  %v2697_v31 = vmul.f32 %v16134_v44, %v17429_v4  ;;  %v1770_v44 = vcombine.high %v17307_v63, %v17307_v63  ;;  %16143 = vrcp.f32 %v2562_v7 }
 0x38b   : > { %v2533_v48 = vsel %vm2406_vm1, %v17695_v62, 0.0  ;;  %v17705_v18 = vpop.eup %16137  ;;  %16145 = vrcp.f32 %v17639_v29 }
 0x38c   : > { %15120 = vmatprep.mubr.msk.f32.mxu1 %vm2406_vm1, %v2697_v31  ;;  %20517 = vst [vmem:[#allocation60_spill] sm:$0xff] %v17705_v18  ;;  %v2536_v4 = vsel %vm2406_vm1, %v17705_v18, 0.0  ;;  %v16140_v58 = vpop.eup %16139  ;;  %16147 = vrcp.f32 %v17642_v30 }
 0x38d   : > { %3581 = vrot.lane.b32.xlu1 %v16982_v43, %s16717_s20  ;;  %v2553_v1 = vpop.xlane.xlu0 %2552  ;;  %15121 = vmatmul.mubr.msk.f32.vlgmr.msra.gmra.mxu1 %vm2406_vm1, %v2698_v21  ;;  %v2272_v5 = vadd.f32 %v17600_v25, %v16140_v58 }
 0x38e   : > { %15124 = vmatpush3.msra.mxu1 %v2999_v54  ;;  %2534 = vadd.xlane.f32.xlu0 %v2533_v48  ;;  %v1947_v54 = vrot.slane %v1770_v44, %v17062_v27  ;;  %16149 = vrcp.f32 %v2553_v1 }
 0x38f   : > { %v2394_v18 = vmul.f32 1.442695, %v2272_v5 }
 0x390   : > { %v2092_v48 = vadd.f32 %v1947_v54, %v17182_v24  ;;  %v2139_v24 = vadd.f32 %v2039_v15, %v17547_v28 }
 0x391   : > { %v2556_v33 = vpop.xlane.xlu0 %2555 }
 0x392   : > { %2537 = vadd.xlane.f32.xlu0 %v2536_v4  ;;  %16151 = vtanh.f32 %v2092_v48 }
 0x393   : > { %v16142_v26 = vpop.eup %16141  ;;  %16153 = vpow2.f32 %v2394_v18 }
 0x394   : > { %v2713_v31 = vmul.f32 %v16142_v26, %v17451_v60  ;;  %v2093_v60 = vadd.f32 %v1947_v54, %v17186_v34  ;;  %16155 = vrcp.f32 %v2556_v33 }
 0x395   : > { %v17712_v21 = vpop.xlane.xlu0 %2564  ;;  %16157 = vrcp.f32 %v17644_v40 }
 0x396   : > { %15127 = vmatprep.mubr.msk.f32.mxu1 %vm2406_vm1, %v2713_v31  ;;  %16159 = vtanh.f32 %v2093_v60  ;;  %v20518_v31 = vld [vmem:[#allocation39_spill] sm:$0xff] }
 0x397   : > { %v16144_v29 = vpop.eup %16143  ;;  %16161 = vtanh.f32 %v2139_v24 }
 0x398   : > { %v16146_v58 = vpop.eup %16145  ;;  %v2714_v30 = vmul.f32 %v16144_v29, %v17461_v8 }
 0x399   : > { %v17719_v4 = vpop.xlane.xlu0 %2567  ;;  %v2679_v1 = vmul.f32 %v16146_v58, %v17364_v55  ;;  %v16148_v34 = vpop.eup %16147 }
 0x39a   : > { %v2680_v55 = vmul.f32 %v16148_v34, %v17382_v17 }
 0x39b   : > { %v16150_v33 = vpop.eup %16149 }
 0x39c   : > { %v2711_v15 = vmul.f32 %v16150_v33, %v17470_v53 }
 0x39d   : > { %v17722_v63 = vpop.xlane.xlu0 %2570 }
 0x39f   : > { %v16152_v28 = vpop.eup %16151 }
 0x3a0   : > { %v17737_v40 = vpop.eup %16153  ;;  %v2226_v26 = vadd.f32 %v17600_v25, %v16152_v28  ;;  %v20519_v28 = vld [vmem:[#allocation34_spill] sm:$0xff] }
 0x3a1   : > { %v17726_v7 = vpop.xlane.xlu0 %2573  ;;  %v16156_v8 = vpop.eup %16155  ;;  %v2581_v53 = vsel %vm2406_vm1, %v17737_v40, 0.0 }
 0x3a2   : > { %v16158_v18 = vpop.eup %16157  ;;  %v2712_v17 = vmul.f32 %v16156_v8, %v17478_v20  ;;  %v2302_v60 = vmul.f32 1.442695, %v2226_v26 }
 0x3a3   : > { %v16160_v44 = vpop.eup %16159  ;;  %v2683_v54 = vmul.f32 %v16158_v18, %v20518_v31  ;;  %v1819_v31 = vcombine.high %v17458_v51, %v17458_v51 }
 0x3a4   : > { %v2227_v48 = vadd.f32 %v17600_v25, %v16160_v44  ;;  %v16162_v24 = vpop.eup %16161  ;;  %16163 = vpow2.f32 %v2302_v60 }
 0x3a5   : > { %v2997_v5 = vpop.permute.xlu0 %2996  ;;  %v2273_v29 = vadd.f32 %v17600_v25, %v16162_v24  ;;  %v20520_v24 = vld [vmem:[#allocation29_spill] sm:$0xff] }
 0x3a6   : > { %15125 = vmatprep.subr.mxu1 %v2997_v5  ;;  %v2304_v20 = vmul.f32 1.442695, %v2227_v48  ;;  %v1979_v48 = vrot.slane %v1819_v31, %v17062_v27 }
 0x3a7   : > { %15126 = vmatpush3.msra.mxu1 %v2997_v5  ;;  %v2396_v5 = vmul.f32 1.442695, %v2273_v29 }
 0x3a8   : > { %3583 = vrot.lane.b32.xlu0 %v16988_v45, %s16717_s20  ;;  %15128 = vmatmul.mubr.msk.f32.vlgmr.msra.gmra.mxu1 %vm2406_vm1, %v2714_v30  ;;  %16165 = vpow2.f32 %v2304_v20  ;;  %v1868_v30 = vcombine.high %v17518_v13, %v17518_v13  ;;  %v2108_v29 = vadd.f32 %v1979_v48, %v20520_v24  ;;  %v20521_v20 = vld [vmem:[#allocation30_spill] sm:$0xff] }
 0x3a9   : > { %15137 = vmatprep.subr.mxu1 %v16976_v41  ;;  %15141 = vmatprep.mubr.msk.f32.mxu1 %vm2406_vm1, %v2679_v1  ;;  %16167 = vpow2.f32 %v2396_v5  ;;  %v2109_v5 = vadd.f32 %v1979_v48, %v20521_v20  ;;  %v20524_v48 = vld [vmem:[#allocation40_spill] sm:$0xff] }
 0x3aa   : > { %15138 = vmatpush3.msra.mxu1 %v16976_v41  ;;  %v2011_v34 = vrot.slane %v1868_v30, %v17062_v27 }
 0x3ab   : > { %15139 = vmatprep.subr.mxu1 %v16969_v39 }
 0x3ac   : > { %15140 = vmatpush3.msra.mxu1 %v16969_v39 }
 0x3ad   : > { %15142 = vmatmul.mubr.msk.f32.vlgmr.msra.gmra.mxu1 %vm2406_vm1, %v2680_v55  ;;  %15151 = vmatprep.subr.mxu1 %v16999_v49  ;;  %v2124_v55 = vadd.f32 %v2011_v34, %v20519_v28 }
 0x3ae   : > { %15152 = vmatpush3.msra.mxu1 %v16999_v49  ;;  %15155 = vmatprep.mubr.msk.f32.mxu1 %vm2406_vm1, %v2711_v15 }
 0x3af   : > { %15153 = vmatprep.subr.mxu1 %v16995_v47  ;;  %16169 = vtanh.f32 %v2124_v55  ;;  %v20522_v55 = vld [vmem:[#allocation36_spill] sm:$0xff] }
 0x3b0   : > { %15154 = vmatpush3.msra.mxu1 %v16995_v47  ;;  %16171 = vrcp.f32 %v17603_v0 }
 0x3b1   : > { %15156 = vmatmul.mubr.msk.f32.vlgmr.msra.gmra.mxu1 %vm2406_vm1, %v2712_v17  ;;  %2582 = vadd.xlane.f32.xlu1 %v2581_v53  ;;  %v17770_v8 = vpop.eup %16163  ;;  %16173 = vrcp.f32 %v17650_v46  ;;  %v20523_v46 = vld [vmem:[#allocation32_spill] sm:$0xff] }
 0x3b2   : > { %15169 = vmatprep.mubr.msk.f32.mxu1 %vm2406_vm1, %v2683_v54  ;;  %v2443_v13 = vsel %vm2406_vm1, %v17770_v8, 0.0  ;;  %16175 = vtanh.f32 %v2108_v29 }
 0x3b3   : > { %16177 = vtanh.f32 %v2109_v5 }
 0x3b5   : > { %v17778_v18 = vpop.eup %16165 }
 0x3b6   : > { %v2446_v44 = vsel %vm2406_vm1, %v17778_v18, 0.0  ;;  %v17784_v17 = vpop.eup %16167 }
 0x3b7   : > { %v2584_v53 = vsel %vm2406_vm1, %v17784_v17, 0.0 }
 0x3b8   : > { %v17758_v58 = vpop.xlane.xlu1 %2480 }
 0x3bc   : > { %v17762_v1 = vpop.xlane.xlu1 %2483  ;;  %v16170_v54 = vpop.eup %16169 }
 0x3bd   : > { %v2258_v60 = vadd.f32 %v17600_v25, %v16170_v54 }
 0x3bf   : > { %v2366_v30 = vmul.f32 1.442695, %v2258_v60 }
 0x3c0   : > { %v17765_v33 = vpop.xlane.xlu1 %2438 }
 0x3c1   : > { %16179 = vpow2.f32 %v2366_v30 }
 0x3c2   : > { %3670 = vrot.lane.b32.xlu1 %v16999_v49, %s16717_s20 }
 0x3c4   : > { %v17772_v15 = vpop.xlane.xlu1 %2441 }
 0x3c6   : > { %3668 = vrot.lane.b32.xlu1 %v16995_v47, %s16717_s20 }
 0x3c7   : > { %2444 = vadd.xlane.f32.xlu0 %v2443_v13  ;;  %v2125_v13 = vadd.f32 %v2011_v34, %v20522_v55 }
 0x3c8   : > { %v3410_v26 = vpop.permute.xlu1 %3409 }
 0x3c9   : > { %15158 = vmatprep.subr.mxu0 %v3410_v26  ;;  %16181 = vtanh.f32 %v2125_v13 }
 0x3ca   : > { %3763 = vrot.lane.b32.xlu1 %v16954_v35, %s16718_s25  ;;  %15159 = vmatpush3.msra.mxu0 %v3410_v26 }
 0x3cb   : > { %2447 = vadd.xlane.f32.xlu0 %v2446_v44  ;;  %v16172_v44 = vpop.eup %16171 }
 0x3cc   : > { %v2668_v31 = vmul.f32 %v16172_v44, %v20523_v46 }
 0x3cf   : > { %2585 = vadd.xlane.f32.xlu0 %v2584_v53  ;;  %v16174_v53 = vpop.eup %16173 }
 0x3d0   : > { %v16176_v54 = vpop.eup %16175  ;;  %v2699_v60 = vmul.f32 %v16174_v53, %v20524_v48  ;;  %v1917_v53 = vcombine.high %v17532_v19, %v17532_v19 }
 0x3d1   : > { %v16178_v24 = vpop.eup %16177  ;;  %v2242_v29 = vadd.f32 %v17600_v25, %v16176_v54 }
 0x3d2   : > { %v17810_v34 = vpop.eup %16179  ;;  %v2243_v20 = vadd.f32 %v17600_v25, %v16178_v24  ;;  %v2043_v46 = vrot.slane %v1917_v53, %v17062_v27 }
 0x3d3   : > { %v2334_v5 = vmul.f32 1.442695, %v2242_v29 }
 0x3d4   : > { %v2336_v55 = vmul.f32 1.442695, %v2243_v20  ;;  %v2140_v54 = vadd.f32 %v2043_v46, %v17560_v22 }
 0x3d5   : > { %16183 = vpow2.f32 %v2334_v5 }
 0x3d6   : > { %v17792_v35 = vpop.xlane.xlu0 %2528  ;;  %v16182_v30 = vpop.eup %16181  ;;  %16185 = vpow2.f32 %v2336_v55 }
 0x3d7   : > { %v2259_v13 = vadd.f32 %v17600_v25, %v16182_v30  ;;  %16187 = vrcp.f32 %v17654_v38 }
 0x3d8   : > { %16189 = vrcp.f32 %v17712_v21 }
 0x3d9   : > { %v2368_v44 = vmul.f32 1.442695, %v2259_v13 }
 0x3da   : > { %v17798_v28 = vpop.xlane.xlu0 %2531 }
 0x3db   : > { %16191 = vpow2.f32 %v2368_v44  ;;  %v20527_v44 = vld [vmem:[#allocation27_spill] sm:$0xff] }
 0x3dc   : > { %16193 = vtanh.f32 %v2140_v54 }
 0x3dd   : > { %16195 = vrcp.f32 %v17669_v9  ;;  %v20528_v9 = vld [vmem:[#allocation41_spill] sm:$0xff] }
 0x3de   : > { %v17800_v51 = vpop.xlane.xlu0 %2576  ;;  %16197 = vrcp.f32 %v17621_v2 }
 0x3e2   : > { %v17803_v26 = vpop.xlane.xlu0 %2579  ;;  %v17830_v48 = vpop.eup %16183 }
 0x3e3   : > { %v17832_v21 = vpop.eup %16185 }
 0x3e4   : > { %v16188_v19 = vpop.eup %16187  ;;  %v2494_v29 = vsel %vm2406_vm1, %v17832_v21, 0.0 }
 0x3e5   : > { %3765 = vrot.lane.b32.xlu0 %v16960_v37, %s16718_s25  ;;  %v2539_v37 = vsel %vm2406_vm1, %v17810_v34, 0.0  ;;  %v16190_v24 = vpop.eup %16189 }
 0x3e6   : > { %v3408_v0 = vpop.permute.xlu0 %3407  ;;  %v2715_v20 = vmul.f32 %v16190_v24, %v17488_v59  ;;  %v20526_v59 = vld [vmem:[#allocation26_spill] sm:$0xff] }
 0x3e7   : > { %15160 = vmatprep.subr.mxu0 %v3408_v0 }
 0x3e8   : > { %15161 = vmatpush3.msra.mxu0 %v3408_v0 }
 0x3e9   : > { %15163 = vmatmul.mubr.msk.f32.vlgmr.msra.gmra.mxu0 %vm2406_vm1, %v2668_v31 }
 0x3ea   : > { %15176 = vmatprep.mubr.msk.f32.mxu0 %vm2406_vm1, %v2699_v60  ;;  %v2491_v60 = vsel %vm2406_vm1, %v17830_v48, 0.0 }
 0x3ee   : > { %2540 = vadd.xlane.f32.xlu1 %v2539_v37 }
 0x3f9   : > { %v17822_v0 = vpop.xlane.xlu1 %2486 }
 0x3fd   : > { %v17825_v31 = vpop.xlane.xlu1 %2489 }
 0x3ff   : > { %3852 = vrot.lane.b32.xlu1 %v16976_v41, %s16718_s25  ;;  %v2684_v41 = vmul.f32 %v16188_v19, %v17401_v52  ;;  %v20525_v52 = vld [vmem:[#allocation48_spill] sm:$0xff] }
 0x401   : > { %v3497_v38 = vpop.permute.xlu1 %3496 }
 0x402   : > { %15165 = vmatprep.subr.mxu1 %v3497_v38 }
 0x403   : > { %3850 = vrot.lane.b32.xlu1 %v16969_v39, %s16718_s25  ;;  %15166 = vmatpush3.msra.mxu1 %v3497_v38  ;;  %v17844_v39 = vpop.eup %16191 }
 0x404   : > { %2492 = vadd.xlane.f32.xlu0 %v2491_v60  ;;  %v2542_v37 = vsel %vm2406_vm1, %v17844_v39, 0.0  ;;  %v16194_v5 = vpop.eup %16193  ;;  %v2141_v60 = vadd.f32 %v2043_v46, %v17569_v61 }
 0x405   : > { %v3495_v22 = vpop.permute.xlu1 %3494  ;;  %v2274_v55 = vadd.f32 %v17600_v25, %v16194_v5  ;;  %v16196_v24 = vpop.eup %16195 }
 0x406   : > { %15167 = vmatprep.subr.mxu1 %v3495_v22 }
 0x407   : > { %3937 = vrot.lane.b32.xlu1 %v16982_v43, %s16718_s25  ;;  %15168 = vmatpush3.msra.mxu1 %v3495_v22  ;;  %v1772_v43 = vcombine.high %v20525_v52, %v20525_v52  ;;  %v2398_v54 = vmul.f32 1.442695, %v2274_v55 }
 0x408   : > { %2495 = vadd.xlane.f32.xlu0 %v2494_v29  ;;  %15170 = vmatmul.mubr.msk.f32.vlgmr.msra.gmra.mxu1 %vm2406_vm1, %v2684_v41  ;;  %v16198_v41 = vpop.eup %16197  ;;  %v2700_v29 = vmul.f32 %v16196_v24, %v20528_v9 }
 0x409   : > { %15183 = vmatprep.mubr.msk.f32.mxu1 %vm2406_vm1, %v2715_v20  ;;  %v1951_v30 = vrot.slane %v1772_v43, %v17062_v27  ;;  %v3582_v2 = vpop.permute.xlu1 %3581  ;;  %v20529_v20 = vld [vmem:[#allocation33_spill] sm:$0xff] }
 0x40b   : > { %v2094_v13 = vadd.f32 %v1951_v30, %v20526_v59  ;;  %v2095_v53 = vadd.f32 %v1951_v30, %v20527_v44  ;;  %v1821_v30 = vcombine.high %v17566_v32, %v17566_v32 }
 0x40c   : > { %2543 = vadd.xlane.f32.xlu0 %v2542_v37  ;;  %v2669_v37 = vmul.f32 %v16198_v41, %v20529_v20  ;;  %v20531_v41 = vld [vmem:[#allocation38_spill] sm:$0xff] }
 0x40d   : > { %16199 = vtanh.f32 %v2094_v13  ;;  %v1983_v44 = vrot.slane %v1821_v30, %v17062_v27 }
 0x40e   : > { %16201 = vtanh.f32 %v2095_v53 }
 0x40f   : > { %16203 = vpow2.f32 %v2398_v54  ;;  %v1870_v54 = vcombine.high %v17618_v50, %v17618_v50 }
 0x410   : > { %16205 = vtanh.f32 %v2141_v60  ;;  %v20530_v60 = vld [vmem:[#allocation31_spill] sm:$0xff] }
 0x411   : > { %v2110_v24 = vadd.f32 %v1983_v44, %v20530_v60  ;;  %v2015_v32 = vrot.slane %v1870_v54, %v17062_v27 }
 0x417   : > { %v17858_v38 = vpop.xlane.xlu0 %2534 }
 0x41a   : > { %v16200_v52 = vpop.eup %16199 }
 0x41b   : > { %v17860_v19 = vpop.xlane.xlu0 %2537  ;;  %v16202_v61 = vpop.eup %16201  ;;  %v2228_v43 = vadd.f32 %v17600_v25, %v16200_v52 }
 0x41c   : > { %v17869_v46 = vpop.eup %16203  ;;  %v2229_v5 = vadd.f32 %v17600_v25, %v16202_v61 }
 0x41d   : > { %v2306_v55 = vmul.f32 1.442695, %v2228_v43  ;;  %v16206_v59 = vpop.eup %16205  ;;  %v20532_v43 = vld [vmem:[#allocation50_spill] sm:$0xff] }
 0x41e   : > { %v2308_v13 = vmul.f32 1.442695, %v2229_v5  ;;  %v2275_v53 = vadd.f32 %v17600_v25, %v16206_v59 }
 0x41f   : > { %v3584_v22 = vpop.permute.xlu0 %3583  ;;  %16207 = vpow2.f32 %v2306_v55 }
 0x420   : > { %15172 = vmatprep.subr.mxu0 %v3584_v22  ;;  %16209 = vpow2.f32 %v2308_v13 }
 0x421   : > { %15173 = vmatpush3.msra.mxu0 %v3584_v22  ;;  %16211 = vrcp.f32 %v17719_v4  ;;  %v2400_v22 = vmul.f32 1.442695, %v2275_v53 }
 0x422   : > { %3939 = vrot.lane.b32.xlu0 %v16988_v45, %s16718_s25  ;;  %15174 = vmatprep.subr.mxu0 %v3582_v2  ;;  %v2587_v45 = vsel %vm2406_vm1, %v17869_v46, 0.0  ;;  %16213 = vrcp.f32 %v17664_v57 }
 0x423   : > { %15175 = vmatpush3.msra.mxu0 %v3582_v2  ;;  %16215 = vtanh.f32 %v2110_v24  ;;  %v2126_v2 = vadd.f32 %v2015_v32, %v20531_v41  ;;  %v20534_v41 = vld [vmem:[#allocation28_spill] sm:$0xff] }
 0x424   : > { %15177 = vmatmul.mubr.msk.f32.vlgmr.msra.gmra.mxu0 %vm2406_vm1, %v2700_v29  ;;  %16217 = vpow2.f32 %v2400_v22 }
 0x425   : > { %15190 = vmatprep.mubr.msk.f32.mxu0 %vm2406_vm1, %v2669_v37  ;;  %16219 = vtanh.f32 %v2126_v2  ;;  %v2111_v2 = vadd.f32 %v1983_v44, %v20534_v41 }
 0x42b   : > { %2588 = vadd.xlane.f32.xlu1 %v2587_v45  ;;  %v20533_v45 = vld [vmem:[#allocation42_spill] sm:$0xff] }
 0x42c   : > { %v17890_v50 = vpop.eup %16207 }
 0x42d   : > { %v17892_v20 = vpop.eup %16209  ;;  %v2449_v4 = vsel %vm2406_vm1, %v17890_v50, 0.0 }
 0x42e   : > { %v16212_v57 = vpop.eup %16211 }
 0x42f   : > { %v16214_v37 = vpop.eup %16213  ;;  %v2716_v5 = vmul.f32 %v16212_v57, %v20532_v43 }
 0x430   : > { %v16216_v61 = vpop.eup %16215  ;;  %v2685_v30 = vmul.f32 %v16214_v37, %v20533_v45  ;;  %v20537_v45 = vld [vmem:[#allocation43_spill] sm:$0xff] }
 0x431   : > { %v17900_v55 = vpop.eup %16217  ;;  %v2244_v59 = vadd.f32 %v17600_v25, %v16216_v61 }
 0x432   : > { %v16220_v13 = vpop.eup %16219  ;;  %v2590_v53 = vsel %vm2406_vm1, %v17900_v55, 0.0 }
 0x433   : > { %v2338_v54 = vmul.f32 1.442695, %v2244_v59  ;;  %v2260_v60 = vadd.f32 %v17600_v25, %v16220_v13 }
 0x435   : > { %16221 = vpow2.f32 %v2338_v54  ;;  %v2370_v24 = vmul.f32 1.442695, %v2260_v60 }
 0x436   : > { %16223 = vrcp.f32 %v17632_v10 }
 0x437   : > { %16225 = vrcp.f32 %v17680_v36 }
 0x438   : > { %16227 = vpow2.f32 %v2370_v24 }
 0x439   : > { %16229 = vtanh.f32 %v2111_v2  ;;  %v20538_v2 = vld [vmem:[#allocation49_spill] sm:$0xff] }
 0x43a   : > { %v17886_v9 = vpop.xlane.xlu1 %2582 }
 0x43c   : > { %4026 = vrot.lane.b32.xlu1 %v16999_v49, %s16718_s25  ;;  %v2452_v49 = vsel %vm2406_vm1, %v17892_v20, 0.0 }
 0x43e   : > { %v3671_v29 = vpop.permute.xlu1 %3670 }
 0x43f   : > { %15179 = vmatprep.subr.mxu1 %v3671_v29 }
 0x440   : > { %15180 = vmatpush3.msra.mxu1 %v3671_v29  ;;  %v20535_v29 = vld [vmem:[#allocation37_spill] sm:$0xff] }
 0x441   : > { %2450 = vadd.xlane.f32.xlu0 %v2449_v4  ;;  %v2127_v57 = vadd.f32 %v2015_v32, %v20535_v29  ;;  %v20536_v32 = vld [vmem:[#allocation35_spill] sm:$0xff] }
 0x442   : > { %v3669_v52 = vpop.permute.xlu1 %3668 }
 0x443   : > { %15181 = vmatprep.subr.mxu1 %v3669_v52  ;;  %16231 = vtanh.f32 %v2127_v57 }
 0x444   : > { %15182 = vmatpush3.msra.mxu1 %v3669_v52  ;;  %v17918_v52 = vpop.eup %16221 }
 0x445   : > { %2453 = vadd.xlane.f32.xlu0 %v2452_v49  ;;  %15184 = vmatmul.mubr.msk.f32.vlgmr.msra.gmra.mxu1 %vm2406_vm1, %v2716_v5  ;;  %v16224_v61 = vpop.eup %16223  ;;  %v2497_v44 = vsel %vm2406_vm1, %v17918_v52, 0.0 }
 0x446   : > { %15197 = vmatprep.mubr.msk.f32.mxu1 %vm2406_vm1, %v2685_v30  ;;  %v16226_v43 = vpop.eup %16225  ;;  %v3764_v36 = vpop.permute.xlu1 %3763  ;;  %v2670_v5 = vmul.f32 %v16224_v61, %v20536_v32 }
 0x447   : > { %v17925_v49 = vpop.eup %16227  ;;  %v2701_v30 = vmul.f32 %v16226_v43, %v20537_v45 }
 0x448   : > { %v16230_v59 = vpop.eup %16229 }
 0x449   : > { %2591 = vadd.xlane.f32.xlu0 %v2590_v53  ;;  %v1919_v53 = vcombine.high %v17677_v23, %v17677_v23  ;;  %v2245_v54 = vadd.f32 %v17600_v25, %v16230_v59  ;;  %v20539_v23 = vld [vmem:[#allocation3_spill] sm:$0xff] }
 0x44b   : > { %v2047_v24 = vrot.slane %v1919_v53, %v17062_v27  ;;  %v2340_v41 = vmul.f32 1.442695, %v2245_v54 }
 0x44d   : > { %v2142_v29 = vadd.f32 %v2047_v24, %v20538_v2  ;;  %16233 = vpow2.f32 %v2340_v41 }
 0x44f   : > { %16235 = vtanh.f32 %v2142_v29 }
 0x450   : > { %v17910_v22 = vpop.xlane.xlu0 %2444  ;;  %v16232_v13 = vpop.eup %16231 }
 0x451   : > { %v2261_v60 = vadd.f32 %v17600_v25, %v16232_v13  ;;  %v20541_v13 = vld [vmem:[#allocation51_spill] sm:$0xff] }
 0x453   : > { %v2372_v57 = vmul.f32 1.442695, %v2261_v60  ;;  %v2143_v60 = vadd.f32 %v2047_v24, %v17575_v56 }
 0x454   : > { %v17914_v4 = vpop.xlane.xlu0 %2447 }
 0x455   : > { %16237 = vpow2.f32 %v2372_v57 }
 0x456   : > { %16239 = vrcp.f32 %v17673_v42 }
 0x457   : > { %16241 = vrcp.f32 %v17722_v63 }
 0x458   : > { %v17916_v37 = vpop.xlane.xlu0 %2585 }
 0x45c   : > { %v3766_v10 = vpop.permute.xlu0 %3765 }
 0x45d   : > { %15186 = vmatprep.subr.mxu0 %v3766_v10 }
 0x45e   : > { %15187 = vmatpush3.msra.mxu0 %v3766_v10  ;;  %v17944_v10 = vpop.eup %16233 }
 0x45f   : > { %4024 = vrot.lane.b32.xlu0 %v16995_v47, %s16718_s25  ;;  %15188 = vmatprep.subr.mxu0 %v3764_v36  ;;  %v2545_v47 = vsel %vm2406_vm1, %v17925_v49, 0.0  ;;  %v16236_v43 = vpop.eup %16235 }
 0x460   : > { %2498 = vadd.xlane.f32.xlu1 %v2497_v44  ;;  %15189 = vmatpush3.msra.mxu0 %v3764_v36  ;;  %v2276_v45 = vadd.f32 %v17600_v25, %v16236_v43 }
 0x461   : > { %15191 = vmatmul.mubr.msk.f32.vlgmr.msra.gmra.mxu0 %vm2406_vm1, %v2670_v5  ;;  %v2500_v5 = vsel %vm2406_vm1, %v17944_v10, 0.0 }
 0x462   : > { %15204 = vmatprep.mubr.msk.f32.mxu0 %vm2406_vm1, %v2701_v30  ;;  %v17946_v44 = vpop.eup %16237  ;;  %v20540_v30 = vld [vmem:[#allocation44_spill] sm:$0xff]  ;;  %v2402_v54 = vmul.f32 1.442695, %v2276_v45  ;;  %v20545_v45 = vld [vmem:[#allocation47_spill] sm:$0xff] }
 0x463   : > { %v16240_v32 = vpop.eup %16239 }
 0x464   : > { %2546 = vadd.xlane.f32.xlu1 %v2545_v47  ;;  %v16242_v42 = vpop.eup %16241  ;;  %v2686_v59 = vmul.f32 %v16240_v32, %v20540_v30  ;;  %v2548_v47 = vsel %vm2406_vm1, %v17946_v44, 0.0  ;;  %16243 = vpow2.f32 %v2402_v54  ;;  %v20544_v32 = vld [vmem:[#allocation46_spill] sm:$0xff] }
 0x465   : > { %v2717_v53 = vmul.f32 %v16242_v42, %v20541_v13  ;;  %16245 = vrcp.f32 %v17687_v3  ;;  %v20542_v3 = vld [vmem:[#allocation2_spill] sm:$0xff] }
 0x466   : > { %16247 = vrcp.f32 %v17684_v12  ;;  %v20547_v54 = vld [vmem:[#allocation6_spill] sm:$0xff] }
 0x467   : > { %16249 = vtanh.f32 %v2143_v60 }
 0x468   : > { %16251 = vrcp.f32 %v17689_v6 }
 0x469   : > { %16253 = vrcp.f32 %v17792_v35 }
 0x46a   : > { %16255 = vrcp.f32 %v17798_v28  ;;  %v20543_v28 = vld [vmem:[#allocation45_spill] sm:$0xff] }
 0x46b   : > { %16257 = vrcp.f32 %v17765_v33 }
 0x471   : > { %v17967_v29 = vpop.eup %16243 }
 0x472   : > { %v2593_v12 = vsel %vm2406_vm1, %v17967_v29, 0.0  ;;  %v16246_v24 = vpop.eup %16245 }
 0x473   : > { %v16248_v35 = vpop.eup %16247 }
 0x474   : > { %v16250_v57 = vpop.eup %16249 }
 0x475   : > { %4455 = vrot.lane.b32.xlu1 %v20539_v23, %s16714_s28  ;;  %v16252_v33 = vpop.eup %16251 }
 0x476   : > { %v16254_v42 = vpop.eup %16253  ;;  %v2672_v30 = vmul.f32 %v16252_v33, %v20545_v45  ;;  %v20554_v33 = vld [vmem:[#allocation53_spill] sm:$0xff] }
 0x477   : > { %v17942_v61 = vpop.xlane.xlu1 %2540 }
 0x47b   : > { %v3853_v36 = vpop.permute.xlu1 %3852 }
 0x47c   : > { %15193 = vmatprep.subr.mxu1 %v3853_v36 }
 0x47d   : > { %15194 = vmatpush3.msra.mxu1 %v3853_v36  ;;  %v2702_v36 = vmul.f32 %v16246_v24, %v20543_v28 }
 0x47e   : > { %2501 = vadd.xlane.f32.xlu0 %v2500_v5  ;;  %v2671_v5 = vmul.f32 %v16248_v35, %v20544_v32 }
 0x47f   : > { %v3851_v63 = vpop.permute.xlu1 %3850 }
 0x480   : > { %15195 = vmatprep.subr.mxu1 %v3851_v63 }
 0x481   : > { %15196 = vmatpush3.msra.mxu1 %v3851_v63  ;;  %v2277_v63 = vadd.f32 %v17600_v25, %v16250_v57  ;;  %v20546_v25 = vld [vmem:[#allocation7_spill] sm:$0xff] }
 0x482   : > { %2549 = vadd.xlane.f32.xlu0 %v2548_v47  ;;  %15198 = vmatmul.mubr.msk.f32.vlgmr.msra.gmra.mxu1 %vm2406_vm1, %v2686_v59  ;;  %v16256_v59 = vpop.eup %16255  ;;  %v2703_v47 = vmul.f32 %v16254_v42, %v17578_v16  ;;  %v20549_v16 = vld [vmem:[#allocation5_spill] sm:$0xff] }
 0x483   : > { %15211 = vmatprep.mubr.msk.f32.mxu1 %vm2406_vm1, %v2717_v53  ;;  %v3938_v43 = vpop.permute.xlu1 %3937  ;;  %v16258_v13 = vpop.eup %16257  ;;  %v2404_v53 = vmul.f32 1.442695, %v2277_v63  ;;  %v2704_v60 = vmul.f32 %v16256_v59, %v17584_v14  ;;  %v20555_v63 = vld [vmem:[#allocation54_spill] sm:$0xff]  ;;  %v20556_v59 = vld [vmem:[#allocation57_spill] sm:$0xff] }
 0x485   : > { %16259 = vpow2.f32 %v2404_v53  ;;  %v20557_v53 = vld [vmem:[#allocation58_spill] sm:$0xff] }
 0x486   : > { %16261 = vrcp.f32 %v17726_v7  ;;  %v20551_v7 = vld [vmem:[#allocation9_spill] sm:$0xff] }
 0x487   : > { %16263 = vrcp.f32 %v17758_v58 }
 0x488   : > { %16265 = vrcp.f32 %v17762_v1 }
 0x489   : > { %16267 = vrcp.f32 %v17800_v51 }
 0x48a   : > { %16269 = vrcp.f32 %v17803_v26  ;;  %v20553_v26 = vld [vmem:[#allocation52_spill] sm:$0xff] }
 0x48b   : > { %16271 = vrcp.f32 %v17822_v0 }
 0x48c   : > { %16273 = vrcp.f32 %v17772_v15 }
 0x48d   : > { %v17960_v41 = vpop.xlane.xlu0 %2492  ;;  %16275 = vrcp.f32 %v17858_v38 }
 0x48e   : > { %16277 = vrcp.f32 %v17825_v31 }
 0x48f   : > { %16279 = vrcp.f32 %v17886_v9 }
 0x490   : > { %16281 = vrcp.f32 %v17860_v19 }
 0x491   : > { %v17964_v2 = vpop.xlane.xlu0 %2495  ;;  %16283 = vrcp.f32 %v17910_v22 }
 0x492   : > { %v18003_v35 = vpop.eup %16259  ;;  %16285 = vrcp.f32 %v17914_v4  ;;  %v20560_v4 = vld [vmem:[#allocation60_spill] sm:$0xff] }
 0x493   : > { %v2596_v57 = vsel %vm2406_vm1, %v18003_v35, 0.0  ;;  %v16262_v1 = vpop.eup %16261  ;;  %16287 = vrcp.f32 %v17916_v37 }
 0x494   : > { %v16264_v51 = vpop.eup %16263  ;;  %v2718_v0 = vmul.f32 %v16262_v1, %v20553_v26  ;;  %v20558_v1 = vld [vmem:[#allocation56_spill] sm:$0xff]  ;;  %16289 = vrcp.f32 %v17942_v61 }
 0x495   : > { %v17970_v56 = vpop.xlane.xlu0 %2543  ;;  %v2687_v32 = vmul.f32 %v16264_v51, %v20554_v33  ;;  %v20559_v33 = vld [vmem:[#allocation59_spill] sm:$0xff]  ;;  %16291 = vrcp.f32 %v17960_v41 }
 0x496   : > { %16293 = vrcp.f32 %v17970_v56 }
 0x498   : > { %4453 = vrot.lane.b32.xlu0 %v20542_v3, %s16714_s28 }
 0x499   : > { %v3940_v6 = vpop.permute.xlu0 %3939  ;;  %2594 = vadd.xlane.f32.xlu1 %v2593_v12  ;;  %v20548_v12 = vld [vmem:[#allocation55_spill] sm:$0xff] }
 0x49a   : > { %15200 = vmatprep.subr.mxu0 %v3940_v6  ;;  %v2673_v24 = vmul.f32 %v16258_v13, %v20548_v12 }
 0x49b   : > { %15201 = vmatpush3.msra.mxu0 %v3940_v6  ;;  %v20550_v6 = vld [vmem:[#allocation4_spill] sm:$0xff] }
 0x49c   : > { %15202 = vmatprep.subr.mxu0 %v3938_v43 }
 0x49d   : > { %15203 = vmatpush3.msra.mxu0 %v3938_v43 }
 0x49e   : > { %15205 = vmatmul.mubr.msk.f32.vlgmr.msra.gmra.mxu0 %vm2406_vm1, %v2702_v36  ;;  %15214 = vmatprep.subr.mxu0 %v20539_v23 }
 0x49f   : > { %15215 = vmatpush3.msra.mxu0 %v20539_v23  ;;  %15218 = vmatprep.mubr.msk.f32.mxu0 %vm2406_vm1, %v2671_v5  ;;  %v16266_v5 = vpop.eup %16265 }
 0x4a0   : > { %15216 = vmatprep.subr.mxu0 %v20542_v3  ;;  %v16268_v42 = vpop.eup %16267  ;;  %v2688_v45 = vmul.f32 %v16266_v5, %v20555_v63 }
 0x4a1   : > { %15217 = vmatpush3.msra.mxu0 %v20542_v3 }
 0x4a2   : > { %15219 = vmatmul.mubr.msk.f32.vlgmr.msra.gmra.mxu0 %vm2406_vm1, %v2672_v30  ;;  %15228 = vmatprep.subr.mxu0 %v20546_v25  ;;  %v16270_v30 = vpop.eup %16269 }
 0x4a3   : > { %15229 = vmatpush3.msra.mxu0 %v20546_v25  ;;  %15232 = vmatprep.mubr.msk.f32.mxu0 %vm2406_vm1, %v2703_v47  ;;  %v2719_v47 = vmul.f32 %v16268_v42, %v20556_v59  ;;  %v16272_v13 = vpop.eup %16271 }
 0x4a4   : > { %15230 = vmatprep.subr.mxu0 %v20547_v54 }
 0x4a5   : > { %15231 = vmatpush3.msra.mxu0 %v20547_v54 }
 0x4a6   : > { %15233 = vmatmul.mubr.msk.f32.vlgmr.msra.gmra.mxu0 %vm2406_vm1, %v2704_v60  ;;  %v2689_v60 = vmul.f32 %v16272_v13, %v17646_v11 }
 0x4a7   : > { %15246 = vmatprep.mubr.msk.f32.mxu0 %vm2406_vm1, %v2673_v24 }
 0x4aa   : > { %4544 = vrot.lane.b32.xlu1 %v20549_v16, %s16714_s28 }
 0x4ae   : > { %4542 = vrot.lane.b32.xlu1 %v20550_v6, %s16714_s28 }
 0x4b2   : > { %4631 = vrot.lane.b32.xlu1 %v20547_v54, %s16714_s28 }
 0x4b4   : > { %v18005_v14 = vpop.xlane.xlu1 %2588 }
 0x4b6   : > { %4817 = vrot.lane.b32.xlu1 %v20539_v23, %s16717_s20 }
 0x4b7   : > { %2597 = vadd.xlane.f32.xlu0 %v2596_v57  ;;  %v16274_v57 = vpop.eup %16273 }
 0x4b8   : > { %v4027_v43 = vpop.permute.xlu1 %4026  ;;  %v2674_v51 = vmul.f32 %v16274_v57, %v20558_v1 }
 0x4b9   : > { %15207 = vmatprep.subr.mxu1 %v4027_v43 }
 0x4ba   : > { %4815 = vrot.lane.b32.xlu1 %v20542_v3, %s16717_s20  ;;  %15208 = vmatpush3.msra.mxu1 %v4027_v43  ;;  %v16276_v43 = vpop.eup %16275 }
 0x4be   : > { %4991 = vrot.lane.b32.xlu1 %v20546_v25, %s16717_s20 }
 0x4c2   : > { %4989 = vrot.lane.b32.xlu1 %v20547_v54, %s16717_s20 }
 0x4c6   : > { %5173 = vrot.lane.b32.xlu1 %v20539_v23, %s16718_s25  ;;  %v20552_v23 = vld [vmem:[#allocation8_spill] sm:$0xff] }
 0x4ca   : > { %v18021_v28 = vpop.xlane.xlu0 %2450  ;;  %5171 = vrot.lane.b32.xlu1 %v20542_v3, %s16718_s25 }
 0x4cb   : > { %16295 = vrcp.f32 %v18021_v28 }
 0x4cc   : > { %16297 = vrcp.f32 %v17964_v2 }
 0x4cd   : > { %4633 = vrot.lane.b32.xlu0 %v20546_v25, %s16714_s28 }
 0x4ce   : > { %v18029_v36 = vpop.xlane.xlu0 %2453  ;;  %5258 = vrot.lane.b32.xlu1 %v20550_v6, %s16718_s25 }
 0x4cf   : > { %16299 = vrcp.f32 %v18029_v36 }
 0x4d1   : > { %4722 = vrot.lane.b32.xlu0 %v20551_v7, %s16714_s28 }
 0x4d2   : > { %v18037_v58 = vpop.xlane.xlu0 %2591  ;;  %5345 = vrot.lane.b32.xlu1 %v20547_v54, %s16718_s25  ;;  %v2720_v54 = vmul.f32 %v16270_v30, %v20557_v53  ;;  %v18125_v53 = vpop.f32.mrf.mxu1 }
 0x4d3   : > { %20561 = vst [vmem:[#allocation39_spill] sm:$0xff] %v18125_v53 }
 0x4d5   : > { %4720 = vrot.lane.b32.xlu0 %v20552_v23, %s16714_s28 }
 0x4d6   : > { %v4025_v3 = vpop.permute.xlu0 %4024  ;;  %5432 = vrot.lane.b32.xlu1 %v20552_v23, %s16718_s25 }
 0x4d7   : > { %15209 = vmatprep.subr.mxu1 %v4025_v3 }
 0x4d8   : > { %15210 = vmatpush3.msra.mxu1 %v4025_v3  ;;  %v16278_v3 = vpop.eup %16277 }
 0x4d9   : > { %4904 = vrot.lane.b32.xlu0 %v20549_v16, %s16717_s20  ;;  %15212 = vmatmul.mubr.msk.f32.vlgmr.msra.gmra.mxu1 %vm2406_vm1, %v2718_v0  ;;  %v16280_v26 = vpop.eup %16279 }
 0x4da   : > { %15221 = vmatprep.subr.mxu1 %v20549_v16  ;;  %15225 = vmatprep.mubr.msk.f32.mxu1 %vm2406_vm1, %v2687_v32  ;;  %v2690_v32 = vmul.f32 %v16278_v3, %v20559_v33  ;;  %v16282_v63 = vpop.eup %16281 }
 0x4db   : > { %15222 = vmatpush3.msra.mxu1 %v20549_v16  ;;  %v16284_v22 = vpop.eup %16283  ;;  %v2706_v37 = vmul.f32 %v16282_v63, %v20560_v4 }
 0x4dc   : > { %15223 = vmatprep.subr.mxu1 %v20550_v6  ;;  %v16286_v56 = vpop.eup %16285  ;;  %v2675_v2 = vmul.f32 %v16284_v22, %v17770_v8  ;;  %v20569_v22 = vld [vmem:[#allocation11_spill] sm:$0xff] }
 0x4dd   : > { %15224 = vmatpush3.msra.mxu1 %v20550_v6  ;;  %4902 = vrot.lane.b32.xlu0 %v20550_v6, %s16717_s20  ;;  %v14539_v6 = vld [vmem:[%s20346_s11 + $0x1] ss:$0 sm:$0xff]  ;;  %v16288_v28 = vpop.eup %16287  ;;  %v2676_v30 = vmul.f32 %v16286_v56, %v17778_v18 }
 0x4de   : > { %15226 = vmatmul.mubr.msk.f32.vlgmr.msra.gmra.mxu1 %vm2406_vm1, %v2688_v45  ;;  %15235 = vmatprep.subr.mxu1 %v20551_v7  ;;  %v16290_v36 = vpop.eup %16289  ;;  %v2722_v13 = vmul.f32 %v16288_v28, %v17784_v17  ;;  %v20572_v56 = vld [vmem:[#allocation10_spill] sm:$0xff]  ;;  %v20574_v28 = vld [vmem:[#allocation17_spill] sm:$0xff] }
 0x4df   : > { %15236 = vmatpush3.msra.mxu1 %v20551_v7  ;;  %15239 = vmatprep.mubr.msk.f32.mxu1 %vm2406_vm1, %v2719_v47  ;;  %v2707_v47 = vmul.f32 %v16290_v36, %v17810_v34 }
 0x4e0   : > { %15237 = vmatprep.subr.mxu1 %v20552_v23 }
 0x4e1   : > { %15238 = vmatpush3.msra.mxu1 %v20552_v23  ;;  %5078 = vrot.lane.b32.xlu0 %v20551_v7, %s16717_s20 }
 0x4e2   : > { %15240 = vmatmul.mubr.msk.f32.vlgmr.msra.gmra.mxu1 %vm2406_vm1, %v2720_v54 }
 0x4e3   : > { %15253 = vmatprep.mubr.msk.f32.mxu1 %vm2406_vm1, %v2689_v60 }
 0x4e5   : > { %5076 = vrot.lane.b32.xlu0 %v20552_v23, %s16717_s20  ;;  %v2705_v23 = vmul.f32 %v16276_v43, %v17695_v62  ;;  %v2721_v62 = vmul.f32 %v16280_v26, %v17737_v40 }
 0x4e9   : > { %5260 = vrot.lane.b32.xlu0 %v20549_v16, %s16718_s25  ;;  %v18075_v12 = vpop.xlane.xlu1 %2498 }
 0x4ed   : > { %5347 = vrot.lane.b32.xlu0 %v20546_v25, %s16718_s25  ;;  %v2547_v24 = vpop.xlane.xlu1 %2546 }
 0x4ee   : > { %16301 = vrcp.f32 %v2547_v24  ;;  %v18132_v24 = vpop.f32.mrf.mxu1 }
 0x4ef   : > { %16303 = vrcp.f32 %v18005_v14  ;;  %v16292_v14 = vpop.eup %16291  ;;  %20562 = vst [vmem:[#allocation34_spill] sm:$0xff] %v18132_v24 }
 0x4f0   : > { %16305 = vrcp.f32 %v18037_v58  ;;  %v16294_v59 = vpop.eup %16293  ;;  %v2691_v18 = vmul.f32 %v16292_v14, %v17830_v48  ;;  %v20575_v14 = vld [vmem:[#allocation15_spill] sm:$0xff] }
 0x4f1   : > { %5434 = vrot.lane.b32.xlu0 %v20551_v7, %s16718_s25  ;;  %v4456_v11 = vpop.permute.xlu1 %4455  ;;  %16307 = vrcp.f32 %v18075_v12  ;;  %v16296_v58 = vpop.eup %16295  ;;  %v2708_v34 = vmul.f32 %v16294_v59, %v17844_v39  ;;  %v20577_v59 = vld [vmem:[#allocation16_spill] sm:$0xff] }
 0x4f2   : > { %15242 = vmatprep.subr.mxu0 %v4456_v11  ;;  %v16298_v60 = vpop.eup %16297  ;;  %v2677_v48 = vmul.f32 %v16296_v58, %v17890_v50 }
 0x4f3   : > { %15243 = vmatpush3.msra.mxu0 %v4456_v11  ;;  %v16300_v12 = vpop.eup %16299  ;;  %v2692_v43 = vmul.f32 %v16298_v60, %v17832_v21 }
 0x4f4   : > { %v2678_v57 = vmul.f32 %v16300_v12, %v17892_v20 }
 0x4f5   : > { %5827 = vrot.lane.b32.xlu0 %v14539_v6, %s16719_s30  ;;  %s20008_s30 = scalar_lea.vmem %s20339_s4, %s14415_s22 }
 0x4fb   : > { %v16302_v17 = vpop.eup %16301 }
 0x4fc   : > { %v16304_v11 = vpop.eup %16303 }
 0x4fd   : > { %v2723_v50 = vmul.f32 %v16304_v11, %v17869_v46 }
 0x507   : > { %v18086_v16 = vpop.xlane.xlu0 %2501 }
 0x508   : > { %16309 = vrcp.f32 %v18086_v16  ;;  %v2709_v16 = vmul.f32 %v16302_v17, %v17925_v49  ;;  %v16306_v49 = vpop.eup %16305 }
 0x509   : > { %v16308_v21 = vpop.eup %16307 }
 0x50b   : > { %v18088_v25 = vpop.xlane.xlu0 %2549 }
 0x50f   : > { %v4454_v7 = vpop.permute.xlu0 %4453 }
 0x510   : > { %15244 = vmatprep.subr.mxu0 %v4454_v7 }
 0x511   : > { %15245 = vmatpush3.msra.mxu0 %v4454_v7  ;;  %v18142_v7 = vpop.f32.mrf.mxu1 }
 0x512   : > { %15247 = vmatmul.mubr.msk.f32.vlgmr.msra.gmra.mxu0 %vm2406_vm1, %v2674_v51  ;;  %20563 = vst [vmem:[#allocation29_spill] sm:$0xff] %v18142_v7  ;;  %v2724_v51 = vmul.f32 %v16306_v49, %v17900_v55 }
 0x513   : > { %15260 = vmatprep.mubr.msk.f32.mxu0 %vm2406_vm1, %v2705_v23  ;;  %v18150_v1 = vpop.f32.mrf.mxu1  ;;  %v2693_v23 = vmul.f32 %v16308_v21, %v17918_v52 }
 0x514   : > { %20564 = vst [vmem:[#allocation30_spill] sm:$0xff] %v18150_v1 }
 0x522   : > { %v18096_v15 = vpop.xlane.xlu1 %2594 }
 0x523   : > { %16311 = vrcp.f32 %v18096_v15  ;;  %v18155_v15 = vpop.f32.mrf.mxu1 }
 0x524   : > { %16313 = vrcp.f32 %v18088_v25  ;;  %20565 = vst [vmem:[#allocation36_spill] sm:$0xff] %v18155_v15 }
 0x526   : > { %v4545_v38 = vpop.permute.xlu1 %4544 }
 0x527   : > { %15249 = vmatprep.subr.mxu1 %v4545_v38 }
 0x528   : > { %15250 = vmatpush3.msra.mxu1 %v4545_v38  ;;  %v16310_v38 = vpop.eup %16309 }
 0x529   : > { %v2694_v55 = vmul.f32 %v16310_v38, %v17944_v10 }
 0x52a   : > { %v4543_v0 = vpop.permute.xlu1 %4542 }
 0x52b   : > { %15251 = vmatprep.subr.mxu1 %v4543_v0 }
 0x52c   : > { %15252 = vmatpush3.msra.mxu1 %v4543_v0  ;;  %v18159_v0 = vpop.f32.mrf.mxu1 }
 0x52d   : > { %15254 = vmatmul.mubr.msk.f32.vlgmr.msra.gmra.mxu1 %vm2406_vm1, %v2690_v32  ;;  %20566 = vst [vmem:[#allocation32_spill] sm:$0xff] %v18159_v0 }
 0x52e   : > { %15267 = vmatprep.mubr.msk.f32.mxu1 %vm2406_vm1, %v2721_v62  ;;  %v4632_v31 = vpop.permute.xlu1 %4631 }
 0x530   : > { %v16312_v26 = vpop.eup %16311 }
 0x531   : > { %v16314_v33 = vpop.eup %16313  ;;  %v2725_v52 = vmul.f32 %v16312_v26, %v17967_v29 }
 0x532   : > { %v4818_v9 = vpop.permute.xlu1 %4817 }
 0x536   : > { %v4816_v5 = vpop.permute.xlu1 %4815 }
 0x53a   : > { %v4992_v42 = vpop.permute.xlu1 %4991 }
 0x53e   : > { %v4990_v61 = vpop.permute.xlu1 %4989 }
 0x540   : > { %v18108_v40 = vpop.xlane.xlu0 %2597 }
 0x541   : > { %16315 = vrcp.f32 %v18108_v40 }
 0x542   : > { %v5174_v8 = vpop.permute.xlu1 %5173 }
 0x544   : > { %v4634_v19 = vpop.permute.xlu0 %4633 }
 0x545   : > { %15256 = vmatprep.subr.mxu0 %v4634_v19 }
 0x546   : > { %15257 = vmatpush3.msra.mxu0 %v4634_v19  ;;  %v5172_v6 = vpop.permute.xlu1 %5171 }
 0x547   : > { %15258 = vmatprep.subr.mxu0 %v4632_v31 }
 0x548   : > { %v4723_v41 = vpop.permute.xlu0 %4722  ;;  %15259 = vmatpush3.msra.mxu0 %v4632_v31  ;;  %v2710_v31 = vmul.f32 %v16314_v33, %v17946_v44  ;;  %v20568_v44 = vld [vmem:[#allocation13_spill] sm:$0xff] }
 0x549   : > { %15261 = vmatmul.mubr.msk.f32.vlgmr.msra.gmra.mxu0 %vm2406_vm1, %v2706_v37  ;;  %15263 = vmatprep.subr.mxu1 %v4723_v41 }
 0x54a   : > { %15270 = vmatprep.subr.mxu0 %v4818_v9  ;;  %15264 = vmatpush3.msra.mxu1 %v4723_v41  ;;  %v5259_v46 = vpop.permute.xlu1 %5258 }
 0x54b   : > { %15271 = vmatpush3.msra.mxu0 %v4818_v9  ;;  %15274 = vmatprep.mubr.msk.f32.mxu0 %vm2406_vm1, %v2675_v2 }
 0x54c   : > { %15272 = vmatprep.subr.mxu0 %v4816_v5  ;;  %v4721_v45 = vpop.permute.xlu0 %4720 }
 0x54d   : > { %15273 = vmatpush3.msra.mxu0 %v4816_v5  ;;  %15265 = vmatprep.subr.mxu1 %v4721_v45  ;;  %v18166_v5 = vpop.f32.mrf.mxu1 }
 0x54e   : > { %15275 = vmatmul.mubr.msk.f32.vlgmr.msra.gmra.mxu0 %vm2406_vm1, %v2676_v30  ;;  %15284 = vmatprep.subr.mxu0 %v4992_v42  ;;  %v5346_v32 = vpop.permute.xlu1 %5345  ;;  %v16316_v9 = vpop.eup %16315 }
 0x54f   : > { %15266 = vmatpush3.msra.mxu1 %v4721_v45  ;;  %15285 = vmatpush3.msra.mxu0 %v4992_v42  ;;  %v2726_v29 = vmul.f32 %v16316_v9, %v18003_v35  ;;  %v18170_v42 = vpop.f32.mrf.mxu1 }
 0x550   : > { %15288 = vmatprep.mubr.msk.f32.mxu0 %vm2406_vm1, %v2707_v47  ;;  %15268 = vmatmul.mubr.msk.f32.vlgmr.msra.gmra.mxu1 %vm2406_vm1, %v2722_v13  ;;  %v4905_v54 = vpop.permute.xlu0 %4904  ;;  %20567 = vst [vmem:[#allocation40_spill] sm:$0xff] %v18170_v42  ;;  %v20578_v47 = vld [vmem:[#allocation14_spill] sm:$0xff] }
 0x551   : > { %15286 = vmatprep.subr.mxu0 %v4990_v61  ;;  %15281 = vmatprep.mubr.msk.f32.mxu1 %vm2406_vm1, %v2691_v18  ;;  %v18175_v37 = vpop.f32.mrf.mxu1 }
 0x552   : > { %15287 = vmatpush3.msra.mxu0 %v4990_v61  ;;  %15277 = vmatprep.subr.mxu1 %v4905_v54  ;;  %v5433_v10 = vpop.permute.xlu1 %5432  ;;  %20570 = vst [vmem:[#allocation48_spill] sm:$0xff] %v18175_v37  ;;  %v20571_v61 = vld [vmem:[#allocation12_spill] sm:$0xff] }
 0x553   : > { %15289 = vmatmul.mubr.msk.f32.vlgmr.msra.gmra.mxu0 %vm2406_vm1, %v2708_v34  ;;  %15298 = vmatprep.subr.mxu0 %v5174_v8  ;;  %v18179_v35 = vpop.f32.mrf.mxu1 }
 0x554   : > { %15278 = vmatpush3.msra.mxu1 %v4905_v54  ;;  %15299 = vmatpush3.msra.mxu0 %v5174_v8  ;;  %v4903_v39 = vpop.permute.xlu0 %4902  ;;  %20573 = vst [vmem:[#allocation26_spill] sm:$0xff] %v18179_v35 }
 0x555   : > { %15302 = vmatprep.mubr.msk.f32.mxu0 %vm2406_vm1, %v2677_v48  ;;  %15300 = vmatprep.subr.mxu0 %v5172_v6  ;;  %v18183_v30 = vpop.f32.mrf.mxu1  ;;  %v5542_v48 = vld [vmem:[%s20344_s9 + $0x18] sm:$0xff] }
 0x556   : > { %15301 = vmatpush3.msra.mxu0 %v5172_v6  ;;  %15279 = vmatprep.subr.mxu1 %v4903_v39  ;;  %20576 = vst [vmem:[#allocation27_spill] sm:$0xff] %v18183_v30  ;;  %v5541_v6 = vld [vmem:[%s20344_s9 + $0x10] sm:$0xff] }
 0x557   : > { %15303 = vmatmul.mubr.msk.f32.vlgmr.msra.gmra.mxu0 %vm2406_vm1, %v2678_v57  ;;  %15280 = vmatpush3.msra.mxu1 %v4903_v39  ;;  %v18187_v18 = vpop.f32.mrf.mxu1  ;;  %v5540_v39 = vld [vmem:[%s20344_s9 + $0x8] sm:$0xff] }
 0x558   : > { %15316 = vmatprep.mubr.msk.f32.mxu0 %vm2406_vm1, %v2709_v16  ;;  %15282 = vmatmul.mubr.msk.f32.vlgmr.msra.gmra.mxu1 %vm2406_vm1, %v2692_v43  ;;  %v5079_v20 = vpop.permute.xlu0 %5078  ;;  %20579 = vst [vmem:[#allocation41_spill] sm:$0xff] %v18187_v18  ;;  %v5539_v16 = vld [vmem:[%s20344_s9] sm:$0xff]  ;;  %v20584_v43 = vmov 0.0  }
 0x559   : > { %15295 = vmatprep.mubr.msk.f32.mxu1 %vm2406_vm1, %v2723_v50  ;;  %15291 = vmatprep.subr.mxu1 %v5079_v20  ;;  %v18189_v58 = vpop.f32.mrf.mxu1 }
 0x55a   : > { %15292 = vmatpush3.msra.mxu1 %v5079_v20  ;;  %20580 = vst [vmem:[#allocation33_spill] sm:$0xff] %v18189_v58 }
 0x55b   : > { %v18191_v54 = vpop.f32.mrf.mxu1 }
 0x55c   : > { %v5077_v25 = vpop.permute.xlu0 %5076  ;;  %20581 = vst [vmem:[#allocation31_spill] sm:$0xff] %v18191_v54 }
 0x55d   : > { %15293 = vmatprep.subr.mxu1 %v5077_v25  ;;  %v18193_v60 = vpop.f32.mrf.mxu1 }
 0x55e   : > { %15294 = vmatpush3.msra.mxu1 %v5077_v25  ;;  %20582 = vst [vmem:[#allocation38_spill] sm:$0xff] %v18193_v60 }
 0x55f   : > { %15296 = vmatmul.mubr.msk.f32.vlgmr.msra.gmra.mxu1 %vm2406_vm1, %v2724_v51  ;;  %v18195_v34 = vpop.f32.mrf.mxu1 }
 0x560   : > { %v5261_v3 = vpop.permute.xlu0 %5260  ;;  %15309 = vmatprep.mubr.msk.f32.mxu1 %vm2406_vm1, %v2693_v23  ;;  %20583 = vst [vmem:[#allocation50_spill] sm:$0xff] %v18195_v34 }
 0x561   : > { %15305 = vmatprep.subr.mxu1 %v5261_v3  ;;  %v15098_v12 = vpop.f32.mrf.mxu1 }
 0x562   : > { %15306 = vmatpush3.msra.mxu1 %v5261_v3 }
 0x563   : > { %15307 = vmatprep.subr.mxu1 %v5259_v46  ;;  %v1039_v17 = vpop.f32.mrf.mxu1 }
 0x564   : > { %v5348_v62 = vpop.permute.xlu0 %5347  ;;  %15308 = vmatpush3.msra.mxu1 %v5259_v46  ;;  %v15136_v46 = vpop.f32.mrf.mxu0 }
 0x565   : > { %15310 = vmatmul.mubr.msk.f32.vlgmr.msra.gmra.mxu1 %vm2406_vm1, %v2694_v55  ;;  %15312 = vmatprep.subr.mxu0 %v5348_v62  ;;  %v15101_v11 = vpop.f32.mrf.mxu1 }
 0x566   : > { %15313 = vmatpush3.msra.mxu0 %v5348_v62  ;;  %15323 = vmatprep.mubr.msk.f32.mxu1 %vm2406_vm1, %v2725_v52  ;;  %v3155_v38 = vpop.f32.mrf.mxu0 }
 0x567   : > { %15314 = vmatprep.subr.mxu0 %v5346_v32  ;;  %v1049_v57 = vpop.f32.mrf.mxu1 }
 0x568   : > { %v5435_v40 = vpop.permute.xlu0 %5434  ;;  %15315 = vmatpush3.msra.mxu0 %v5346_v32  ;;  %v18222_v26 = vpop.f32.mrf.mxu0 }
 0x569   : > { %15317 = vmatmul.mubr.msk.f32.vlgmr.msra.gmra.mxu0 %vm2406_vm1, %v2710_v31  ;;  %15319 = vmatprep.subr.mxu1 %v5435_v40  ;;  %v15108_v50 = vpop.f32.mrf.mxu1 }
 0x56a   : > { %15320 = vmatpush3.msra.mxu1 %v5435_v40  ;;  %15326 = vmatprep.subr.mxu0 %v5542_v48  ;;  %v18226_v33 = vpop.f32.mrf.mxu0 }
 0x56b   : > { %15321 = vmatprep.subr.mxu1 %v5433_v10  ;;  %15327 = vmatpush3.msra.mxu0 %v5542_v48  ;;  %v2807_v20 = vpop.f32.mrf.mxu1 }
 0x56c   : > { %v5828_v63 = vpop.permute.xlu0 %5827  ;;  %15322 = vmatpush3.msra.mxu1 %v5433_v10  ;;  %15328 = vmatprep.subr.mxu0 %v5541_v6  ;;  %v15164_v62 = vpop.f32.mrf.mxu0  ;;  %v3156_v54 = vadd.f32 %v3155_v38, %v2807_v20 }
 0x56d   : > { %15324 = vmatmul.mubr.msk.f32.vlgmr.msra.gmra.mxu1 %vm2406_vm1, %v2726_v29  ;;  %v5832_v19 = vadd.f32 %v5828_v63, %v20568_v44  ;;  %v5830_v4 = vadd.f32 %v5828_v63, %v20569_v22  ;;  %v5833_v41 = vadd.f32 %v20571_v61, %v5828_v63  ;;  %v5831_v2 = vadd.f32 %v20572_v56, %v5828_v63  ;;  %v18210_v49 = vpop.f32.mrf.mxu1 }
 0x56e   : > { %v5836_v36 = vadd.f32 %v5828_v63, %v20574_v28  ;;  %v5834_v45 = vadd.f32 %v5828_v63, %v20575_v14  ;;  %v5837_v8 = vadd.f32 %v20577_v59, %v5828_v63  ;;  %v5835_v13 = vadd.f32 %v20578_v47, %v5828_v63  ;;  %15329 = vmatpush3.msra.mxu0 %v5541_v6  ;;  %v3485_v31 = vpop.f32.mrf.mxu0 }
 0x56f   : > { %5850 = vrot.lane.b32.xlu0 %v5832_v19, %s16720_s16  ;;  %5846 = vrot.lane.b32.xlu1 %v5830_v4, %s16720_s16  ;;  %v18212_v21 = vpop.f32.mrf.mxu1  ;;  %v3755_v18 = vadd.f32 %v3485_v31, %v3156_v54 }
 0x570   : > { %15330 = vmatprep.subr.mxu0 %v5540_v39  ;;  %v18232_v9 = vpop.f32.mrf.mxu0 }
 0x571   : > { %15331 = vmatpush3.msra.mxu0 %v5540_v39  ;;  %v18214_v25 = vpop.f32.mrf.mxu1 }
 0x572   : > { %15332 = vmatprep.subr.mxu0 %v5539_v16  ;;  %v18238_v44 = vpop.f32.mrf.mxu0 }
 0x573   : > { %5852 = vrot.lane.b32.xlu0 %v5833_v41, %s16720_s16  ;;  %5848 = vrot.lane.b32.xlu1 %v5831_v2, %s16720_s16  ;;  %v18216_v51 = vpop.f32.mrf.mxu1 }
 0x574   : > { %15333 = vmatpush3.msra.mxu0 %v5539_v16  ;;  %v15192_v4 = vpop.f32.mrf.mxu0 }
 0x575   : > { %15366 = vmatprep.subr.mxu0 %v20584_v43  ;;  %v18218_v23 = vpop.f32.mrf.mxu1 }
 0x576   : > { %v3841_v28 = vpop.f32.mrf.mxu0 }
 0x577   : > { %5858 = vrot.lane.b32.xlu0 %v5836_v36, %s16720_s16  ;;  %5854 = vrot.lane.b32.xlu1 %v5834_v45, %s16720_s16  ;;  %v18220_v3 = vpop.f32.mrf.mxu1  ;;  %v4111_v42 = vadd.f32 %v3841_v28, %v3755_v18 }
 0x578   : > { %v18244_v36 = vpop.f32.mrf.mxu0 }
 0x579   : > { %v18224_v55 = vpop.f32.mrf.mxu1 }
 0x57a   : > { %v18248_v47 = vpop.f32.mrf.mxu0 }
 0x57b   : > { %5860 = vrot.lane.b32.xlu0 %v5837_v8, %s16720_s16  ;;  %5856 = vrot.lane.b32.xlu1 %v5835_v13, %s16720_s16  ;;  %v18228_v32 = vpop.f32.mrf.mxu1 }
 0x57d   : > { %v18230_v52 = vpop.f32.mrf.mxu1 }
 0x57f   : > { %v18234_v29 = vpop.f32.mrf.mxu1 }
 0x581   : > { %v18236_v63 = vpop.f32.mrf.mxu1 }
 0x583   : > { %v18240_v61 = vpop.f32.mrf.mxu1 }
 0x585   : > { %v18242_v2 = vpop.f32.mrf.mxu1 }
 0x587   : > { %v18246_v45 = vpop.f32.mrf.mxu1 }
 0x589   : > { %v15199_v8 = vpop.f32.mrf.mxu1 }
 0x58b   : > { %v3928_v13 = vpop.f32.mrf.mxu1 }
 0x599   : > { %6030 = vxpose.xlu0.b32.start.end [1/1] (short) (narrow) %v15098_v12, 8  ;;  %v15220_v12 = vpop.f32.mrf.mxu0 }
 0x59b   : > { %v4191_v48 = vpop.f32.mrf.mxu0 }
 0x59c   : > { %v4443_v30 = vadd.f32 %v4191_v48, %v4111_v42 }
 0x59d   : > { %6062 = vxpose.xlu0.b32.start.end [1/1] (short) (narrow) %v1049_v57, 8  ;;  %v18254_v6 = vpop.f32.mrf.mxu0 }
 0x59f   : > { %v18256_v57 = vpop.f32.mrf.mxu0 }
 0x5a1   : > { %6094 = vxpose.xlu0.b32.start.end [1/1] (short) (narrow) %v15101_v11, 8 }
 0x5a4   : > { %5998 = vxpose.xlu1.b32.start.end [1/1] (short) (narrow) %v1039_v17, 8  ;;  %v18250_v17 = vpop.f32.mrf.mxu1 }
 0x5a6   : > { %v18252_v11 = vpop.f32.mrf.mxu1 }
 0x5a8   : > { %v15227_v39 = vpop.f32.mrf.mxu1 }
 0x5aa   : > { %v4272_v16 = vpop.f32.mrf.mxu1 }
 0x5e1   : > { %v5851_v40 = vpop.permute.xlu0 %5850  ;;  %v5847_v10 = vpop.permute.xlu1 %5846 }
 0x5e2   : > { %5902 = vxpose.xlu1.b32.start [1/2] (short) (narrow) %v5851_v40, 8  ;;  %5870 = vxpose.xlu0.b32.start [1/2] (short) (narrow) %v5847_v10, 8  ;;  %v15248_v40 = vpop.f32.mrf.mxu0  ;;  %v18258_v10 = vpop.f32.mrf.mxu1 }
 0x5e5   : > { %v5853_v19 = vpop.permute.xlu0 %5852  ;;  %v5849_v22 = vpop.permute.xlu1 %5848 }
 0x5e6   : > { %5903 = vxpose.xlu1.b32.end [2/2] (short) (narrow) %v5853_v19, 8  ;;  %5871 = vxpose.xlu0.b32.end [2/2] (short) (narrow) %v5849_v22, 8  ;;  %v4531_v19 = vpop.f32.mrf.mxu0 }
 0x5e9   : > { %v5859_v41 = vpop.permute.xlu0 %5858  ;;  %v5855_v56 = vpop.permute.xlu1 %5854 }
 0x5ea   : > { %5966 = vxpose.xlu0.b32.start [1/2] (short) (narrow) %v5859_v41, 8  ;;  %5934 = vxpose.xlu1.b32.start [1/2] (short) (narrow) %v5855_v56, 8  ;;  %v18262_v41 = vpop.f32.mrf.mxu1 }
 0x5ed   : > { %v5861_v14 = vpop.permute.xlu0 %5860  ;;  %v5857_v59 = vpop.permute.xlu1 %5856 }
 0x5ee   : > { %5967 = vxpose.xlu0.b32.end [2/2] (short) (narrow) %v5861_v14, 8  ;;  %5935 = vxpose.xlu1.b32.end [2/2] (short) (narrow) %v5857_v59, 8  ;;  %v15255_v14 = vpop.f32.mrf.mxu1  ;;  %v3161_v59 = vadd.f32 %v15136_v46, %v15108_v50  ;;  %v4807_v50 = vadd.f32 %v4531_v19, %v4443_v30  ;;  %v20585_v46 = vld [vmem:[#allocation18_spill] sm:$0xff] }
 0x5ef   : > { %v18285_v30 = vld [vmem:[%s20347_s12] ss:$0 sm:$0xff] }
 0x5f0   : > { %v3756_v34 = vadd.f32 %v15164_v62, %v3161_v59  ;;  %v4620_v0 = vpop.f32.mrf.mxu1 }
 0x5f2   : > { %v4112_v1 = vadd.f32 %v15192_v4, %v3756_v34 }
 0x5f4   : > { %v4444_v60 = vadd.f32 %v15220_v12, %v4112_v1 }
 0x5f6   : > { %v4808_v15 = vadd.f32 %v15248_v40, %v4444_v60 }
 0x609   : > { %v18260_v22 = vpop.f32.mrf.mxu0 }
 0x60b   : > { %v18264_v56 = vpop.f32.mrf.mxu0 }
 0x60e   : > { %v15276_v35 = vpop.f32.mrf.mxu0 }
 0x60f   : > { %v5164_v38 = vadd.f32 %v15276_v35, %v4808_v15  ;;  %v3242_v15 = vadd.f32 %v18224_v55, %v18210_v49 }
 0x610   : > { %v4893_v24 = vpop.f32.mrf.mxu0  ;;  %v18266_v58 = vpop.f32.mrf.mxu1 }
 0x611   : > { %v5163_v18 = vadd.f32 %v4893_v24, %v4807_v50  ;;  %v3237_v24 = vadd.f32 %v18228_v32, %v18212_v21  ;;  %v3758_v28 = vadd.f32 %v18236_v63, %v3242_v15  ;;  %v3323_v21 = vadd.f32 %v18222_v26, %v18214_v25 }
 0x612   : > { %v18274_v20 = vpop.f32.mrf.mxu1  ;;  %v3318_v63 = vadd.f32 %v18226_v33, %v18216_v51 }
 0x613   : > { %v18268_v37 = vpop.f32.mrf.mxu0  ;;  %v3757_v19 = vadd.f32 %v18240_v61, %v3237_v24  ;;  %v4114_v55 = vadd.f32 %v15199_v8, %v3758_v28  ;;  %v20586_v61 = vld [vmem:[#allocation19_spill] sm:$0xff] }
 0x614   : > { %v3759_v26 = vadd.f32 %v18238_v44, %v3318_v63  ;;  %v20587_v44 = vld [vmem:[#allocation21_spill] sm:$0xff] }
 0x615   : > { %v18270_v53 = vpop.f32.mrf.mxu0  ;;  %v18272_v7 = vpop.trf.xlu0  ;;  %v4113_v59 = vadd.f32 %v3928_v13, %v3757_v19 }
 0x616   : > { %v6192_v54 = vrot.slane %v18272_v7, %v20585_v46  ;;  %v6185_v1 = vrot.slane %v18272_v7, %v17062_v27 }
 0x617   : > { %v15304_v34 = vpop.f32.mrf.mxu0  ;;  %v4445_v8 = vadd.f32 %v4272_v16, %v4113_v59 }
 0x618   : > { %v15283_v62 = vpop.f32.mrf.mxu1  ;;  %6194 = vbcast.lane.b32.xlu0 %v6192_v54, 256  ;;  %v5520_v42 = vadd.f32 %v15304_v34, %v5164_v38  ;;  %v3760_v38 = vadd.f32 %v18232_v9, %v3323_v21  ;;  %v4446_v34 = vadd.f32 %v15227_v39, %v4114_v55  ;;  %v3399_v9 = vadd.f32 %v18234_v29, %v18220_v3 }
 0x619   : > { %v5249_v60 = vpop.f32.mrf.mxu0  ;;  %v18280_v31 = vpop.trf.xlu0  ;;  %v4115_v39 = vadd.f32 %v18248_v47, %v3759_v26 }
 0x61a   : > { %v5519_v4 = vadd.f32 %v5249_v60, %v5163_v18  ;;  %v5532_v12 = vadd.f32 %v18285_v30, %v5520_v42  ;;  %v4980_v48 = vpop.f32.mrf.mxu1  ;;  %v6255_v54 = vrot.slane %v18280_v31, %v20586_v61  ;;  %v3404_v18 = vadd.f32 %v18230_v52, %v18218_v23 }
 0x61b   : > { %v4116_v51 = vadd.f32 %v18244_v36, %v3760_v38  ;;  %v4810_v33 = vadd.f32 %v15255_v14, %v4446_v34  ;;  %v4809_v42 = vadd.f32 %v4620_v0, %v4445_v8  ;;  %v6269_v16 = vrot.slane %v18280_v31, %v20587_v44 }
 0x61c   : > { %v5531_v35 = vadd.f32 %v18285_v30, %v5519_v4  ;;  %6187 = vbcast.lane.b32.xlu0 %v6185_v1, 256  ;;  %v6248_v1 = vrot.slane %v18280_v31, %v20585_v46  ;;  %v3762_v23 = vadd.f32 %v18242_v2, %v3404_v18  ;;  %v3761_v60 = vadd.f32 %v18246_v45, %v3399_v9 }
 0x61d   : > { %v18294_v40 = vpop.trf.xlu0  ;;  %v4448_v52 = vadd.f32 %v18254_v6, %v4116_v51  ;;  %v5166_v36 = vadd.f32 %v15283_v62, %v4810_v33  ;;  %v4447_v4 = vadd.f32 %v18256_v57, %v4115_v39  ;;  %v5165_v15 = vadd.f32 %v4980_v48, %v4809_v42  ;;  %v20589_v51 = vld [vmem:[#allocation20_spill] sm:$0xff] }
 0x61e   : > { %15334 = vmatprep.mubr.msk.f32.mxu0 %vm601_vm0, %v5531_v35  ;;  %v6297_v49 = vrot.slane %v18294_v40, %v17062_v27  ;;  %v4118_v3 = vadd.f32 %v18250_v17, %v3762_v23  ;;  %v6304_v24 = vrot.slane %v18294_v40, %v20585_v46  ;;  %v4117_v2 = vadd.f32 %v18252_v11, %v3761_v60  ;;  %v14518_v60 = vld [vmem:[%s20344_s9 + $0x28] sm:$0xff] }
 0x61f   : > { %15335 = vmatmul.mubr.msk.f32.vlgmr.msra.gmra.mxu0 %vm601_vm0, %v5532_v12  ;;  %v15297_v32 = vpop.f32.mrf.mxu1  ;;  %v4812_v29 = vadd.f32 %v18260_v22, %v4448_v52  ;;  %v4811_v6 = vadd.f32 %v18264_v56, %v4447_v4  ;;  %v20588_v12 = vld [vmem:[#allocation23_spill] sm:$0xff]  ;;  %v6199_v8 = vrot.slane %v18272_v7, %v20586_v61  ;;  %v6311_v18 = vrot.slane %v18294_v40, %v20586_v61  ;;  %v14520_v52 = vld [vmem:[%s20344_s9 + $0x38] sm:$0xff] }
 0x620   : > { %6299 = vbcast.lane.b32.xlu0 %v6297_v49, 256  ;;  %v18305_v50 = vpop.trf.xlu1  ;;  %v4450_v45 = vadd.f32 %v18258_v10, %v4118_v3  ;;  %v4449_v17 = vadd.f32 %v18262_v41, %v4117_v2  ;;  %v6234_v48 = vrot.slane %v18272_v7, %v20588_v12  ;;  %v6346_v63 = vrot.slane %v18294_v40, %v20588_v12 }
 0x621   : > { %v6136_v25 = vrot.slane %v18305_v50, %v20585_v46  ;;  %v5154_v13 = vpop.f32.mrf.mxu1  ;;  %v5168_v57 = vadd.f32 %v18268_v37, %v4812_v29  ;;  %v5167_v22 = vadd.f32 %v18270_v53, %v4811_v6  ;;  %v6129_v21 = vrot.slane %v18305_v50, %v17062_v27  ;;  %15346 = vmatprep.subr.mxu1 %v14520_v52  ;;  %v20591_v29 = vld [vmem:[#allocation24_spill] sm:$0xff] }
 0x622   : > { %v4814_v11 = vadd.f32 %v18266_v58, %v4450_v45  ;;  %v4813_v10 = vadd.f32 %v18274_v20, %v4449_v17  ;;  %v6143_v26 = vrot.slane %v18305_v50, %v20586_v61  ;;  %v6206_v33 = vrot.slane %v18272_v7, %v20589_v51  ;;  %15347 = vmatpush3.msra.mxu1 %v14520_v52 }
 0x623   : > { %6138 = vbcast.lane.b32.xlu1 %v6136_v25, 256  ;;  %v6157_v9 = vrot.slane %v18305_v50, %v20587_v44  ;;  %v6213_v39 = vrot.slane %v18272_v7, %v20587_v44  ;;  %v6325_v42 = vrot.slane %v18294_v40, %v20587_v44  ;;  %v6339_v6 = vrot.slane %v18294_v40, %v20591_v29 }
 0x624   : > { %6257 = vbcast.lane.b32.xlu0 %v6255_v54, 256  ;;  %v5170_v41 = vadd.f32 %v15297_v32, %v4814_v11  ;;  %v5169_v55 = vadd.f32 %v5154_v13, %v4813_v10  ;;  %v6241_v32 = vrot.slane %v18280_v31, %v17062_v27  ;;  %v6262_v13 = vrot.slane %v18280_v31, %v20589_v51 }
 0x625   : > { %v15311_v14 = vpop.f32.mrf.mxu1  ;;  %v6290_v17 = vrot.slane %v18280_v31, %v20588_v12 }
 0x626   : > { %v5522_v0 = vadd.f32 %v15311_v14, %v5166_v36  ;;  %v14519_v14 = vld [vmem:[%s20344_s9 + $0x30] sm:$0xff] }
 0x627   : > { %v5336_v47 = vpop.f32.mrf.mxu1  ;;  %6250 = vbcast.lane.b32.xlu1 %v6248_v1, 256  ;;  %v6318_v1 = vrot.slane %v18294_v40, %v20589_v51  ;;  %15348 = vmatprep.subr.mxu1 %v14519_v14 }
 0x628   : > { %v5521_v62 = vadd.f32 %v5336_v47, %v5165_v15  ;;  %6271 = vbcast.lane.b32.xlu0 %v6269_v16, 256  ;;  %v5534_v56 = vadd.f32 %v18285_v30, %v5522_v0  ;;  %v20590_v16 = vld [vmem:[#allocation22_spill] sm:$0xff]  ;;  %15349 = vmatpush3.msra.mxu1 %v14519_v14  ;;  %v6171_v0 = vrot.slane %v18305_v50, %v20591_v29 }
 0x629   : > { %v15318_v35 = vpop.f32.mrf.mxu0  ;;  %v6164_v23 = vrot.slane %v18305_v50, %v20590_v16  ;;  %v6220_v36 = vrot.slane %v18272_v7, %v20590_v16  ;;  %v6276_v4 = vrot.slane %v18280_v31, %v20590_v16  ;;  %15350 = vmatprep.subr.mxu1 %v14518_v60  ;;  %v14517_v15 = vld [vmem:[%s20344_s9 + $0x20] sm:$0xff]  ;;  %v6332_v3 = vrot.slane %v18294_v40, %v20590_v16 }
 0x62a   : > { %v5533_v28 = vadd.f32 %v18285_v30, %v5521_v62  ;;  %v5524_v19 = vadd.f32 %v15318_v35, %v5168_v57  ;;  %15351 = vmatpush3.msra.mxu1 %v14518_v60  ;;  %v6227_v47 = vrot.slane %v18272_v7, %v20591_v29  ;;  %v20592_v62 = vld [vmem:[#allocation25_spill] sm:$0xff]  ;;  %v6178_v57 = vrot.slane %v18305_v50, %v20588_v12 }
 0x62b   : > { %v5423_v49 = vpop.f32.mrf.mxu0  ;;  %6306 = vbcast.lane.b32.xlu1 %v6304_v24, 256  ;;  %15352 = vmatprep.subr.mxu1 %v14517_v15  ;;  %v6283_v24 = vrot.slane %v18280_v31, %v20591_v29 }
 0x62c   : > { %v5523_v37 = vadd.f32 %v5423_v49, %v5167_v22  ;;  %15337 = vmatprep.mubr.msk.f32.mxu0 %vm601_vm0, %v5533_v28  ;;  %6236 = vbcast.lane.b32.xlu0 %v6234_v48, 256  ;;  %v5536_v59 = vadd.f32 %v18285_v30, %v5524_v19 }
 0x62d   : > { %v15325_v53 = vpop.f32.mrf.mxu1  ;;  %15338 = vmatmul.mubr.msk.f32.gmra.mxu0 %vm601_vm0, %v5534_v56  ;;  %15353 = vmatpush3.msra.mxu1 %v14517_v15 }
 0x62e   : > { %v5535_v58 = vadd.f32 %v18285_v30, %v5523_v37  ;;  %v5526_v20 = vadd.f32 %v15325_v53, %v5170_v41  ;;  %15373 = vmatprep.subr.mxu1 %v20584_v43 }
 0x62f   : > { %v5510_v54 = vpop.f32.mrf.mxu1  ;;  %6131 = vbcast.lane.b32.xlu1 %v6129_v21, 256 }
 0x630   : > { %v5525_v38 = vadd.f32 %v5510_v54, %v5169_v55  ;;  %15340 = vmatprep.mubr.msk.f32.mxu0 %vm601_vm0, %v5535_v58  ;;  %6348 = vbcast.lane.b32.xlu0 %v6346_v63, 256  ;;  %v5538_v25 = vadd.f32 %v18285_v30, %v5526_v20 }
 0x631   : > { %15341 = vmatmul.mubr.msk.f32.gmra.mxu0 %vm601_vm0, %v5536_v59 }
 0x632   : > { %v5537_v34 = vadd.f32 %v18285_v30, %v5525_v38  ;;  %v6150_v30 = vrot.slane %v18305_v50, %v20589_v51 }
 0x633   : > { %6243 = vbcast.lane.b32.xlu1 %v6241_v32, 256 }
 0x634   : > { %15343 = vmatprep.mubr.msk.f32.mxu0 %vm601_vm0, %v5537_v34 }
 0x635   : > { %15344 = vmatmul.mubr.msk.f32.gmra.mxu0 %vm601_vm0, %v5538_v25 }
 0x636   : > { %15370 = vmatprep.mubr.msk.f32.mxu0 %vm16721_vm2, %v20584_v43 }
 0x637   : > { %6145 = vbcast.lane.b32.xlu1 %v6143_v26, 256 }
 0x63b   : > { %6201 = vbcast.lane.b32.xlu1 %v6199_v8, 256 }
 0x63f   : > { %6313 = vbcast.lane.b32.xlu1 %v6311_v18, 256 }
 0x643   : > { %6152 = vbcast.lane.b32.xlu1 %v6150_v30, 256 }
 0x647   : > { %6208 = vbcast.lane.b32.xlu1 %v6206_v33, 256 }
 0x64b   : > { %6264 = vbcast.lane.b32.xlu1 %v6262_v13, 256 }
 0x64f   : > { %6320 = vbcast.lane.b32.xlu1 %v6318_v1, 256 }
 0x653   : > { %6159 = vbcast.lane.b32.xlu1 %v6157_v9, 256  ;;  %v18459_v9 = vld [vmem:[%s20337_s2] ss:$0 sm:$0xff] }
 0x657   : > { %6215 = vbcast.lane.b32.xlu1 %v6213_v39, 256 }
 0x65b   : > { %6327 = vbcast.lane.b32.xlu1 %v6325_v42, 256 }
 0x65e   : > { %v18406_v2 = vpop.trf.xlu1  ;;  %v18414_v35 = vpop.trf.xlu0 }
 0x65f   : > { %6166 = vbcast.lane.b32.xlu1 %v6164_v23, 256  ;;  %v6410_v45 = vrot.slane %v18406_v2, %v20592_v62  ;;  %v6361_v40 = vrot.slane %v18414_v35, %v20592_v62 }
 0x661   : > { %v6418_v7 = vcombine.high %v6410_v45, %v6410_v45  ;;  %v6369_v11 = vcombine.high %v6361_v40, %v6361_v40  ;;  %v6426_v41 = vrot.slane %v6410_v45, %v20592_v62  ;;  %v6377_v23 = vrot.slane %v6361_v40, %v20592_v62 }
 0x663   : > { %6222 = vbcast.lane.b32.xlu1 %v6220_v36, 256  ;;  %v18419_v22 = vrot.slane %v6418_v7, %v20592_v62  ;;  %v18434_v37 = vrot.slane %v6369_v11, %v20592_v62  ;;  %v6585_v59 = vrot.slane %v6426_v41, %v17062_v27  ;;  %v6448_v11 = vcombine.high %v6426_v41, %v6426_v41 }
 0x665   : > { %v6589_v48 = vrot.slane %v18419_v22, %v17062_v27  ;;  %v6557_v55 = vrot.slane %v18434_v37, %v17062_v27 }
 0x666   : > { %v18421_v28 = vpop.trf.xlu0  ;;  %v18427_v50 = vpop.trf.xlu1 }
 0x667   : > { %6278 = vbcast.lane.b32.xlu1 %v6276_v4, 256  ;;  %v6459_v19 = vrot.slane %v18427_v50, %v20592_v62  ;;  %v6508_v49 = vrot.slane %v18421_v28, %v20592_v62  ;;  %v6553_v4 = vrot.slane %v6377_v23, %v17062_v27 }
 0x669   : > { %v6467_v10 = vcombine.high %v6459_v19, %v6459_v19  ;;  %v6516_v53 = vcombine.high %v6508_v49, %v6508_v49  ;;  %v18438_v21 = vrot.slane %v6508_v49, %v20592_v62  ;;  %v6475_v26 = vrot.slane %v6459_v19, %v20592_v62 }
 0x66b   : > { %6334 = vbcast.lane.b32.xlu1 %v6332_v3, 256  ;;  %v18443_v58 = vrot.slane %v6467_v10, %v20592_v62  ;;  %v6649_v54 = vrot.slane %v18438_v21, %v17062_v27  ;;  %v18451_v34 = vrot.slane %v6516_v53, %v20592_v62  ;;  %v6497_v42 = vcombine.high %v6475_v26, %v6475_v26 }
 0x66d   : > { %v6621_v32 = vrot.slane %v18443_v58, %v17062_v27  ;;  %v6653_v1 = vrot.slane %v18451_v34, %v17062_v27  ;;  %v6625_v60 = vrot.slane %v6497_v42, %v17062_v27 }
 0x66f   : > { %6173 = vbcast.lane.b32.xlu1 %v6171_v0, 256 }
 0x673   : > { %6229 = vbcast.lane.b32.xlu1 %v6227_v47, 256 }
 0x677   : > { %6285 = vbcast.lane.b32.xlu1 %v6283_v24, 256  ;;  %v6617_v24 = vrot.slane %v6475_v26, %v17062_v27 }
 0x67b   : > { %6341 = vbcast.lane.b32.xlu1 %v6339_v6, 256  ;;  %v6399_v6 = vcombine.high %v6377_v23, %v6377_v23  ;;  %v6450_v23 = vcombine.high %v18419_v22, %v18419_v22 }
 0x67f   : > { %6180 = vbcast.lane.b32.xlu1 %v6178_v57, 256 }
 0x683   : > { %6292 = vbcast.lane.b32.xlu1 %v6290_v17, 256 }
 0x68a   : > { %v6195_v56 = vpop.permute.xlu0 %6194 }
 0x68b   : > { %v6719_v31 = vadd.f32 %v6589_v48, %v6195_v56  ;;  %v6561_v48 = vrot.slane %v6399_v6, %v17062_v27 }
 0x68d   : > { %16317 = vtanh.f32 %v6719_v31 }
 0x68e   : > { %v6188_v63 = vpop.permute.xlu0 %6187 }
 0x68f   : > { %v6718_v25 = vadd.f32 %v6585_v59, %v6188_v63  ;;  %v6593_v59 = vrot.slane %v6448_v11, %v17062_v27 }
 0x692   : > { %v6300_v8 = vpop.permute.xlu0 %6299 }
 0x693   : > { %v6734_v33 = vadd.f32 %v6649_v54, %v6300_v8 }
 0x695   : > { %v6139_v20 = vpop.permute.xlu1 %6138 }
 0x696   : > { %v6711_v38 = vadd.f32 %v6557_v55, %v6139_v20  ;;  %v6258_v3 = vpop.permute.xlu0 %6257  ;;  %v6546_v20 = vcombine.high %v18438_v21, %v18438_v21  ;;  %v6401_v21 = vcombine.high %v18434_v37, %v18434_v37 }
 0x697   : > { %v6728_v47 = vadd.f32 %v6625_v60, %v6258_v3 }
 0x698   : > { %16319 = vtanh.f32 %v6711_v38 }
 0x699   : > { %v6251_v18 = vpop.permute.xlu1 %6250  ;;  %16321 = vtanh.f32 %v6718_v25 }
 0x69a   : > { %v16318_v30 = vpop.eup %16317  ;;  %v6727_v13 = vadd.f32 %v6621_v32, %v6251_v18 }
 0x69b   : > { %v6783_v39 = vadd.f32 %v18459_v9, %v16318_v30  ;;  %v6657_v30 = vrot.slane %v6546_v20, %v17062_v27 }
 0x69c   : > { %16323 = vtanh.f32 %v6727_v13 }
 0x69d   : > { %v6307_v52 = vpop.permute.xlu1 %6306  ;;  %v6824_v36 = vmul.f32 1.442695, %v6783_v39  ;;  %16325 = vtanh.f32 %v6734_v33 }
 0x69e   : > { %v6735_v14 = vadd.f32 %v6653_v1, %v6307_v52 }
 0x69f   : > { %16327 = vpow2.f32 %v6824_v36 }
 0x6a0   : > { %16329 = vtanh.f32 %v6735_v14  ;;  %v6565_v14 = vrot.slane %v6401_v21, %v17062_v27 }
 0x6a1   : > { %v6132_v15 = vpop.permute.xlu1 %6131 }
 0x6a2   : > { %v6710_v0 = vadd.f32 %v6553_v4, %v6132_v15 }
 0x6a4   : > { %16331 = vtanh.f32 %v6710_v0 }
 0x6a5   : > { %v16320_v45 = vpop.eup %16319  ;;  %v6244_v57 = vpop.permute.xlu1 %6243  ;;  %16333 = vtanh.f32 %v6728_v47  ;;  %v6597_v47 = vrot.slane %v6450_v23, %v17062_v27 }
 0x6a6   : > { %v6775_v7 = vadd.f32 %v18459_v9, %v16320_v45  ;;  %v6726_v17 = vadd.f32 %v6617_v24, %v6244_v57  ;;  %v16322_v40 = vpop.eup %16321 }
 0x6a7   : > { %v6782_v55 = vadd.f32 %v18459_v9, %v16322_v40 }
 0x6a8   : > { %16335 = vtanh.f32 %v6726_v17  ;;  %v6808_v56 = vmul.f32 1.442695, %v6775_v7 }
 0x6a9   : > { %v16324_v19 = vpop.eup %16323  ;;  %v6146_v31 = vpop.permute.xlu1 %6145  ;;  %v6822_v18 = vmul.f32 1.442695, %v6782_v55 }
 0x6aa   : > { %v6791_v49 = vadd.f32 %v18459_v9, %v16324_v19  ;;  %v6712_v10 = vadd.f32 %v6561_v48, %v6146_v31  ;;  %16337 = vpow2.f32 %v6808_v56  ;;  %v16326_v53 = vpop.eup %16325 }
 0x6ab   : > { %v6798_v8 = vadd.f32 %v18459_v9, %v16326_v53 }
 0x6ac   : > { %v18470_v63 = vpop.eup %16327  ;;  %16339 = vtanh.f32 %v6712_v10  ;;  %v6840_v54 = vmul.f32 1.442695, %v6791_v49 }
 0x6ad   : > { %v16330_v41 = vpop.eup %16329  ;;  %v6202_v38 = vpop.permute.xlu1 %6201  ;;  %v6897_v32 = vsel %vm2406_vm1, %v18470_v63, 0.0  ;;  %v6854_v52 = vmul.f32 1.442695, %v6798_v8 }
 0x6ae   : > { %v6799_v25 = vadd.f32 %v18459_v9, %v16330_v41  ;;  %v6720_v26 = vadd.f32 %v6593_v59, %v6202_v38  ;;  %6898 = vadd.xlane.f32.xlu0 %v6897_v32  ;;  %16341 = vpow2.f32 %v6840_v54 }
 0x6b0   : > { %16343 = vtanh.f32 %v6720_v26  ;;  %v6856_v33 = vmul.f32 1.442695, %v6799_v25 }
 0x6b1   : > { %v16332_v13 = vpop.eup %16331  ;;  %v6314_v1 = vpop.permute.xlu1 %6313 }
 0x6b2   : > { %v6774_v39 = vadd.f32 %v18459_v9, %v16332_v13  ;;  %v6736_v42 = vadd.f32 %v6657_v30, %v6314_v1  ;;  %16345 = vpow2.f32 %v6856_v33  ;;  %v16334_v36 = vpop.eup %16333 }
 0x6b3   : > { %16347 = vpow2.f32 %v6822_v18  ;;  %v6792_v22 = vadd.f32 %v18459_v9, %v16334_v36 }
 0x6b4   : > { %16349 = vtanh.f32 %v6736_v42  ;;  %v6806_v60 = vmul.f32 1.442695, %v6774_v39 }
 0x6b5   : > { %v16336_v4 = vpop.eup %16335  ;;  %v6153_v15 = vpop.permute.xlu1 %6152  ;;  %v6842_v56 = vmul.f32 1.442695, %v6792_v22  ;;  %v6499_v22 = vcombine.high %v18443_v58, %v18443_v58  ;;  %v6548_v58 = vcombine.high %v18451_v34, %v18451_v34 }
 0x6b6   : > { %v6790_v37 = vadd.f32 %v18459_v9, %v16336_v4  ;;  %v6713_v3 = vadd.f32 %v6565_v14, %v6153_v15  ;;  %16351 = vpow2.f32 %v6806_v60 }
 0x6b7   : > { %v18487_v0 = vpop.eup %16337  ;;  %16353 = vpow2.f32 %v6854_v52 }
 0x6b8   : > { %16355 = vtanh.f32 %v6713_v3  ;;  %v6873_v24 = vsel %vm2406_vm1, %v18487_v0, 0.0  ;;  %v6838_v6 = vmul.f32 1.442695, %v6790_v37 }
 0x6b9   : > { %v16340_v45 = vpop.eup %16339  ;;  %6874 = vadd.xlane.f32.xlu1 %v6873_v24  ;;  %v6209_v57 = vpop.permute.xlu1 %6208 }
 0x6ba   : > { %v6776_v7 = vadd.f32 %v18459_v9, %v16340_v45  ;;  %v6721_v17 = vadd.f32 %v6597_v47, %v6209_v57  ;;  %16357 = vpow2.f32 %v6838_v6  ;;  %v14521_v45 = vld [vmem:[%s20348_s13] ss:$0 sm:$0xff]  ;;  %v6629_v57 = vrot.slane %v6499_v22, %v17062_v27 }
 0x6bb   : > { %v18494_v40 = vpop.eup %16341 }
 0x6bc   : > { %16359 = vtanh.f32 %v6721_v17  ;;  %v6921_v48 = vsel %vm2406_vm1, %v18494_v40, 0.0  ;;  %v6810_v11 = vmul.f32 1.442695, %v6776_v7 }
 0x6bd   : > { %v16344_v19 = vpop.eup %16343  ;;  %6922 = vadd.xlane.f32.xlu0 %v6921_v48  ;;  %v6265_v6 = vpop.permute.xlu1 %6264 }
 0x6be   : > { %v6784_v31 = vadd.f32 %v18459_v9, %v16344_v19  ;;  %16361 = vpow2.f32 %v6810_v11  ;;  %v6729_v17 = vadd.f32 %v6629_v57, %v6265_v6 }
 0x6bf   : > { %v18499_v49 = vpop.eup %16345  ;;  %16363 = vpow2.f32 %v6842_v56 }
 0x6c0   : > { %v18501_v10 = vpop.eup %16347  ;;  %v6945_v53 = vsel %vm2406_vm1, %v18499_v49, 0.0  ;;  %v6826_v55 = vmul.f32 1.442695, %v6784_v31 }
 0x6c1   : > { %v16350_v59 = vpop.eup %16349  ;;  %6946 = vadd.xlane.f32.xlu1 %v6945_v53  ;;  %v6894_v38 = vsel %vm2406_vm1, %v18501_v10, 0.0  ;;  %v6321_v53 = vpop.permute.xlu1 %6320 }
 0x6c2   : > { %v6800_v20 = vadd.f32 %v18459_v9, %v16350_v59  ;;  %16365 = vpow2.f32 %v6826_v55  ;;  %v6661_v55 = vrot.slane %v6548_v58, %v17062_v27 }
 0x6c3   : > { %v18506_v54 = vpop.eup %16351 }
 0x6c4   : > { %v18508_v41 = vpop.eup %16353  ;;  %v6870_v32 = vsel %vm2406_vm1, %v18506_v54, 0.0  ;;  %v6858_v25 = vmul.f32 1.442695, %v6800_v20  ;;  %v6737_v59 = vadd.f32 %v6661_v55, %v6321_v53  ;;  %v6354_v53 = vcombine.high %v18414_v35, %v18414_v35 }
 0x6c5   : > { %v16356_v26 = vpop.eup %16355  ;;  %6895 = vadd.xlane.f32.xlu1 %v6894_v38  ;;  %6871 = vadd.xlane.f32.xlu0 %v6870_v32  ;;  %v6942_v30 = vsel %vm2406_vm1, %v18508_v41, 0.0  ;;  %v6501_v35 = vcombine.high %v18421_v28, %v18421_v28 }
 0x6c6   : > { %v6777_v8 = vadd.f32 %v18459_v9, %v16356_v26  ;;  %16367 = vpow2.f32 %v6858_v25  ;;  %v20593_v25 = vld [vmem:[#allocation29_spill] sm:$0xff] }
 0x6c7   : > { %v18515_v18 = vpop.eup %16357 }
 0x6c8   : > { %v6918_v21 = vsel %vm2406_vm1, %v18515_v18, 0.0  ;;  %v6812_v33 = vmul.f32 1.442695, %v6777_v8 }
 0x6c9   : > { %v16360_v13 = vpop.eup %16359  ;;  %6943 = vadd.xlane.f32.xlu1 %v6942_v30  ;;  %6919 = vadd.xlane.f32.xlu0 %v6918_v21  ;;  %v20594_v21 = vld [vmem:[#allocation39_spill] sm:$0xff] }
 0x6ca   : > { %v6785_v1 = vadd.f32 %v18459_v9, %v16360_v13  ;;  %16369 = vpow2.f32 %v6812_v33 }
 0x6cb   : > { %v18522_v39 = vpop.eup %16361 }
 0x6cc   : > { %v6876_v42 = vsel %vm2406_vm1, %v18522_v39, 0.0  ;;  %v6828_v23 = vmul.f32 1.442695, %v6785_v1  ;;  %v18526_v52 = vpop.eup %16363 }
 0x6cd   : > { %6877 = vadd.xlane.f32.xlu0 %v6876_v42  ;;  %v6924_v14 = vsel %vm2406_vm1, %v18526_v52, 0.0 }
 0x6ce   : > { %16371 = vpow2.f32 %v6828_v23 }
 0x6cf   : > { %v18528_v36 = vpop.eup %16365  ;;  %16373 = vtanh.f32 %v6729_v17 }
 0x6d0   : > { %v6900_v60 = vsel %vm2406_vm1, %v18528_v36, 0.0  ;;  %16375 = vtanh.f32 %v6737_v59  ;;  %v6452_v59 = vcombine.high %v18427_v50, %v18427_v50  ;;  %v6403_v50 = vcombine.high %v18406_v2, %v18406_v2 }
 0x6d1   : > { %6925 = vadd.xlane.f32.xlu0 %v6924_v14  ;;  %6901 = vadd.xlane.f32.xlu1 %v6900_v60 }
 0x6d3   : > { %v18534_v4 = vpop.eup %16367 }
 0x6d4   : > { %v6948_v15 = vsel %vm2406_vm1, %v18534_v4, 0.0 }
 0x6d5   : > { %6949 = vadd.xlane.f32.xlu1 %v6948_v15  ;;  %v20595_v15 = vld [vmem:[#allocation36_spill] sm:$0xff] }
 0x6d7   : > { %v18538_v37 = vpop.eup %16369 }
 0x6d8   : > { %v6879_v3 = vsel %vm2406_vm1, %v18538_v37, 0.0 }
 0x6d9   : > { %6880 = vadd.xlane.f32.xlu0 %v6879_v3 }
 0x6db   : > { %v18542_v47 = vpop.eup %16371 }
 0x6dc   : > { %v6903_v24 = vsel %vm2406_vm1, %v18542_v47, 0.0  ;;  %v16374_v8 = vpop.eup %16373 }
 0x6dd   : > { %6904 = vadd.xlane.f32.xlu1 %v6903_v24  ;;  %v6793_v23 = vadd.f32 %v18459_v9, %v16374_v8 }
 0x6df   : > { %v15336_v7 = vpop.f32.mrf.mxu0  ;;  %v6844_v57 = vmul.f32 1.442695, %v6793_v23 }
 0x6e0   : > { %v5648_v48 = vadd.f32 %v15336_v7, %v14521_v45 }
 0x6e1   : > { %v5642_v11 = vpop.f32.mrf.mxu0  ;;  %16377 = vpow2.f32 %v6844_v57 }
 0x6e2   : > { %v5643_v56 = vadd.f32 %v14521_v45, %v5642_v11  ;;  %v5682_v31 = vmax.f32 %v5648_v48, 0.0  ;;  %v6160_v48 = vpop.permute.xlu1 %6159  ;;  %v16376_v11 = vpop.eup %16375 }
 0x6e4   : > { %v5681_v19 = vmax.f32 %v5643_v56, 0.0  ;;  %v6801_v56 = vadd.f32 %v18459_v9, %v16376_v11 }
 0x6e6   : > { %15354 = vmatprep.mubr.msk.f32.mxu1 %vm601_vm0, %v5681_v19  ;;  %v6860_v19 = vmul.f32 1.442695, %v6801_v56 }
 0x6e7   : > { %15355 = vmatmul.mubr.msk.f32.vlgmr.msra.gmra.mxu1 %vm601_vm0, %v5682_v31 }
 0x6e8   : > { %16379 = vpow2.f32 %v6860_v19 }
 0x6ed   : > { %v15339_v20 = vpop.f32.mrf.mxu0 }
 0x6ee   : > { %7115 = vrot.lane.b32.xlu1 %v18166_v5, %s16714_s28  ;;  %v5658_v38 = vadd.f32 %v15339_v20, %v14521_v45  ;;  %v18577_v58 = vpop.eup %16377 }
 0x6ef   : > { %v5652_v32 = vpop.f32.mrf.mxu0  ;;  %7034 = vrot.lane.b32.xlu0 %v20593_v25, %s16714_s28  ;;  %v6927_v55 = vsel %vm2406_vm1, %v18577_v58, 0.0 }
 0x6f0   : > { %v5653_v26 = vadd.f32 %v14521_v45, %v5652_v32  ;;  %v5684_v33 = vmax.f32 %v5658_v38, 0.0  ;;  %v6368_v38 = vrot.slane %v6354_v53, %v20592_v62  ;;  %v18587_v32 = vrot.slane %v6452_v59, %v20592_v62  ;;  %v20597_v53 = vld [vmem:[#allocation27_spill] sm:$0xff] }
 0x6f1   : > { %v15342_v34 = vpop.f32.mrf.mxu0 }
 0x6f2   : > { %v5683_v30 = vmax.f32 %v5653_v26, 0.0  ;;  %7032 = vrot.lane.b32.xlu1 %v20594_v21, %s16714_s28  ;;  %v5668_v13 = vadd.f32 %v15342_v34, %v14521_v45  ;;  %v18590_v26 = vrot.slane %v6368_v38, %v20592_v62  ;;  %v6370_v2 = vcombine.high %v6368_v38, %v6368_v38 }
 0x6f3   : > { %v5662_v1 = vpop.f32.mrf.mxu0 }
 0x6f4   : > { %v5663_v42 = vadd.f32 %v14521_v45, %v5662_v1  ;;  %15357 = vmatprep.mubr.msk.f32.mxu1 %vm601_vm0, %v5683_v30  ;;  %v5686_v3 = vmax.f32 %v5668_v13, 0.0  ;;  %v18598_v30 = vrot.slane %v18587_v32, %v20592_v62  ;;  %v18607_v1 = vrot.slane %v6501_v35, %v20592_v62  ;;  %v20598_v35 = vld [vmem:[#allocation48_spill] sm:$0xff] }
 0x6f5   : > { %v15345_v14 = vpop.f32.mrf.mxu0  ;;  %15358 = vmatmul.mubr.msk.f32.gmra.mxu1 %vm601_vm0, %v5684_v33  ;;  %v18592_v8 = vpop.eup %16379  ;;  %v6569_v33 = vrot.slane %v18590_v26, %v17062_v27 }
 0x6f6   : > { %v5685_v60 = vmax.f32 %v5663_v42, 0.0  ;;  %7113 = vrot.lane.b32.xlu1 %v20595_v15, %s16714_s28  ;;  %v5678_v22 = vadd.f32 %v15345_v14, %v14521_v45  ;;  %20596 = vst [vmem:[#allocation42_spill] sm:$0xff] %v18592_v8  ;;  %v6951_v13 = vsel %vm2406_vm1, %v18592_v8, 0.0  ;;  %v6633_v42 = vrot.slane %v18598_v30, %v17062_v27 }
 0x6f7   : > { %v5672_v24 = vpop.f32.mrf.mxu0  ;;  %v6714_v28 = vadd.f32 %v6569_v33, %v6160_v48  ;;  %v6417_v14 = vrot.slane %v6403_v50, %v20592_v62 }
 0x6f8   : > { %v5673_v6 = vadd.f32 %v14521_v45, %v5672_v24  ;;  %15360 = vmatprep.mubr.msk.f32.mxu1 %vm601_vm0, %v5685_v60  ;;  %v5688_v17 = vmax.f32 %v5678_v22, 0.0  ;;  %v6216_v45 = vpop.permute.xlu1 %6215  ;;  %v6272_v60 = vpop.permute.xlu0 %6271 }
 0x6f9   : > { %15361 = vmatmul.mubr.msk.f32.gmra.mxu1 %vm601_vm0, %v5686_v3  ;;  %v18616_v3 = vrot.slane %v18607_v1, %v20592_v62  ;;  %v6730_v22 = vadd.f32 %v6633_v42, %v6272_v60  ;;  %16381 = vtanh.f32 %v6714_v28  ;;  %v18619_v24 = vrot.slane %v6417_v14, %v20592_v62  ;;  %v20600_v28 = vld [vmem:[#allocation33_spill] sm:$0xff] }
 0x6fa   : > { %v5687_v7 = vmax.f32 %v5673_v6, 0.0  ;;  %v6419_v6 = vcombine.high %v6417_v14, %v6417_v14 }
 0x6fb   : > { %v6665_v57 = vrot.slane %v18616_v3, %v17062_v27  ;;  %16383 = vtanh.f32 %v6730_v22  ;;  %v6601_v11 = vrot.slane %v18619_v24, %v17062_v27 }
 0x6fc   : > { %15363 = vmatprep.mubr.msk.f32.mxu1 %vm601_vm0, %v5687_v7  ;;  %v6328_v31 = vpop.permute.xlu1 %6327  ;;  %v18624_v7 = vrot.slane %v6370_v2, %v20592_v62  ;;  %v18631_v56 = vrot.slane %v6419_v6, %v20592_v62 }
 0x6fd   : > { %15364 = vmatmul.mubr.msk.f32.gmra.mxu1 %vm601_vm0, %v5688_v17  ;;  %v6738_v48 = vadd.f32 %v6665_v57, %v6328_v31 }
 0x6fe   : > { %15377 = vmatprep.mubr.msk.f32.mxu1 %vm16721_vm2, %v20584_v43  ;;  %v6573_v19 = vrot.slane %v18624_v7, %v17062_v27  ;;  %v6605_v31 = vrot.slane %v18631_v56, %v17062_v27 }
 0x6ff   : > { %16385 = vtanh.f32 %v6738_v48 }
 0x700   : > { %v6167_v20 = vpop.permute.xlu1 %6166 }
 0x701   : > { %v6715_v59 = vadd.f32 %v6573_v19, %v6167_v20 }
 0x704   : > { %v6223_v34 = vpop.permute.xlu1 %6222 }
 0x705   : > { %v6723_v50 = vadd.f32 %v6605_v31, %v6223_v34 }
 0x706   : > { %v16382_v33 = vpop.eup %16381 }
 0x708   : > { %v18611_v23 = vpop.permute.xlu1 %6278  ;;  %v16384_v20 = vpop.eup %16383 }
 0x709   : > { %v6794_v14 = vadd.f32 %v18459_v9, %v16384_v20 }
 0x70b   : > { %v6846_v57 = vmul.f32 1.442695, %v6794_v14 }
 0x70c   : > { %v18626_v17 = vpop.permute.xlu1 %6334  ;;  %v16386_v22 = vpop.eup %16385 }
 0x70d   : > { %v6802_v6 = vadd.f32 %v18459_v9, %v16386_v22 }
 0x70e   : > { %6928 = vadd.xlane.f32.xlu0 %v6927_v55  ;;  %v6722_v55 = vadd.f32 %v6601_v11, %v6216_v45  ;;  %v6778_v45 = vadd.f32 %v18459_v9, %v16382_v33 }
 0x710   : > { %v18637_v38 = vpop.permute.xlu1 %6173  ;;  %16387 = vtanh.f32 %v6722_v55  ;;  %v6814_v2 = vmul.f32 1.442695, %v6778_v45 }
 0x711   : > { %16389 = vtanh.f32 %v6715_v59  ;;  %v6862_v59 = vmul.f32 1.442695, %v6802_v6 }
 0x712   : > { %16391 = vtanh.f32 %v6723_v50  ;;  %v18658_v50 = vpop.permute.xlu0 %6236 }
 0x713   : > { %16393 = vpow2.f32 %v6814_v2 }
 0x714   : > { %v18645_v42 = vpop.permute.xlu1 %6229  ;;  %16395 = vpow2.f32 %v6846_v57 }
 0x715   : > { %16397 = vpow2.f32 %v6862_v59 }
 0x716   : > { %v18663_v14 = vpop.permute.xlu0 %6348 }
 0x718   : > { %v18651_v60 = vpop.permute.xlu1 %6285 }
 0x71a   : > { %6952 = vadd.xlane.f32.xlu1 %v6951_v13  ;;  %v20599_v13 = vld [vmem:[#allocation38_spill] sm:$0xff] }
 0x71c   : > { %v18654_v11 = vpop.permute.xlu1 %6341 }
 0x71d   : > { %v16388_v34 = vpop.eup %16387 }
 0x71e   : > { %v16390_v48 = vpop.eup %16389  ;;  %v6786_v19 = vadd.f32 %v18459_v9, %v16388_v34 }
 0x71f   : > { %v6779_v55 = vadd.f32 %v18459_v9, %v16390_v48  ;;  %v16392_v31 = vpop.eup %16391 }
 0x720   : > { %v6830_v33 = vmul.f32 1.442695, %v6786_v19  ;;  %v6787_v45 = vadd.f32 %v18459_v9, %v16392_v31  ;;  %v18661_v20 = vpop.permute.xlu1 %6180  ;;  %v18665_v34 = vpop.eup %16393 }
 0x721   : > { %v6816_v2 = vmul.f32 1.442695, %v6779_v55  ;;  %v6882_v57 = vsel %vm2406_vm1, %v18665_v34, 0.0  ;;  %v18671_v19 = vpop.eup %16395 }
 0x722   : > { %16399 = vpow2.f32 %v6830_v33  ;;  %v6832_v22 = vmul.f32 1.442695, %v6787_v45  ;;  %20601 = vst [vmem:[#allocation28_spill] sm:$0xff] %v18671_v19  ;;  %v6930_v55 = vsel %vm2406_vm1, %v18671_v19, 0.0  ;;  %v18677_v33 = vpop.eup %16397 }
 0x723   : > { %16401 = vpow2.f32 %v6816_v2  ;;  %20602 = vst [vmem:[#allocation37_spill] sm:$0xff] %v18677_v33 }
 0x724   : > { %7196 = vrot.lane.b32.xlu0 %v20597_v53, %s16714_s28  ;;  %v18667_v48 = vpop.permute.xlu1 %6292  ;;  %16403 = vpow2.f32 %v6832_v22  ;;  %v6954_v22 = vsel %vm2406_vm1, %v18677_v33, 0.0 }
 0x728   : > { %7194 = vrot.lane.b32.xlu0 %v20598_v35, %s16714_s28 }
 0x72b   : > { %7277 = vrot.lane.b32.xlu1 %v20599_v13, %s16714_s28 }
 0x72f   : > { %7275 = vrot.lane.b32.xlu1 %v20600_v28, %s16714_s28  ;;  %v18681_v2 = vpop.eup %16399 }
 0x730   : > { %20603 = vst [vmem:[#allocation35_spill] sm:$0xff] %v18681_v2  ;;  %v18687_v29 = vpop.eup %16401 }
 0x731   : > { %20604 = vst [vmem:[#allocation43_spill] sm:$0xff] %v18687_v29  ;;  %v6885_v51 = vsel %vm2406_vm1, %v18687_v29, 0.0  ;;  %v18699_v61 = vpop.eup %16403 }
 0x732   : > { %20605 = vst [vmem:[#allocation49_spill] sm:$0xff] %v18699_v61 }
 0x737   : > { %v6899_v6 = vpop.xlane.xlu0 %6898 }
 0x742   : > { %v6875_v31 = vpop.xlane.xlu1 %6874 }
 0x743   : > { %16405 = vrcp.f32 %v6875_v31 }
 0x746   : > { %v18673_v59 = vpop.xlane.xlu0 %6922 }
 0x747   : > { %6883 = vadd.xlane.f32.xlu0 %v6882_v57  ;;  %v6468_v57 = vcombine.high %v18587_v32, %v18587_v32  ;;  %v6909_v32 = vsel %vm2406_vm1, %v18699_v61, 0.0 }
 0x749   : > { %v18702_v46 = vrot.slane %v6468_v57, %v20592_v62  ;;  %v6517_v57 = vcombine.high %v18607_v1, %v18607_v1 }
 0x74a   : > { %v18679_v45 = vpop.xlane.xlu1 %6946 }
 0x74b   : > { %6931 = vadd.xlane.f32.xlu0 %v6930_v55  ;;  %v6906_v55 = vsel %vm2406_vm1, %v18681_v2, 0.0  ;;  %v6637_v2 = vrot.slane %v18702_v46, %v17062_v27  ;;  %v18724_v61 = vrot.slane %v6517_v57, %v20592_v62 }
 0x74d   : > { %v6731_v29 = vadd.f32 %v6637_v2, %v18611_v23  ;;  %v6669_v23 = vrot.slane %v18724_v61, %v17062_v27 }
 0x74e   : > { %v18683_v12 = vpop.xlane.xlu0 %6871  ;;  %v18691_v16 = vpop.xlane.xlu1 %6895 }
 0x74f   : > { %6955 = vadd.xlane.f32.xlu0 %v6954_v22  ;;  %16407 = vtanh.f32 %v6731_v29  ;;  %v6739_v31 = vadd.f32 %v6669_v23, %v18626_v17 }
 0x750   : > { %16409 = vrcp.f32 %v6899_v6  ;;  %v16406_v1 = vpop.eup %16405 }
 0x751   : > { %16411 = vtanh.f32 %v6739_v31  ;;  %v6999_v17 = vmul.f32 %v16406_v1, %v18487_v0 }
 0x752   : > { %v18693_v44 = vpop.xlane.xlu0 %6919  ;;  %v18706_v22 = vpop.xlane.xlu1 %6943 }
 0x753   : > { %6907 = vadd.xlane.f32.xlu1 %v6906_v55  ;;  %6886 = vadd.xlane.f32.xlu0 %v6885_v51 }
 0x756   : > { %v18708_v33 = vpop.xlane.xlu0 %6877 }
 0x757   : > { %6910 = vadd.xlane.f32.xlu1 %v6909_v32 }
 0x75a   : > { %v18713_v8 = vpop.xlane.xlu1 %6901  ;;  %v18715_v51 = vpop.xlane.xlu0 %6925 }
 0x75c   : > { %v16408_v6 = vpop.eup %16407 }
 0x75d   : > { %v16410_v23 = vpop.eup %16409 }
 0x75e   : > { %v18719_v55 = vpop.xlane.xlu1 %6949  ;;  %v7007_v31 = vmul.f32 %v16410_v23, %v18470_v63  ;;  %v16412_v1 = vpop.eup %16411  ;;  %v6400_v23 = vcombine.high %v18590_v26, %v18590_v26  ;;  %v6449_v26 = vcombine.high %v18619_v24, %v18619_v24 }
 0x762   : > { %v18721_v32 = vpop.xlane.xlu0 %6880 }
 0x766   : > { %v7035_v2 = vpop.permute.xlu0 %7034  ;;  %v18728_v19 = vpop.xlane.xlu1 %6904 }
 0x767   : > { %15367 = vmatpush3.msra.mxu0 %v7035_v2  ;;  %v6795_v2 = vadd.f32 %v18459_v9, %v16408_v6  ;;  %v6803_v6 = vadd.f32 %v18459_v9, %v16412_v1 }
 0x768   : > { %7727 = vrot.lane.b32.xlu1 %v18166_v5, %s16717_s20  ;;  %15368 = vmatprep.subr.mxu0 %v20584_v43 }
 0x769   : > { %7648 = vrot.lane.b32.xlu0 %v20593_v25, %s16717_s20  ;;  %v6848_v0 = vmul.f32 1.442695, %v6795_v2 }
 0x76a   : > { %v7116_v29 = vpop.permute.xlu1 %7115 }
 0x76b   : > { %15374 = vmatpush3.msra.mxu1 %v7116_v29  ;;  %16413 = vpow2.f32 %v6848_v0 }
 0x76c   : > { %7646 = vrot.lane.b32.xlu1 %v20594_v21, %s16717_s20  ;;  %15375 = vmatprep.subr.mxu1 %v20584_v43 }
 0x76e   : > { %v7033_v57 = vpop.permute.xlu1 %7032 }
 0x76f   : > { %15369 = vmatpush3.msra.mxu0 %v7033_v57 }
 0x770   : > { %7725 = vrot.lane.b32.xlu1 %v20595_v15, %s16717_s20  ;;  %15371 = vmatmul.mubr.msk.f32.vlgmr.msra.gmra.mxu0 %vm2406_vm1, %v6999_v17  ;;  %v6864_v17 = vmul.f32 1.442695, %v6803_v6 }
 0x771   : > { %15380 = vmatprep.subr.mxu0 %v20584_v43  ;;  %15384 = vmatprep.mubr.msk.f32.mxu0 %vm16721_vm2, %v20584_v43 }
 0x772   : > { %v7114_v29 = vpop.permute.xlu1 %7113  ;;  %16415 = vpow2.f32 %v6864_v17 }
 0x773   : > { %15376 = vmatpush3.msra.mxu1 %v7114_v29  ;;  %16417 = vrcp.f32 %v18673_v59 }
 0x774   : > { %15378 = vmatmul.mubr.msk.f32.vlgmr.msra.gmra.mxu1 %vm2406_vm1, %v7007_v31  ;;  %15387 = vmatprep.subr.mxu1 %v20584_v43  ;;  %v6577_v31 = vrot.slane %v6400_v23, %v17062_v27  ;;  %16419 = vrcp.f32 %v18683_v12  ;;  %v6609_v12 = vrot.slane %v6449_v26, %v17062_v27 }
 0x775   : > { %15391 = vmatprep.mubr.msk.f32.mxu1 %vm16721_vm2, %v20584_v43 }
 0x776   : > { %v6716_v29 = vadd.f32 %v6577_v31, %v18637_v38  ;;  %v6724_v24 = vadd.f32 %v6609_v12, %v18645_v42 }
 0x778   : > { %v18753_v57 = vpop.eup %16413  ;;  %16421 = vtanh.f32 %v6716_v29 }
 0x779   : > { %v6933_v63 = vsel %vm2406_vm1, %v18753_v57, 0.0  ;;  %16423 = vrcp.f32 %v18693_v44 }
 0x77a   : > { %16425 = vrcp.f32 %v18679_v45 }
 0x77b   : > { %16427 = vrcp.f32 %v18691_v16 }
 0x77c   : > { %16429 = vrcp.f32 %v18706_v22 }
 0x77d   : > { %16431 = vtanh.f32 %v6724_v24 }
 0x77f   : > { %v18760_v2 = vpop.eup %16415 }
 0x780   : > { %v6957_v0 = vsel %vm2406_vm1, %v18760_v2, 0.0  ;;  %v16418_v6 = vpop.eup %16417 }
 0x781   : > { %v7015_v44 = vmul.f32 %v16418_v6, %v18494_v40  ;;  %v16420_v17 = vpop.eup %16419 }
 0x782   : > { %v6998_v40 = vmul.f32 %v16420_v17, %v18506_v54 }
 0x785   : > { %v16422_v42 = vpop.eup %16421 }
 0x786   : > { %v16424_v45 = vpop.eup %16423  ;;  %v6780_v54 = vadd.f32 %v18459_v9, %v16422_v42 }
 0x787   : > { %v7014_v23 = vmul.f32 %v16424_v45, %v18515_v18 }
 0x788   : > { %6934 = vadd.xlane.f32.xlu0 %v6933_v63  ;;  %v16426_v63 = vpop.eup %16425  ;;  %v6818_v18 = vmul.f32 1.442695, %v6780_v54 }
 0x789   : > { %v7023_v29 = vmul.f32 %v16426_v63, %v18499_v49 }
 0x78a   : > { %16433 = vpow2.f32 %v6818_v18 }
 0x794   : > { %6958 = vadd.xlane.f32.xlu1 %v6957_v0  ;;  %v16428_v0 = vpop.eup %16427 }
 0x795   : > { %v7006_v49 = vmul.f32 %v16428_v0, %v18501_v10  ;;  %v16430_v26 = vpop.eup %16429 }
 0x796   : > { %v7022_v6 = vmul.f32 %v16430_v26, %v18508_v41  ;;  %v6498_v41 = vcombine.high %v18598_v30, %v18598_v30 }
 0x797   : > { %v18767_v1 = vpop.xlane.xlu0 %6928 }
 0x798   : > { %v6641_v24 = vrot.slane %v6498_v41, %v17062_v27 }
 0x79a   : > { %v6732_v42 = vadd.f32 %v6641_v24, %v18651_v60  ;;  %v6549_v24 = vcombine.high %v18724_v61, %v18724_v61 }
 0x79b   : > { %v7197_v59 = vpop.permute.xlu0 %7196 }
 0x79c   : > { %15381 = vmatpush3.msra.mxu0 %v7197_v59  ;;  %v16432_v59 = vpop.eup %16431 }
 0x79d   : > { %15382 = vmatprep.subr.mxu0 %v20584_v43  ;;  %v6788_v10 = vadd.f32 %v18459_v9, %v16432_v59 }
 0x79e   : > { %7806 = vrot.lane.b32.xlu0 %v20597_v53, %s16717_s20 }
 0x79f   : > { %v7195_v38 = vpop.permute.xlu0 %7194  ;;  %v6834_v12 = vmul.f32 1.442695, %v6788_v10 }
 0x7a0   : > { %15383 = vmatpush3.msra.mxu0 %v7195_v38  ;;  %v18833_v38 = vpop.eup %16433 }
 0x7a1   : > { %15385 = vmatmul.mubr.msk.f32.vlgmr.msra.gmra.mxu0 %vm2406_vm1, %v7015_v44  ;;  %15394 = vmatprep.subr.mxu0 %v20584_v43  ;;  %16435 = vpow2.f32 %v6834_v12  ;;  %v6888_v44 = vsel %vm2406_vm1, %v18833_v38, 0.0 }
 0x7a2   : > { %7804 = vrot.lane.b32.xlu0 %v20598_v35, %s16717_s20  ;;  %15395 = vmatpush3.msra.mxu0 %v20593_v25  ;;  %16437 = vtanh.f32 %v6732_v42 }
 0x7a3   : > { %15396 = vmatprep.subr.mxu0 %v20584_v43  ;;  %v18787_v16 = vpop.xlane.xlu1 %6952  ;;  %15398 = vmatprep.mubr.msk.f32.mxu0 %vm16721_vm2, %v20584_v43  ;;  %16439 = vrcp.f32 %v18708_v33 }
 0x7a4   : > { %15397 = vmatpush3.msra.mxu0 %v20594_v21  ;;  %16441 = vrcp.f32 %v18713_v8 }
 0x7a5   : > { %7885 = vrot.lane.b32.xlu1 %v20599_v13, %s16717_s20  ;;  %15399 = vmatmul.mubr.msk.f32.vlgmr.msra.gmra.mxu0 %vm2406_vm1, %v6998_v40 }
 0x7a6   : > { %15408 = vmatprep.subr.mxu0 %v20584_v43  ;;  %15412 = vmatprep.mubr.msk.f32.mxu0 %vm16721_vm2, %v20584_v43 }
 0x7a7   : > { %15409 = vmatpush3.msra.mxu0 %v20597_v53  ;;  %v7278_v22 = vpop.permute.xlu1 %7277 }
 0x7a8   : > { %15410 = vmatprep.subr.mxu0 %v20584_v43  ;;  %15388 = vmatpush3.msra.mxu1 %v7278_v22  ;;  %v6547_v22 = vcombine.high %v18616_v3, %v18616_v3 }
 0x7a9   : > { %15411 = vmatpush3.msra.mxu0 %v20598_v35  ;;  %7883 = vrot.lane.b32.xlu1 %v20600_v28, %s16717_s20 }
 0x7aa   : > { %15413 = vmatmul.mubr.msk.f32.vlgmr.msra.gmra.mxu0 %vm2406_vm1, %v7014_v23  ;;  %15389 = vmatprep.subr.mxu1 %v20584_v43  ;;  %v6673_v30 = vrot.slane %v6547_v22, %v17062_v27 }
 0x7ab   : > { %v7276_v31 = vpop.permute.xlu1 %7275  ;;  %15422 = vmatprep.subr.mxu0 %v20584_v43  ;;  %15426 = vmatprep.mubr.msk.f32.mxu0 %vm16721_vm2, %v20584_v43 }
 0x7ac   : > { %15390 = vmatpush3.msra.mxu1 %v7276_v31  ;;  %v6740_v60 = vadd.f32 %v6673_v30, %v18654_v11 }
 0x7ad   : > { %15392 = vmatmul.mubr.msk.f32.vlgmr.msra.gmra.mxu1 %vm2406_vm1, %v7023_v29  ;;  %15401 = vmatprep.subr.mxu1 %v20584_v43 }
 0x7ae   : > { %15402 = vmatpush3.msra.mxu1 %v18166_v5  ;;  %15405 = vmatprep.mubr.msk.f32.mxu1 %vm16721_vm2, %v20584_v43  ;;  %v18839_v17 = vpop.eup %16435  ;;  %16443 = vtanh.f32 %v6740_v60 }
 0x7af   : > { %15403 = vmatprep.subr.mxu1 %v20584_v43  ;;  %v6912_v40 = vsel %vm2406_vm1, %v18839_v17, 0.0  ;;  %v16438_v31 = vpop.eup %16437 }
 0x7b0   : > { %15404 = vmatpush3.msra.mxu1 %v20595_v15  ;;  %v6796_v29 = vadd.f32 %v18459_v9, %v16438_v31  ;;  %v16440_v8 = vpop.eup %16439 }
 0x7b1   : > { %15406 = vmatmul.mubr.msk.f32.vlgmr.msra.gmra.mxu1 %vm2406_vm1, %v7006_v49  ;;  %15415 = vmatprep.subr.mxu1 %v20584_v43  ;;  %v16442_v18 = vpop.eup %16441 }
 0x7b2   : > { %15416 = vmatpush3.msra.mxu1 %v20599_v13  ;;  %15419 = vmatprep.mubr.msk.f32.mxu1 %vm16721_vm2, %v20584_v43  ;;  %v6850_v11 = vmul.f32 1.442695, %v6796_v29  ;;  %v7008_v26 = vmul.f32 %v16442_v18, %v18528_v36  ;;  %v6402_v36 = vcombine.high %v18624_v7, %v18624_v7  ;;  %v6677_v7 = vrot.slane %v6549_v24, %v17062_v27 }
 0x7b3   : > { %15417 = vmatprep.subr.mxu1 %v20584_v43 }
 0x7b4   : > { %15418 = vmatpush3.msra.mxu1 %v20600_v28  ;;  %16445 = vpow2.f32 %v6850_v11  ;;  %v6581_v12 = vrot.slane %v6402_v36, %v17062_v27  ;;  %v6741_v30 = vadd.f32 %v6677_v7, %v18663_v14 }
 0x7b5   : > { %15420 = vmatmul.mubr.msk.f32.vlgmr.msra.gmra.mxu1 %vm2406_vm1, %v7022_v6  ;;  %15429 = vmatprep.subr.mxu1 %v20584_v43 }
 0x7b6   : > { %15433 = vmatprep.mubr.msk.f32.mxu1 %vm16721_vm2, %v20584_v43 }
 0x7bb   : > { %v16444_v49 = vpop.eup %16443 }
 0x7bc   : > { %v6804_v59 = vadd.f32 %v18459_v9, %v16444_v49 }
 0x7c1   : > { %6889 = vadd.xlane.f32.xlu0 %v6888_v44  ;;  %v18885_v6 = vpop.eup %16445  ;;  %v6500_v44 = vcombine.high %v18702_v46, %v18702_v46  ;;  %v6451_v46 = vcombine.high %v18631_v56, %v18631_v56 }
 0x7c2   : > { %v6936_v10 = vsel %vm2406_vm1, %v18885_v6, 0.0 }
 0x7c3   : > { %v6645_v42 = vrot.slane %v6500_v44, %v17062_v27  ;;  %v6613_v61 = vrot.slane %v6451_v46, %v17062_v27 }
 0x7c5   : > { %v6733_v22 = vadd.f32 %v6645_v42, %v18667_v48 }
 0x7cd   : > { %6913 = vadd.xlane.f32.xlu1 %v6912_v40  ;;  %v6717_v40 = vadd.f32 %v6581_v12, %v18661_v20 }
 0x7d0   : > { %v18845_v45 = vpop.xlane.xlu0 %6883 }
 0x7d4   : > { %v18849_v63 = vpop.xlane.xlu0 %6931 }
 0x7d7   : > { %7968 = vrot.lane.b32.xlu0 %v20593_v25, %s16718_s25 }
 0x7d8   : > { %v18855_v54 = vpop.xlane.xlu0 %6955 }
 0x7db   : > { %7966 = vrot.lane.b32.xlu0 %v20594_v21, %s16718_s25 }
 0x7dc   : > { %v18861_v23 = vpop.xlane.xlu0 %6886  ;;  %v18863_v3 = vpop.xlane.xlu1 %6907 }
 0x7de   : > { %8047 = vrot.lane.b32.xlu1 %v18166_v5, %s16718_s25  ;;  %v7000_v5 = vmul.f32 %v16440_v8, %v18522_v39  ;;  %v6866_v39 = vmul.f32 1.442695, %v6804_v59 }
 0x7e0   : > { %v7649_v25 = vpop.permute.xlu0 %7648  ;;  %v18867_v33 = vpop.xlane.xlu1 %6910  ;;  %16447 = vpow2.f32 %v6866_v39 }
 0x7e1   : > { %15423 = vmatpush3.msra.mxu0 %v7649_v25  ;;  %16449 = vrcp.f32 %v18715_v51  ;;  %v6725_v51 = vadd.f32 %v6613_v61, %v18658_v50 }
 0x7e2   : > { %8045 = vrot.lane.b32.xlu1 %v20595_v15, %s16718_s25  ;;  %15424 = vmatprep.subr.mxu0 %v20584_v43  ;;  %16451 = vtanh.f32 %v6717_v40 }
 0x7e3   : > { %16453 = vtanh.f32 %v6733_v22 }
 0x7e4   : > { %v7728_v21 = vpop.permute.xlu1 %7727  ;;  %16455 = vtanh.f32 %v6741_v30 }
 0x7e5   : > { %15430 = vmatpush3.msra.mxu1 %v7728_v21  ;;  %16457 = vrcp.f32 %v18719_v55 }
 0x7e6   : > { %15431 = vmatprep.subr.mxu1 %v20584_v43  ;;  %16459 = vtanh.f32 %v6725_v51 }
 0x7e8   : > { %v7647_v0 = vpop.permute.xlu1 %7646 }
 0x7e9   : > { %15425 = vmatpush3.msra.mxu0 %v7647_v0 }
 0x7ea   : > { %15427 = vmatmul.mubr.msk.f32.vlgmr.msra.gmra.mxu0 %vm2406_vm1, %v7000_v5  ;;  %15436 = vmatprep.subr.mxu0 %v20584_v43 }
 0x7eb   : > { %15440 = vmatprep.mubr.msk.f32.mxu0 %vm16721_vm2, %v20584_v43 }
 0x7ec   : > { %v7726_v15 = vpop.permute.xlu1 %7725 }
 0x7ed   : > { %15432 = vmatpush3.msra.mxu1 %v7726_v15  ;;  %v18891_v9 = vpop.eup %16447 }
 0x7ee   : > { %15434 = vmatmul.mubr.msk.f32.vlgmr.msra.gmra.mxu1 %vm2406_vm1, %v7008_v26  ;;  %15443 = vmatprep.subr.mxu1 %v20584_v43  ;;  %v6960_v41 = vsel %vm2406_vm1, %v18891_v9, 0.0  ;;  %v16450_v56 = vpop.eup %16449 }
 0x7ef   : > { %15447 = vmatprep.mubr.msk.f32.mxu1 %vm16721_vm2, %v20584_v43  ;;  %v16452_v14 = vpop.eup %16451  ;;  %v7016_v50 = vmul.f32 %v16450_v56, %v18526_v52 }
 0x7f0   : > { %v16454_v31 = vpop.eup %16453 }
 0x7f1   : > { %v16456_v8 = vpop.eup %16455 }
 0x7f2   : > { %v16458_v0 = vpop.eup %16457 }
 0x7f3   : > { %v16460_v49 = vpop.eup %16459  ;;  %v7024_v26 = vmul.f32 %v16458_v0, %v18534_v4 }
 0x7fa   : > { %6937 = vadd.xlane.f32.xlu0 %v6936_v10 }
 0x806   : > { %6961 = vadd.xlane.f32.xlu1 %v6960_v41 }
 0x810   : > { %8126 = vrot.lane.b32.xlu0 %v20597_v53, %s16718_s25  ;;  %v18920_v53 = vpop.f32.mrf.mxu1 }
 0x811   : > { %v18911_v20 = vpop.xlane.xlu0 %6934 }
 0x814   : > { %8124 = vrot.lane.b32.xlu0 %v20598_v35, %s16718_s25  ;;  %v16703_v35 = vld [vmem:[%s20337_s2] ss:$0 sm:$0xff] }
 0x815   : > { %v7807_v48 = vpop.permute.xlu0 %7806  ;;  %v6781_v55 = vadd.f32 %v16703_v35, %v16452_v14  ;;  %v6797_v25 = vadd.f32 %v16703_v35, %v16454_v31  ;;  %v6805_v5 = vadd.f32 %v16703_v35, %v16456_v8  ;;  %v6789_v59 = vadd.f32 %v16703_v35, %v16460_v49  ;;  %v20606_v35 = vld [vmem:[#allocation40_spill] sm:$0xff]  ;;  %v20610_v8 = vld [vmem:[#allocation41_spill] sm:$0xff] }
 0x816   : > { %15437 = vmatpush3.msra.mxu0 %v7807_v48 }
 0x817   : > { %8205 = vrot.lane.b32.xlu1 %v20599_v13, %s16718_s25  ;;  %15438 = vmatprep.subr.mxu0 %v20584_v43  ;;  %v18929_v13 = vpop.f32.mrf.mxu1  ;;  %v6820_v21 = vmul.f32 1.442695, %v6781_v55  ;;  %v6852_v18 = vmul.f32 1.442695, %v6797_v25  ;;  %v6868_v10 = vmul.f32 1.442695, %v6805_v5 }
 0x818   : > { %v6836_v12 = vmul.f32 1.442695, %v6789_v59  ;;  %v20607_v55 = vld [vmem:[#allocation30_spill] sm:$0xff] }
 0x819   : > { %v7805_v60 = vpop.permute.xlu0 %7804  ;;  %v18936_v29 = vpop.f32.mrf.mxu1  ;;  %16461 = vpow2.f32 %v6820_v21  ;;  %v20612_v5 = vld [vmem:[#allocation26_spill] sm:$0xff] }
 0x81a   : > { %15439 = vmatpush3.msra.mxu0 %v7805_v60  ;;  %16463 = vpow2.f32 %v6852_v18  ;;  %v20613_v18 = vld [vmem:[#allocation31_spill] sm:$0xff] }
 0x81b   : > { %8203 = vrot.lane.b32.xlu1 %v20600_v28, %s16718_s25  ;;  %15441 = vmatmul.mubr.msk.f32.vlgmr.msra.gmra.mxu0 %vm2406_vm1, %v7016_v50  ;;  %v18938_v28 = vpop.f32.mrf.mxu1  ;;  %16465 = vpow2.f32 %v6868_v10 }
 0x81c   : > { %15450 = vmatprep.subr.mxu0 %v20584_v43  ;;  %15454 = vmatprep.mubr.msk.f32.mxu0 %vm16721_vm2, %v20584_v43  ;;  %16467 = vpow2.f32 %v6836_v12 }
 0x81d   : > { %v18934_v52 = vpop.xlane.xlu1 %6958  ;;  %v18942_v39 = vpop.f32.mrf.mxu1  ;;  %16469 = vrcp.f32 %v18721_v32  ;;  %v20608_v32 = vld [vmem:[#allocation34_spill] sm:$0xff] }
 0x81e   : > { %16471 = vrcp.f32 %v18728_v19  ;;  %v20609_v19 = vld [vmem:[#allocation32_spill] sm:$0xff] }
 0x81f   : > { %v18948_v36 = vpop.f32.mrf.mxu1  ;;  %16473 = vrcp.f32 %v18767_v1 }
 0x820   : > { %16475 = vrcp.f32 %v18845_v45 }
 0x821   : > { %v7886_v11 = vpop.permute.xlu1 %7885  ;;  %v18950_v44 = vpop.f32.mrf.mxu1  ;;  %16477 = vrcp.f32 %v18849_v63 }
 0x822   : > { %15444 = vmatpush3.msra.mxu1 %v7886_v11  ;;  %16479 = vrcp.f32 %v18787_v16 }
 0x823   : > { %15445 = vmatprep.subr.mxu1 %v20584_v43  ;;  %v18954_v24 = vpop.f32.mrf.mxu1  ;;  %16481 = vrcp.f32 %v18863_v3 }
 0x824   : > { %16483 = vrcp.f32 %v18855_v54  ;;  %v20614_v54 = vld [vmem:[#allocation28_spill] sm:$0xff] }
 0x825   : > { %v7884_v15 = vpop.permute.xlu1 %7883  ;;  %16485 = vrcp.f32 %v18867_v33 }
 0x826   : > { %15446 = vmatpush3.msra.mxu1 %v7884_v15  ;;  %v18952_v4 = vpop.eup %16461  ;;  %16487 = vrcp.f32 %v18861_v23  ;;  %v20618_v23 = vld [vmem:[#allocation49_spill] sm:$0xff] }
 0x827   : > { %15448 = vmatmul.mubr.msk.f32.vlgmr.msra.gmra.mxu1 %vm2406_vm1, %v7024_v26  ;;  %15457 = vmatprep.subr.mxu1 %v20584_v43  ;;  %v6891_v42 = vsel %vm2406_vm1, %v18952_v4, 0.0  ;;  %v18958_v7 = vpop.eup %16463  ;;  %16489 = vrcp.f32 %v18934_v52 }
 0x828   : > { %15461 = vmatprep.mubr.msk.f32.mxu1 %vm16721_vm2, %v20584_v43  ;;  %v6939_v30 = vsel %vm2406_vm1, %v18958_v7, 0.0  ;;  %v18964_v61 = vpop.eup %16465  ;;  %16491 = vrcp.f32 %v18911_v20 }
 0x829   : > { %v6963_v51 = vsel %vm2406_vm1, %v18964_v61, 0.0  ;;  %v18968_v48 = vpop.eup %16467 }
 0x82a   : > { %v6915_v56 = vsel %vm2406_vm1, %v18968_v48, 0.0  ;;  %v16470_v50 = vpop.eup %16469 }
 0x82b   : > { %v7001_v25 = vmul.f32 %v16470_v50, %v18538_v37  ;;  %v20611_v37 = vld [vmem:[#allocation50_spill] sm:$0xff]  ;;  %v16472_v0 = vpop.eup %16471 }
 0x82c   : > { %v7009_v15 = vmul.f32 %v16472_v0, %v18542_v47  ;;  %v16474_v0 = vpop.eup %16473 }
 0x830   : > { %v7107_v41 = vpop.f32.mrf.mxu0 }
 0x832   : > { %v15372_v40 = vpop.f32.mrf.mxu0 }
 0x833   : > { %6892 = vadd.xlane.f32.xlu0 %v6891_v42 }
 0x834   : > { %v18960_v22 = vpop.f32.mrf.mxu1 }
 0x836   : > { %v15379_v46 = vpop.f32.mrf.mxu1 }
 0x837   : > { %6940 = vadd.xlane.f32.xlu0 %v6939_v30 }
 0x83b   : > { %6964 = vadd.xlane.f32.xlu0 %v6963_v51 }
 0x83f   : > { %6916 = vadd.xlane.f32.xlu1 %v6915_v56 }
 0x84a   : > { %v18973_v14 = vpop.xlane.xlu0 %6889 }
 0x84e   : > { %v7969_v60 = vpop.permute.xlu0 %7968 }
 0x84f   : > { %15451 = vmatpush3.msra.mxu0 %v7969_v60 }
 0x850   : > { %8667 = vrot.lane.b32.xlu1 %v20606_v35, %s16714_s28  ;;  %15452 = vmatprep.subr.mxu0 %v20584_v43 }
 0x851   : > { %8586 = vrot.lane.b32.xlu0 %v20607_v55, %s16714_s28 }
 0x852   : > { %v7967_v31 = vpop.permute.xlu0 %7966 }
 0x853   : > { %15453 = vmatpush3.msra.mxu0 %v7967_v31 }
 0x854   : > { %8584 = vrot.lane.b32.xlu1 %v20608_v32, %s16714_s28  ;;  %15455 = vmatmul.mubr.msk.f32.vlgmr.msra.gmra.mxu0 %vm2406_vm1, %v7001_v25 }
 0x855   : > { %8665 = vrot.lane.b32.xlu0 %v20609_v19, %s16714_s28  ;;  %15464 = vmatprep.subr.mxu0 %v20584_v43 }
 0x856   : > { %v18988_v21 = vpop.xlane.xlu1 %6913  ;;  %15468 = vmatprep.mubr.msk.f32.mxu0 %vm16721_vm2, %v20584_v43 }
 0x857   : > { %16493 = vrcp.f32 %v18988_v21 }
 0x858   : > { %8748 = vrot.lane.b32.xlu1 %v20610_v8, %s16714_s28  ;;  %16495 = vrcp.f32 %v18973_v14 }
 0x859   : > { %8829 = vrot.lane.b32.xlu0 %v20611_v37, %s16714_s28 }
 0x85a   : > { %v8048_v11 = vpop.permute.xlu1 %8047 }
 0x85b   : > { %15458 = vmatpush3.msra.mxu1 %v8048_v11 }
 0x85c   : > { %8746 = vrot.lane.b32.xlu1 %v20612_v5, %s16714_s28  ;;  %15459 = vmatprep.subr.mxu1 %v20584_v43 }
 0x85d   : > { %8827 = vrot.lane.b32.xlu0 %v20613_v18, %s16714_s28 }
 0x85e   : > { %v8046_v49 = vpop.permute.xlu1 %8045 }
 0x85f   : > { %15460 = vmatpush3.msra.mxu1 %v8046_v49  ;;  %v7017_v49 = vmul.f32 %v16474_v0, %v18577_v58 }
 0x860   : > { %8912 = vrot.lane.b32.xlu1 %v20607_v55, %s16717_s20  ;;  %15462 = vmatmul.mubr.msk.f32.vlgmr.msra.gmra.mxu1 %vm2406_vm1, %v7009_v15  ;;  %v16476_v15 = vpop.eup %16475 }
 0x861   : > { %8991 = vrot.lane.b32.xlu0 %v20606_v35, %s16717_s20  ;;  %v7269_v26 = vpop.f32.mrf.mxu0  ;;  %15471 = vmatprep.subr.mxu1 %v20584_v43  ;;  %v7002_v45 = vmul.f32 %v16476_v15, %v18665_v34  ;;  %v16478_v58 = vpop.eup %16477 }
 0x862   : > { %15475 = vmatprep.mubr.msk.f32.mxu1 %vm16721_vm2, %v20584_v43  ;;  %v7018_v3 = vmul.f32 %v16478_v58, %v20614_v54 }
 0x863   : > { %v15386_v59 = vpop.f32.mrf.mxu0 }
 0x864   : > { %8910 = vrot.lane.b32.xlu1 %v20608_v32, %s16717_s20 }
 0x865   : > { %8989 = vrot.lane.b32.xlu0 %v20609_v19, %s16717_s20  ;;  %v7423_v47 = vpop.f32.mrf.mxu0 }
 0x866   : > { %v19014_v10 = vadd.f32 %v7423_v47, %v7107_v41 }
 0x867   : > { %v15400_v12 = vpop.f32.mrf.mxu0 }
 0x868   : > { %9070 = vrot.lane.b32.xlu1 %v20610_v8, %s16717_s20 }
 0x869   : > { %9149 = vrot.lane.b32.xlu0 %v20611_v37, %s16717_s20 }
 0x86a   : > { %v7569_v40 = vpop.f32.mrf.mxu0 }
 0x86b   : > { %v19020_v42 = vadd.f32 %v7569_v40, %v7269_v26 }
 0x86c   : > { %v15414_v46 = vpop.f32.mrf.mxu0  ;;  %9068 = vrot.lane.b32.xlu1 %v20612_v5, %s16717_s20 }
 0x86d   : > { %9147 = vrot.lane.b32.xlu0 %v20613_v18, %s16717_s20  ;;  %v7350_v30 = vpop.f32.mrf.mxu1 }
 0x86f   : > { %v15393_v41 = vpop.f32.mrf.mxu1 }
 0x870   : > { %9232 = vrot.lane.b32.xlu1 %v20607_v55, %s16718_s25 }
 0x871   : > { %9311 = vrot.lane.b32.xlu0 %v20606_v35, %s16718_s25  ;;  %v7496_v51 = vpop.f32.mrf.mxu1 }
 0x872   : > { %v19031_v56 = vadd.f32 %v7496_v51, %v18960_v22 }
 0x873   : > { %v15407_v60 = vpop.f32.mrf.mxu1 }
 0x874   : > { %9230 = vrot.lane.b32.xlu1 %v20608_v32, %s16718_s25 }
 0x875   : > { %9309 = vrot.lane.b32.xlu0 %v20609_v19, %s16718_s25  ;;  %v7642_v50 = vpop.f32.mrf.mxu1 }
 0x876   : > { %v19037_v31 = vadd.f32 %v7642_v50, %v7350_v30 }
 0x877   : > { %v15421_v25 = vpop.f32.mrf.mxu1 }
 0x878   : > { %9390 = vrot.lane.b32.xlu1 %v20610_v8, %s16718_s25 }
 0x879   : > { %9469 = vrot.lane.b32.xlu0 %v20611_v37, %s16718_s25 }
 0x87c   : > { %9388 = vrot.lane.b32.xlu1 %v20612_v5, %s16718_s25 }
 0x87d   : > { %9467 = vrot.lane.b32.xlu0 %v20613_v18, %s16718_s25 }
 0x883   : > { %v19050_v22 = vpop.xlane.xlu0 %6937 }
 0x887   : > { %v8127_v11 = vpop.permute.xlu0 %8126 }
 0x888   : > { %15465 = vmatpush3.msra.mxu0 %v8127_v11 }
 0x889   : > { %15466 = vmatprep.subr.mxu0 %v20584_v43 }
 0x88b   : > { %v8125_v1 = vpop.permute.xlu0 %8124 }
 0x88c   : > { %15467 = vmatpush3.msra.mxu0 %v8125_v1  ;;  %v20619_v1 = vld [vmem:[#allocation43_spill] sm:$0xff] }
 0x88d   : > { %15469 = vmatmul.mubr.msk.f32.vlgmr.msra.gmra.mxu0 %vm2406_vm1, %v7017_v49  ;;  %15478 = vmatprep.subr.mxu0 %v20584_v43 }
 0x88e   : > { %15479 = vmatpush3.msra.mxu0 %v20607_v55  ;;  %15482 = vmatprep.mubr.msk.f32.mxu0 %vm16721_vm2, %v20584_v43  ;;  %v16480_v55 = vpop.eup %16479 }
 0x88f   : > { %15480 = vmatprep.subr.mxu0 %v20584_v43  ;;  %v19063_v16 = vpop.xlane.xlu1 %6961  ;;  %v16482_v26 = vpop.eup %16481 }
 0x890   : > { %15481 = vmatpush3.msra.mxu0 %v20608_v32  ;;  %v20615_v32 = vld [vmem:[#allocation42_spill] sm:$0xff]  ;;  %v16484_v47 = vpop.eup %16483  ;;  %16497 = vrcp.f32 %v19063_v16 }
 0x891   : > { %15483 = vmatmul.mubr.msk.f32.vlgmr.msra.gmra.mxu0 %vm2406_vm1, %v7002_v45  ;;  %15492 = vmatprep.subr.mxu0 %v20584_v43  ;;  %16499 = vrcp.f32 %v19050_v22 }
 0x892   : > { %15493 = vmatpush3.msra.mxu0 %v20610_v8  ;;  %15496 = vmatprep.mubr.msk.f32.mxu0 %vm16721_vm2, %v20584_v43  ;;  %v7025_v8 = vmul.f32 %v16480_v55, %v20615_v32 }
 0x893   : > { %15494 = vmatprep.subr.mxu0 %v20584_v43  ;;  %v8206_v63 = vpop.permute.xlu1 %8205 }
 0x894   : > { %15472 = vmatpush3.msra.mxu1 %v8206_v63  ;;  %15495 = vmatpush3.msra.mxu0 %v20612_v5  ;;  %v20616_v5 = vld [vmem:[#allocation35_spill] sm:$0xff] }
 0x895   : > { %15497 = vmatmul.mubr.msk.f32.vlgmr.msra.gmra.mxu0 %vm2406_vm1, %v7018_v3  ;;  %15473 = vmatprep.subr.mxu1 %v20584_v43  ;;  %v7010_v59 = vmul.f32 %v16482_v26, %v20616_v5 }
 0x896   : > { %15506 = vmatprep.subr.mxu0 %v20584_v43  ;;  %15510 = vmatprep.mubr.msk.f32.mxu0 %vm16721_vm2, %v20584_v43 }
 0x897   : > { %v8204_v34 = vpop.permute.xlu1 %8203 }
 0x898   : > { %15474 = vmatpush3.msra.mxu1 %v8204_v34 }
 0x899   : > { %15476 = vmatmul.mubr.msk.f32.vlgmr.msra.gmra.mxu1 %vm2406_vm1, %v7025_v8  ;;  %15485 = vmatprep.subr.mxu1 %v20584_v43 }
 0x89a   : > { %15486 = vmatpush3.msra.mxu1 %v20606_v35  ;;  %15489 = vmatprep.mubr.msk.f32.mxu1 %vm16721_vm2, %v20584_v43  ;;  %v20617_v35 = vld [vmem:[#allocation37_spill] sm:$0xff] }
 0x89b   : > { %15487 = vmatprep.subr.mxu1 %v20584_v43  ;;  %v7026_v12 = vmul.f32 %v16484_v47, %v20617_v35 }
 0x89c   : > { %15488 = vmatpush3.msra.mxu1 %v20609_v19 }
 0x89d   : > { %15490 = vmatmul.mubr.msk.f32.vlgmr.msra.gmra.mxu1 %vm2406_vm1, %v7010_v59  ;;  %15499 = vmatprep.subr.mxu1 %v20584_v43 }
 0x89e   : > { %15500 = vmatpush3.msra.mxu1 %v20611_v37  ;;  %15503 = vmatprep.mubr.msk.f32.mxu1 %vm16721_vm2, %v20584_v43 }
 0x89f   : > { %15501 = vmatprep.subr.mxu1 %v20584_v43 }
 0x8a0   : > { %15502 = vmatpush3.msra.mxu1 %v20613_v18 }
 0x8a1   : > { %15504 = vmatmul.mubr.msk.f32.vlgmr.msra.gmra.mxu1 %vm2406_vm1, %v7026_v12  ;;  %15513 = vmatprep.subr.mxu1 %v20584_v43 }
 0x8a2   : > { %15517 = vmatprep.mubr.msk.f32.mxu1 %vm16721_vm2, %v20584_v43 }
 0x8aa   : > { %v7721_v19 = vpop.f32.mrf.mxu0 }
 0x8ab   : > { %v19102_v40 = vadd.f32 %v7721_v19, %v19014_v10 }
 0x8ac   : > { %v15428_v37 = vpop.f32.mrf.mxu0 }
 0x8ae   : > { %v7800_v46 = vpop.f32.mrf.mxu1 }
 0x8af   : > { %v19105_v30 = vadd.f32 %v7800_v46, %v19031_v56  ;;  %v16486_v56 = vpop.eup %16485 }
 0x8b0   : > { %v15435_v41 = vpop.f32.mrf.mxu1  ;;  %v16488_v11 = vpop.eup %16487  ;;  %v7011_v52 = vmul.f32 %v16486_v56, %v20618_v23 }
 0x8b1   : > { %v7003_v49 = vmul.f32 %v16488_v11, %v20619_v1  ;;  %v16490_v21 = vpop.eup %16489 }
 0x8b2   : > { %v7027_v45 = vmul.f32 %v16490_v21, %v18760_v2  ;;  %v16492_v58 = vpop.eup %16491 }
 0x8b3   : > { %v7019_v2 = vmul.f32 %v16492_v58, %v18753_v57  ;;  %v16494_v54 = vpop.eup %16493 }
 0x8b4   : > { %v7012_v57 = vmul.f32 %v16494_v54, %v18839_v17  ;;  %v16496_v32 = vpop.eup %16495 }
 0x8b5   : > { %v7004_v5 = vmul.f32 %v16496_v32, %v18833_v38  ;;  %v16498_v17 = vpop.eup %16497 }
 0x8b6   : > { %v7028_v35 = vmul.f32 %v16498_v17, %v18891_v9  ;;  %v16500_v12 = vpop.eup %16499 }
 0x8b7   : > { %v7020_v46 = vmul.f32 %v16500_v12, %v18885_v6 }
 0x8bc   : > { %v19107_v51 = vpop.xlane.xlu0 %6892 }
 0x8c0   : > { %v19111_v18 = vpop.xlane.xlu0 %6940 }
 0x8c4   : > { %v19114_v60 = vpop.xlane.xlu0 %6964 }
 0x8c8   : > { %v8587_v10 = vpop.permute.xlu0 %8586  ;;  %v6917_v50 = vpop.xlane.xlu1 %6916 }
 0x8c9   : > { %15507 = vmatpush3.msra.mxu0 %v8587_v10  ;;  %16501 = vrcp.f32 %v6917_v50 }
 0x8ca   : > { %15508 = vmatprep.subr.mxu0 %v20584_v43  ;;  %16503 = vrcp.f32 %v19107_v51 }
 0x8cb   : > { %16505 = vrcp.f32 %v19114_v60 }
 0x8cc   : > { %v8666_v25 = vpop.permute.xlu0 %8665  ;;  %v8668_v33 = vpop.permute.xlu1 %8667  ;;  %16507 = vrcp.f32 %v19111_v18 }
 0x8cd   : > { %15514 = vmatpush3.msra.mxu1 %v8668_v33 }
 0x8ce   : > { %15515 = vmatprep.subr.mxu1 %v20584_v43 }
 0x8cf   : > { %15516 = vmatpush3.msra.mxu1 %v8666_v25 }
 0x8d0   : > { %v8830_v20 = vpop.permute.xlu0 %8829  ;;  %15518 = vmatmul.mubr.msk.f32.vlgmr.msra.gmra.mxu1 %vm2406_vm1, %v7011_v52  ;;  %15527 = vmatprep.subr.mxu1 %v20584_v43  ;;  %v8585_v0 = vpop.permute.xlu1 %8584 }
 0x8d1   : > { %15509 = vmatpush3.msra.mxu0 %v8585_v0  ;;  %15528 = vmatpush3.msra.mxu1 %v8830_v20 }
 0x8d2   : > { %15511 = vmatmul.mubr.msk.f32.vlgmr.msra.gmra.mxu0 %vm2406_vm1, %v7003_v49  ;;  %15520 = vmatprep.subr.mxu0 %v20584_v43 }
 0x8d3   : > { %15529 = vmatprep.subr.mxu1 %v20584_v43  ;;  %15531 = vmatprep.mubr.msk.f32.mxu1 %vm16721_vm2, %v20584_v43 }
 0x8d4   : > { %v8828_v14 = vpop.permute.xlu0 %8827  ;;  %v8749_v15 = vpop.permute.xlu1 %8748  ;;  %15524 = vmatprep.mubr.msk.f32.mxu0 %vm16721_vm2, %v20584_v43 }
 0x8d5   : > { %15521 = vmatpush3.msra.mxu0 %v8749_v15  ;;  %15530 = vmatpush3.msra.mxu1 %v8828_v14  ;;  %v14576_v14 = vld [vmem:[%s20344_s9 + $0x58] sm:$0xff]  ;;  %v9784_v15 = vld [vmem:[%s20342_s7 + $0x50] sm:$0xff] }
 0x8d6   : > { %15532 = vmatmul.mubr.msk.f32.vlgmr.msra.gmra.mxu1 %vm2406_vm1, %v7027_v45  ;;  %15522 = vmatprep.subr.mxu0 %v20584_v43  ;;  %v16502_v41 = vpop.eup %16501 }
 0x8d7   : > { %15541 = vmatprep.subr.mxu1 %v20584_v43  ;;  %15545 = vmatprep.mubr.msk.f32.mxu1 %vm16721_vm2, %v20584_v43  ;;  %v7013_v60 = vmul.f32 %v16502_v41, %v18968_v48  ;;  %v16504_v10 = vpop.eup %16503 }
 0x8d8   : > { %v8992_v16 = vpop.permute.xlu0 %8991  ;;  %v8747_v63 = vpop.permute.xlu1 %8746  ;;  %v7005_v56 = vmul.f32 %v16504_v10, %v18952_v4 }
 0x8d9   : > { %15523 = vmatpush3.msra.mxu0 %v8747_v63  ;;  %15542 = vmatpush3.msra.mxu1 %v8992_v16  ;;  %v16506_v25 = vpop.eup %16505 }
 0x8da   : > { %15525 = vmatmul.mubr.msk.f32.vlgmr.msra.gmra.mxu0 %vm2406_vm1, %v7019_v2  ;;  %15534 = vmatprep.subr.mxu0 %v20584_v43  ;;  %v7029_v11 = vmul.f32 %v16506_v25, %v18964_v61  ;;  %v16508_v23 = vpop.eup %16507 }
 0x8db   : > { %v7879_v3 = vpop.f32.mrf.mxu0  ;;  %15543 = vmatprep.subr.mxu1 %v20584_v43  ;;  %15538 = vmatprep.mubr.msk.f32.mxu0 %vm16721_vm2, %v20584_v43  ;;  %v7021_v52 = vmul.f32 %v16508_v23, %v18958_v7  ;;  %v14575_v7 = vld [vmem:[%s20344_s9 + $0x50] sm:$0xff] }
 0x8dc   : > { %v19147_v22 = vadd.f32 %v7879_v3, %v19020_v42  ;;  %v8990_v55 = vpop.permute.xlu0 %8989  ;;  %v8913_v34 = vpop.permute.xlu1 %8912 }
 0x8dd   : > { %v15442_v8 = vpop.f32.mrf.mxu0  ;;  %15535 = vmatpush3.msra.mxu0 %v8913_v34  ;;  %15544 = vmatpush3.msra.mxu1 %v8990_v55 }
 0x8de   : > { %15546 = vmatmul.mubr.msk.f32.vlgmr.msra.gmra.mxu1 %vm2406_vm1, %v7012_v57  ;;  %15536 = vmatprep.subr.mxu0 %v20584_v43 }
 0x8df   : > { %15555 = vmatprep.subr.mxu1 %v20584_v43  ;;  %15559 = vmatprep.mubr.msk.f32.mxu1 %vm16721_vm2, %v20584_v43 }
 0x8e0   : > { %v9150_v42 = vpop.permute.xlu0 %9149  ;;  %v8911_v26 = vpop.permute.xlu1 %8910 }
 0x8e1   : > { %15537 = vmatpush3.msra.mxu0 %v8911_v26  ;;  %15556 = vmatpush3.msra.mxu1 %v9150_v42 }
 0x8e2   : > { %15539 = vmatmul.mubr.msk.f32.vlgmr.msra.gmra.mxu0 %vm2406_vm1, %v7004_v5  ;;  %15548 = vmatprep.subr.mxu0 %v20584_v43 }
 0x8e3   : > { %15557 = vmatprep.subr.mxu1 %v20584_v43  ;;  %15552 = vmatprep.mubr.msk.f32.mxu0 %vm16721_vm2, %v20584_v43 }
 0x8e4   : > { %v9148_v59 = vpop.permute.xlu0 %9147  ;;  %v9071_v47 = vpop.permute.xlu1 %9070 }
 0x8e5   : > { %15549 = vmatpush3.msra.mxu0 %v9071_v47  ;;  %15558 = vmatpush3.msra.mxu1 %v9148_v59 }
 0x8e6   : > { %15560 = vmatmul.mubr.msk.f32.vlgmr.msra.gmra.mxu1 %vm2406_vm1, %v7028_v35  ;;  %15550 = vmatprep.subr.mxu0 %v20584_v43 }
 0x8e7   : > { %v7958_v38 = vpop.f32.mrf.mxu1  ;;  %15569 = vmatprep.subr.mxu1 %v20584_v43  ;;  %15573 = vmatprep.mubr.msk.f32.mxu1 %vm16721_vm2, %v20584_v43 }
 0x8e8   : > { %v19171_v19 = vadd.f32 %v7958_v38, %v19037_v31  ;;  %v9312_v37 = vpop.permute.xlu0 %9311  ;;  %v9069_v9 = vpop.permute.xlu1 %9068 }
 0x8e9   : > { %v15449_v51 = vpop.f32.mrf.mxu1  ;;  %15551 = vmatpush3.msra.mxu0 %v9069_v9  ;;  %15570 = vmatpush3.msra.mxu1 %v9312_v37 }
 0x8ea   : > { %15553 = vmatmul.mubr.msk.f32.vlgmr.msra.gmra.mxu0 %vm2406_vm1, %v7020_v46  ;;  %15562 = vmatprep.subr.mxu0 %v20584_v43 }
 0x8eb   : > { %15571 = vmatprep.subr.mxu1 %v20584_v43  ;;  %15566 = vmatprep.mubr.msk.f32.mxu0 %vm16721_vm2, %v20584_v43 }
 0x8ec   : > { %v9310_v18 = vpop.permute.xlu0 %9309  ;;  %v9233_v31 = vpop.permute.xlu1 %9232 }
 0x8ed   : > { %15563 = vmatpush3.msra.mxu0 %v9233_v31  ;;  %15572 = vmatpush3.msra.mxu1 %v9310_v18 }
 0x8ee   : > { %15574 = vmatmul.mubr.msk.f32.vlgmr.msra.gmra.mxu1 %vm2406_vm1, %v7013_v60  ;;  %15564 = vmatprep.subr.mxu0 %v20584_v43 }
 0x8ef   : > { %15583 = vmatprep.subr.mxu1 %v20584_v43  ;;  %15587 = vmatprep.mubr.msk.f32.mxu1 %vm16721_vm2, %v20584_v43 }
 0x8f0   : > { %v9470_v6 = vpop.permute.xlu0 %9469  ;;  %v9231_v50 = vpop.permute.xlu1 %9230 }
 0x8f1   : > { %15565 = vmatpush3.msra.mxu0 %v9231_v50  ;;  %15584 = vmatpush3.msra.mxu1 %v9470_v6 }
 0x8f2   : > { %15567 = vmatmul.mubr.msk.f32.vlgmr.msra.gmra.mxu0 %vm2406_vm1, %v7005_v56  ;;  %15576 = vmatprep.subr.mxu0 %v20584_v43 }
 0x8f3   : > { %15585 = vmatprep.subr.mxu1 %v20584_v43  ;;  %15580 = vmatprep.mubr.msk.f32.mxu0 %vm16721_vm2, %v20584_v43 }
 0x8f4   : > { %v9468_v48 = vpop.permute.xlu0 %9467  ;;  %v9391_v33 = vpop.permute.xlu1 %9390 }
 0x8f5   : > { %15577 = vmatpush3.msra.mxu0 %v9391_v33  ;;  %15586 = vmatpush3.msra.mxu1 %v9468_v48 }
 0x8f6   : > { %15588 = vmatmul.mubr.msk.f32.vlgmr.msra.gmra.mxu1 %vm2406_vm1, %v7029_v11  ;;  %15578 = vmatprep.subr.mxu0 %v20584_v43 }
 0x8f8   : > { %v9389_v4 = vpop.permute.xlu1 %9388 }
 0x8f9   : > { %15579 = vmatpush3.msra.mxu0 %v9389_v4 }
 0x8fa   : > { %15581 = vmatmul.mubr.msk.f32.vlgmr.msra.gmra.mxu0 %vm2406_vm1, %v7021_v52  ;;  %15590 = vmatprep.subr.mxu0 %v14576_v14 }
 0x8fb   : > { %15591 = vmatpush3.msra.mxu0 %v14576_v14 }
 0x8fc   : > { %15592 = vmatprep.subr.mxu0 %v14575_v7 }
 0x8fd   : > { %15593 = vmatpush3.msra.mxu0 %v14575_v7  ;;  %v9783_v7 = vld [vmem:[%s20342_s7 + $0x48] sm:$0xff] }
 0x914   : > { %v8041_v20 = vpop.f32.mrf.mxu0 }
 0x915   : > { %v8282_v0 = vadd.f32 %v8041_v20, %v19102_v40  ;;  %v14574_v40 = vld [vmem:[%s20344_s9 + $0x48] sm:$0xff]  ;;  %v14572_v20 = vld [vmem:[%s20347_s12 + $0x1] ss:$0 sm:$0xff] }
 0x916   : > { %v15456_v1 = vpop.f32.mrf.mxu0  ;;  %15594 = vmatprep.subr.mxu0 %v14574_v40 }
 0x917   : > { %15595 = vmatpush3.msra.mxu0 %v14574_v40 }
 0x920   : > { %v8120_v49 = vpop.f32.mrf.mxu1 }
 0x921   : > { %v8283_v61 = vadd.f32 %v8120_v49, %v19105_v30  ;;  %v14573_v30 = vld [vmem:[%s20344_s9 + $0x40] sm:$0xff] }
 0x922   : > { %v15463_v21 = vpop.f32.mrf.mxu1  ;;  %15596 = vmatprep.subr.mxu0 %v14573_v30 }
 0x923   : > { %15597 = vmatpush3.msra.mxu0 %v14573_v30  ;;  %v9781_v30 = vld [vmem:[%s20342_s7 + $0x38] sm:$0xff] }
 0x924   : > { %9834 = vmatprep.subr.mxu0 %v9784_v15 }
 0x94d   : > { %v8199_v45 = vpop.f32.mrf.mxu0 }
 0x94e   : > { %v8284_v58 = vadd.f32 %v8199_v45, %v19147_v22 }
 0x94f   : > { %v15470_v16 = vpop.f32.mrf.mxu0 }
 0x951   : > { %v8355_v63 = vpop.f32.mrf.mxu0 }
 0x952   : > { %v8578_v2 = vadd.f32 %v8355_v63, %v8282_v0  ;;  %v9778_v63 = vld [vmem:[%s20342_s7 + $0x20] sm:$0xff] }
 0x953   : > { %v15484_v54 = vpop.f32.mrf.mxu0 }
 0x955   : > { %v8501_v3 = vpop.f32.mrf.mxu0 }
 0x956   : > { %v8580_v55 = vadd.f32 %v8501_v3, %v8284_v58  ;;  %v9780_v58 = vld [vmem:[%s20342_s7 + $0x30] sm:$0xff]  ;;  %v9777_v3 = vld [vmem:[%s20342_s7 + $0x18] sm:$0xff] }
 0x957   : > { %v15498_v34 = vpop.f32.mrf.mxu0 }
 0x958   : > { %v9775_v34 = vld [vmem:[%s20342_s7 + $0x8] sm:$0xff] }
 0x959   : > { %v8278_v57 = vpop.f32.mrf.mxu1 }
 0x95a   : > { %v8285_v32 = vadd.f32 %v8278_v57, %v19171_v19 }
 0x95b   : > { %v15477_v8 = vpop.f32.mrf.mxu1 }
 0x95d   : > { %v8428_v42 = vpop.f32.mrf.mxu1 }
 0x95e   : > { %v8579_v26 = vadd.f32 %v8428_v42, %v8283_v61 }
 0x95f   : > { %v15491_v5 = vpop.f32.mrf.mxu1 }
 0x961   : > { %v8574_v17 = vpop.f32.mrf.mxu1 }
 0x962   : > { %v8581_v59 = vadd.f32 %v8574_v17, %v8285_v32  ;;  %v9774_v32 = vld [vmem:[%s20342_s7] sm:$0xff] }
 0x963   : > { %v15505_v47 = vpop.f32.mrf.mxu1 }
 0x964   : > { %v14577_v47 = vld [vmem:[%s20344_s9 + $0x60] sm:$0xff] }
 0x990   : > { %v8740_v35 = vpop.f32.mrf.mxu1 }
 0x991   : > { %v8907_v56 = vadd.f32 %v8740_v35, %v8579_v26  ;;  %v14530_v26 = vld [vmem:[%s20348_s13 + $0x1] ss:$0 sm:$0xff]  ;;  %v9785_v35 = vld [vmem:[%s20342_s7 + $0x58] sm:$0xff] }
 0x992   : > { %v8659_v12 = vpop.f32.mrf.mxu0  ;;  %v15519_v22 = vpop.f32.mrf.mxu1  ;;  %v19249_v5 = vadd.f32 %v14530_v26, %v18929_v13  ;;  %v19255_v17 = vadd.f32 %v18920_v53, %v14530_v26  ;;  %v19267_v13 = vadd.f32 %v18936_v29, %v14530_v26  ;;  %v19273_v53 = vadd.f32 %v14530_v26, %v18948_v36 }
 0x993   : > { %v8906_v48 = vadd.f32 %v8659_v12, %v8578_v2  ;;  %v19285_v29 = vadd.f32 %v14530_v26, %v18954_v24  ;;  %v19291_v36 = vadd.f32 %v18950_v44, %v14530_v26  ;;  %v14579_v24 = vld [vmem:[%s20344_s9 + $0x70] sm:$0xff]  ;;  %v14578_v44 = vld [vmem:[%s20344_s9 + $0x68] sm:$0xff]  ;;  %v14581_v12 = vld [vmem:[%s20348_s13 + $0x2] ss:$0 sm:$0xff] }
 0x994   : > { %v15512_v38 = vpop.f32.mrf.mxu0  ;;  %20620 = vst [vmem:[#allocation3_spill] sm:$0xff] %v19249_v5  ;;  %20621 = vst [vmem:[#allocation44_spill] sm:$0xff] %v19255_v17 }
 0x995   : > { %20623 = vst [vmem:[#allocation2_spill] sm:$0xff] %v19267_v13  ;;  %20624 = vst [vmem:[#allocation45_spill] sm:$0xff] %v19273_v53 }
 0x996   : > { %v8902_v37 = vpop.f32.mrf.mxu1  ;;  %20626 = vst [vmem:[#allocation47_spill] sm:$0xff] %v19285_v29  ;;  %20627 = vst [vmem:[#allocation7_spill] sm:$0xff] %v19291_v36 }
 0x997   : > { %v8909_v61 = vadd.f32 %v8902_v37, %v8581_v59  ;;  %v19261_v59 = vadd.f32 %v14530_v26, %v18938_v28  ;;  %v19279_v28 = vadd.f32 %v18942_v39, %v14530_v26  ;;  %v14580_v39 = vld [vmem:[%s20344_s9 + $0x78] sm:$0xff] }
 0x998   : > { %v15533_v9 = vpop.f32.mrf.mxu1  ;;  %15604 = vmatprep.subr.mxu1 %v14580_v39 }
 0x999   : > { %20622 = vst [vmem:[#allocation51_spill] sm:$0xff] %v19261_v59  ;;  %20625 = vst [vmem:[#allocation46_spill] sm:$0xff] %v19279_v28  ;;  %15605 = vmatpush3.msra.mxu1 %v14580_v39 }
 0x99a   : > { %v8821_v46 = vpop.f32.mrf.mxu0  ;;  %15606 = vmatprep.subr.mxu1 %v14579_v24 }
 0x99b   : > { %v8908_v40 = vadd.f32 %v8821_v46, %v8580_v55  ;;  %15607 = vmatpush3.msra.mxu1 %v14579_v24 }
 0x99c   : > { %v15526_v41 = vpop.f32.mrf.mxu0  ;;  %15608 = vmatprep.subr.mxu1 %v14578_v44 }
 0x99d   : > { %15609 = vmatpush3.msra.mxu1 %v14578_v44 }
 0x99e   : > { %v9064_v51 = vpop.f32.mrf.mxu1  ;;  %15610 = vmatprep.subr.mxu1 %v14577_v47 }
 0x99f   : > { %v9227_v33 = vadd.f32 %v9064_v51, %v8907_v56  ;;  %15611 = vmatpush3.msra.mxu1 %v14577_v47  ;;  %v9782_v51 = vld [vmem:[%s20342_s7 + $0x40] sm:$0xff] }
 0x9a0   : > { %v15547_v18 = vpop.f32.mrf.mxu1  ;;  %15618 = vmatprep.subr.mxu1 %v9785_v35 }
 0x9a2   : > { %v8985_v31 = vpop.f32.mrf.mxu0 }
 0x9a3   : > { %v9226_v23 = vadd.f32 %v8985_v31, %v8906_v48  ;;  %v9779_v31 = vld [vmem:[%s20342_s7 + $0x28] sm:$0xff] }
 0x9a4   : > { %v15540_v60 = vpop.f32.mrf.mxu0 }
 0x9a6   : > { %v9222_v19 = vpop.f32.mrf.mxu1 }
 0x9a7   : > { %v9229_v15 = vadd.f32 %v9222_v19, %v8909_v61  ;;  %v10031_v61 = vld [vmem:[%s20343_s8 + $0x18] sm:$0xff] }
 0x9a8   : > { %v15561_v10 = vpop.f32.mrf.mxu1 }
 0x9aa   : > { %v9143_v6 = vpop.f32.mrf.mxu0 }
 0x9ab   : > { %v9228_v16 = vadd.f32 %v9143_v6, %v8908_v40  ;;  %v9776_v6 = vld [vmem:[%s20342_s7 + $0x10] sm:$0xff] }
 0x9ac   : > { %v15554_v50 = vpop.f32.mrf.mxu0 }
 0x9ae   : > { %v9384_v25 = vpop.f32.mrf.mxu1 }
 0x9af   : > { %v9547_v4 = vadd.f32 %v9384_v25, %v9227_v33 }
 0x9b0   : > { %v15575_v11 = vpop.f32.mrf.mxu1 }
 0x9b1   : > { %v9555_v21 = vadd.f32 %v14572_v20, %v9547_v4 }
 0x9b2   : > { %v9305_v52 = vpop.f32.mrf.mxu0 }
 0x9b3   : > { %v9546_v0 = vadd.f32 %v9305_v52, %v9226_v23 }
 0x9b4   : > { %v15568_v1 = vpop.f32.mrf.mxu0 }
 0x9b5   : > { %v9554_v49 = vadd.f32 %v14572_v20, %v9546_v0 }
 0x9b6   : > { %v9542_v14 = vpop.f32.mrf.mxu1 }
 0x9b7   : > { %15598 = vmatprep.mubr.msk.f32.mxu0 %vm601_vm0, %v9554_v49  ;;  %v9549_v2 = vadd.f32 %v9542_v14, %v9229_v15 }
 0x9b8   : > { %v15589_v45 = vpop.f32.mrf.mxu1  ;;  %15599 = vmatmul.mubr.msk.f32.vlgmr.msra.gmra.mxu0 %vm601_vm0, %v9555_v21  ;;  %v10030_v21 = vld [vmem:[%s20343_s8 + $0x10] sm:$0xff] }
 0x9b9   : > { %9835 = vmatpush1.msra.mxu0 %v9783_v7  ;;  %v9557_v42 = vadd.f32 %v14572_v20, %v9549_v2  ;;  %v10029_v7 = vld [vmem:[%s20343_s8 + $0x8] sm:$0xff]  ;;  %v10028_v45 = vld [vmem:[%s20343_s8] sm:$0xff] }
 0x9ba   : > { %v9463_v54 = vpop.f32.mrf.mxu0  ;;  %9836 = vmatprep.subr.mxu0 %v9781_v30 }
 0x9bb   : > { %v9548_v55 = vadd.f32 %v9463_v54, %v9228_v16  ;;  %9837 = vmatpush1.msra.mxu0 %v9780_v58 }
 0x9bc   : > { %v15582_v57 = vpop.f32.mrf.mxu0  ;;  %9838 = vmatprep.subr.mxu0 %v9778_v63 }
 0x9bd   : > { %v9556_v8 = vadd.f32 %v14572_v20, %v9548_v55  ;;  %9839 = vmatpush1.msra.mxu0 %v9777_v3  ;;  %v14586_v57 = vld [vmem:[%s20348_s13 + $0x3] ss:$0 sm:$0xff] }
 0x9be   : > { %9840 = vmatprep.subr.mxu0 %v9775_v34 }
 0x9bf   : > { %15601 = vmatprep.mubr.msk.f32.mxu0 %vm601_vm0, %v9556_v8  ;;  %9841 = vmatpush1.msra.mxu0 %v9774_v32 }
 0x9c0   : > { %15602 = vmatmul.mubr.msk.f32.gmra.mxu0 %vm601_vm0, %v9557_v42  ;;  %15666 = vmatprep.subr.mxu0 %v20584_v43 }
 0x9c1   : > { %9874 = vmatprep.mubr.f32.mxu0 %v20584_v43 }
 0x9c4   : > { %14591 = vmatmul.mubr.msk.f32.vlgmr.msra.gmra.mxu0 %vm601_vm0, %v19249_v5 }
 0x9c5   : > { %9880 = vmatprep.mubr.f32.mxu0 %v20584_v43 }
 0x9c8   : > { %14592 = vmatmul.mubr.msk.f32.gmra.mxu0 %vm601_vm0, %v19255_v17 }
 0x9c9   : > { %9886 = vmatprep.mubr.f32.mxu0 %v20584_v43 }
 0x9cc   : > { %14593 = vmatmul.mubr.msk.f32.gmra.mxu0 %vm601_vm0, %v19261_v59 }
 0x9cd   : > { %9892 = vmatprep.mubr.f32.mxu0 %v20584_v43 }
 0x9d0   : > { %14594 = vmatmul.mubr.msk.f32.gmra.mxu0 %vm601_vm0, %v19267_v13 }
 0x9d1   : > { %9898 = vmatprep.mubr.f32.mxu0 %v20584_v43 }
 0x9d4   : > { %14595 = vmatmul.mubr.msk.f32.gmra.mxu0 %vm601_vm0, %v19273_v53 }
 0x9d5   : > { %9904 = vmatprep.mubr.f32.mxu0 %v20584_v43 }
 0x9d8   : > { %14596 = vmatmul.mubr.msk.f32.gmra.mxu0 %vm601_vm0, %v19279_v28 }
 0x9d9   : > { %9910 = vmatprep.mubr.f32.mxu0 %v20584_v43 }
 0x9dc   : > { %14597 = vmatmul.mubr.msk.f32.gmra.mxu0 %vm601_vm0, %v19285_v29 }
 0x9dd   : > { %9916 = vmatprep.mubr.f32.mxu0 %v20584_v43 }
 0x9e0   : > { %14598 = vmatmul.mubr.msk.f32.gmra.mxu0 %vm601_vm0, %v19291_v36 }
 0x9e1   : > { %15670 = vmatprep.mubr.msk.f32.mxu0 %vm16721_vm2, %v20584_v43 }
 0xa78   : > { %v15600_v22 = vpop.f32.mrf.mxu0 }
 0xa79   : > { %v9656_v38 = vadd.f32 %v15600_v22, %v14581_v12 }
 0xa7a   : > { %v9650_v37 = vpop.f32.mrf.mxu0 }
 0xa7b   : > { %v9651_v9 = vadd.f32 %v14581_v12, %v9650_v37  ;;  %v9670_v41 = vmax.f32 %v9656_v38, 0.0 }
 0xa7d   : > { %v9669_v46 = vmax.f32 %v9651_v9, 0.0 }
 0xa7f   : > { %15612 = vmatprep.mubr.msk.f32.mxu1 %vm601_vm0, %v9669_v46 }
 0xa80   : > { %v15603_v18 = vpop.f32.mrf.mxu0  ;;  %15613 = vmatmul.mubr.msk.f32.vlgmr.msra.gmra.mxu1 %vm601_vm0, %v9670_v41 }
 0xa81   : > { %15619 = vmatpush3.msra.mxu1 %v9785_v35  ;;  %v9666_v60 = vadd.f32 %v15603_v18, %v14581_v12  ;;  %v14611_v35 = vld [vmem:[%s20346_s11 + $0x2] ss:$0 sm:$0xff] }
 0xa82   : > { %v9660_v19 = vpop.f32.mrf.mxu0  ;;  %15620 = vmatprep.subr.mxu1 %v9782_v51 }
 0xa83   : > { %v9661_v10 = vadd.f32 %v14581_v12, %v9660_v19  ;;  %15621 = vmatpush3.msra.mxu1 %v9782_v51  ;;  %v9672_v25 = vmax.f32 %v9666_v60, 0.0 }
 0xa84   : > { %v19326_v50 = vpop.f32.mrf.mxu0  ;;  %15622 = vmatprep.subr.mxu1 %v9779_v31 }
 0xa85   : > { %v9671_v56 = vmax.f32 %v9661_v10, 0.0  ;;  %11303 = vrot.lane.b32.xlu1 %v19326_v50, %s16714_s28  ;;  %15623 = vmatpush3.msra.mxu1 %v9779_v31 }
 0xa86   : > { %v19330_v48 = vpop.f32.mrf.mxu0  ;;  %15624 = vmatprep.subr.mxu1 %v9776_v6 }
 0xa87   : > { %15615 = vmatprep.mubr.msk.f32.mxu1 %vm601_vm0, %v9671_v56  ;;  %15625 = vmatpush3.msra.mxu1 %v9776_v6 }
 0xa88   : > { %15616 = vmatmul.mubr.msk.f32.gmra.mxu1 %vm601_vm0, %v9672_v25  ;;  %v19334_v33 = vpop.f32.mrf.mxu0  ;;  %15638 = vmatprep.subr.mxu1 %v10031_v61 }
 0xa89   : > { %11305 = vrot.lane.b32.xlu0 %v19334_v33, %s16714_s28  ;;  %15626 = vmatprep.mubr.msk.f32.mxu1 %vm601_vm0, %v19249_v5 }
 0xa8a   : > { %v19340_v11 = vpop.f32.mrf.mxu0 }
 0xa8c   : > { %v19342_v23 = vpop.f32.mrf.mxu0  ;;  %15627 = vmatmul.mubr.msk.f32.vlgmr.msra.gmra.mxu1 %vm601_vm0, %v19255_v17 }
 0xa8d   : > { %11384 = vrot.lane.b32.xlu0 %v19342_v23, %s16714_s28  ;;  %15629 = vmatprep.mubr.msk.f32.mxu1 %vm601_vm0, %v19261_v59 }
 0xa8e   : > { %v19350_v4 = vpop.f32.mrf.mxu0  ;;  %15639 = vmatpush3.msra.mxu1 %v10031_v61 }
 0xa8f   : > { %15640 = vmatprep.subr.mxu1 %v10030_v21 }
 0xa90   : > { %v19352_v52 = vpop.f32.mrf.mxu0  ;;  %15630 = vmatmul.mubr.msk.f32.gmra.mxu1 %vm601_vm0, %v19267_v13 }
 0xa91   : > { %11386 = vrot.lane.b32.xlu1 %v19352_v52, %s16714_s28  ;;  %15632 = vmatprep.mubr.msk.f32.mxu1 %vm601_vm0, %v19273_v53 }
 0xa92   : > { %v19360_v20 = vpop.f32.mrf.mxu0  ;;  %15641 = vmatpush3.msra.mxu1 %v10030_v21 }
 0xa93   : > { %15642 = vmatprep.subr.mxu1 %v10029_v7 }
 0xa94   : > { %v19362_v0 = vpop.f32.mrf.mxu0  ;;  %15633 = vmatmul.mubr.msk.f32.gmra.mxu1 %vm601_vm0, %v19279_v28 }
 0xa95   : > { %15635 = vmatprep.mubr.msk.f32.mxu1 %vm601_vm0, %v19285_v29  ;;  %15643 = vmatpush3.msra.mxu1 %v10029_v7 }
 0xa96   : > { %v19368_v1 = vpop.f32.mrf.mxu0  ;;  %15644 = vmatprep.subr.mxu1 %v10028_v45 }
 0xa97   : > { %15645 = vmatpush3.msra.mxu1 %v10028_v45 }
 0xa98   : > { %v19370_v49 = vpop.f32.mrf.mxu0  ;;  %15636 = vmatmul.mubr.msk.f32.gmra.mxu1 %vm601_vm0, %v19291_v36  ;;  %15652 = vmatprep.subr.mxu1 %v20584_v43 }
 0xa99   : > { %11467 = vrot.lane.b32.xlu1 %v19370_v49, %s16714_s28 }
 0xa9a   : > { %v19382_v14 = vpop.f32.mrf.mxu0 }
 0xa9c   : > { %v19387_v40 = vpop.f32.mrf.mxu0 }
 0xa9d   : > { %11546 = vrot.lane.b32.xlu1 %v19387_v40, %s16714_s28 }
 0xa9e   : > { %v19391_v30 = vpop.f32.mrf.mxu0 }
 0xaa0   : > { %v19393_v15 = vpop.f32.mrf.mxu0 }
 0xaa1   : > { %11548 = vrot.lane.b32.xlu0 %v19393_v15, %s16714_s28 }
 0xaa5   : > { %11465 = vrot.lane.b32.xlu0 %v19362_v0, %s16714_s28 }
 0xaf7   : > { %v11304_v58 = vpop.permute.xlu1 %11303 }
 0xafb   : > { %v11306_v63 = vpop.permute.xlu0 %11305 }
 0xaff   : > { %v19406_v54 = vpop.permute.xlu0 %11384 }
 0xb03   : > { %v19403_v16 = vpop.permute.xlu1 %11386 }
 0xb0b   : > { %v11468_v2 = vpop.permute.xlu1 %11467 }
 0xb0c   : > { %15667 = vmatpush3.msra.mxu0 %v11468_v2 }
 0xb0d   : > { %15668 = vmatprep.subr.mxu0 %v20584_v43 }
 0xb0f   : > { %v19437_v45 = vpop.permute.xlu1 %11546 }
 0xb13   : > { %v19408_v3 = vpop.permute.xlu0 %11548 }
 0xb17   : > { %v11466_v55 = vpop.permute.xlu0 %11465 }
 0xb18   : > { %15669 = vmatpush3.msra.mxu0 %v11466_v55 }
 0xb19   : > { %15680 = vmatprep.subr.mxu0 %v20584_v43 }
 0xb40   : > { %v15614_v34 = vpop.f32.mrf.mxu1 }
 0xb41   : > { %v19416_v42 = vadd.f32 %v15614_v34, %v14586_v57 }
 0xb42   : > { %v9755_v32 = vpop.f32.mrf.mxu1 }
 0xb43   : > { %v19414_v8 = vadd.f32 %v14586_v57, %v9755_v32  ;;  %20629 = vst [vmem:[#allocation55_spill] sm:$0xff] %v19416_v42 }
 0xb45   : > { %20628 = vst [vmem:[#allocation6_spill] sm:$0xff] %v19414_v8  ;;  %15646 = vmatprep.mubr.msk.f32.mxu1 %vm601_vm0, %v19414_v8 }
 0xb46   : > { %15647 = vmatmul.mubr.msk.f32.vlgmr.msra.gmra.mxu1 %vm601_vm0, %v19416_v42 }
 0xb47   : > { %15653 = vmatpush3.msra.mxu1 %v11306_v63 }
 0xb48   : > { %15654 = vmatprep.subr.mxu1 %v20584_v43  ;;  %v15617_v26 = vpop.f32.mrf.mxu1 }
 0xb49   : > { %15655 = vmatpush3.msra.mxu1 %v11304_v58  ;;  %v19426_v44 = vadd.f32 %v15617_v26, %v14586_v57 }
 0xb4a   : > { %v9765_v39 = vpop.f32.mrf.mxu1  ;;  %15659 = vmatprep.subr.mxu1 %v20584_v43 }
 0xb4b   : > { %v19424_v24 = vadd.f32 %v14586_v57, %v9765_v39  ;;  %20631 = vst [vmem:[#allocation4_spill] sm:$0xff] %v19426_v44  ;;  %v20632_v57 = vld [vmem:[#allocation18_spill] sm:$0xff] }
 0xb4c   : > { %v15628_v47 = vpop.f32.mrf.mxu1 }
 0xb4d   : > { %20630 = vst [vmem:[#allocation5_spill] sm:$0xff] %v19424_v24  ;;  %15649 = vmatprep.mubr.msk.f32.mxu1 %vm601_vm0, %v19424_v24  ;;  %v10134_v9 = vadd.f32 %v15628_v47, %v14611_v35 }
 0xb4e   : > { %v9989_v12 = vpop.f32.mrf.mxu1  ;;  %15650 = vmatmul.mubr.msk.f32.gmra.mxu1 %vm601_vm0, %v19426_v44 }
 0xb4f   : > { %v10133_v22 = vadd.f32 %v14611_v35, %v9989_v12  ;;  %15656 = vmatprep.mubr.msk.f32.mxu1 %vm16721_vm2, %v20584_v43 }
 0xb50   : > { %v15631_v38 = vpop.f32.mrf.mxu1 }
 0xb51   : > { %10141 = vxpose.xlu1.b32.start [1/2] (short) (narrow) %v10133_v22, 8  ;;  %v10136_v18 = vadd.f32 %v15631_v38, %v14611_v35 }
 0xb52   : > { %v9999_v37 = vpop.f32.mrf.mxu1 }
 0xb53   : > { %v10135_v46 = vadd.f32 %v14611_v35, %v9999_v37  ;;  %v20634_v37 = vld [vmem:[#allocation20_spill] sm:$0xff] }
 0xb54   : > { %v15634_v41 = vpop.f32.mrf.mxu1 }
 0xb55   : > { %10142 = vxpose.xlu1.b32.end [2/2] (short) (narrow) %v10134_v9, 8  ;;  %10173 = vxpose.xlu0.b32.start [1/2] (short) (narrow) %v10135_v46, 8  ;;  %v10138_v19 = vadd.f32 %v15634_v41, %v14611_v35  ;;  %v20635_v41 = vld [vmem:[#allocation21_spill] sm:$0xff] }
 0xb56   : > { %v10009_v51 = vpop.f32.mrf.mxu1 }
 0xb57   : > { %v10137_v31 = vadd.f32 %v14611_v35, %v10009_v51 }
 0xb58   : > { %v15637_v60 = vpop.f32.mrf.mxu1 }
 0xb59   : > { %10174 = vxpose.xlu0.b32.end [2/2] (short) (narrow) %v10136_v18, 8  ;;  %10205 = vxpose.xlu1.b32.start [1/2] (short) (narrow) %v10137_v31, 8  ;;  %v10140_v56 = vadd.f32 %v15637_v60, %v14611_v35  ;;  %v20636_v18 = vld [vmem:[#allocation22_spill] sm:$0xff] }
 0xb5a   : > { %v10019_v10 = vpop.f32.mrf.mxu1 }
 0xb5b   : > { %v10139_v6 = vadd.f32 %v14611_v35, %v10019_v10  ;;  %v20633_v35 = vld [vmem:[#allocation19_spill] sm:$0xff] }
 0xb5d   : > { %10206 = vxpose.xlu1.b32.end [2/2] (short) (narrow) %v10138_v19, 8 }
 0xb61   : > { %10237 = vxpose.xlu1.b32.start [1/2] (short) (narrow) %v10139_v6, 8  ;;  %v20637_v6 = vld [vmem:[#allocation24_spill] sm:$0xff] }
 0xb65   : > { %10238 = vxpose.xlu1.b32.end [2/2] (short) (narrow) %v10140_v56, 8 }
 0xbcd   : > { %v19439_v58 = vpop.trf.xlu1 }
 0xbd1   : > { %v19443_v2 = vpop.trf.xlu0 }
 0xbd5   : > { %v19441_v63 = vpop.trf.xlu1 }
 0xbdd   : > { %v19445_v55 = vpop.trf.xlu1 }
 0xc06   : > { %v15648_v25 = vpop.f32.mrf.mxu1 }
 0xc07   : > { %10301 = vxpose.xlu0.b32.start.end [1/1] (short) (narrow) %v15648_v25, 8 }
 0xc08   : > { %v10110_v61 = vpop.f32.mrf.mxu1 }
 0xc09   : > { %10269 = vxpose.xlu1.b32.start.end [1/1] (short) (narrow) %v10110_v61, 8  ;;  %v20638_v61 = vld [vmem:[#allocation23_spill] sm:$0xff] }
 0xc0e   : > { %v15651_v21 = vpop.f32.mrf.mxu1 }
 0xc0f   : > { %10365 = vxpose.xlu0.b32.start.end [1/1] (short) (narrow) %v15651_v21, 8 }
 0xc10   : > { %v10120_v7 = vpop.f32.mrf.mxu1 }
 0xc13   : > { %10333 = vxpose.xlu0.b32.start.end [1/1] (short) (narrow) %v10120_v7, 8 }
 0xc83   : > { %v10317_v34 = vpop.trf.xlu0 }
 0xc84   : > { %v10463_v32 = vrot.slane %v10317_v34, %v20632_v57  ;;  %v10456_v26 = vrot.slane %v10317_v34, %v17062_v27  ;;  %v10470_v12 = vrot.slane %v10317_v34, %v20633_v35  ;;  %v10477_v9 = vrot.slane %v10317_v34, %v20634_v37 }
 0xc85   : > { %v10285_v39 = vpop.trf.xlu1  ;;  %v10484_v51 = vrot.slane %v10317_v34, %v20635_v41  ;;  %v10491_v19 = vrot.slane %v10317_v34, %v20636_v18  ;;  %v10498_v56 = vrot.slane %v10317_v34, %v20637_v6  ;;  %v10505_v21 = vrot.slane %v10317_v34, %v20638_v61 }
 0xc86   : > { %10465 = vbcast.lane.b32.xlu1 %v10463_v32, 256  ;;  %10458 = vbcast.lane.b32.xlu0 %v10456_v26, 256  ;;  %v10400_v47 = vrot.slane %v10285_v39, %v17062_v27  ;;  %v10407_v7 = vrot.slane %v10285_v39, %v20632_v57  ;;  %v10414_v32 = vrot.slane %v10285_v39, %v20633_v35 }
 0xc87   : > { %v10421_v26 = vrot.slane %v10285_v39, %v20634_v37  ;;  %v10435_v34 = vrot.slane %v10285_v39, %v20636_v18 }
 0xc8a   : > { %10402 = vbcast.lane.b32.xlu1 %v10400_v47, 256  ;;  %10472 = vbcast.lane.b32.xlu0 %v10470_v12, 256  ;;  %v10428_v47 = vrot.slane %v10285_v39, %v20635_v41  ;;  %v10449_v12 = vrot.slane %v10285_v39, %v20638_v61 }
 0xc8b   : > { %v10381_v22 = vpop.trf.xlu0 }
 0xc8c   : > { %v10575_v38 = vrot.slane %v10381_v22, %v20632_v57  ;;  %v10582_v46 = vrot.slane %v10381_v22, %v20633_v35  ;;  %v10603_v31 = vrot.slane %v10381_v22, %v20636_v18 }
 0xc8e   : > { %10577 = vbcast.lane.b32.xlu1 %v10575_v38, 256  ;;  %10479 = vbcast.lane.b32.xlu0 %v10477_v9, 256  ;;  %v10568_v38 = vrot.slane %v10381_v22, %v17062_v27  ;;  %v10589_v9 = vrot.slane %v10381_v22, %v20634_v37 }
 0xc8f   : > { %v10349_v60 = vpop.trf.xlu0 }
 0xc90   : > { %v10519_v10 = vrot.slane %v10349_v60, %v20632_v57  ;;  %v10512_v25 = vrot.slane %v10349_v60, %v17062_v27  ;;  %v10442_v57 = vrot.slane %v10285_v39, %v20637_v6  ;;  %v10533_v39 = vrot.slane %v10349_v60, %v20634_v37 }
 0xc91   : > { %v19489_v37 = vrot.slane %v19439_v58, %v20592_v62 }
 0xc92   : > { %10584 = vbcast.lane.b32.xlu1 %v10582_v46, 256  ;;  %10486 = vbcast.lane.b32.xlu0 %v10484_v51, 256  ;;  %v10596_v46 = vrot.slane %v10381_v22, %v20635_v41  ;;  %v10610_v51 = vrot.slane %v10381_v22, %v20637_v6 }
 0xc96   : > { %10605 = vbcast.lane.b32.xlu1 %v10603_v31, 256  ;;  %10493 = vbcast.lane.b32.xlu0 %v10491_v19, 256  ;;  %v10617_v31 = vrot.slane %v10381_v22, %v20638_v61  ;;  %v10526_v19 = vrot.slane %v10349_v60, %v20633_v35  ;;  %v10681_v35 = vrot.slane %v19443_v2, %v20592_v62 }
 0xc98   : > { %v10689_v22 = vcombine.high %v10681_v35, %v10681_v35 }
 0xc9a   : > { %10500 = vbcast.lane.b32.xlu0 %v10498_v56, 256  ;;  %10521 = vbcast.lane.b32.xlu1 %v10519_v10, 256  ;;  %v10540_v10 = vrot.slane %v10349_v60, %v20635_v41  ;;  %v10547_v56 = vrot.slane %v10349_v60, %v20636_v18  ;;  %v10697_v41 = vrot.slane %v10681_v35, %v20592_v62 }
 0xc9b   : > { %v10711_v18 = vrot.slane %v10689_v22, %v20592_v62 }
 0xc9e   : > { %10507 = vbcast.lane.b32.xlu0 %v10505_v21, 256  ;;  %10514 = vbcast.lane.b32.xlu1 %v10512_v25, 256  ;;  %v10554_v25 = vrot.slane %v10349_v60, %v20637_v6  ;;  %v10561_v21 = vrot.slane %v10349_v60, %v20638_v61  ;;  %v10674_v6 = vcombine.high %v19443_v2, %v19443_v2 }
 0xc9f   : > { %v10772_v60 = vcombine.high %v19445_v55, %v19445_v55  ;;  %v19499_v61 = vrot.slane %v19489_v37, %v20592_v62 }
 0xca1   : > { %v19505_v2 = vrot.slane %v10772_v60, %v20592_v62 }
 0xca2   : > { %10409 = vbcast.lane.b32.xlu0 %v10407_v7, 256  ;;  %11998 = vrot.lane.b32.xlu1 %v19352_v52, %s16717_s20  ;;  %v10860_v7 = vrot.slane %v10711_v18, %v17062_v27 }
 0xca3   : > { %v10788_v35 = vcombine.high %v19505_v2, %v19505_v2 }
 0xca5   : > { %v19519_v60 = vrot.slane %v10788_v35, %v20592_v62 }
 0xca6   : > { %10416 = vbcast.lane.b32.xlu0 %v10414_v32, 256  ;;  %11917 = vrot.lane.b32.xlu1 %v19326_v50, %s16717_s20  ;;  %v10856_v32 = vrot.slane %v10697_v41, %v17062_v27 }
 0xcaa   : > { %10423 = vbcast.lane.b32.xlu0 %v10421_v26, 256  ;;  %v10719_v26 = vcombine.high %v10697_v41, %v10697_v41 }
 0xcae   : > { %10430 = vbcast.lane.b32.xlu0 %v10428_v47, 256 }
 0xcb2   : > { %10437 = vbcast.lane.b32.xlu0 %v10435_v34, 256 }
 0xcb6   : > { %10444 = vbcast.lane.b32.xlu0 %v10442_v57, 256 }
 0xcba   : > { %10451 = vbcast.lane.b32.xlu0 %v10449_v12, 256 }
 0xcbe   : > { %10570 = vbcast.lane.b32.xlu0 %v10568_v38, 256  ;;  %v10688_v38 = vrot.slane %v10674_v6, %v20592_v62 }
 0xcc2   : > { %10591 = vbcast.lane.b32.xlu0 %v10589_v9, 256  ;;  %v10824_v9 = vrot.slane %v19499_v61, %v17062_v27 }
 0xcc6   : > { %10598 = vbcast.lane.b32.xlu0 %v10596_v46, 256  ;;  %v10864_v46 = vrot.slane %v10719_v26, %v17062_v27 }
 0xcca   : > { %10612 = vbcast.lane.b32.xlu0 %v10610_v51, 256  ;;  %v10721_v51 = vcombine.high %v10711_v18, %v10711_v18 }
 0xcce   : > { %10619 = vbcast.lane.b32.xlu0 %v10617_v31, 256 }
 0xcd2   : > { %10528 = vbcast.lane.b32.xlu0 %v10526_v19, 256 }
 0xcd6   : > { %10535 = vbcast.lane.b32.xlu0 %v10533_v39, 256 }
 0xcda   : > { %10542 = vbcast.lane.b32.xlu0 %v10540_v10, 256 }
 0xcde   : > { %10549 = vbcast.lane.b32.xlu0 %v10547_v56, 256  ;;  %v10690_v56 = vcombine.high %v10688_v38, %v10688_v38 }
 0xce2   : > { %10556 = vbcast.lane.b32.xlu0 %v10554_v25, 256  ;;  %v10868_v25 = vrot.slane %v10721_v51, %v17062_v27 }
 0xce6   : > { %10563 = vbcast.lane.b32.xlu0 %v10561_v21, 256  ;;  %v19512_v21 = vrot.slane %v10688_v38, %v20592_v62 }
 0xce8   : > { %v10872_v18 = vrot.slane %v19512_v21, %v17062_v27 }
 0xcea   : > { %11919 = vrot.lane.b32.xlu0 %v19334_v33, %s16717_s20 }
 0xcf8   : > { %v10466_v47 = vpop.permute.xlu1 %10465  ;;  %v10459_v34 = vpop.permute.xlu0 %10458 }
 0xcf9   : > { %v10990_v57 = vadd.f32 %v10860_v7, %v10466_v47  ;;  %v10989_v12 = vadd.f32 %v10856_v32, %v10459_v34  ;;  %v19522_v7 = vrot.slane %v10690_v56, %v20592_v62  ;;  %v19528_v34 = vrot.slane %v19445_v55, %v20592_v62 }
 0xcfa   : > { %v10640_v56 = vcombine.high %v19489_v37, %v19489_v37 }
 0xcfb   : > { %16509 = vtanh.f32 %v10990_v57  ;;  %v10940_v57 = vrot.slane %v19519_v60, %v17062_v27 }
 0xcfc   : > { %16511 = vtanh.f32 %v10989_v12  ;;  %v10403_v31 = vpop.permute.xlu1 %10402  ;;  %v10473_v19 = vpop.permute.xlu0 %10472  ;;  %v10876_v12 = vrot.slane %v19522_v7, %v17062_v27 }
 0xcfd   : > { %v10981_v39 = vadd.f32 %v10824_v9, %v10403_v31  ;;  %v10991_v10 = vadd.f32 %v10864_v46, %v10473_v19  ;;  %v19537_v31 = vld [vmem:[%s20337_s2] ss:$0 sm:$0xff] }
 0xcff   : > { %16513 = vtanh.f32 %v10981_v39 }
 0xd00   : > { %16515 = vtanh.f32 %v10991_v10  ;;  %v10578_v22 = vpop.permute.xlu1 %10577  ;;  %v10480_v41 = vpop.permute.xlu0 %10479 }
 0xd01   : > { %v10992_v6 = vadd.f32 %v10868_v25, %v10480_v41  ;;  %v10787_v25 = vcombine.high %v19528_v34, %v19528_v34 }
 0xd03   : > { %16517 = vtanh.f32 %v10992_v6 }
 0xd04   : > { %v19524_v32 = vpop.permute.xlu1 %10584  ;;  %v10487_v26 = vpop.permute.xlu0 %10486 }
 0xd05   : > { %v10993_v47 = vadd.f32 %v10872_v18, %v10487_v26 }
 0xd07   : > { %16519 = vtanh.f32 %v10993_v47 }
 0xd08   : > { %v16510_v38 = vpop.eup %16509  ;;  %v10606_v9 = vpop.permute.xlu1 %10605 }
 0xd09   : > { %v10494_v46 = vpop.permute.xlu0 %10493  ;;  %v16512_v51 = vpop.eup %16511  ;;  %v11054_v19 = vadd.f32 %v19537_v31, %v16510_v38  ;;  %v19540_v55 = vadd.f32 %v10940_v57, %v10606_v9  ;;  %v19551_v57 = vrot.slane %v10787_v25, %v20592_v62 }
 0xd0a   : > { %v10994_v39 = vadd.f32 %v10876_v12, %v10494_v46  ;;  %v11053_v10 = vadd.f32 %v19537_v31, %v16512_v51  ;;  %v10662_v12 = vrot.slane %v10640_v56, %v20592_v62  ;;  %v10625_v51 = vcombine.high %v19439_v58, %v19439_v58 }
 0xd0b   : > { %v11095_v35 = vmul.f32 1.442695, %v11054_v19  ;;  %v10670_v56 = vcombine.high %v19499_v61, %v19499_v61 }
 0xd0c   : > { %v16514_v41 = vpop.eup %16513  ;;  %16521 = vtanh.f32 %v10994_v39  ;;  %v11093_v18 = vmul.f32 1.442695, %v11053_v10  ;;  %v10924_v39 = vrot.slane %v19551_v57, %v17062_v27  ;;  %v10828_v10 = vrot.slane %v10662_v12, %v17062_v27 }
 0xd0d   : > { %v19547_v6 = vpop.permute.xlu0 %10500  ;;  %v16516_v26 = vpop.eup %16515  ;;  %16523 = vpow2.f32 %v11095_v35  ;;  %v11045_v37 = vadd.f32 %v19537_v31, %v16514_v41  ;;  %v10639_v44 = vrot.slane %v10625_v51, %v20592_v62 }
 0xd0e   : > { %v11055_v47 = vadd.f32 %v19537_v31, %v16516_v26  ;;  %16525 = vpow2.f32 %v11093_v18  ;;  %v11006_v26 = vadd.f32 %v10924_v39, %v10578_v22 }
 0xd0f   : > { %v11077_v41 = vmul.f32 1.442695, %v11045_v37  ;;  %v10641_v37 = vcombine.high %v10639_v44, %v10639_v44 }
 0xd10   : > { %v11097_v9 = vmul.f32 1.442695, %v11055_v47  ;;  %v16518_v46 = vpop.eup %16517 }
 0xd11   : > { %v19555_v38 = vpop.permute.xlu0 %10507  ;;  %v11056_v19 = vadd.f32 %v19537_v31, %v16518_v46  ;;  %v10672_v46 = vcombine.high %v10662_v12, %v10662_v12 }
 0xd12   : > { %16527 = vpow2.f32 %v11097_v9  ;;  %v10832_v9 = vrot.slane %v10670_v56, %v17062_v27 }
 0xd13   : > { %v11099_v35 = vmul.f32 1.442695, %v11056_v19  ;;  %v10836_v12 = vrot.slane %v10672_v46, %v17062_v27 }
 0xd14   : > { %v16520_v18 = vpop.eup %16519 }
 0xd15   : > { %v10410_v25 = vpop.permute.xlu0 %10409  ;;  %v11057_v58 = vadd.f32 %v19537_v31, %v16520_v18  ;;  %16529 = vpow2.f32 %v11099_v35 }
 0xd16   : > { %v10982_v47 = vadd.f32 %v10828_v10, %v10410_v25  ;;  %v19577_v10 = vrot.slane %v10639_v44, %v20592_v62  ;;  %v10795_v44 = vrot.slane %v19528_v34, %v20592_v62 }
 0xd17   : > { %v11101_v24 = vmul.f32 1.442695, %v11057_v58 }
 0xd18   : > { %16531 = vtanh.f32 %v10982_v47  ;;  %v10840_v35 = vrot.slane %v19577_v10, %v17062_v27 }
 0xd19   : > { %v10417_v42 = vpop.permute.xlu0 %10416  ;;  %16533 = vpow2.f32 %v11077_v41  ;;  %v16522_v8 = vpop.eup %16521  ;;  %v19586_v41 = vrot.slane %v10641_v37, %v20592_v62  ;;  %v10817_v37 = vcombine.high %v10795_v44, %v10795_v44 }
 0xd1a   : > { %16535 = vtanh.f32 %v11006_v26  ;;  %v10983_v61 = vadd.f32 %v10832_v9, %v10417_v42  ;;  %v19568_v19 = vpop.eup %16523  ;;  %v11058_v22 = vadd.f32 %v19537_v31, %v16522_v8 }
 0xd1b   : > { %16537 = vpow2.f32 %v11101_v24  ;;  %v19571_v51 = vpop.eup %16525  ;;  %v11168_v39 = vsel %vm2406_vm1, %v19568_v19, 0.0  ;;  %v10844_v9 = vrot.slane %v19586_v41, %v17062_v27 }
 0xd1c   : > { %16539 = vtanh.f32 %v10983_v61  ;;  %11169 = vadd.xlane.f32.xlu0 %v11168_v39  ;;  %v11165_v42 = vsel %vm2406_vm1, %v19571_v51, 0.0  ;;  %v11103_v25 = vmul.f32 1.442695, %v11058_v22  ;;  %v10730_v61 = vrot.slane %v19441_v63, %v20592_v62 }
 0xd1d   : > { %v10424_v56 = vpop.permute.xlu0 %10423  ;;  %11166 = vadd.xlane.f32.xlu1 %v11165_v42 }
 0xd1e   : > { %v10984_v8 = vadd.f32 %v10836_v12, %v10424_v56  ;;  %16541 = vpow2.f32 %v11103_v25 }
 0xd1f   : > { %v19581_v24 = vpop.eup %16527 }
 0xd20   : > { %16543 = vtanh.f32 %v10984_v8  ;;  %v11171_v18 = vsel %vm2406_vm1, %v19581_v24, 0.0 }
 0xd21   : > { %v10431_v26 = vpop.permute.xlu0 %10430  ;;  %11172 = vadd.xlane.f32.xlu1 %v11171_v18  ;;  %v10738_v18 = vcombine.high %v10730_v61, %v10730_v61 }
 0xd22   : > { %v10985_v47 = vadd.f32 %v10840_v35, %v10431_v26  ;;  %v19592_v58 = vpop.eup %16529  ;;  %v10928_v26 = vrot.slane %v10817_v37, %v17062_v27 }
 0xd23   : > { %v11174_v34 = vsel %vm2406_vm1, %v19592_v58, 0.0 }
 0xd24   : > { %16545 = vtanh.f32 %v10985_v47  ;;  %11175 = vadd.xlane.f32.xlu0 %v11174_v34  ;;  %v11007_v34 = vadd.f32 %v10928_v26, %v19524_v32  ;;  %v10920_v32 = vrot.slane %v10795_v44, %v17062_v27 }
 0xd25   : > { %v16532_v46 = vpop.eup %16531  ;;  %v10438_v22 = vpop.permute.xlu0 %10437 }
 0xd26   : > { %v19600_v39 = vpop.eup %16533  ;;  %v11046_v12 = vadd.f32 %v19537_v31, %v16532_v46  ;;  %v10986_v42 = vadd.f32 %v10844_v9, %v10438_v22 }
 0xd27   : > { %v16536_v56 = vpop.eup %16535  ;;  %v11141_v47 = vsel %vm2406_vm1, %v19600_v39, 0.0 }
 0xd28   : > { %v19603_v25 = vpop.eup %16537  ;;  %16547 = vtanh.f32 %v10986_v42  ;;  %v11079_v8 = vmul.f32 1.442695, %v11046_v12  ;;  %11142 = vadd.xlane.f32.xlu0 %v11141_v47  ;;  %v11070_v9 = vadd.f32 %v19537_v31, %v16536_v56  ;;  %v19618_v42 = vrot.slane %v10738_v18, %v20592_v62 }
 0xd29   : > { %20639 = vst [vmem:[#allocation9_spill] sm:$0xff] %v19603_v25  ;;  %v16540_v35 = vpop.eup %16539  ;;  %v11177_v29 = vsel %vm2406_vm1, %v19603_v25, 0.0  ;;  %v19610_v36 = vpop.permute.xlu0 %10444 }
 0xd2a   : > { %v11047_v46 = vadd.f32 %v19537_v31, %v16540_v35  ;;  %11178 = vadd.xlane.f32.xlu1 %v11177_v29  ;;  %16549 = vpow2.f32 %v11079_v8  ;;  %v10522_v35 = vpop.permute.xlu1 %10521  ;;  %v11127_v56 = vmul.f32 1.442695, %v11070_v9  ;;  %v10819_v8 = vcombine.high %v19551_v57, %v19551_v57 }
 0xd2b   : > { %v19615_v22 = vpop.eup %16541  ;;  %v10892_v47 = vrot.slane %v19618_v42, %v17062_v27  ;;  %v19635_v57 = vrot.slane %v19505_v2, %v20592_v62 }
 0xd2c   : > { %20640 = vst [vmem:[#allocation8_spill] sm:$0xff] %v19615_v22  ;;  %v11081_v37 = vmul.f32 1.442695, %v11047_v46  ;;  %v11180_v53 = vsel %vm2406_vm1, %v19615_v22, 0.0  ;;  %v10746_v46 = vrot.slane %v10730_v61, %v20592_v62  ;;  %v10932_v44 = vrot.slane %v10819_v8, %v17062_v27 }
 0xd2d   : > { %v16544_v12 = vpop.eup %16543  ;;  %v19622_v28 = vpop.permute.xlu0 %10451  ;;  %v10936_v2 = vrot.slane %v19635_v57, %v17062_v27 }
 0xd2e   : > { %v11048_v29 = vadd.f32 %v19537_v31, %v16544_v12  ;;  %11181 = vadd.xlane.f32.xlu1 %v11180_v53  ;;  %16551 = vpow2.f32 %v11081_v37  ;;  %v10998_v53 = vadd.f32 %v10892_v47, %v10522_v35  ;;  %v10515_v9 = vpop.permute.xlu1 %10514 }
 0xd2f   : > { %16553 = vtanh.f32 %v11007_v34 }
 0xd30   : > { %v11083_v26 = vmul.f32 1.442695, %v11048_v29  ;;  %v10888_v29 = vrot.slane %v10746_v46, %v17062_v27 }
 0xd31   : > { %v16546_v18 = vpop.eup %16545  ;;  %v10571_v59 = vpop.permute.xlu0 %10570 }
 0xd32   : > { %v11049_v13 = vadd.f32 %v19537_v31, %v16546_v18  ;;  %v11005_v12 = vadd.f32 %v10920_v32, %v10571_v59  ;;  %16555 = vpow2.f32 %v11083_v26  ;;  %v10997_v35 = vadd.f32 %v10888_v29, %v10515_v9 }
 0xd33   : > { %16557 = vpow2.f32 %v11127_v56 }
 0xd34   : > { %16559 = vtanh.f32 %v11005_v12  ;;  %v11085_v34 = vmul.f32 1.442695, %v11049_v13 }
 0xd35   : > { %v16548_v37 = vpop.eup %16547  ;;  %v10592_v61 = vpop.permute.xlu0 %10591 }
 0xd36   : > { %v11050_v17 = vadd.f32 %v19537_v31, %v16548_v37  ;;  %v11008_v18 = vadd.f32 %v10932_v44, %v10592_v61  ;;  %16561 = vpow2.f32 %v11085_v34  ;;  %v10768_v34 = vcombine.high %v10746_v46, %v10746_v46 }
 0xd37   : > { %v19639_v59 = vpop.eup %16549  ;;  %16563 = vtanh.f32 %v10998_v53 }
 0xd38   : > { %16565 = vtanh.f32 %v11008_v18  ;;  %v11144_v56 = vsel %vm2406_vm1, %v19639_v59, 0.0  ;;  %v11087_v13 = vmul.f32 1.442695, %v11050_v17  ;;  %v10723_v17 = vcombine.high %v19441_v63, %v19441_v63 }
 0xd39   : > { %11145 = vadd.xlane.f32.xlu1 %v11144_v56  ;;  %v10599_v32 = vpop.permute.xlu0 %10598  ;;  %v10896_v63 = vrot.slane %v10768_v34, %v17062_v27 }
 0xd3a   : > { %v11009_v8 = vadd.f32 %v10936_v2, %v10599_v32  ;;  %16567 = vpow2.f32 %v11087_v13  ;;  %v10737_v2 = vrot.slane %v10723_v17, %v20592_v62 }
 0xd3b   : > { %v19645_v26 = vpop.eup %16551  ;;  %16569 = vtanh.f32 %v10997_v35 }
 0xd3c   : > { %v16554_v47 = vpop.eup %16553  ;;  %16571 = vtanh.f32 %v11009_v8  ;;  %v11147_v12 = vsel %vm2406_vm1, %v19645_v26, 0.0  ;;  %v19678_v22 = vrot.slane %v10737_v2, %v20592_v62  ;;  %v10739_v25 = vcombine.high %v10737_v2, %v10737_v2 }
 0xd3d   : > { %11148 = vadd.xlane.f32.xlu0 %v11147_v12  ;;  %v19649_v53 = vpop.permute.xlu0 %10612  ;;  %v11071_v44 = vadd.f32 %v19537_v31, %v16554_v47  ;;  %v10770_v47 = vcombine.high %v19618_v42, %v19618_v42 }
 0xd3e   : > { %v10904_v2 = vrot.slane %v19678_v22, %v17062_v27 }
 0xd3f   : > { %v19651_v9 = vpop.eup %16555  ;;  %v11129_v13 = vmul.f32 1.442695, %v11071_v44 }
 0xd40   : > { %v19656_v37 = vpop.eup %16557  ;;  %v11150_v29 = vsel %vm2406_vm1, %v19651_v9, 0.0 }
 0xd41   : > { %v16560_v61 = vpop.eup %16559  ;;  %11151 = vadd.xlane.f32.xlu1 %v11150_v29  ;;  %v19660_v18 = vpop.permute.xlu0 %10619  ;;  %v11216_v46 = vsel %vm2406_vm1, %v19656_v37, 0.0 }
 0xd42   : > { %v11069_v35 = vadd.f32 %v19537_v31, %v16560_v61 }
 0xd43   : > { %v19663_v56 = vpop.eup %16561 }
 0xd44   : > { %20641 = vst [vmem:[#allocation52_spill] sm:$0xff] %v19663_v56  ;;  %v16564_v32 = vpop.eup %16563  ;;  %v11153_v8 = vsel %vm2406_vm1, %v19663_v56, 0.0  ;;  %v11125_v12 = vmul.f32 1.442695, %v11069_v35  ;;  %v10900_v35 = vrot.slane %v10770_v47, %v17062_v27 }
 0xd45   : > { %v16566_v29 = vpop.eup %16565  ;;  %11217 = vadd.xlane.f32.xlu1 %v11216_v46  ;;  %11154 = vadd.xlane.f32.xlu0 %v11153_v8  ;;  %v10529_v61 = vpop.permute.xlu0 %10528  ;;  %v11062_v5 = vadd.f32 %v19537_v31, %v16564_v32 }
 0xd46   : > { %v11072_v17 = vadd.f32 %v19537_v31, %v16566_v29  ;;  %v10999_v44 = vadd.f32 %v10896_v63, %v10529_v61  ;;  %16573 = vpow2.f32 %v11125_v12 }
 0xd47   : > { %v19674_v34 = vpop.eup %16567  ;;  %16575 = vpow2.f32 %v11129_v13  ;;  %v11111_v32 = vmul.f32 1.442695, %v11062_v5  ;;  %v10767_v13 = vrot.slane %v10739_v25, %v20592_v62 }
 0xd48   : > { %20642 = vst [vmem:[#allocation53_spill] sm:$0xff] %v19674_v34  ;;  %v16570_v56 = vpop.eup %16569  ;;  %16577 = vtanh.f32 %v10999_v44  ;;  %v11156_v42 = vsel %vm2406_vm1, %v19674_v34, 0.0  ;;  %v11131_v46 = vmul.f32 1.442695, %v11072_v17 }
 0xd49   : > { %v16572_v8 = vpop.eup %16571  ;;  %11157 = vadd.xlane.f32.xlu0 %v11156_v42  ;;  %v10536_v63 = vpop.permute.xlu0 %10535  ;;  %v11061_v61 = vadd.f32 %v19537_v31, %v16570_v56  ;;  %v10908_v42 = vrot.slane %v10767_v13, %v17062_v27 }
 0xd4a   : > { %v11073_v12 = vadd.f32 %v19537_v31, %v16572_v8  ;;  %v11000_v29 = vadd.f32 %v10900_v35, %v10536_v63  ;;  %16579 = vpow2.f32 %v11131_v46  ;;  %v10771_v46 = vcombine.high %v10767_v13, %v10767_v13 }
 0xd4b   : > { %v11109_v17 = vmul.f32 1.442695, %v11061_v61 }
 0xd4c   : > { %16581 = vtanh.f32 %v11000_v29  ;;  %v11133_v44 = vmul.f32 1.442695, %v11073_v12 }
 0xd4d   : > { %v10543_v34 = vpop.permute.xlu0 %10542 }
 0xd4e   : > { %v11001_v47 = vadd.f32 %v10904_v2, %v10543_v34  ;;  %16583 = vpow2.f32 %v11133_v44  ;;  %v10916_v2 = vrot.slane %v10771_v46, %v17062_v27 }
 0xd4f   : > { %16585 = vpow2.f32 %v11111_v32 }
 0xd50   : > { %16587 = vtanh.f32 %v11001_v47 }
 0xd51   : > { %v10550_v35 = vpop.permute.xlu0 %10549  ;;  %16589 = vpow2.f32 %v11109_v17 }
 0xd52   : > { %v11002_v5 = vadd.f32 %v10908_v42, %v10550_v35 }
 0xd53   : > { %v19689_v8 = vpop.eup %16573 }
 0xd54   : > { %v19691_v56 = vpop.eup %16575  ;;  %16591 = vtanh.f32 %v11002_v5  ;;  %v11213_v25 = vsel %vm2406_vm1, %v19689_v8, 0.0 }
 0xd55   : > { %v16578_v63 = vpop.eup %16577  ;;  %11214 = vadd.xlane.f32.xlu1 %v11213_v25  ;;  %v19695_v34 = vpop.permute.xlu0 %10556  ;;  %v11219_v61 = vsel %vm2406_vm1, %v19691_v56, 0.0 }
 0xd56   : > { %v11063_v12 = vadd.f32 %v19537_v31, %v16578_v63 }
 0xd57   : > { %v19698_v29 = vpop.eup %16579 }
 0xd58   : > { %20643 = vst [vmem:[#allocation54_spill] sm:$0xff] %v19698_v29  ;;  %v11113_v32 = vmul.f32 1.442695, %v11063_v12  ;;  %v11222_v25 = vsel %vm2406_vm1, %v19698_v29, 0.0 }
 0xd59   : > { %v16582_v44 = vpop.eup %16581  ;;  %11220 = vadd.xlane.f32.xlu1 %v11219_v61  ;;  %v10564_v47 = vpop.permute.xlu0 %10563 }
 0xd5a   : > { %v11064_v17 = vadd.f32 %v19537_v31, %v16582_v44  ;;  %v19704_v13 = vadd.f32 %v10916_v2, %v10564_v47  ;;  %16593 = vpow2.f32 %v11113_v32 }
 0xd5b   : > { %v19706_v42 = vpop.eup %16583 }
 0xd5c   : > { %20644 = vst [vmem:[#allocation57_spill] sm:$0xff] %v19706_v42  ;;  %v19708_v35 = vpop.eup %16585  ;;  %v11115_v5 = vmul.f32 1.442695, %v11064_v17  ;;  %v11225_v63 = vsel %vm2406_vm1, %v19706_v42, 0.0 }
 0xd5d   : > { %v16588_v46 = vpop.eup %16587  ;;  %11223 = vadd.xlane.f32.xlu1 %v11222_v25  ;;  %11226 = vadd.xlane.f32.xlu0 %v11225_v63  ;;  %v11192_v2 = vsel %vm2406_vm1, %v19708_v35, 0.0 }
 0xd5e   : > { %v11065_v12 = vadd.f32 %v19537_v31, %v16588_v46  ;;  %16595 = vpow2.f32 %v11115_v5  ;;  %v19715_v61 = vpop.eup %16589 }
 0xd5f   : > { %v11189_v62 = vsel %vm2406_vm1, %v19715_v61, 0.0 }
 0xd60   : > { %v11117_v32 = vmul.f32 1.442695, %v11065_v12 }
 0xd61   : > { %v16592_v44 = vpop.eup %16591  ;;  %11193 = vadd.xlane.f32.xlu0 %v11192_v2 }
 0xd62   : > { %v11066_v47 = vadd.f32 %v19537_v31, %v16592_v44  ;;  %16597 = vpow2.f32 %v11117_v32  ;;  %v10671_v44 = vcombine.high %v19577_v10, %v19577_v10 }
 0xd64   : > { %v11119_v17 = vmul.f32 1.442695, %v11066_v47  ;;  %v10848_v47 = vrot.slane %v10671_v44, %v17062_v27 }
 0xd65   : > { %11190 = vadd.xlane.f32.xlu0 %v11189_v62 }
 0xd66   : > { %16599 = vpow2.f32 %v11119_v17  ;;  %v10987_v17 = vadd.f32 %v10848_v47, %v19610_v36  ;;  %v19755_v47 = vpop.permute.xlu1 %11998 }
 0xd67   : > { %v19722_v25 = vpop.eup %16593  ;;  %16601 = vtanh.f32 %v19540_v55 }
 0xd68   : > { %v11195_v5 = vsel %vm2406_vm1, %v19722_v25, 0.0  ;;  %16603 = vtanh.f32 %v10987_v17  ;;  %v10720_v17 = vcombine.high %v19512_v21, %v19512_v21  ;;  %v10769_v21 = vcombine.high %v19678_v22, %v19678_v22 }
 0xd69   : > { %11196 = vadd.xlane.f32.xlu0 %v11195_v5 }
 0xd6b   : > { %v19726_v63 = vpop.eup %16595 }
 0xd6c   : > { %v11198_v46 = vsel %vm2406_vm1, %v19726_v63, 0.0 }
 0xd6d   : > { %11199 = vadd.xlane.f32.xlu1 %v11198_v46 }
 0xd6f   : > { %v19730_v12 = vpop.eup %16597 }
 0xd70   : > { %v11201_v32 = vsel %vm2406_vm1, %v19730_v12, 0.0 }
 0xd71   : > { %11202 = vadd.xlane.f32.xlu0 %v11201_v32 }
 0xd73   : > { %v19734_v62 = vpop.eup %16599 }
 0xd74   : > { %20645 = vst [vmem:[#allocation58_spill] sm:$0xff] %v19734_v62  ;;  %v11204_v2 = vsel %vm2406_vm1, %v19734_v62, 0.0  ;;  %v16602_v5 = vpop.eup %16601 }
 0xd75   : > { %11205 = vadd.xlane.f32.xlu0 %v11204_v2  ;;  %v11074_v46 = vadd.f32 %v19537_v31, %v16602_v5  ;;  %v16604_v55 = vpop.eup %16603 }
 0xd76   : > { %v11051_v10 = vadd.f32 %v19537_v31, %v16604_v55 }
 0xd77   : > { %v11135_v32 = vmul.f32 1.442695, %v11074_v46  ;;  %v19761_v46 = vpop.permute.xlu1 %11917 }
 0xd78   : > { %v11089_v2 = vmul.f32 1.442695, %v11051_v10 }
 0xd79   : > { %16605 = vpow2.f32 %v11135_v32  ;;  %v10880_v32 = vrot.slane %v10720_v17, %v17062_v27  ;;  %v10912_v17 = vrot.slane %v10769_v21, %v17062_v27 }
 0xd7a   : > { %16607 = vpow2.f32 %v11089_v2 }
 0xd7b   : > { %v10995_v10 = vadd.f32 %v10880_v32, %v19547_v6  ;;  %v11003_v6 = vadd.f32 %v10912_v17, %v19695_v34  ;;  %v19779_v32 = vpop.permute.xlu0 %11919 }
 0xd7d   : > { %16609 = vtanh.f32 %v10995_v10 }
 0xd7e   : > { %11996 = vrot.lane.b32.xlu1 %v19342_v23, %s16717_s20  ;;  %16611 = vtanh.f32 %v11003_v6 }
 0xd86   : > { %v19751_v44 = vpop.eup %16605 }
 0xd87   : > { %20646 = vst [vmem:[#allocation56_spill] sm:$0xff] %v19751_v44  ;;  %v11228_v36 = vsel %vm2406_vm1, %v19751_v44, 0.0  ;;  %v19759_v5 = vpop.eup %16607 }
 0xd88   : > { %20647 = vst [vmem:[#allocation59_spill] sm:$0xff] %v19759_v5  ;;  %v11159_v55 = vsel %vm2406_vm1, %v19759_v5, 0.0 }
 0xd8a   : > { %v16610_v10 = vpop.eup %16609 }
 0xd8b   : > { %12077 = vrot.lane.b32.xlu0 %v19370_v49, %s16717_s20  ;;  %v11059_v5 = vadd.f32 %v19537_v31, %v16610_v10  ;;  %v16612_v17 = vpop.eup %16611 }
 0xd8c   : > { %v11067_v6 = vadd.f32 %v19537_v31, %v16612_v17  ;;  %v10818_v17 = vcombine.high %v19635_v57, %v19635_v57 }
 0xd8d   : > { %v11105_v21 = vmul.f32 1.442695, %v11059_v5 }
 0xd8e   : > { %v10944_v57 = vrot.slane %v10818_v17, %v17062_v27 }
 0xd8f   : > { %12075 = vrot.lane.b32.xlu0 %v19362_v0, %s16717_s20 }
 0xda2   : > { %11229 = vadd.xlane.f32.xlu1 %v11228_v36 }
 0xda5   : > { %v11170_v22 = vpop.xlane.xlu0 %11169 }
 0xda6   : > { %v11167_v2 = vpop.xlane.xlu1 %11166 }
 0xdaa   : > { %v19771_v36 = vpop.xlane.xlu1 %11172 }
 0xdae   : > { %11160 = vadd.xlane.f32.xlu0 %v11159_v55 }
 0xdb3   : > { %12156 = vrot.lane.b32.xlu1 %v19393_v15, %s16717_s20  ;;  %v19776_v62 = vpop.xlane.xlu1 %11178 }
 0xdb7   : > { %12154 = vrot.lane.b32.xlu1 %v19387_v40, %s16717_s20  ;;  %v19781_v55 = vpop.xlane.xlu1 %11181 }
 0xdb8   : > { %20648 = vst [vmem:[#allocation60_spill] sm:$0xff] %v19781_v55  ;;  %v19791_v55 = vpop.xlane.xlu0 %11175 }
 0xdbc   : > { %v11143_v5 = vpop.xlane.xlu0 %11142 }
 0xdc2   : > { %v11146_v44 = vpop.xlane.xlu1 %11145 }
 0xdc3   : > { %16613 = vrcp.f32 %v11146_v44 }
 0xdc4   : > { %12239 = vrot.lane.b32.xlu0 %v19334_v33, %s16718_s25  ;;  %16615 = vrcp.f32 %v11170_v22  ;;  %v11121_v22 = vmul.f32 1.442695, %v11067_v6 }
 0xdc5   : > { %16617 = vpow2.f32 %v11105_v21 }
 0xdc8   : > { %12237 = vrot.lane.b32.xlu0 %v19326_v50, %s16718_s25 }
 0xdca   : > { %v19788_v34 = vpop.xlane.xlu1 %11151 }
 0xdce   : > { %v11218_v10 = vpop.xlane.xlu1 %11217 }
 0xdcf   : > { %16619 = vrcp.f32 %v11218_v10 }
 0xdd0   : > { %v16614_v42 = vpop.eup %16613  ;;  %16621 = vrcp.f32 %v11167_v2 }
 0xdd1   : > { %v11270_v44 = vmul.f32 %v16614_v42, %v19639_v59  ;;  %v16616_v29 = vpop.eup %16615  ;;  %16623 = vpow2.f32 %v11121_v22  ;;  %v11149_v59 = vpop.xlane.xlu0 %11148 }
 0xdd2   : > { %v11278_v21 = vmul.f32 %v16616_v29, %v19568_v19  ;;  %v19801_v2 = vpop.eup %16617 }
 0xdd3   : > { %15657 = vmatmul.mubr.msk.f32.vlgmr.msra.gmra.mxu1 %vm2406_vm1, %v11270_v44 }
 0xdd4   : > { %15660 = vmatpush3.msra.mxu1 %v19403_v16  ;;  %15663 = vmatprep.mubr.msk.f32.mxu1 %vm16721_vm2, %v20584_v43  ;;  %v11183_v16 = vsel %vm2406_vm1, %v19801_v2, 0.0 }
 0xdd5   : > { %15661 = vmatprep.subr.mxu1 %v20584_v43  ;;  %v19813_v19 = vpop.xlane.xlu0 %11154 }
 0xdd6   : > { %15662 = vmatpush3.msra.mxu1 %v19406_v54 }
 0xdd7   : > { %15673 = vmatprep.subr.mxu1 %v20584_v43  ;;  %15664 = vmatmul.mubr.msk.f32.vlgmr.msra.gmra.mxu1 %vm2406_vm1, %v11278_v21 }
 0xdd8   : > { %15674 = vmatpush3.msra.mxu1 %v19408_v3  ;;  %15677 = vmatprep.mubr.msk.f32.mxu1 %vm16721_vm2, %v20584_v43 }
 0xdd9   : > { %15675 = vmatprep.subr.mxu1 %v20584_v43  ;;  %v19824_v6 = vpop.xlane.xlu0 %11157 }
 0xdda   : > { %15676 = vmatpush3.msra.mxu1 %v19437_v45 }
 0xddb   : > { %11184 = vadd.xlane.f32.xlu1 %v11183_v16  ;;  %15687 = vmatprep.subr.mxu1 %v20584_v43 }
 0xddc   : > { %v16620_v54 = vpop.eup %16619 }
 0xddd   : > { %v11294_v29 = vmul.f32 %v16620_v54, %v19656_v37  ;;  %v16622_v42 = vpop.eup %16621 }
 0xdde   : > { %v11215_v3 = vpop.xlane.xlu1 %11214  ;;  %v11277_v45 = vmul.f32 %v16622_v42, %v19571_v51  ;;  %v19827_v37 = vpop.eup %16623  ;;  %v11011_v51 = vadd.f32 %v10944_v57, %v19649_v53  ;;  %v10673_v53 = vcombine.high %v19586_v41, %v19586_v41  ;;  %v16722_v41 = vmov 1  }
 0xddf   : > { %16625 = vrcp.f32 %v11215_v3  ;;  %15678 = vmatmul.mubr.msk.f32.vlgmr.msra.gmra.mxu1 %vm2406_vm1, %v11294_v29  ;;  %v11207_v44 = vsel %vm2406_vm1, %v19827_v37, 0.0  ;;  %15929 = vset.pattern.permute.xlu0 %v16722_v41 }
 0xde0   : > { %15688 = vmatpush3.msra.mxu1 %v19352_v52  ;;  %15691 = vmatprep.mubr.msk.f32.mxu1 %vm16721_vm2, %v20584_v43  ;;  %16627 = vtanh.f32 %v11011_v51 }
 0xde1   : > { %15689 = vmatprep.subr.mxu1 %v20584_v43  ;;  %16629 = vrcp.f32 %v19771_v36  ;;  %v10852_v36 = vrot.slane %v10673_v53, %v17062_v27  ;;  %15928 = vset.pattern.permute.xlu1 %v16722_v41 }
 0xde2   : > { %15690 = vmatpush3.msra.mxu1 %v19342_v23  ;;  %v19844_v16 = vpop.xlane.xlu1 %11220 }
 0xde3   : > { %15701 = vmatprep.subr.mxu1 %v20584_v43  ;;  %15692 = vmatmul.mubr.msk.f32.vlgmr.msra.gmra.mxu1 %vm2406_vm1, %v11277_v45 }
 0xde4   : > { %15702 = vmatpush3.msra.mxu1 %v19393_v15  ;;  %15705 = vmatprep.mubr.msk.f32.mxu1 %vm16721_vm2, %v20584_v43 }
 0xde5   : > { %15703 = vmatprep.subr.mxu1 %v20584_v43 }
 0xde6   : > { %15704 = vmatpush3.msra.mxu1 %v19387_v40  ;;  %v19838_v10 = vpop.xlane.xlu0 %11226 }
 0xde7   : > { %11208 = vadd.xlane.f32.xlu0 %v11207_v44  ;;  %15715 = vmatprep.subr.mxu1 %v20584_v43 }
 0xdea   : > { %v11194_v22 = vpop.xlane.xlu0 %11193 }
 0xdeb   : > { %16631 = vrcp.f32 %v11194_v22 }
 0xdec   : > { %v16626_v21 = vpop.eup %16625  ;;  %12318 = vrot.lane.b32.xlu1 %v19352_v52, %s16718_s25  ;;  %16633 = vrcp.f32 %v11143_v5  ;;  %v19859_v52 = vpop.xlane.xlu1 %11223 }
 0xded   : > { %v11293_v54 = vmul.f32 %v16626_v21, %v19689_v8  ;;  %v10988_v8 = vadd.f32 %v10852_v36, %v19622_v28 }
 0xdee   : > { %v11191_v29 = vpop.xlane.xlu0 %11190 }
 0xdef   : > { %15706 = vmatmul.mubr.msk.f32.vlgmr.msra.gmra.mxu1 %vm2406_vm1, %v11293_v54  ;;  %16635 = vrcp.f32 %v11191_v29 }
 0xdf0   : > { %15716 = vmatpush3.msra.mxu1 %v19755_v47  ;;  %12316 = vrot.lane.b32.xlu1 %v19342_v23, %s16718_s25  ;;  %v10820_v23 = vcombine.high %v19519_v60, %v19519_v60  ;;  %16637 = vrcp.f32 %v11149_v59  ;;  %v16628_v47 = vpop.eup %16627 }
 0xdf1   : > { %15717 = vmatprep.subr.mxu1 %v20584_v43  ;;  %15719 = vmatprep.mubr.msk.f32.mxu1 %vm16721_vm2, %v20584_v43  ;;  %v16630_v3 = vpop.eup %16629  ;;  %16639 = vtanh.f32 %v10988_v8  ;;  %v11075_v60 = vadd.f32 %v19537_v31, %v16628_v47 }
 0xdf2   : > { %v11197_v5 = vpop.xlane.xlu0 %11196  ;;  %v10948_v45 = vrot.slane %v10820_v23, %v17062_v27  ;;  %v11279_v44 = vmul.f32 %v16630_v3, %v19581_v24 }
 0xdf3   : > { %16641 = vrcp.f32 %v11197_v5  ;;  %v10722_v5 = vcombine.high %v19522_v7, %v19522_v7 }
 0xdf4   : > { %v11012_v59 = vadd.f32 %v10948_v45, %v19660_v18  ;;  %16643 = vtanh.f32 %v19704_v13 }
 0xdf6   : > { %v19866_v42 = vpop.xlane.xlu1 %11199  ;;  %16645 = vtanh.f32 %v11012_v59 }
 0xdf8   : > { %v16632_v17 = vpop.eup %16631 }
 0xdf9   : > { %v11286_v57 = vmul.f32 %v16632_v17, %v19708_v35  ;;  %v16634_v51 = vpop.eup %16633  ;;  %v10884_v17 = vrot.slane %v10722_v5, %v17062_v27 }
 0xdfa   : > { %v11997_v28 = vpop.permute.xlu1 %11996  ;;  %v19871_v22 = vpop.xlane.xlu0 %11202  ;;  %v11269_v35 = vmul.f32 %v16634_v51, %v19600_v39 }
 0xdfb   : > { %15671 = vmatmul.mubr.msk.f32.vlgmr.msra.gmra.mxu0 %vm2406_vm1, %v11286_v57  ;;  %15718 = vmatpush3.msra.mxu1 %v11997_v28  ;;  %v10996_v51 = vadd.f32 %v10884_v17, %v19555_v38 }
 0xdfc   : > { %15681 = vmatpush3.msra.mxu0 %v19334_v33  ;;  %15720 = vmatmul.mubr.msk.f32.vlgmr.msra.gmra.mxu1 %vm2406_vm1, %v11279_v44  ;;  %v16636_v24 = vpop.eup %16635  ;;  %v11137_v33 = vmul.f32 1.442695, %v11075_v60 }
 0xdfd   : > { %15682 = vmatprep.subr.mxu0 %v20584_v43  ;;  %12397 = vrot.lane.b32.xlu0 %v19370_v49, %s16718_s25  ;;  %v11285_v39 = vmul.f32 %v16636_v24, %v19715_v61 }
 0xdfe   : > { %15683 = vmatpush3.msra.mxu0 %v19326_v50  ;;  %15684 = vmatprep.mubr.msk.f32.mxu0 %vm16721_vm2, %v20584_v43  ;;  %v19886_v18 = vpop.xlane.xlu0 %11205  ;;  %v16638_v50 = vpop.eup %16637  ;;  %16647 = vpow2.f32 %v11137_v33 }
 0xdff   : > { %15694 = vmatprep.subr.mxu0 %v20584_v43  ;;  %15685 = vmatmul.mubr.msk.f32.vlgmr.msra.gmra.mxu0 %vm2406_vm1, %v11269_v35  ;;  %v11271_v61 = vmul.f32 %v16638_v50, %v19645_v26 }
 0xe00   : > { %15695 = vmatpush3.msra.mxu0 %v19370_v49  ;;  %15698 = vmatprep.mubr.msk.f32.mxu0 %vm16721_vm2, %v20584_v43  ;;  %v16640_v49 = vpop.eup %16639 }
 0xe01   : > { %15696 = vmatprep.subr.mxu0 %v20584_v43  ;;  %12395 = vrot.lane.b32.xlu0 %v19362_v0, %s16718_s25  ;;  %v11052_v21 = vadd.f32 %v19537_v31, %v16640_v49 }
 0xe02   : > { %15697 = vmatpush3.msra.mxu0 %v19362_v0  ;;  %15729 = vmatprep.subr.mxu1 %v20584_v43  ;;  %v12078_v13 = vpop.permute.xlu0 %12077  ;;  %v16642_v0 = vpop.eup %16641 }
 0xe03   : > { %15708 = vmatprep.subr.mxu0 %v20584_v43  ;;  %15699 = vmatmul.mubr.msk.f32.vlgmr.msra.gmra.mxu0 %vm2406_vm1, %v11285_v39  ;;  %v11287_v26 = vmul.f32 %v16642_v0, %v19722_v25  ;;  %v19969_v39 = vpop.f32.mrf.mxu0 }
 0xe04   : > { %15709 = vmatpush3.msra.mxu0 %v19779_v32  ;;  %15712 = vmatprep.mubr.msk.f32.mxu0 %vm16721_vm2, %v20584_v43  ;;  %v16644_v32 = vpop.eup %16643 }
 0xe05   : > { %15710 = vmatprep.subr.mxu0 %v20584_v43  ;;  %15733 = vmatprep.mubr.msk.f32.mxu1 %vm16721_vm2, %v20584_v43  ;;  %v11068_v54 = vadd.f32 %v19537_v31, %v16644_v32  ;;  %v16646_v29 = vpop.eup %16645 }
 0xe06   : > { %15711 = vmatpush3.msra.mxu0 %v19761_v46  ;;  %v12076_v53 = vpop.permute.xlu0 %12075  ;;  %v11091_v46 = vmul.f32 1.442695, %v11052_v21  ;;  %v11076_v36 = vadd.f32 %v19537_v31, %v16646_v29  ;;  %v16723_v21 = vmov 0  }
 0xe07   : > { %15722 = vmatprep.subr.mxu0 %v20584_v43  ;;  %15713 = vmatmul.mubr.msk.f32.vlgmr.msra.gmra.mxu0 %vm2406_vm1, %v11271_v61  ;;  %v11123_v8 = vmul.f32 1.442695, %v11068_v54  ;;  %v13838_v61 = vld [vmem:[%s20008_s30 + $0x8] sm:$0xff] }
 0xe08   : > { %15723 = vmatpush3.msra.mxu0 %v12078_v13  ;;  %15726 = vmatprep.mubr.msk.f32.mxu0 %vm16721_vm2, %v20584_v43  ;;  %16649 = vpow2.f32 %v11091_v46  ;;  %v11139_v47 = vmul.f32 1.442695, %v11076_v36  ;;  %v13834_v46 = vld [vmem:[%s20023_s17 + $0x28] sm:$0xff]  ;;  %v20649_v36 = vld [vmem:[#allocation52_spill] sm:$0xff] }
 0xe09   : > { %15724 = vmatprep.subr.mxu0 %v20584_v43  ;;  %16651 = vpow2.f32 %v11123_v8 }
 0xe0a   : > { %15725 = vmatpush3.msra.mxu0 %v12076_v53  ;;  %16653 = vpow2.f32 %v11139_v47 }
 0xe0b   : > { %15727 = vmatmul.mubr.msk.f32.vlgmr.msra.gmra.mxu0 %vm2406_vm1, %v11287_v26  ;;  %15736 = vmatprep.subr.mxu0 %v20584_v43  ;;  %v19922_v25 = vpop.eup %16647  ;;  %16655 = vrcp.f32 %v19844_v16  ;;  %v13832_v26 = vld [vmem:[%s20023_s17 + $0x18] sm:$0xff] }
 0xe0c   : > { %15740 = vmatprep.mubr.msk.f32.mxu0 %vm16721_vm2, %v20584_v43  ;;  %v11231_v23 = vsel %vm2406_vm1, %v19922_v25, 0.0  ;;  %16657 = vtanh.f32 %v10996_v51 }
 0xe0d   : > { %16659 = vrcp.f32 %v19788_v34 }
 0xe14   : > { %11232 = vadd.xlane.f32.xlu1 %v11231_v23 }
 0xe15   : > { %v19928_v3 = vpop.eup %16649 }
 0xe16   : > { %v11162_v45 = vsel %vm2406_vm1, %v19928_v3, 0.0  ;;  %v19933_v57 = vpop.eup %16651 }
 0xe17   : > { %v11210_v44 = vsel %vm2406_vm1, %v19933_v57, 0.0  ;;  %v19939_v28 = vpop.eup %16653 }
 0xe18   : > { %v11234_v27 = vsel %vm2406_vm1, %v19939_v28, 0.0  ;;  %v16656_v16 = vpop.eup %16655 }
 0xe19   : > { %v16658_v60 = vpop.eup %16657  ;;  %v11295_v59 = vmul.f32 %v16656_v16, %v19691_v56 }
 0xe1a   : > { %v11060_v35 = vadd.f32 %v19537_v31, %v16658_v60  ;;  %v16660_v33 = vpop.eup %16659 }
 0xe1b   : > { %v11272_v31 = vmul.f32 %v16660_v33, %v19651_v9 }
 0xe1c   : > { %v11107_v34 = vmul.f32 1.442695, %v11060_v35 }
 0xe1e   : > { %16661 = vpow2.f32 %v11107_v34 }
 0xe1f   : > { %16663 = vrcp.f32 %v19791_v55 }
 0xe20   : > { %11163 = vadd.xlane.f32.xlu0 %v11162_v45  ;;  %16665 = vrcp.f32 %v19866_v42 }
 0xe21   : > { %16667 = vrcp.f32 %v19813_v19  ;;  %v13829_v19 = vld [vmem:[%s20023_s17] sm:$0xff] }
 0xe22   : > { %16669 = vrcp.f32 %v19871_v22 }
 0xe23   : > { %16671 = vrcp.f32 %v19859_v52 }
 0xe24   : > { %11211 = vadd.xlane.f32.xlu0 %v11210_v44  ;;  %16673 = vrcp.f32 %v19776_v62 }
 0xe25   : > { %12476 = vrot.lane.b32.xlu1 %v19393_v15, %s16718_s25  ;;  %16675 = vrcp.f32 %v19838_v10 }
 0xe28   : > { %11235 = vadd.xlane.f32.xlu0 %v11234_v27  ;;  %v13833_v27 = vld [vmem:[%s20023_s17 + $0x20] sm:$0xff] }
 0xe29   : > { %12474 = vrot.lane.b32.xlu1 %v19387_v40, %s16718_s25 }
 0xe2b   : > { %v19947_v7 = vpop.xlane.xlu1 %11229  ;;  %v19973_v50 = vpop.eup %16661 }
 0xe2c   : > { %v11186_v9 = vsel %vm2406_vm1, %v19973_v50, 0.0  ;;  %v16664_v49 = vpop.eup %16663 }
 0xe2d   : > { %v11280_v0 = vmul.f32 %v16664_v49, %v19592_v58  ;;  %v16666_v53 = vpop.eup %16665 }
 0xe2e   : > { %v11288_v54 = vmul.f32 %v16666_v53, %v19726_v63  ;;  %v16668_v29 = vpop.eup %16667  ;;  %v13836_v63 = vld [vmem:[%s20023_s17 + $0x38] sm:$0xff] }
 0xe2f   : > { %v12157_v38 = vpop.permute.xlu1 %12156  ;;  %v11273_v8 = vmul.f32 %v16668_v29, %v20649_v36  ;;  %v16670_v23 = vpop.eup %16669 }
 0xe30   : > { %15730 = vmatpush3.msra.mxu1 %v12157_v38  ;;  %v11289_v47 = vmul.f32 %v16670_v23, %v19730_v12  ;;  %v13837_v12 = vld [vmem:[%s20008_s30] sm:$0xff]  ;;  %v16672_v16 = vpop.eup %16671 }
 0xe31   : > { %15731 = vmatprep.subr.mxu1 %v20584_v43  ;;  %v16674_v33 = vpop.eup %16673 }
 0xe33   : > { %v12155_v15 = vpop.permute.xlu1 %12154 }
 0xe34   : > { %15732 = vmatpush3.msra.mxu1 %v12155_v15  ;;  %v20650_v15 = vld [vmem:[#allocation54_spill] sm:$0xff] }
 0xe35   : > { %15734 = vmatmul.mubr.msk.f32.vlgmr.msra.gmra.mxu1 %vm2406_vm1, %v11295_v59  ;;  %15743 = vmatprep.subr.mxu1 %v20584_v43  ;;  %v13835_v59 = vld [vmem:[%s20023_s17 + $0x30] sm:$0xff]  ;;  %v11296_v35 = vmul.f32 %v16672_v16, %v20650_v15 }
 0xe36   : > { %15747 = vmatprep.mubr.msk.f32.mxu1 %vm16721_vm2, %v20584_v43 }
 0xe37   : > { %v19957_v40 = vpop.xlane.xlu0 %11160 }
 0xe3b   : > { %v12240_v24 = vpop.permute.xlu0 %12239 }
 0xe3c   : > { %15737 = vmatpush3.msra.mxu0 %v12240_v24 }
 0xe3d   : > { %15738 = vmatprep.subr.mxu0 %v20584_v43 }
 0xe3e   : > { %12857 = vrot.lane.b32.xlu0 %v19340_v11, %s16714_s28 }
 0xe3f   : > { %v12238_v56 = vpop.permute.xlu0 %12237 }
 0xe40   : > { %15739 = vmatpush3.msra.mxu0 %v12238_v56 }
 0xe41   : > { %15741 = vmatmul.mubr.msk.f32.vlgmr.msra.gmra.mxu0 %vm2406_vm1, %v11272_v31  ;;  %15750 = vmatprep.subr.mxu0 %v20584_v43  ;;  %v20651_v31 = vld [vmem:[#allocation9_spill] sm:$0xff] }
 0xe42   : > { %12936 = vrot.lane.b32.xlu0 %v19350_v4, %s16714_s28  ;;  %15754 = vmatprep.mubr.msk.f32.mxu0 %vm16721_vm2, %v20584_v43  ;;  %v11281_v56 = vmul.f32 %v16674_v33, %v20651_v31 }
 0xe46   : > { %13100 = vrot.lane.b32.xlu0 %v19969_v39, %s16714_s28 }
 0xe4a   : > { %13098 = vrot.lane.b32.xlu0 %v19391_v30, %s16714_s28 }
 0xe4d   : > { %11187 = vadd.xlane.f32.xlu1 %v11186_v9  ;;  %v16676_v9 = vpop.eup %16675 }
 0xe4e   : > { %13262 = vrot.lane.b32.xlu0 %v19360_v20, %s16717_s20 }
 0xe52   : > { %13260 = vrot.lane.b32.xlu0 %v19350_v4, %s16717_s20 }
 0xe56   : > { %13420 = vrot.lane.b32.xlu0 %v19969_v39, %s16717_s20 }
 0xe5a   : > { %13418 = vrot.lane.b32.xlu0 %v19391_v30, %s16717_s20 }
 0xe5e   : > { %12938 = vrot.lane.b32.xlu1 %v19360_v20, %s16714_s28  ;;  %13582 = vrot.lane.b32.xlu0 %v19360_v20, %s16718_s25 }
 0xe62   : > { %12855 = vrot.lane.b32.xlu1 %v19330_v48, %s16714_s28  ;;  %13580 = vrot.lane.b32.xlu0 %v19350_v4, %s16718_s25 }
 0xe64   : > { %v19996_v13 = vpop.xlane.xlu1 %11184 }
 0xe66   : > { %13019 = vrot.lane.b32.xlu1 %v19382_v14, %s16714_s28  ;;  %13740 = vrot.lane.b32.xlu0 %v19969_v39, %s16718_s25 }
 0xe68   : > { %v12319_v55 = vpop.permute.xlu1 %12318 }
 0xe69   : > { %15744 = vmatpush3.msra.mxu1 %v12319_v55 }
 0xe6a   : > { %13017 = vrot.lane.b32.xlu1 %v19368_v1, %s16714_s28  ;;  %13738 = vrot.lane.b32.xlu0 %v19391_v30, %s16718_s25 }
 0xe6b   : > { %15745 = vmatprep.subr.mxu1 %v20584_v43 }
 0xe6c   : > { %v12317_v42 = vpop.permute.xlu1 %12316 }
 0xe6d   : > { %15746 = vmatpush3.msra.mxu1 %v12317_v42 }
 0xe6e   : > { %13183 = vrot.lane.b32.xlu1 %v19340_v11, %s16717_s20  ;;  %13982 = vperm.xlu0 %15929, %v13838_v61  }
 0xe6f   : > { %15748 = vmatmul.mubr.msk.f32.vlgmr.msra.gmra.mxu1 %vm2406_vm1, %v11280_v0  ;;  %15757 = vmatprep.subr.mxu1 %v20584_v43 }
 0xe70   : > { %v20029_v58 = vpop.xlane.xlu0 %11208  ;;  %15761 = vmatprep.mubr.msk.f32.mxu1 %vm16721_vm2, %v20584_v43 }
 0xe72   : > { %13181 = vrot.lane.b32.xlu1 %v19330_v48, %s16717_s20  ;;  %15930 = vset.pattern.permute.xlu0 %v16723_v21 }
 0xe73   : > { %13843 = vperm.xlu0 %15930, %v13829_v19  }
 0xe74   : > { %v12398_v32 = vpop.permute.xlu0 %12397 }
 0xe75   : > { %15751 = vmatpush3.msra.mxu0 %v12398_v32 }
 0xe76   : > { %13341 = vrot.lane.b32.xlu1 %v19382_v14, %s16717_s20  ;;  %15752 = vmatprep.subr.mxu0 %v20584_v43 }
 0xe77   : > { %13858 = vperm.xlu0 %15930, %v13832_v26  }
 0xe78   : > { %v12396_v22 = vpop.permute.xlu0 %12395 }
 0xe79   : > { %15753 = vmatpush3.msra.mxu0 %v12396_v22 }
 0xe7a   : > { %13339 = vrot.lane.b32.xlu1 %v19368_v1, %s16717_s20  ;;  %15755 = vmatmul.mubr.msk.f32.vlgmr.msra.gmra.mxu0 %vm2406_vm1, %v11288_v54 }
 0xe7b   : > { %15764 = vmatprep.subr.mxu0 %v20584_v43  ;;  %13868 = vperm.xlu0 %15930, %v13834_v46  }
 0xe7c   : > { %15765 = vmatpush3.msra.mxu0 %v19340_v11  ;;  %15768 = vmatprep.mubr.msk.f32.mxu0 %vm16721_vm2, %v20584_v43 }
 0xe7d   : > { %15766 = vmatprep.subr.mxu0 %v20584_v43 }
 0xe7e   : > { %15767 = vmatpush3.msra.mxu0 %v19330_v48  ;;  %13503 = vrot.lane.b32.xlu1 %v19340_v11, %s16718_s25  ;;  %v13840_v11 = vld [vmem:[%s20008_s30 + $0x18] sm:$0xff] }
 0xe7f   : > { %15769 = vmatmul.mubr.msk.f32.vlgmr.msra.gmra.mxu0 %vm2406_vm1, %v11273_v8  ;;  %15778 = vmatprep.subr.mxu0 %v20584_v43 }
 0xe80   : > { %13878 = vperm.xlu0 %15930, %v13836_v63   ;;  %15779 = vmatpush3.msra.mxu0 %v19382_v14 }
 0xe81   : > { %15780 = vmatprep.subr.mxu0 %v20584_v43  ;;  %15782 = vmatprep.mubr.msk.f32.mxu0 %vm16721_vm2, %v20584_v43 }
 0xe82   : > { %15781 = vmatpush3.msra.mxu0 %v19368_v1  ;;  %13501 = vrot.lane.b32.xlu1 %v19330_v48, %s16718_s25  ;;  %v13839_v48 = vld [vmem:[%s20008_s30 + $0x10] sm:$0xff] }
 0xe83   : > { %15783 = vmatmul.mubr.msk.f32.vlgmr.msra.gmra.mxu0 %vm2406_vm1, %v11289_v47  ;;  %15792 = vmatprep.subr.mxu0 %v20584_v43 }
 0xe84   : > { %13932 = vperm.xlu0 %15930, %v13838_v61   ;;  %15796 = vmatprep.mubr.msk.f32.mxu0 %vm16721_vm2, %v20584_v43 }
 0xe86   : > { %13661 = vrot.lane.b32.xlu1 %v19382_v14, %s16718_s25  ;;  %v13830_v14 = vld [vmem:[%s20023_s17 + $0x8] sm:$0xff] }
 0xe88   : > { %13942 = vperm.xlu0 %15930, %v13840_v11  }
 0xe8a   : > { %13659 = vrot.lane.b32.xlu1 %v19368_v1, %s16718_s25  ;;  %v13831_v1 = vld [vmem:[%s20023_s17 + $0x10] sm:$0xff] }
 0xe8c   : > { %15932 = vset.pattern.permute.xlu0 %v16722_v41 }
 0xe8e   : > { %13978 = vperm.xlu1 %15928, %v13837_v12  }
 0xe92   : > { %13986 = vperm.xlu1 %15928, %v13839_v48  }
 0xe93   : > { %v20078_v5 = vpop.f32.mrf.mxu1 }
 0xe95   : > { %v15658_v17 = vpop.f32.mrf.mxu1 }
 0xe96   : > { %13990 = vperm.xlu1 %15928, %v13840_v11  }
 0xe97   : > { %v11459_v45 = vpop.f32.mrf.mxu1 }
 0xe99   : > { %v15665_v51 = vpop.f32.mrf.mxu1 }
 0xe9a   : > { %15931 = vset.pattern.permute.xlu1 %v16723_v21 }
 0xe9b   : > { %13848 = vperm.xlu1 %15931, %v13830_v14  }
 0xe9d   : > { %v20084_v41 = vpop.xlane.xlu1 %11232 }
 0xe9f   : > { %13853 = vperm.xlu1 %15931, %v13831_v1   ;;  %v11621_v44 = vpop.f32.mrf.mxu1 }
 0xea1   : > { %v12477_v38 = vpop.permute.xlu1 %12476  ;;  %v15679_v52 = vpop.f32.mrf.mxu1 }
 0xea2   : > { %15758 = vmatpush3.msra.mxu1 %v12477_v38 }
 0xea3   : > { %13863 = vperm.xlu1 %15931, %v13833_v27   ;;  %v11767_v60 = vpop.f32.mrf.mxu1  ;;  %15759 = vmatprep.subr.mxu1 %v20584_v43 }
 0xea4   : > { %v11768_v62 = vadd.f32 %v11767_v60, %v11459_v45  ;;  %v20653_v45 = vld [vmem:[#allocation60_spill] sm:$0xff] }
 0xea5   : > { %v12475_v34 = vpop.permute.xlu1 %12474  ;;  %v15693_v24 = vpop.f32.mrf.mxu1  ;;  %16677 = vrcp.f32 %v20653_v45  ;;  %v20654_v60 = vld [vmem:[#allocation8_spill] sm:$0xff] }
 0xea6   : > { %15760 = vmatpush3.msra.mxu1 %v12475_v34  ;;  %16679 = vrcp.f32 %v19824_v6 }
 0xea7   : > { %13873 = vperm.xlu1 %15931, %v13835_v59   ;;  %15762 = vmatmul.mubr.msk.f32.vlgmr.msra.gmra.mxu1 %vm2406_vm1, %v11296_v35  ;;  %16681 = vrcp.f32 %v19947_v7  ;;  %v20655_v7 = vld [vmem:[#allocation53_spill] sm:$0xff] }
 0xea8   : > { %15771 = vmatprep.subr.mxu1 %v20584_v43  ;;  %15775 = vmatprep.mubr.msk.f32.mxu1 %vm16721_vm2, %v20584_v43  ;;  %16683 = vrcp.f32 %v19996_v13 }
 0xea9   : > { %15772 = vmatpush3.msra.mxu1 %v19360_v20  ;;  %v20096_v10 = vpop.xlane.xlu0 %11163  ;;  %v20652_v20 = vld [vmem:[#allocation57_spill] sm:$0xff]  ;;  %16685 = vrcp.f32 %v19886_v18  ;;  %v20656_v18 = vld [vmem:[#allocation56_spill] sm:$0xff] }
 0xeaa   : > { %15773 = vmatprep.subr.mxu1 %v20584_v43  ;;  %v11297_v49 = vmul.f32 %v16676_v9, %v20652_v20  ;;  %16687 = vrcp.f32 %v20084_v41  ;;  %v20657_v9 = vld [vmem:[#allocation58_spill] sm:$0xff] }
 0xeab   : > { %15774 = vmatpush3.msra.mxu1 %v19350_v4  ;;  %13927 = vperm.xlu1 %15931, %v13837_v12  }
 0xeac   : > { %15776 = vmatmul.mubr.msk.f32.vlgmr.msra.gmra.mxu1 %vm2406_vm1, %v11281_v56  ;;  %15785 = vmatprep.subr.mxu1 %v20584_v43 }
 0xead   : > { %15786 = vmatpush3.msra.mxu1 %v19969_v39  ;;  %v20104_v55 = vpop.xlane.xlu0 %11211  ;;  %15789 = vmatprep.mubr.msk.f32.mxu1 %vm16721_vm2, %v20584_v43 }
 0xeae   : > { %15787 = vmatprep.subr.mxu1 %v20584_v43 }
 0xeaf   : > { %15788 = vmatpush3.msra.mxu1 %v19391_v30  ;;  %13937 = vperm.xlu1 %15931, %v13839_v48   ;;  %v11913_v4 = vpop.f32.mrf.mxu1 }
 0xeb0   : > { %v20111_v61 = vadd.f32 %v11913_v4, %v11621_v44  ;;  %15790 = vmatmul.mubr.msk.f32.vlgmr.msra.gmra.mxu1 %vm2406_vm1, %v11297_v49  ;;  %15799 = vmatprep.subr.mxu1 %v20584_v43 }
 0xeb1   : > { %v15707_v39 = vpop.f32.mrf.mxu1  ;;  %v11236_v42 = vpop.xlane.xlu0 %11235  ;;  %15803 = vmatprep.mubr.msk.f32.mxu1 %vm16721_vm2, %v20584_v43 }
 0xeb2   : > { %v16678_v27 = vpop.eup %16677 }
 0xeb3   : > { %v16680_v16 = vpop.eup %16679 }
 0xeb4   : > { %v16682_v6 = vpop.eup %16681  ;;  %v11274_v59 = vmul.f32 %v16680_v16, %v20655_v7 }
 0xeb5   : > { %v12858_v0 = vpop.permute.xlu0 %12857  ;;  %v11298_v41 = vmul.f32 %v16682_v6, %v20656_v18  ;;  %v16684_v35 = vpop.eup %16683 }
 0xeb6   : > { %15793 = vmatpush3.msra.mxu0 %v12858_v0  ;;  %v11283_v24 = vmul.f32 %v16684_v35, %v19801_v2  ;;  %v20662_v35 = vld [vmem:[#allocation51_spill] sm:$0xff] }
 0xeb7   : > { %15794 = vmatprep.subr.mxu0 %v20584_v43 }
 0xeb9   : > { %v12937_v19 = vpop.permute.xlu0 %12936 }
 0xebb   : > { %v11540_v21 = vpop.f32.mrf.mxu0 }
 0xebc   : > { %v12071_v30 = vpop.f32.mrf.mxu1 }
 0xebd   : > { %v20118_v32 = vadd.f32 %v12071_v30, %v11768_v62  ;;  %v15672_v26 = vpop.f32.mrf.mxu0  ;;  %v13101_v53 = vpop.permute.xlu0 %13100  ;;  %v11282_v62 = vmul.f32 %v16678_v27, %v20654_v60  ;;  %v20660_v60 = vld [vmem:[#allocation44_spill] sm:$0xff] }
 0xebe   : > { %v15721_v54 = vpop.f32.mrf.mxu1 }
 0xebf   : > { %v11694_v22 = vpop.f32.mrf.mxu0 }
 0xec0   : > { %v11695_v46 = vadd.f32 %v11694_v22, %v20078_v5 }
 0xec1   : > { %v15686_v29 = vpop.f32.mrf.mxu0  ;;  %v13099_v36 = vpop.permute.xlu0 %13098 }
 0xec3   : > { %v11840_v8 = vpop.f32.mrf.mxu0 }
 0xec4   : > { %v11841_v63 = vadd.f32 %v11840_v8, %v11540_v21  ;;  %v14025_v8 = vld [vmem:[%s20345_s10] sm:$0xff] }
 0xec5   : > { %v15700_v23 = vpop.f32.mrf.mxu0  ;;  %v13263_v11 = vpop.permute.xlu0 %13262 }
 0xec7   : > { %v11992_v47 = vpop.f32.mrf.mxu0 }
 0xec8   : > { %v20121_v12 = vadd.f32 %v11992_v47, %v11695_v46 }
 0xec9   : > { %v15714_v48 = vpop.f32.mrf.mxu0  ;;  %v13261_v1 = vpop.permute.xlu0 %13260 }
 0xecb   : > { %v12150_v17 = vpop.f32.mrf.mxu0 }
 0xecc   : > { %v20124_v14 = vadd.f32 %v12150_v17, %v11841_v63 }
 0xecd   : > { %v15728_v51 = vpop.f32.mrf.mxu0  ;;  %v13421_v5 = vpop.permute.xlu0 %13420 }
 0xed1   : > { %v13419_v38 = vpop.permute.xlu0 %13418 }
 0xed5   : > { %v13583_v15 = vpop.permute.xlu0 %13582 }
 0xed6   : > { %v11188_v44 = vpop.xlane.xlu1 %11187 }
 0xed7   : > { %16689 = vrcp.f32 %v11188_v44 }
 0xed8   : > { %16691 = vrcp.f32 %v19957_v40  ;;  %v16686_v40 = vpop.eup %16685 }
 0xed9   : > { %16693 = vrcp.f32 %v11236_v42  ;;  %v16688_v33 = vpop.eup %16687  ;;  %v13581_v31 = vpop.permute.xlu0 %13580  ;;  %v11290_v20 = vmul.f32 %v16686_v40, %v20657_v9 }
 0xeda   : > { %v12939_v52 = vpop.permute.xlu1 %12938  ;;  %16695 = vrcp.f32 %v20029_v58  ;;  %v11299_v2 = vmul.f32 %v16688_v33, %v19922_v25  ;;  %v20663_v33 = vld [vmem:[#allocation46_spill] sm:$0xff] }
 0xedb   : > { %15800 = vmatpush3.msra.mxu1 %v12939_v52  ;;  %16697 = vrcp.f32 %v20096_v10 }
 0xedc   : > { %15801 = vmatprep.subr.mxu1 %v20584_v43  ;;  %16699 = vrcp.f32 %v20104_v55 }
 0xedd   : > { %15802 = vmatpush3.msra.mxu1 %v12937_v19  ;;  %v13741_v4 = vpop.permute.xlu0 %13740  ;;  %v20658_v19 = vld [vmem:[#allocation59_spill] sm:$0xff] }
 0xede   : > { %v12856_v13 = vpop.permute.xlu1 %12855  ;;  %15804 = vmatmul.mubr.msk.f32.vlgmr.msra.gmra.mxu1 %vm2406_vm1, %v11282_v62  ;;  %15813 = vmatprep.subr.mxu1 %v20584_v43 }
 0xedf   : > { %15795 = vmatpush3.msra.mxu0 %v12856_v13  ;;  %15814 = vmatpush3.msra.mxu1 %v13101_v53  ;;  %v14028_v53 = vld [vmem:[%s20345_s10 + $0x18] sm:$0xff] }
 0xee0   : > { %15797 = vmatmul.mubr.msk.f32.vlgmr.msra.gmra.mxu0 %vm2406_vm1, %v11274_v59  ;;  %15815 = vmatprep.subr.mxu1 %v20584_v43  ;;  %v20661_v59 = vld [vmem:[#allocation2_spill] sm:$0xff] }
 0xee1   : > { %15816 = vmatpush3.msra.mxu1 %v13099_v36  ;;  %15817 = vmatprep.mubr.msk.f32.mxu1 %vm16721_vm2, %v20584_v43  ;;  %v13739_v10 = vpop.permute.xlu0 %13738  ;;  %v14027_v36 = vld [vmem:[%s20345_s10 + $0x10] sm:$0xff] }
 0xee2   : > { %v13020_v34 = vpop.permute.xlu1 %13019  ;;  %15806 = vmatprep.subr.mxu0 %v20584_v43  ;;  %15818 = vmatmul.mubr.msk.f32.vlgmr.msra.gmra.mxu1 %vm2406_vm1, %v11298_v41 }
 0xee3   : > { %15827 = vmatprep.subr.mxu1 %v20584_v43  ;;  %15807 = vmatpush3.msra.mxu0 %v13020_v34 }
 0xee4   : > { %15828 = vmatpush3.msra.mxu1 %v13263_v11  ;;  %15831 = vmatprep.mubr.msk.f32.mxu1 %vm16721_vm2, %v20584_v43  ;;  %v16690_v49 = vpop.eup %16689 }
 0xee5   : > { %15829 = vmatprep.subr.mxu1 %v20584_v43  ;;  %15808 = vmatprep.subr.mxu0 %v20584_v43  ;;  %v16692_v39 = vpop.eup %16691  ;;  %v11284_v25 = vmul.f32 %v16690_v49, %v19973_v50 }
 0xee6   : > { %15830 = vmatpush3.msra.mxu1 %v13261_v1  ;;  %v13018_v56 = vpop.permute.xlu1 %13017  ;;  %15810 = vmatprep.mubr.msk.f32.mxu0 %vm16721_vm2, %v20584_v43  ;;  %v16694_v0 = vpop.eup %16693  ;;  %v11275_v21 = vmul.f32 %v16692_v39, %v20658_v19 }
 0xee7   : > { %15832 = vmatmul.mubr.msk.f32.vlgmr.msra.gmra.mxu1 %vm2406_vm1, %v11283_v24  ;;  %15841 = vmatprep.subr.mxu1 %v20584_v43  ;;  %v11300_v50 = vmul.f32 %v16694_v0, %v19939_v28  ;;  %v16696_v26 = vpop.eup %16695 }
 0xee8   : > { %15809 = vmatpush3.msra.mxu0 %v13018_v56  ;;  %15842 = vmatpush3.msra.mxu1 %v13421_v5  ;;  %v11291_v54 = vmul.f32 %v16696_v26, %v19827_v37  ;;  %v14026_v37 = vld [vmem:[%s20345_s10 + $0x8] sm:$0xff] }
 0xee9   : > { %15811 = vmatmul.mubr.msk.f32.vlgmr.msra.gmra.mxu0 %vm2406_vm1, %v11290_v20  ;;  %15843 = vmatprep.subr.mxu1 %v20584_v43  ;;  %v20223_v51 = vpop.permute.xlu0 %13982 }
 0xeea   : > { %15844 = vmatpush3.msra.mxu1 %v13419_v38  ;;  %15845 = vmatprep.mubr.msk.f32.mxu1 %vm16721_vm2, %v20584_v43  ;;  %v13184_v58 = vpop.permute.xlu1 %13183 }
 0xeeb   : > { %15820 = vmatprep.subr.mxu0 %v20584_v43  ;;  %15846 = vmatmul.mubr.msk.f32.vlgmr.msra.gmra.mxu1 %vm2406_vm1, %v11299_v2 }
 0xeec   : > { %15855 = vmatprep.subr.mxu1 %v20584_v43  ;;  %15821 = vmatpush3.msra.mxu0 %v13184_v58  ;;  %v20664_v58 = vld [vmem:[#allocation45_spill] sm:$0xff] }
 0xeed   : > { %15856 = vmatpush3.msra.mxu1 %v13583_v15  ;;  %15859 = vmatprep.mubr.msk.f32.mxu1 %vm16721_vm2, %v20584_v43 }
 0xeee   : > { %15857 = vmatprep.subr.mxu1 %v20584_v43  ;;  %v13182_v42 = vpop.permute.xlu1 %13181  ;;  %15822 = vmatprep.subr.mxu0 %v20584_v43  ;;  %v13844_v5 = vpop.permute.xlu0 %13843 }
 0xeef   : > { %15858 = vmatpush3.msra.mxu1 %v13581_v31  ;;  %15823 = vmatpush3.msra.mxu0 %v13182_v42  ;;  %v20665_v42 = vld [vmem:[#allocation7_spill] sm:$0xff] }
 0xef0   : > { %15860 = vmatmul.mubr.msk.f32.vlgmr.msra.gmra.mxu1 %vm2406_vm1, %v11284_v25  ;;  %15869 = vmatprep.subr.mxu1 %v20584_v43 }
 0xef1   : > { %15824 = vmatprep.mubr.msk.f32.mxu0 %vm16721_vm2, %v20584_v43  ;;  %15870 = vmatpush3.msra.mxu1 %v13741_v4 }
 0xef2   : > { %15825 = vmatmul.mubr.msk.f32.vlgmr.msra.gmra.mxu0 %vm2406_vm1, %v11275_v21  ;;  %15871 = vmatprep.subr.mxu1 %v20584_v43  ;;  %v13342_v30 = vpop.permute.xlu1 %13341  ;;  %v13859_v27 = vpop.permute.xlu0 %13858 }
 0xef3   : > { %15872 = vmatpush3.msra.mxu1 %v13739_v10  ;;  %15873 = vmatprep.mubr.msk.f32.mxu1 %vm16721_vm2, %v20584_v43  ;;  %v13884_v13 = vmul.f32 %v13859_v27, %v20661_v59 }
 0xef4   : > { %15834 = vmatprep.subr.mxu0 %v20584_v43  ;;  %15874 = vmatmul.mubr.msk.f32.vlgmr.msra.gmra.mxu1 %vm2406_vm1, %v11300_v50 }
 0xef5   : > { %15835 = vmatpush3.msra.mxu0 %v13342_v30  ;;  %v12229_v28 = vpop.f32.mrf.mxu1  ;;  %15838 = vmatprep.mubr.msk.f32.mxu0 %vm16721_vm2, %v20584_v43  ;;  %v13899_v24 = vsel %vm601_vm0, %v13884_v13, 0.0  ;;  %v20666_v30 = vld [vmem:[#allocation47_spill] sm:$0xff] }
 0xef6   : > { %v20190_v22 = vadd.f32 %v12229_v28, %v20111_v61  ;;  %v13340_v46 = vpop.permute.xlu1 %13339  ;;  %15836 = vmatprep.subr.mxu0 %v20584_v43  ;;  %15887 = vmatprep.subr.mxu1 %v20584_v43  ;;  %v16698_v61 = vpop.eup %16697 }
 0xef7   : > { %v15735_v29 = vpop.f32.mrf.mxu1  ;;  %15837 = vmatpush3.msra.mxu0 %v13340_v46  ;;  %15888 = vmatpush3.msra.mxu1 %v14028_v53  ;;  %v11276_v63 = vmul.f32 %v16698_v61, %v19928_v3  ;;  %v16700_v17 = vpop.eup %16699 }
 0xef8   : > { %15839 = vmatmul.mubr.msk.f32.vlgmr.msra.gmra.mxu0 %vm2406_vm1, %v11291_v54  ;;  %15848 = vmatprep.subr.mxu0 %v20584_v43  ;;  %v11292_v3 = vmul.f32 %v16700_v17, %v19933_v57  ;;  %v20659_v57 = vld [vmem:[#allocation3_spill] sm:$0xff]  ;;  %v13869_v6 = vpop.permute.xlu0 %13868 }
 0xef9   : > { %15852 = vmatprep.mubr.msk.f32.mxu0 %vm16721_vm2, %v20584_v43  ;;  %15889 = vmatprep.subr.mxu1 %v20584_v43  ;;  %v13881_v52 = vmul.f32 %v13844_v5, %v20659_v57  ;;  %v13886_v31 = vmul.f32 %v13869_v6, %v20663_v33 }
 0xefa   : > { %v13504_v55 = vpop.permute.xlu1 %13503  ;;  %15890 = vmatpush3.msra.mxu1 %v14027_v36  ;;  %15895 = vmatprep.mubr.msk.f32.mxu1 %vm16721_vm2, %v20584_v43 }
 0xefb   : > { %15849 = vmatpush3.msra.mxu0 %v13504_v55  ;;  %15891 = vmatprep.subr.mxu1 %v20584_v43  ;;  %v13889_v7 = vsel %vm601_vm0, %v13881_v52, 0.0  ;;  %v13908_v25 = vsel %vm601_vm0, %v13886_v31, 0.0  ;;  %v14032_v31 = vld [vmem:[%s20345_s10 + $0x38] sm:$0xff] }
 0xefc   : > { %15850 = vmatprep.subr.mxu0 %v20584_v43  ;;  %15892 = vmatpush3.msra.mxu1 %v14026_v37  ;;  %v13879_v9 = vpop.permute.xlu0 %13878 }
 0xefd   : > { %15893 = vmatprep.subr.mxu1 %v20584_v43  ;;  %v13888_v0 = vmul.f32 %v13879_v9, %v20665_v42 }
 0xefe   : > { %v13502_v23 = vpop.permute.xlu1 %13501  ;;  %15894 = vmatpush3.msra.mxu1 %v14025_v8 }
 0xeff   : > { %15851 = vmatpush3.msra.mxu0 %v13502_v23  ;;  %v13917_v46 = vsel %vm601_vm0, %v13888_v0, 0.0 }
 0xf00   : > { %15853 = vmatmul.mubr.msk.f32.vlgmr.msra.gmra.mxu0 %vm2406_vm1, %v11276_v63  ;;  %15862 = vmatprep.subr.mxu0 %v20584_v43 }
 0xf01   : > { %v12312_v47 = vpop.f32.mrf.mxu0  ;;  %15866 = vmatprep.mubr.msk.f32.mxu0 %vm16721_vm2, %v20584_v43 }
 0xf02   : > { %v20219_v11 = vadd.f32 %v12312_v47, %v20121_v12  ;;  %v13662_v48 = vpop.permute.xlu1 %13661 }
 0xf03   : > { %v15742_v45 = vpop.f32.mrf.mxu0  ;;  %15863 = vmatpush3.msra.mxu0 %v13662_v48 }
 0xf04   : > { %15864 = vmatprep.subr.mxu0 %v20584_v43 }
 0xf06   : > { %v13660_v1 = vpop.permute.xlu1 %13659 }
 0xf07   : > { %15865 = vmatpush3.msra.mxu0 %v13660_v1 }
 0xf08   : > { %15867 = vmatmul.mubr.msk.f32.vlgmr.msra.gmra.mxu0 %vm2406_vm1, %v11292_v3  ;;  %15876 = vmatprep.subr.mxu0 %v20584_v43 }
 0xf09   : > { %15884 = vmatprep.mubr.msk.f32.mxu0 %vm16721_vm2, %v20584_v43  ;;  %15877 = vmatpush3.msra.mxu0 %v14032_v31 }
 0xf0a   : > { %v20229_v12 = vpop.permute.xlu1 %13978  ;;  %15878 = vmatprep.subr.mxu0 %v20584_v43 }
 0xf0e   : > { %v20231_v44 = vpop.permute.xlu1 %13986 }
 0xf12   : > { %v20233_v38 = vpop.permute.xlu1 %13990 }
 0xf16   : > { %v13849_v16 = vpop.permute.xlu1 %13848 }
 0xf17   : > { %v13882_v62 = vmul.f32 %v13849_v16, %v20660_v60 }
 0xf19   : > { %v13890_v18 = vsel %vm601_vm0, %v13882_v62, 0.0 }
 0xf1a   : > { %v13891_v41 = vadd.f32 %v13890_v18, %v13889_v7  ;;  %v13854_v15 = vpop.permute.xlu1 %13853 }
 0xf1b   : > { %v13883_v34 = vmul.f32 %v13854_v15, %v20662_v35 }
 0xf1c   : > { %v13892_v40 = vrot.slane %v13891_v41, 4 }
 0xf1d   : > { %v13898_v56 = vsel %vm601_vm0, %v13883_v34, 0.0 }
 0xf1e   : > { %v13900_v20 = vadd.f32 %v13899_v24, %v13898_v56  ;;  %v13864_v2 = vpop.permute.xlu1 %13863  ;;  %v13893_v4 = vadd.f32 %v13892_v40, %v13891_v41  ;;  %v14029_v56 = vld [vmem:[%s20345_s10 + $0x20] sm:$0xff] }
 0xf1f   : > { %v13885_v49 = vmul.f32 %v13864_v2, %v20664_v58 }
 0xf20   : > { %v13901_v39 = vrot.slane %v13900_v20, 4  ;;  %v13894_v53 = vrot.slane %v13893_v4, 2 }
 0xf21   : > { %v13907_v19 = vsel %vm601_vm0, %v13885_v49, 0.0 }
 0xf22   : > { %v13902_v21 = vadd.f32 %v13901_v39, %v13900_v20  ;;  %v13909_v50 = vadd.f32 %v13908_v25, %v13907_v19  ;;  %v13874_v10 = vpop.permute.xlu1 %13873  ;;  %v13895_v61 = vadd.f32 %v13894_v53, %v13893_v4 }
 0xf23   : > { %v13887_v26 = vmul.f32 %v13874_v10, %v20666_v30 }
 0xf24   : > { %v13903_v28 = vrot.slane %v13902_v21, 2  ;;  %v13910_v54 = vrot.slane %v13909_v50, 4  ;;  %v13896_v17 = vrot.slane %v13895_v61, 1 }
 0xf25   : > { %v13916_v29 = vsel %vm601_vm0, %v13887_v26, 0.0 }
 0xf26   : > { %v13904_v36 = vadd.f32 %v13903_v28, %v13902_v21  ;;  %v13911_v37 = vadd.f32 %v13910_v54, %v13909_v50  ;;  %v13918_v55 = vadd.f32 %v13917_v46, %v13916_v29  ;;  %v13897_v52 = vadd.f32 %v13896_v17, %v13895_v61 }
 0xf28   : > { %v13912_v8 = vrot.slane %v13911_v37, 2  ;;  %v13919_v63 = vrot.slane %v13918_v55, 4  ;;  %v13905_v23 = vrot.slane %v13904_v36, 1 }
 0xf2a   : > { %v13913_v47 = vadd.f32 %v13912_v8, %v13911_v37  ;;  %v13920_v48 = vadd.f32 %v13919_v63, %v13918_v55  ;;  %v13906_v1 = vadd.f32 %v13905_v23, %v13904_v36  ;;  %v14644_v37 = vld [vmem:[%s20347_s12 + $0x2] ss:$0 sm:$0xff] }
 0xf2c   : > { %v13914_v45 = vrot.slane %v13913_v47, 1  ;;  %v13921_v3 = vrot.slane %v13920_v48, 2  ;;  %v14123_v7 = vsel %vm14041_vm3, %v13906_v1, %v13897_v52 }
 0xf2e   : > { %v13922_v5 = vadd.f32 %v13921_v3, %v13920_v48  ;;  %v13915_v27 = vadd.f32 %v13914_v45, %v13913_v47 }
 0xf2f   : > { %v12391_v57 = vpop.f32.mrf.mxu1 }
 0xf30   : > { %v13923_v16 = vrot.slane %v13922_v5, 1  ;;  %v12554_v60 = vadd.f32 %v12391_v57, %v20118_v32  ;;  %v14124_v59 = vsel %vm14043_vm4, %v13915_v27, %v14123_v7  ;;  %v13928_v57 = vpop.permute.xlu1 %13927  ;;  %v13933_v7 = vpop.permute.xlu0 %13932 }
 0xf31   : > { %v15749_v62 = vpop.f32.mrf.mxu1 }
 0xf32   : > { %v13924_v6 = vadd.f32 %v13923_v16, %v13922_v5 }
 0xf34   : > { %v14125_v13 = vsel %vm14045_vm5, %v13924_v6, %v14124_v59 }
 0xf35   : > { %15896 = vmatmul.mubr.msk.f32.vlgmr.msra.gmra.mxu1 %vm601_vm0, %v14125_v13  ;;  %v13938_v13 = vpop.permute.xlu1 %13937 }
 0xf3a   : > { %v12470_v18 = vpop.f32.mrf.mxu0 }
 0xf3b   : > { %v12555_v41 = vadd.f32 %v12470_v18, %v20124_v14  ;;  %v14031_v14 = vld [vmem:[%s20345_s10 + $0x30] sm:$0xff] }
 0xf3c   : > { %v15756_v15 = vpop.f32.mrf.mxu0  ;;  %15879 = vmatpush3.msra.mxu0 %v14031_v14 }
 0xf3d   : > { %15880 = vmatprep.subr.mxu0 %v20584_v43 }
 0xf3f   : > { %v12626_v35 = vpop.f32.mrf.mxu0 }
 0xf40   : > { %v12849_v34 = vadd.f32 %v12626_v35, %v20219_v11  ;;  %v14030_v11 = vld [vmem:[%s20345_s10 + $0x28] sm:$0xff]  ;;  %v20667_v35 = vld [vmem:[#allocation6_spill] sm:$0xff] }
 0xf41   : > { %v15770_v32 = vpop.f32.mrf.mxu0  ;;  %15881 = vmatpush3.msra.mxu0 %v14030_v11  ;;  %v20669_v11 = vld [vmem:[#allocation55_spill] sm:$0xff] }
 0xf42   : > { %15882 = vmatprep.subr.mxu0 %v20584_v43  ;;  %v13945_v32 = vmul.f32 %v13928_v57, %v20667_v35 }
 0xf43   : > { %v12772_v40 = vpop.f32.mrf.mxu0  ;;  %15883 = vmatpush3.msra.mxu0 %v14029_v56  ;;  %v13946_v56 = vmul.f32 %v13933_v7, %v20669_v11  ;;  %v14036_v11 = vld [vmem:[%s20345_s10 + $0x58] sm:$0xff] }
 0xf44   : > { %v20258_v24 = vadd.f32 %v12772_v40, %v12555_v41  ;;  %15898 = vmatprep.subr.mxu0 %v20584_v43 }
 0xf45   : > { %v15784_v33 = vpop.f32.mrf.mxu0 }
 0xf46   : > { %v20668_v33 = vld [vmem:[#allocation5_spill] sm:$0xff] }
 0xf47   : > { %v13947_v31 = vmul.f32 %v13938_v13, %v20668_v33 }
 0xf67   : > { %v12549_v9 = vpop.f32.mrf.mxu1 }
 0xf68   : > { %v12556_v20 = vadd.f32 %v12549_v9, %v20190_v22 }
 0xf69   : > { %v15763_v2 = vpop.f32.mrf.mxu1 }
 0xf6c   : > { %v12699_v58 = vpop.f32.mrf.mxu1 }
 0xf6d   : > { %v12850_v49 = vadd.f32 %v12699_v58, %v12554_v60 }
 0xf6e   : > { %v15777_v4 = vpop.f32.mrf.mxu1 }
 0xf70   : > { %v12845_v39 = vpop.f32.mrf.mxu1 }
 0xf71   : > { %v12852_v25 = vadd.f32 %v12845_v39, %v12556_v20 }
 0xf72   : > { %v15791_v42 = vpop.f32.mrf.mxu1 }
 0xf73   : > { %v13956_v42 = vsel %vm601_vm0, %v13946_v56, 0.0 }
 0xf9e   : > { %v13011_v0 = vpop.f32.mrf.mxu1 }
 0xf9f   : > { %v13178_v29 = vadd.f32 %v13011_v0, %v12850_v49  ;;  %v13963_v49 = vsel %vm601_vm0, %v13947_v31, 0.0  ;;  %v20670_v0 = vld [vmem:[#allocation4_spill] sm:$0xff] }
 0xfa0   : > { %v12930_v19 = vpop.f32.mrf.mxu0  ;;  %v15805_v21 = vpop.f32.mrf.mxu1 }
 0xfa1   : > { %v13177_v62 = vadd.f32 %v12930_v19, %v12849_v34  ;;  %v13943_v34 = vpop.permute.xlu0 %13942 }
 0xfa2   : > { %v15798_v50 = vpop.f32.mrf.mxu0  ;;  %v13173_v10 = vpop.f32.mrf.mxu1  ;;  %v13948_v19 = vmul.f32 %v13943_v34, %v20670_v0 }
 0xfa3   : > { %v13180_v47 = vadd.f32 %v13173_v10, %v12852_v25 }
 0xfa4   : > { %v15819_v30 = vpop.f32.mrf.mxu1 }
 0xfa7   : > { %v13335_v26 = vpop.f32.mrf.mxu1 }
 0xfa8   : > { %v13498_v36 = vadd.f32 %v13335_v26, %v13178_v29  ;;  %v13970_v29 = vsel %vm601_vm0, %v13948_v19, 0.0 }
 0xfa9   : > { %v13092_v53 = vpop.f32.mrf.mxu0  ;;  %v15833_v28 = vpop.f32.mrf.mxu1 }
 0xfaa   : > { %v13179_v20 = vadd.f32 %v13092_v53, %v20258_v24  ;;  %v13964_v24 = vrot.slane %v13963_v49, 4  ;;  %v13957_v28 = vrot.slane %v13956_v42, 4 }
 0xfab   : > { %v15812_v54 = vpop.f32.mrf.mxu0  ;;  %v13493_v46 = vpop.f32.mrf.mxu1 }
 0xfac   : > { %v13500_v45 = vadd.f32 %v13493_v46, %v13180_v47  ;;  %v13971_v47 = vrot.slane %v13970_v29, 4 }
 0xfad   : > { %v15847_v22 = vpop.f32.mrf.mxu1 }
 0xfb0   : > { %v13655_v55 = vpop.f32.mrf.mxu1 }
 0xfb1   : > { %v13818_v61 = vadd.f32 %v13655_v55, %v13498_v36 }
 0xfb2   : > { %v13256_v8 = vpop.f32.mrf.mxu0  ;;  %v15861_v63 = vpop.f32.mrf.mxu1 }
 0xfb3   : > { %v13826_v23 = vadd.f32 %v14644_v37, %v13818_v61  ;;  %v13497_v59 = vadd.f32 %v13256_v8, %v13177_v62  ;;  %v13965_v61 = vadd.f32 %v13964_v24, %v13963_v49  ;;  %v14648_v24 = vld [vmem:[%s20349_s14] ss:$0 sm:$0xff] }
 0xfb4   : > { %v15826_v48 = vpop.f32.mrf.mxu0  ;;  %v13813_v17 = vpop.f32.mrf.mxu1 }
 0xfb5   : > { %v13994_v1 = vmul.f32 %v20223_v51, %v13826_v23  ;;  %v13820_v5 = vadd.f32 %v13813_v17, %v13500_v45  ;;  %v13958_v23 = vadd.f32 %v13957_v28, %v13956_v42  ;;  %v20671_v28 = vld [vmem:[#allocation25_spill] sm:$0xff] }
 0xfb6   : > { %v15875_v3 = vpop.f32.mrf.mxu1 }
 0xfb7   : > { %v14004_v16 = vsel %vm601_vm0, %v13994_v1, 0.0  ;;  %v13828_v60 = vadd.f32 %v14644_v37, %v13820_v5  ;;  %v13966_v5 = vrot.slane %v13965_v61, 2 }
 0xfb8   : > { %v13414_v27 = vpop.f32.mrf.mxu0  ;;  %v14005_v6 = vrot.slane %v14004_v16, 4 }
 0xfb9   : > { %v13996_v18 = vmul.f32 %v20233_v38, %v13828_v60  ;;  %v13949_v38 = vsel %vm601_vm0, %v13945_v32, 0.0  ;;  %v13499_v39 = vadd.f32 %v13414_v27, %v13179_v20  ;;  %v13967_v7 = vadd.f32 %v13966_v5, %v13965_v61  ;;  %v14035_v20 = vld [vmem:[%s20345_s10 + $0x50] sm:$0xff] }
 0xfba   : > { %v15840_v52 = vpop.f32.mrf.mxu0  ;;  %v14006_v40 = vadd.f32 %v14005_v6, %v14004_v16  ;;  %v13950_v10 = vrot.slane %v13949_v38, 4  ;;  %v13972_v16 = vadd.f32 %v13971_v47, %v13970_v29 }
 0xfbb   : > { %v14018_v9 = vsel %vm601_vm0, %v13996_v18, 0.0  ;;  %v13959_v52 = vrot.slane %v13958_v23, 2  ;;  %v13968_v32 = vrot.slane %v13967_v7, 1 }
 0xfbc   : > { %v14007_v58 = vrot.slane %v14006_v40, 2  ;;  %v14019_v4 = vrot.slane %v14018_v9, 4  ;;  %v13951_v36 = vadd.f32 %v13950_v10, %v13949_v38  ;;  %v13973_v18 = vrot.slane %v13972_v16, 2 }
 0xfbd   : > { %v13960_v13 = vadd.f32 %v13959_v52, %v13958_v23  ;;  %v13969_v34 = vadd.f32 %v13968_v32, %v13967_v7 }
 0xfbe   : > { %v14008_v26 = vadd.f32 %v14007_v58, %v14006_v40  ;;  %v14020_v54 = vadd.f32 %v14019_v4, %v14018_v9  ;;  %v13952_v1 = vrot.slane %v13951_v36, 2  ;;  %v13974_v33 = vadd.f32 %v13973_v18, %v13972_v16  ;;  %v14034_v58 = vld [vmem:[%s20345_s10 + $0x48] sm:$0xff]  ;;  %v14033_v4 = vld [vmem:[%s20345_s10 + $0x40] sm:$0xff] }
 0xfc0   : > { %v13576_v41 = vpop.f32.mrf.mxu0  ;;  %v14009_v8 = vrot.slane %v14008_v26, 1  ;;  %v14021_v48 = vrot.slane %v14020_v54, 2  ;;  %v13953_v6 = vadd.f32 %v13952_v1, %v13951_v36  ;;  %v13975_v38 = vrot.slane %v13974_v33, 1 }
 0xfc1   : > { %v13817_v15 = vadd.f32 %v13576_v41, %v13497_v59 }
 0xfc2   : > { %v15854_v51 = vpop.f32.mrf.mxu0  ;;  %v14010_v27 = vadd.f32 %v14009_v8, %v14008_v26  ;;  %v14022_v60 = vadd.f32 %v14021_v48, %v14020_v54  ;;  %v13954_v35 = vrot.slane %v13953_v6, 1 }
 0xfc3   : > { %v13825_v14 = vadd.f32 %v14644_v37, %v13817_v15  ;;  %v13961_v51 = vrot.slane %v13960_v13, 1 }
 0xfc4   : > { %v14023_v41 = vrot.slane %v14022_v60, 1  ;;  %v13955_v56 = vadd.f32 %v13954_v35, %v13953_v6 }
 0xfc5   : > { %v13993_v2 = vmul.f32 %v20229_v12, %v13825_v14 }
 0xfc6   : > { %v14024_v31 = vadd.f32 %v14023_v41, %v14022_v60 }
 0xfc7   : > { %v13997_v25 = vsel %vm601_vm0, %v13993_v2, 0.0  ;;  %v13962_v2 = vadd.f32 %v13961_v51, %v13960_v13 }
 0xfc8   : > { %v13998_v21 = vrot.slane %v13997_v25, 4  ;;  %v13734_v50 = vpop.f32.mrf.mxu0 }
 0xfc9   : > { %v13819_v30 = vadd.f32 %v13734_v50, %v13499_v39  ;;  %v14202_v49 = vsel %vm14041_vm3, %v13962_v2, %v13955_v56 }
 0xfca   : > { %v13999_v12 = vadd.f32 %v13998_v21, %v13997_v25  ;;  %v15868_v53 = vpop.f32.mrf.mxu0  ;;  %v14203_v39 = vsel %vm14043_vm4, %v13969_v34, %v14202_v49  ;;  %v13976_v25 = vadd.f32 %v13975_v38, %v13974_v33 }
 0xfcb   : > { %v13827_v46 = vadd.f32 %v14644_v37, %v13819_v30 }
 0xfcc   : > { %v14000_v22 = vrot.slane %v13999_v12, 2  ;;  %v14204_v42 = vsel %vm14045_vm5, %v13976_v25, %v14203_v39 }
 0xfcd   : > { %v13995_v55 = vmul.f32 %v20231_v44, %v13827_v46 }
 0xfce   : > { %v14001_v63 = vadd.f32 %v14000_v22, %v13999_v12 }
 0xfcf   : > { %v14011_v17 = vsel %vm601_vm0, %v13995_v55, 0.0 }
 0xfd0   : > { %v14002_v45 = vrot.slane %v14001_v63, 1  ;;  %v14012_v3 = vrot.slane %v14011_v17, 4 }
 0xfd2   : > { %v14003_v37 = vadd.f32 %v14002_v45, %v14001_v63  ;;  %v14013_v57 = vadd.f32 %v14012_v3, %v14011_v17 }
 0xfd4   : > { %v14014_v62 = vrot.slane %v14013_v57, 2  ;;  %v14042_v44 = vsel %vm14041_vm3, %v14010_v27, %v14003_v37 }
 0xfd6   : > { %v14015_v59 = vadd.f32 %v14014_v62, %v14013_v57 }
 0xfd8   : > { %v14016_v15 = vrot.slane %v14015_v59, 1 }
 0xfda   : > { %v14017_v40 = vadd.f32 %v14016_v15, %v14015_v59 }
 0xfdc   : > { %v14044_v14 = vsel %vm14043_vm4, %v14017_v40, %v14042_v44 }
 0xfdd   : > { %v14046_v9 = vsel %vm14045_vm5, %v14024_v31, %v14044_v14 }
 0xfde   : > { %15885 = vmatmul.mubr.msk.f32.vlgmr.msra.gmra.mxu0 %vm601_vm0, %v14046_v9 }
 0xfdf   : > { %15899 = vmatpush3.msra.mxu0 %v14036_v11  ;;  %15906 = vmatprep.mubr.msk.f32.mxu0 %vm16721_vm2, %v20584_v43 }
 0xfe0   : > { %15900 = vmatprep.subr.mxu0 %v20584_v43 }
 0xfe1   : > { %15901 = vmatpush3.msra.mxu0 %v14035_v20 }
 0xfe2   : > { %15902 = vmatprep.subr.mxu0 %v20584_v43 }
 0xfe3   : > { %15903 = vmatpush3.msra.mxu0 %v14034_v58 }
 0xfe4   : > { %15904 = vmatprep.subr.mxu0 %v20584_v43 }
 0xfe5   : > { %15905 = vmatpush3.msra.mxu0 %v14033_v4 }
 0xfe6   : > { %15907 = vmatmul.mubr.msk.f32.vlgmr.msra.gmra.mxu0 %vm601_vm0, %v14204_v42 }
 0xff5   : > { %v14194_v0 = vpop.f32.mrf.mxu1 }
 0xff7   : > { %v15897_v19 = vpop.f32.mrf.mxu1 }
0x109e   : > { %v14115_v21 = vpop.f32.mrf.mxu0 }
0x109f   : > { %v14195_v10 = vadd.f32 %v14194_v0, %v14115_v21 }
0x10a0   : > { %v15886_v50 = vpop.f32.mrf.mxu0 }
0x10a6   : > { %v14273_v30 = vpop.f32.mrf.mxu0 }
0x10a7   : > { %v14277_v26 = vadd.f32 %v14273_v30, %v14195_v10 }
0x10a8   : > { %v15908_v12 = vpop.f32.mrf.mxu0 }
0x10a9   : > { %v14285_v53 = vadd.f32 %v14648_v24, %v14277_v26 }
0x10ab   : > { %v14293_v43 = vrot.slane %v14285_v53, %v20671_v28 }
0x10ad   : > { %v14294_v54 = vcombine.high %v14293_v43, %v14293_v43  ;;  %v14301_v46 = vrot.slane %v14293_v43, %v20671_v28 }
0x10af   : > { %v14308_v29 = vrot.slane %v14294_v54, %v20671_v28  ;;  %v14309_v22 = vcombine.high %v14301_v46, %v14301_v46  ;;  %14316 = vst.msk [vmem:[%s566_s19] sm:$0x1] %vm14315_vm6, %v14301_v46 }
0x10b1   : > { %v14310_v36 = vcombine.high %v14308_v29, %v14308_v29  ;;  %14317 = vst.msk [vmem:[%s566_s19 + $0x1] sm:$0x1] %vm14315_vm6, %v14308_v29  ;;  %14318 = vst.msk [vmem:[%s566_s19 + $0x2] sm:$0x1] %vm14315_vm6, %v14309_v22 }
0x10b3   : > { %14319 = vst.msk [vmem:[%s566_s19 + $0x3] sm:$0x1] %vm14315_vm6, %v14310_v36 }
0x10b4 PF: > { %s25_s18 = sadd.s32 1, %s16711_s18  }
0x10b5   : > { %p22_p4 = scmp.ge.s32.totalorder %s25_s18, 4  }
0x10b7   :  { %24 = sbr.rel (!%p22_p4) target bundleno = 1 (0x1), region = 122 }

</bundles_post_ra>
